<compile_context>
chip_gen: v5e
topology: v5e:2x2
jax: 0.10.0
libtpu: 0.0.40
codegen_flags: <defaults>
</compile_context>

<pallas_src>
import functools

import jax
import jax.numpy as jnp
import numpy as np
from jax.experimental import pallas as pl
from jax.experimental.pallas import tpu as pltpu

EPS = 1e-5


def _make_tap_masks(height, width):
    """(9, H*W, 1) f32 masks: 1 where the 3x3 tap's source pixel is in bounds (zero pad)."""
    h = np.arange(height)[:, None]
    w = np.arange(width)[None, :]
    ms = []
    for dy in (-1, 0, 1):
        for dx in (-1, 0, 1):
            valid = (h + dy >= 0) & (h + dy < height) & (w + dx >= 0) & (w + dx < width)
            ms.append(valid.astype(np.float32).reshape(height * width))
    return jnp.asarray(np.stack(ms, axis=0).reshape(9, height * width, 1))


# -----------------------------------------------------------------------------
# Kernel 1: braided 3x3 conv (pad 1, stride 1, no bias) + per-image BN partials.
# Uses the sum/diff form: u = x1+x2, v = x1-x2, Ws = 0.5(Wa+Wb), Wd = 0.5(Wa-Wb);
#   s = conv(u, Ws), d = conv(v, Wd), y1 = s + d, y2 = s - d.
# -----------------------------------------------------------------------------
def _braid_conv_kernel(u_ref, v_ref, ws_ref, wd_ref, mask_ref,
                       y1_ref, y2_ref, ssum_ref, ssq_ref, *, width):
    hw = u_ref.shape[1]
    cout = y1_ref.shape[-1]

    u = u_ref[0]                        # (HW, Cin) == x1 + x2
    v = v_ref[0]                        # (HW, Cin) == x1 - x2

    acc_s = jnp.zeros((hw, cout), dtype=jnp.float32)
    acc_d = jnp.zeros((hw, cout), dtype=jnp.float32)

    for k in range(9):                  # static unroll over the 3x3 taps
        dy = k // 3 - 1
        dx = k % 3 - 1
        off = dy * width + dx
        if off == 0:
            su, sv = u, v
        else:
            # cyclic shift so that shifted[p] == x[p + off]; wrapped rows are masked below
            su = jnp.roll(u, -off, axis=0)
            sv = jnp.roll(v, -off, axis=0)
        m = mask_ref[k]                 # (HW, 1) zero-padding boundary mask
        acc_s = acc_s + jnp.dot(su * m, ws_ref[k], preferred_element_type=jnp.float32)
        acc_d = acc_d + jnp.dot(sv * m, wd_ref[k], preferred_element_type=jnp.float32)

    y1_ref[0] = acc_s + acc_d
    y2_ref[0] = acc_s - acc_d
    # Per-image per-channel partial sums for the pair-shared BatchNorm (both streams):
    #   sum(y1 + y2) = 2 * sum(s),  sum(y1^2 + y2^2) = 2 * sum(s^2 + d^2)
    ssum_ref[0] = 2.0 * jnp.sum(acc_s, axis=0, keepdims=True)
    ssq_ref[0] = 2.0 * jnp.sum(acc_s * acc_s + acc_d * acc_d, axis=0, keepdims=True)


# -----------------------------------------------------------------------------
# Kernel 2: folded BN affine (scale/shift) + ReLU + 2x2 stride-2 max pool, both
# streams in one call.  Input view per image: (H/2, 2, W/2, 2C); H pair = untiled
# dim, W pair = lane halves.
# -----------------------------------------------------------------------------
def _bn_relu_pool_kernel(y1_ref, y2_ref, scale_ref, shift_ref, o1_ref, o2_ref):
    c = o1_ref.shape[-1]
    scale = scale_ref[...]
    shift = shift_ref[...]

    def one(y_ref, o_ref):
        z = y_ref[0]                                              # (H/2, 2, W/2, 2C)
        z = jnp.maximum(z * scale + shift, 0.0)                   # BN affine + ReLU
        a = jnp.maximum(z[:, 0], z[:, 1])                         # pool the H pair
        o_ref[0] = jnp.maximum(a[:, :, :c], a[:, :, c:])          # pool the W pair

    one(y1_ref, o1_ref)
    one(y2_ref, o2_ref)


def braid_block_forward(x1, x2, w_a, w_b, gamma, beta, *, eps=EPS):
    """BraidBlock forward (kernel=(3,3), stride=(1,1), gap=False) on an NCHW pair."""
    N, Cin, H, W = x1.shape
    Cout = w_a.shape[0]
    HW = H * W
    assert H % 2 == 0 and W % 2 == 0, "MaxPool2d(2,2) path expects even H, W"

    # Boundary layout pass: NCHW -> channels-last flattened (kernels compute in (HW, C)),
    # plus the braid sum/diff inputs.
    x1f = jnp.transpose(x1, (0, 2, 3, 1)).reshape(N, HW, Cin).astype(jnp.float32)
    x2f = jnp.transpose(x2, (0, 2, 3, 1)).reshape(N, HW, Cin).astype(jnp.float32)
    u = x1f + x2f
    v = x1f - x2f

    # (Cout, Cin, 3, 3) -> (9, Cin, Cout), tap-major (ky*3 + kx); fold the 1/2 of the
    # sum/diff decomposition into the weights.
    wa_m = jnp.transpose(w_a, (2, 3, 1, 0)).reshape(9, Cin, Cout).astype(jnp.float32)
    wb_m = jnp.transpose(w_b, (2, 3, 1, 0)).reshape(9, Cin, Cout).astype(jnp.float32)
    ws = 0.5 * (wa_m + wb_m)
    wd = 0.5 * (wa_m - wb_m)

    masks = _make_tap_masks(H, W)

    y1, y2, ssum, ssq = pl.pallas_call(
        functools.partial(_braid_conv_kernel, width=W),
        out_shape=(
            jax.ShapeDtypeStruct((N, HW, Cout), jnp.float32),
            jax.ShapeDtypeStruct((N, HW, Cout), jnp.float32),
            jax.ShapeDtypeStruct((N, 1, Cout), jnp.float32),
            jax.ShapeDtypeStruct((N, 1, Cout), jnp.float32),
        ),
        grid=(N,),
        in_specs=[
            pl.BlockSpec((1, HW, Cin), lambda n: (n, 0, 0)),
            pl.BlockSpec((1, HW, Cin), lambda n: (n, 0, 0)),
            pl.BlockSpec((9, Cin, Cout), lambda n: (0, 0, 0)),
            pl.BlockSpec((9, Cin, Cout), lambda n: (0, 0, 0)),
            pl.BlockSpec((9, HW, 1), lambda n: (0, 0, 0)),
        ],
        out_specs=[
            pl.BlockSpec((1, HW, Cout), lambda n: (n, 0, 0)),
            pl.BlockSpec((1, HW, Cout), lambda n: (n, 0, 0)),
            pl.BlockSpec((1, 1, Cout), lambda n: (n, 0, 0)),
            pl.BlockSpec((1, 1, Cout), lambda n: (n, 0, 0)),
        ],
        compiler_params=pltpu.CompilerParams(dimension_semantics=("parallel",)),
    )(u, v, ws, wd, masks)

    # Pair-shared BatchNorm2d statistics (training mode, biased variance), affine folded
    # into per-channel scale/shift so kernel 2 is one fused multiply-add per element.
    cnt = 2.0 * N * HW
    mean = jnp.sum(ssum, axis=(0, 1)) / cnt
    var = jnp.maximum(jnp.sum(ssq, axis=(0, 1)) / cnt - mean * mean, 0.0)
    inv_std = jax.lax.rsqrt(var + eps)
    scale = gamma.astype(jnp.float32) * inv_std
    shift = beta.astype(jnp.float32) - mean * scale
    # TODO(synk): WBatchNorm2d's running-stats (momentum) update is training-time
    # bookkeeping that does not affect the returned activations; not emitted here.

    # Duplicate per-channel params so they broadcast over the (W/2, 2C) lane-halves view.
    scale2 = jnp.concatenate([scale, scale]).reshape(1, 2 * Cout)
    shift2 = jnp.concatenate([shift, shift]).reshape(1, 2 * Cout)

    H2, W2 = H // 2, W // 2
    y1v = y1.reshape(N, H2, 2, W2, 2 * Cout)   # free contiguous view of (N, H, W, C)
    y2v = y2.reshape(N, H2, 2, W2, 2 * Cout)

    o1, o2 = pl.pallas_call(
        _bn_relu_pool_kernel,
        out_shape=(
            jax.ShapeDtypeStruct((N, H2, W2, Cout), jnp.float32),
            jax.ShapeDtypeStruct((N, H2, W2, Cout), jnp.float32),
        ),
        grid=(N,),
        in_specs=[
            pl.BlockSpec((1, H2, 2, W2, 2 * Cout), lambda n: (n, 0, 0, 0, 0)),
            pl.BlockSpec((1, H2, 2, W2, 2 * Cout), lambda n: (n, 0, 0, 0, 0)),
            pl.BlockSpec((1, 2 * Cout), lambda n: (0, 0)),
            pl.BlockSpec((1, 2 * Cout), lambda n: (0, 0)),
        ],
        out_specs=[
            pl.BlockSpec((1, H2, W2, Cout), lambda n: (n, 0, 0, 0)),
            pl.BlockSpec((1, H2, W2, Cout), lambda n: (n, 0, 0, 0)),
        ],
        compiler_params=pltpu.CompilerParams(dimension_semantics=("parallel",)),
    )(y1v, y2v, scale2, shift2)

    # TODO(synk): gap=True (AdaptiveAvgPool2d(1)) branch of BraidBlock is not used by the
    # default ctor and is not implemented here.
    return jnp.transpose(o1, (0, 3, 1, 2)), jnp.transpose(o2, (0, 3, 1, 2))


def _braid_block_ref(x1, x2, w_a, w_b, gamma, beta, eps=EPS):
    """Pure-JAX reference mirroring the PyTorch BraidBlock forward (training-mode BN)."""
    dn = ("NCHW", "OIHW", "NCHW")
    conv = lambda x, w: jax.lax.conv_general_dilated(
        x, w, window_strides=(1, 1), padding=((1, 1), (1, 1)),
        dimension_numbers=dn, precision=jax.lax.Precision.HIGHEST)
    y1 = conv(x1, w_a) + conv(x2, w_b)
    y2 = conv(x2, w_a) + conv(x1, w_b)
    y = jnp.concatenate([y1, y2], axis=0)            # WBatchNorm2d: stats shared over pair
    mean = jnp.mean(y, axis=(0, 2, 3), keepdims=True)
    var = jnp.mean((y - mean) ** 2, axis=(0, 2, 3), keepdims=True)
    yn = (y - mean) / jnp.sqrt(var + eps)
    yn = yn * gamma.reshape(1, -1, 1, 1) + beta.reshape(1, -1, 1, 1)
    yn = jnp.maximum(yn, 0.0)
    pooled = jax.lax.reduce_window(yn, -jnp.inf, jax.lax.max,
                                   (1, 1, 2, 2), (1, 1, 2, 2), "VALID")
    n = x1.shape[0]
    return pooled[:n], pooled[n:]


if __name__ == "__main__":
    N, Cin, Cout, H, W = 2, 4, 8, 16, 16
    key = jax.random.PRNGKey(0)
    k1, k2, k3, k4 = jax.random.split(key, 4)
    x1 = jax.random.normal(k1, (N, Cin, H, W), dtype=jnp.float32)
    x2 = jax.random.normal(k2, (N, Cin, H, W), dtype=jnp.float32)
    w_a = 0.2 * jax.random.normal(k3, (Cout, Cin, 3, 3), dtype=jnp.float32)
    w_b = 0.2 * jax.random.normal(k4, (Cout, Cin, 3, 3), dtype=jnp.float32)
    gamma = 1.0 + 0.1 * jnp.arange(Cout, dtype=jnp.float32)
    beta = 0.01 * jnp.arange(Cout, dtype=jnp.float32)

    fwd = jax.jit(braid_block_forward)
    o1, o2 = fwd(x1, x2, w_a, w_b, gamma, beta)
    o1, o2 = jax.block_until_ready((o1, o2))

    r1, r2 = _braid_block_ref(x1, x2, w_a, w_b, gamma, beta)
    assert o1.shape == (N, Cout, H // 2, W // 2) and o2.shape == (N, Cout, H // 2, W // 2)
    assert jnp.allclose(o1, r1, atol=3e-2, rtol=3e-2), float(jnp.max(jnp.abs(o1 - r1)))
    assert jnp.allclose(o2, r2, atol=3e-2, rtol=3e-2), float(jnp.max(jnp.abs(o2 - r2)))

    print("KERNEL_OK")
</pallas_src>

<mosaic_0001>
module attributes {stable_mosaic.version = 11 : i64} {
  func.func @_braid_conv_kernel(%arg0: i32, %arg1: memref<1x256x4xf32, #tpu.memory_space<vmem>>, %arg2: memref<1x256x4xf32, #tpu.memory_space<vmem>>, %arg3: memref<9x4x8xf32, #tpu.memory_space<vmem>>, %arg4: memref<9x4x8xf32, #tpu.memory_space<vmem>>, %arg5: memref<9x256x1xf32, #tpu.memory_space<vmem>>, %arg6: memref<1x256x8xf32, #tpu.memory_space<vmem>>, %arg7: memref<1x256x8xf32, #tpu.memory_space<vmem>>, %arg8: memref<1x1x8xf32, #tpu.memory_space<vmem>>, %arg9: memref<1x1x8xf32, #tpu.memory_space<vmem>>) attributes {dimension_semantics = [#tpu.dimension_semantics<parallel>], iteration_bounds = array<i64: 2>, scalar_prefetch = 0 : i64, scratch_operands = 0 : i64, tpu.core_type = #tpu.core_type<tc>, window_params = [{transform_indices = @transform_0, window_bounds = array<i64: 1, 256, 4>}, {transform_indices = @transform_1, window_bounds = array<i64: 1, 256, 4>}, {pipeline_mode = #tpu.pipeline_mode<synchronous>, transform_indices = @transform_2, window_bounds = array<i64: 9, 4, 8>}, {pipeline_mode = #tpu.pipeline_mode<synchronous>, transform_indices = @transform_3, window_bounds = array<i64: 9, 4, 8>}, {pipeline_mode = #tpu.pipeline_mode<synchronous>, transform_indices = @transform_4, window_bounds = array<i64: 9, 256, 1>}, {transform_indices = @transform_5, window_bounds = array<i64: 1, 256, 8>}, {transform_indices = @transform_6, window_bounds = array<i64: 1, 256, 8>}, {transform_indices = @transform_7, window_bounds = array<i64: 1, 1, 8>}, {transform_indices = @transform_8, window_bounds = array<i64: 1, 1, 8>}]} {
    %c0 = arith.constant 0 : index
    %c0_0 = arith.constant 0 : index
    %c0_1 = arith.constant 0 : index
    %0 = vector.load %arg1[%c0, %c0_0, %c0_1] : memref<1x256x4xf32, #tpu.memory_space<vmem>>, vector<1x256x4xf32>
    %1 = vector.shape_cast %0 : vector<1x256x4xf32> to vector<256x4xf32>
    %c0_2 = arith.constant 0 : index
    %c0_3 = arith.constant 0 : index
    %c0_4 = arith.constant 0 : index
    %2 = vector.load %arg2[%c0_2, %c0_3, %c0_4] : memref<1x256x4xf32, #tpu.memory_space<vmem>>, vector<1x256x4xf32>
    %3 = vector.shape_cast %2 : vector<1x256x4xf32> to vector<256x4xf32>
    %cst = arith.constant 0.000000e+00 : f32
    %4 = vector.broadcast %cst : f32 to vector<256x8xf32>
    %cst_5 = arith.constant 0.000000e+00 : f32
    %5 = vector.broadcast %cst_5 : f32 to vector<256x8xf32>
    %6 = vector.extract_strided_slice %1 {offsets = [239, 0], sizes = [17, 4], strides = [1, 1]} : vector<256x4xf32> to vector<17x4xf32>
    %7 = vector.extract_strided_slice %1 {offsets = [0, 0], sizes = [239, 4], strides = [1, 1]} : vector<256x4xf32> to vector<239x4xf32>
    %8 = tpu.concatenate %6, %7 in 0 : vector<17x4xf32>, vector<239x4xf32> -> vector<256x4xf32>
    %9 = vector.extract_strided_slice %3 {offsets = [239, 0], sizes = [17, 4], strides = [1, 1]} : vector<256x4xf32> to vector<17x4xf32>
    %10 = vector.extract_strided_slice %3 {offsets = [0, 0], sizes = [239, 4], strides = [1, 1]} : vector<256x4xf32> to vector<239x4xf32>
    %11 = tpu.concatenate %9, %10 in 0 : vector<17x4xf32>, vector<239x4xf32> -> vector<256x4xf32>
    %c0_6 = arith.constant 0 : index
    %c0_7 = arith.constant 0 : index
    %c0_8 = arith.constant 0 : index
    %12 = vector.load %arg5[%c0_6, %c0_7, %c0_8] : memref<9x256x1xf32, #tpu.memory_space<vmem>>, vector<1x256x1xf32>
    %13 = vector.shape_cast %12 : vector<1x256x1xf32> to vector<256x1xf32>
    %14 = vector.broadcast %13 : vector<256x1xf32> to vector<256x4xf32>
    %15 = arith.mulf %8, %14 : vector<256x4xf32>
    %c0_9 = arith.constant 0 : index
    %c0_10 = arith.constant 0 : index
    %c0_11 = arith.constant 0 : index
    %16 = vector.load %arg3[%c0_9, %c0_10, %c0_11] : memref<9x4x8xf32, #tpu.memory_space<vmem>>, vector<1x4x8xf32>
    %17 = vector.shape_cast %16 : vector<1x4x8xf32> to vector<4x8xf32>
    %cst_12 = arith.constant dense<0.000000e+00> : vector<256x8xf32>
    %18 = tpu.matmul %15, %17, %cst_12 {dimension_numbers = #tpu.dot_dimension_numbers<[1], [0], [0], [1], [0, 0, 1, 1], [], []>} : vector<256x4xf32>, vector<4x8xf32>, vector<256x8xf32> -> vector<256x8xf32>
    %19 = arith.addf %4, %18 : vector<256x8xf32>
    %20 = vector.broadcast %13 : vector<256x1xf32> to vector<256x4xf32>
    %21 = arith.mulf %11, %20 : vector<256x4xf32>
    %c0_13 = arith.constant 0 : index
    %c0_14 = arith.constant 0 : index
    %c0_15 = arith.constant 0 : index
    %22 = vector.load %arg4[%c0_13, %c0_14, %c0_15] : memref<9x4x8xf32, #tpu.memory_space<vmem>>, vector<1x4x8xf32>
    %23 = vector.shape_cast %22 : vector<1x4x8xf32> to vector<4x8xf32>
    %cst_16 = arith.constant dense<0.000000e+00> : vector<256x8xf32>
    %24 = tpu.matmul %21, %23, %cst_16 {dimension_numbers = #tpu.dot_dimension_numbers<[1], [0], [0], [1], [0, 0, 1, 1], [], []>} : vector<256x4xf32>, vector<4x8xf32>, vector<256x8xf32> -> vector<256x8xf32>
    %25 = arith.addf %5, %24 : vector<256x8xf32>
    %26 = vector.extract_strided_slice %1 {offsets = [240, 0], sizes = [16, 4], strides = [1, 1]} : vector<256x4xf32> to vector<16x4xf32>
    %27 = vector.extract_strided_slice %1 {offsets = [0, 0], sizes = [240, 4], strides = [1, 1]} : vector<256x4xf32> to vector<240x4xf32>
    %28 = tpu.concatenate %26, %27 in 0 : vector<16x4xf32>, vector<240x4xf32> -> vector<256x4xf32>
    %29 = vector.extract_strided_slice %3 {offsets = [240, 0], sizes = [16, 4], strides = [1, 1]} : vector<256x4xf32> to vector<16x4xf32>
    %30 = vector.extract_strided_slice %3 {offsets = [0, 0], sizes = [240, 4], strides = [1, 1]} : vector<256x4xf32> to vector<240x4xf32>
    %31 = tpu.concatenate %29, %30 in 0 : vector<16x4xf32>, vector<240x4xf32> -> vector<256x4xf32>
    %c1 = arith.constant 1 : index
    %c0_17 = arith.constant 0 : index
    %c0_18 = arith.constant 0 : index
    %32 = vector.load %arg5[%c1, %c0_17, %c0_18] : memref<9x256x1xf32, #tpu.memory_space<vmem>>, vector<1x256x1xf32>
    %33 = vector.shape_cast %32 : vector<1x256x1xf32> to vector<256x1xf32>
    %34 = vector.broadcast %33 : vector<256x1xf32> to vector<256x4xf32>
    %35 = arith.mulf %28, %34 : vector<256x4xf32>
    %c1_19 = arith.constant 1 : index
    %c0_20 = arith.constant 0 : index
    %c0_21 = arith.constant 0 : index
    %36 = vector.load %arg3[%c1_19, %c0_20, %c0_21] : memref<9x4x8xf32, #tpu.memory_space<vmem>>, vector<1x4x8xf32>
    %37 = vector.shape_cast %36 : vector<1x4x8xf32> to vector<4x8xf32>
    %cst_22 = arith.constant dense<0.000000e+00> : vector<256x8xf32>
    %38 = tpu.matmul %35, %37, %cst_22 {dimension_numbers = #tpu.dot_dimension_numbers<[1], [0], [0], [1], [0, 0, 1, 1], [], []>} : vector<256x4xf32>, vector<4x8xf32>, vector<256x8xf32> -> vector<256x8xf32>
    %39 = arith.addf %19, %38 : vector<256x8xf32>
    %40 = vector.broadcast %33 : vector<256x1xf32> to vector<256x4xf32>
    %41 = arith.mulf %31, %40 : vector<256x4xf32>
    %c1_23 = arith.constant 1 : index
    %c0_24 = arith.constant 0 : index
    %c0_25 = arith.constant 0 : index
    %42 = vector.load %arg4[%c1_23, %c0_24, %c0_25] : memref<9x4x8xf32, #tpu.memory_space<vmem>>, vector<1x4x8xf32>
    %43 = vector.shape_cast %42 : vector<1x4x8xf32> to vector<4x8xf32>
    %cst_26 = arith.constant dense<0.000000e+00> : vector<256x8xf32>
    %44 = tpu.matmul %41, %43, %cst_26 {dimension_numbers = #tpu.dot_dimension_numbers<[1], [0], [0], [1], [0, 0, 1, 1], [], []>} : vector<256x4xf32>, vector<4x8xf32>, vector<256x8xf32> -> vector<256x8xf32>
    %45 = arith.addf %25, %44 : vector<256x8xf32>
    %46 = vector.extract_strided_slice %1 {offsets = [241, 0], sizes = [15, 4], strides = [1, 1]} : vector<256x4xf32> to vector<15x4xf32>
    %47 = vector.extract_strided_slice %1 {offsets = [0, 0], sizes = [241, 4], strides = [1, 1]} : vector<256x4xf32> to vector<241x4xf32>
    %48 = tpu.concatenate %46, %47 in 0 : vector<15x4xf32>, vector<241x4xf32> -> vector<256x4xf32>
    %49 = vector.extract_strided_slice %3 {offsets = [241, 0], sizes = [15, 4], strides = [1, 1]} : vector<256x4xf32> to vector<15x4xf32>
    %50 = vector.extract_strided_slice %3 {offsets = [0, 0], sizes = [241, 4], strides = [1, 1]} : vector<256x4xf32> to vector<241x4xf32>
    %51 = tpu.concatenate %49, %50 in 0 : vector<15x4xf32>, vector<241x4xf32> -> vector<256x4xf32>
    %c2 = arith.constant 2 : index
    %c0_27 = arith.constant 0 : index
    %c0_28 = arith.constant 0 : index
    %52 = vector.load %arg5[%c2, %c0_27, %c0_28] : memref<9x256x1xf32, #tpu.memory_space<vmem>>, vector<1x256x1xf32>
    %53 = vector.shape_cast %52 : vector<1x256x1xf32> to vector<256x1xf32>
    %54 = vector.broadcast %53 : vector<256x1xf32> to vector<256x4xf32>
    %55 = arith.mulf %48, %54 : vector<256x4xf32>
    %c2_29 = arith.constant 2 : index
    %c0_30 = arith.constant 0 : index
    %c0_31 = arith.constant 0 : index
    %56 = vector.load %arg3[%c2_29, %c0_30, %c0_31] : memref<9x4x8xf32, #tpu.memory_space<vmem>>, vector<1x4x8xf32>
    %57 = vector.shape_cast %56 : vector<1x4x8xf32> to vector<4x8xf32>
    %cst_32 = arith.constant dense<0.000000e+00> : vector<256x8xf32>
    %58 = tpu.matmul %55, %57, %cst_32 {dimension_numbers = #tpu.dot_dimension_numbers<[1], [0], [0], [1], [0, 0, 1, 1], [], []>} : vector<256x4xf32>, vector<4x8xf32>, vector<256x8xf32> -> vector<256x8xf32>
    %59 = arith.addf %39, %58 : vector<256x8xf32>
    %60 = vector.broadcast %53 : vector<256x1xf32> to vector<256x4xf32>
    %61 = arith.mulf %51, %60 : vector<256x4xf32>
    %c2_33 = arith.constant 2 : index
    %c0_34 = arith.constant 0 : index
    %c0_35 = arith.constant 0 : index
    %62 = vector.load %arg4[%c2_33, %c0_34, %c0_35] : memref<9x4x8xf32, #tpu.memory_space<vmem>>, vector<1x4x8xf32>
    %63 = vector.shape_cast %62 : vector<1x4x8xf32> to vector<4x8xf32>
    %cst_36 = arith.constant dense<0.000000e+00> : vector<256x8xf32>
    %64 = tpu.matmul %61, %63, %cst_36 {dimension_numbers = #tpu.dot_dimension_numbers<[1], [0], [0], [1], [0, 0, 1, 1], [], []>} : vector<256x4xf32>, vector<4x8xf32>, vector<256x8xf32> -> vector<256x8xf32>
    %65 = arith.addf %45, %64 : vector<256x8xf32>
    %66 = vector.extract_strided_slice %1 {offsets = [255, 0], sizes = [1, 4], strides = [1, 1]} : vector<256x4xf32> to vector<1x4xf32>
    %67 = vector.extract_strided_slice %1 {offsets = [0, 0], sizes = [255, 4], strides = [1, 1]} : vector<256x4xf32> to vector<255x4xf32>
    %68 = tpu.concatenate %66, %67 in 0 : vector<1x4xf32>, vector<255x4xf32> -> vector<256x4xf32>
    %69 = vector.extract_strided_slice %3 {offsets = [255, 0], sizes = [1, 4], strides = [1, 1]} : vector<256x4xf32> to vector<1x4xf32>
    %70 = vector.extract_strided_slice %3 {offsets = [0, 0], sizes = [255, 4], strides = [1, 1]} : vector<256x4xf32> to vector<255x4xf32>
    %71 = tpu.concatenate %69, %70 in 0 : vector<1x4xf32>, vector<255x4xf32> -> vector<256x4xf32>
    %c3 = arith.constant 3 : index
    %c0_37 = arith.constant 0 : index
    %c0_38 = arith.constant 0 : index
    %72 = vector.load %arg5[%c3, %c0_37, %c0_38] : memref<9x256x1xf32, #tpu.memory_space<vmem>>, vector<1x256x1xf32>
    %73 = vector.shape_cast %72 : vector<1x256x1xf32> to vector<256x1xf32>
    %74 = vector.broadcast %73 : vector<256x1xf32> to vector<256x4xf32>
    %75 = arith.mulf %68, %74 : vector<256x4xf32>
    %c3_39 = arith.constant 3 : index
    %c0_40 = arith.constant 0 : index
    %c0_41 = arith.constant 0 : index
    %76 = vector.load %arg3[%c3_39, %c0_40, %c0_41] : memref<9x4x8xf32, #tpu.memory_space<vmem>>, vector<1x4x8xf32>
    %77 = vector.shape_cast %76 : vector<1x4x8xf32> to vector<4x8xf32>
    %cst_42 = arith.constant dense<0.000000e+00> : vector<256x8xf32>
    %78 = tpu.matmul %75, %77, %cst_42 {dimension_numbers = #tpu.dot_dimension_numbers<[1], [0], [0], [1], [0, 0, 1, 1], [], []>} : vector<256x4xf32>, vector<4x8xf32>, vector<256x8xf32> -> vector<256x8xf32>
    %79 = arith.addf %59, %78 : vector<256x8xf32>
    %80 = vector.broadcast %73 : vector<256x1xf32> to vector<256x4xf32>
    %81 = arith.mulf %71, %80 : vector<256x4xf32>
    %c3_43 = arith.constant 3 : index
    %c0_44 = arith.constant 0 : index
    %c0_45 = arith.constant 0 : index
    %82 = vector.load %arg4[%c3_43, %c0_44, %c0_45] : memref<9x4x8xf32, #tpu.memory_space<vmem>>, vector<1x4x8xf32>
    %83 = vector.shape_cast %82 : vector<1x4x8xf32> to vector<4x8xf32>
    %cst_46 = arith.constant dense<0.000000e+00> : vector<256x8xf32>
    %84 = tpu.matmul %81, %83, %cst_46 {dimension_numbers = #tpu.dot_dimension_numbers<[1], [0], [0], [1], [0, 0, 1, 1], [], []>} : vector<256x4xf32>, vector<4x8xf32>, vector<256x8xf32> -> vector<256x8xf32>
    %85 = arith.addf %65, %84 : vector<256x8xf32>
    %c4 = arith.constant 4 : index
    %c0_47 = arith.constant 0 : index
    %c0_48 = arith.constant 0 : index
    %86 = vector.load %arg5[%c4, %c0_47, %c0_48] : memref<9x256x1xf32, #tpu.memory_space<vmem>>, vector<1x256x1xf32>
    %87 = vector.shape_cast %86 : vector<1x256x1xf32> to vector<256x1xf32>
    %88 = vector.broadcast %87 : vector<256x1xf32> to vector<256x4xf32>
    %89 = arith.mulf %1, %88 : vector<256x4xf32>
    %c4_49 = arith.constant 4 : index
    %c0_50 = arith.constant 0 : index
    %c0_51 = arith.constant 0 : index
    %90 = vector.load %arg3[%c4_49, %c0_50, %c0_51] : memref<9x4x8xf32, #tpu.memory_space<vmem>>, vector<1x4x8xf32>
    %91 = vector.shape_cast %90 : vector<1x4x8xf32> to vector<4x8xf32>
    %cst_52 = arith.constant dense<0.000000e+00> : vector<256x8xf32>
    %92 = tpu.matmul %89, %91, %cst_52 {dimension_numbers = #tpu.dot_dimension_numbers<[1], [0], [0], [1], [0, 0, 1, 1], [], []>} : vector<256x4xf32>, vector<4x8xf32>, vector<256x8xf32> -> vector<256x8xf32>
    %93 = arith.addf %79, %92 : vector<256x8xf32>
    %94 = vector.broadcast %87 : vector<256x1xf32> to vector<256x4xf32>
    %95 = arith.mulf %3, %94 : vector<256x4xf32>
    %c4_53 = arith.constant 4 : index
    %c0_54 = arith.constant 0 : index
    %c0_55 = arith.constant 0 : index
    %96 = vector.load %arg4[%c4_53, %c0_54, %c0_55] : memref<9x4x8xf32, #tpu.memory_space<vmem>>, vector<1x4x8xf32>
    %97 = vector.shape_cast %96 : vector<1x4x8xf32> to vector<4x8xf32>
    %cst_56 = arith.constant dense<0.000000e+00> : vector<256x8xf32>
    %98 = tpu.matmul %95, %97, %cst_56 {dimension_numbers = #tpu.dot_dimension_numbers<[1], [0], [0], [1], [0, 0, 1, 1], [], []>} : vector<256x4xf32>, vector<4x8xf32>, vector<256x8xf32> -> vector<256x8xf32>
    %99 = arith.addf %85, %98 : vector<256x8xf32>
    %100 = vector.extract_strided_slice %1 {offsets = [1, 0], sizes = [255, 4], strides = [1, 1]} : vector<256x4xf32> to vector<255x4xf32>
    %101 = vector.extract_strided_slice %1 {offsets = [0, 0], sizes = [1, 4], strides = [1, 1]} : vector<256x4xf32> to vector<1x4xf32>
    %102 = tpu.concatenate %100, %101 in 0 : vector<255x4xf32>, vector<1x4xf32> -> vector<256x4xf32>
    %103 = vector.extract_strided_slice %3 {offsets = [1, 0], sizes = [255, 4], strides = [1, 1]} : vector<256x4xf32> to vector<255x4xf32>
    %104 = vector.extract_strided_slice %3 {offsets = [0, 0], sizes = [1, 4], strides = [1, 1]} : vector<256x4xf32> to vector<1x4xf32>
    %105 = tpu.concatenate %103, %104 in 0 : vector<255x4xf32>, vector<1x4xf32> -> vector<256x4xf32>
    %c5 = arith.constant 5 : index
    %c0_57 = arith.constant 0 : index
    %c0_58 = arith.constant 0 : index
    %106 = vector.load %arg5[%c5, %c0_57, %c0_58] : memref<9x256x1xf32, #tpu.memory_space<vmem>>, vector<1x256x1xf32>
    %107 = vector.shape_cast %106 : vector<1x256x1xf32> to vector<256x1xf32>
    %108 = vector.broadcast %107 : vector<256x1xf32> to vector<256x4xf32>
    %109 = arith.mulf %102, %108 : vector<256x4xf32>
    %c5_59 = arith.constant 5 : index
    %c0_60 = arith.constant 0 : index
    %c0_61 = arith.constant 0 : index
    %110 = vector.load %arg3[%c5_59, %c0_60, %c0_61] : memref<9x4x8xf32, #tpu.memory_space<vmem>>, vector<1x4x8xf32>
    %111 = vector.shape_cast %110 : vector<1x4x8xf32> to vector<4x8xf32>
    %cst_62 = arith.constant dense<0.000000e+00> : vector<256x8xf32>
    %112 = tpu.matmul %109, %111, %cst_62 {dimension_numbers = #tpu.dot_dimension_numbers<[1], [0], [0], [1], [0, 0, 1, 1], [], []>} : vector<256x4xf32>, vector<4x8xf32>, vector<256x8xf32> -> vector<256x8xf32>
    %113 = arith.addf %93, %112 : vector<256x8xf32>
    %114 = vector.broadcast %107 : vector<256x1xf32> to vector<256x4xf32>
    %115 = arith.mulf %105, %114 : vector<256x4xf32>
    %c5_63 = arith.constant 5 : index
    %c0_64 = arith.constant 0 : index
    %c0_65 = arith.constant 0 : index
    %116 = vector.load %arg4[%c5_63, %c0_64, %c0_65] : memref<9x4x8xf32, #tpu.memory_space<vmem>>, vector<1x4x8xf32>
    %117 = vector.shape_cast %116 : vector<1x4x8xf32> to vector<4x8xf32>
    %cst_66 = arith.constant dense<0.000000e+00> : vector<256x8xf32>
    %118 = tpu.matmul %115, %117, %cst_66 {dimension_numbers = #tpu.dot_dimension_numbers<[1], [0], [0], [1], [0, 0, 1, 1], [], []>} : vector<256x4xf32>, vector<4x8xf32>, vector<256x8xf32> -> vector<256x8xf32>
    %119 = arith.addf %99, %118 : vector<256x8xf32>
    %120 = vector.extract_strided_slice %1 {offsets = [15, 0], sizes = [241, 4], strides = [1, 1]} : vector<256x4xf32> to vector<241x4xf32>
    %121 = vector.extract_strided_slice %1 {offsets = [0, 0], sizes = [15, 4], strides = [1, 1]} : vector<256x4xf32> to vector<15x4xf32>
    %122 = tpu.concatenate %120, %121 in 0 : vector<241x4xf32>, vector<15x4xf32> -> vector<256x4xf32>
    %123 = vector.extract_strided_slice %3 {offsets = [15, 0], sizes = [241, 4], strides = [1, 1]} : vector<256x4xf32> to vector<241x4xf32>
    %124 = vector.extract_strided_slice %3 {offsets = [0, 0], sizes = [15, 4], strides = [1, 1]} : vector<256x4xf32> to vector<15x4xf32>
    %125 = tpu.concatenate %123, %124 in 0 : vector<241x4xf32>, vector<15x4xf32> -> vector<256x4xf32>
    %c6 = arith.constant 6 : index
    %c0_67 = arith.constant 0 : index
    %c0_68 = arith.constant 0 : index
    %126 = vector.load %arg5[%c6, %c0_67, %c0_68] : memref<9x256x1xf32, #tpu.memory_space<vmem>>, vector<1x256x1xf32>
    %127 = vector.shape_cast %126 : vector<1x256x1xf32> to vector<256x1xf32>
    %128 = vector.broadcast %127 : vector<256x1xf32> to vector<256x4xf32>
    %129 = arith.mulf %122, %128 : vector<256x4xf32>
    %c6_69 = arith.constant 6 : index
    %c0_70 = arith.constant 0 : index
    %c0_71 = arith.constant 0 : index
    %130 = vector.load %arg3[%c6_69, %c0_70, %c0_71] : memref<9x4x8xf32, #tpu.memory_space<vmem>>, vector<1x4x8xf32>
    %131 = vector.shape_cast %130 : vector<1x4x8xf32> to vector<4x8xf32>
    %cst_72 = arith.constant dense<0.000000e+00> : vector<256x8xf32>
    %132 = tpu.matmul %129, %131, %cst_72 {dimension_numbers = #tpu.dot_dimension_numbers<[1], [0], [0], [1], [0, 0, 1, 1], [], []>} : vector<256x4xf32>, vector<4x8xf32>, vector<256x8xf32> -> vector<256x8xf32>
    %133 = arith.addf %113, %132 : vector<256x8xf32>
    %134 = vector.broadcast %127 : vector<256x1xf32> to vector<256x4xf32>
    %135 = arith.mulf %125, %134 : vector<256x4xf32>
    %c6_73 = arith.constant 6 : index
    %c0_74 = arith.constant 0 : index
    %c0_75 = arith.constant 0 : index
    %136 = vector.load %arg4[%c6_73, %c0_74, %c0_75] : memref<9x4x8xf32, #tpu.memory_space<vmem>>, vector<1x4x8xf32>
    %137 = vector.shape_cast %136 : vector<1x4x8xf32> to vector<4x8xf32>
    %cst_76 = arith.constant dense<0.000000e+00> : vector<256x8xf32>
    %138 = tpu.matmul %135, %137, %cst_76 {dimension_numbers = #tpu.dot_dimension_numbers<[1], [0], [0], [1], [0, 0, 1, 1], [], []>} : vector<256x4xf32>, vector<4x8xf32>, vector<256x8xf32> -> vector<256x8xf32>
    %139 = arith.addf %119, %138 : vector<256x8xf32>
    %140 = vector.extract_strided_slice %1 {offsets = [16, 0], sizes = [240, 4], strides = [1, 1]} : vector<256x4xf32> to vector<240x4xf32>
    %141 = vector.extract_strided_slice %1 {offsets = [0, 0], sizes = [16, 4], strides = [1, 1]} : vector<256x4xf32> to vector<16x4xf32>
    %142 = tpu.concatenate %140, %141 in 0 : vector<240x4xf32>, vector<16x4xf32> -> vector<256x4xf32>
    %143 = vector.extract_strided_slice %3 {offsets = [16, 0], sizes = [240, 4], strides = [1, 1]} : vector<256x4xf32> to vector<240x4xf32>
    %144 = vector.extract_strided_slice %3 {offsets = [0, 0], sizes = [16, 4], strides = [1, 1]} : vector<256x4xf32> to vector<16x4xf32>
    %145 = tpu.concatenate %143, %144 in 0 : vector<240x4xf32>, vector<16x4xf32> -> vector<256x4xf32>
    %c7 = arith.constant 7 : index
    %c0_77 = arith.constant 0 : index
    %c0_78 = arith.constant 0 : index
    %146 = vector.load %arg5[%c7, %c0_77, %c0_78] : memref<9x256x1xf32, #tpu.memory_space<vmem>>, vector<1x256x1xf32>
    %147 = vector.shape_cast %146 : vector<1x256x1xf32> to vector<256x1xf32>
    %148 = vector.broadcast %147 : vector<256x1xf32> to vector<256x4xf32>
    %149 = arith.mulf %142, %148 : vector<256x4xf32>
    %c7_79 = arith.constant 7 : index
    %c0_80 = arith.constant 0 : index
    %c0_81 = arith.constant 0 : index
    %150 = vector.load %arg3[%c7_79, %c0_80, %c0_81] : memref<9x4x8xf32, #tpu.memory_space<vmem>>, vector<1x4x8xf32>
    %151 = vector.shape_cast %150 : vector<1x4x8xf32> to vector<4x8xf32>
    %cst_82 = arith.constant dense<0.000000e+00> : vector<256x8xf32>
    %152 = tpu.matmul %149, %151, %cst_82 {dimension_numbers = #tpu.dot_dimension_numbers<[1], [0], [0], [1], [0, 0, 1, 1], [], []>} : vector<256x4xf32>, vector<4x8xf32>, vector<256x8xf32> -> vector<256x8xf32>
    %153 = arith.addf %133, %152 : vector<256x8xf32>
    %154 = vector.broadcast %147 : vector<256x1xf32> to vector<256x4xf32>
    %155 = arith.mulf %145, %154 : vector<256x4xf32>
    %c7_83 = arith.constant 7 : index
    %c0_84 = arith.constant 0 : index
    %c0_85 = arith.constant 0 : index
    %156 = vector.load %arg4[%c7_83, %c0_84, %c0_85] : memref<9x4x8xf32, #tpu.memory_space<vmem>>, vector<1x4x8xf32>
    %157 = vector.shape_cast %156 : vector<1x4x8xf32> to vector<4x8xf32>
    %cst_86 = arith.constant dense<0.000000e+00> : vector<256x8xf32>
    %158 = tpu.matmul %155, %157, %cst_86 {dimension_numbers = #tpu.dot_dimension_numbers<[1], [0], [0], [1], [0, 0, 1, 1], [], []>} : vector<256x4xf32>, vector<4x8xf32>, vector<256x8xf32> -> vector<256x8xf32>
    %159 = arith.addf %139, %158 : vector<256x8xf32>
    %160 = vector.extract_strided_slice %1 {offsets = [17, 0], sizes = [239, 4], strides = [1, 1]} : vector<256x4xf32> to vector<239x4xf32>
    %161 = vector.extract_strided_slice %1 {offsets = [0, 0], sizes = [17, 4], strides = [1, 1]} : vector<256x4xf32> to vector<17x4xf32>
    %162 = tpu.concatenate %160, %161 in 0 : vector<239x4xf32>, vector<17x4xf32> -> vector<256x4xf32>
    %163 = vector.extract_strided_slice %3 {offsets = [17, 0], sizes = [239, 4], strides = [1, 1]} : vector<256x4xf32> to vector<239x4xf32>
    %164 = vector.extract_strided_slice %3 {offsets = [0, 0], sizes = [17, 4], strides = [1, 1]} : vector<256x4xf32> to vector<17x4xf32>
    %165 = tpu.concatenate %163, %164 in 0 : vector<239x4xf32>, vector<17x4xf32> -> vector<256x4xf32>
    %c8 = arith.constant 8 : index
    %c0_87 = arith.constant 0 : index
    %c0_88 = arith.constant 0 : index
    %166 = vector.load %arg5[%c8, %c0_87, %c0_88] : memref<9x256x1xf32, #tpu.memory_space<vmem>>, vector<1x256x1xf32>
    %167 = vector.shape_cast %166 : vector<1x256x1xf32> to vector<256x1xf32>
    %168 = vector.broadcast %167 : vector<256x1xf32> to vector<256x4xf32>
    %169 = arith.mulf %162, %168 : vector<256x4xf32>
    %c8_89 = arith.constant 8 : index
    %c0_90 = arith.constant 0 : index
    %c0_91 = arith.constant 0 : index
    %170 = vector.load %arg3[%c8_89, %c0_90, %c0_91] : memref<9x4x8xf32, #tpu.memory_space<vmem>>, vector<1x4x8xf32>
    %171 = vector.shape_cast %170 : vector<1x4x8xf32> to vector<4x8xf32>
    %cst_92 = arith.constant dense<0.000000e+00> : vector<256x8xf32>
    %172 = tpu.matmul %169, %171, %cst_92 {dimension_numbers = #tpu.dot_dimension_numbers<[1], [0], [0], [1], [0, 0, 1, 1], [], []>} : vector<256x4xf32>, vector<4x8xf32>, vector<256x8xf32> -> vector<256x8xf32>
    %173 = arith.addf %153, %172 : vector<256x8xf32>
    %174 = vector.broadcast %167 : vector<256x1xf32> to vector<256x4xf32>
    %175 = arith.mulf %165, %174 : vector<256x4xf32>
    %c8_93 = arith.constant 8 : index
    %c0_94 = arith.constant 0 : index
    %c0_95 = arith.constant 0 : index
    %176 = vector.load %arg4[%c8_93, %c0_94, %c0_95] : memref<9x4x8xf32, #tpu.memory_space<vmem>>, vector<1x4x8xf32>
    %177 = vector.shape_cast %176 : vector<1x4x8xf32> to vector<4x8xf32>
    %cst_96 = arith.constant dense<0.000000e+00> : vector<256x8xf32>
    %178 = tpu.matmul %175, %177, %cst_96 {dimension_numbers = #tpu.dot_dimension_numbers<[1], [0], [0], [1], [0, 0, 1, 1], [], []>} : vector<256x4xf32>, vector<4x8xf32>, vector<256x8xf32> -> vector<256x8xf32>
    %179 = arith.addf %159, %178 : vector<256x8xf32>
    %180 = arith.addf %173, %179 : vector<256x8xf32>
    %c0_97 = arith.constant 0 : index
    %c0_98 = arith.constant 0 : index
    %c0_99 = arith.constant 0 : index
    %181 = vector.load %arg6[%c0_97, %c0_98, %c0_99] : memref<1x256x8xf32, #tpu.memory_space<vmem>>, vector<1x256x8xf32>
    %182 = vector.shape_cast %181 : vector<1x256x8xf32> to vector<256x8xf32>
    %183 = vector.shape_cast %180 : vector<256x8xf32> to vector<1x256x8xf32>
    tpu.vector_store %arg6[%c0_97, %c0_98, %c0_99], %183 {strides = array<i32>} : memref<1x256x8xf32, #tpu.memory_space<vmem>>, vector<1x256x8xf32>,
    %184 = arith.subf %173, %179 : vector<256x8xf32>
    %c0_100 = arith.constant 0 : index
    %c0_101 = arith.constant 0 : index
    %c0_102 = arith.constant 0 : index
    %185 = vector.load %arg7[%c0_100, %c0_101, %c0_102] : memref<1x256x8xf32, #tpu.memory_space<vmem>>, vector<1x256x8xf32>
    %186 = vector.shape_cast %185 : vector<1x256x8xf32> to vector<256x8xf32>
    %187 = vector.shape_cast %184 : vector<256x8xf32> to vector<1x256x8xf32>
    tpu.vector_store %arg7[%c0_100, %c0_101, %c0_102], %187 {strides = array<i32>} : memref<1x256x8xf32, #tpu.memory_space<vmem>>, vector<1x256x8xf32>,
    %cst_103 = arith.constant dense<0.000000e+00> : vector<8xf32>
    %188 = vector.multi_reduction <add>, %173, %cst_103 [0] : vector<256x8xf32> to vector<8xf32>
    %189 = vector.shape_cast %188 : vector<8xf32> to vector<1x8xf32>
    %cst_104 = arith.constant 2.000000e+00 : f32
    %190 = vector.broadcast %cst_104 : f32 to vector<1x8xf32>
    %191 = arith.mulf %190, %189 : vector<1x8xf32>
    %c0_105 = arith.constant 0 : index
    %c0_106 = arith.constant 0 : index
    %c0_107 = arith.constant 0 : index
    %192 = vector.load %arg8[%c0_105, %c0_106, %c0_107] : memref<1x1x8xf32, #tpu.memory_space<vmem>>, vector<1x1x8xf32>
    %193 = vector.shape_cast %192 : vector<1x1x8xf32> to vector<1x8xf32>
    %194 = vector.shape_cast %191 : vector<1x8xf32> to vector<1x1x8xf32>
    tpu.vector_store %arg8[%c0_105, %c0_106, %c0_107], %194 {strides = array<i32>} : memref<1x1x8xf32, #tpu.memory_space<vmem>>, vector<1x1x8xf32>,
    %195 = arith.mulf %173, %173 : vector<256x8xf32>
    %196 = arith.mulf %179, %179 : vector<256x8xf32>
    %197 = arith.addf %195, %196 : vector<256x8xf32>
    %cst_108 = arith.constant dense<0.000000e+00> : vector<8xf32>
    %198 = vector.multi_reduction <add>, %197, %cst_108 [0] : vector<256x8xf32> to vector<8xf32>
    %199 = vector.shape_cast %198 : vector<8xf32> to vector<1x8xf32>
    %cst_109 = arith.constant 2.000000e+00 : f32
    %200 = vector.broadcast %cst_109 : f32 to vector<1x8xf32>
    %201 = arith.mulf %200, %199 : vector<1x8xf32>
    %c0_110 = arith.constant 0 : index
    %c0_111 = arith.constant 0 : index
    %c0_112 = arith.constant 0 : index
    %202 = vector.load %arg9[%c0_110, %c0_111, %c0_112] : memref<1x1x8xf32, #tpu.memory_space<vmem>>, vector<1x1x8xf32>
    %203 = vector.shape_cast %202 : vector<1x1x8xf32> to vector<1x8xf32>
    %204 = vector.shape_cast %201 : vector<1x8xf32> to vector<1x1x8xf32>
    tpu.vector_store %arg9[%c0_110, %c0_111, %c0_112], %204 {strides = array<i32>} : memref<1x1x8xf32, #tpu.memory_space<vmem>>, vector<1x1x8xf32>,
    return
  }
  func.func @transform_0(%arg0: i32) -> (i32, i32, i32) {
    %c0_i32 = arith.constant 0 : i32
    %c0_i32_0 = arith.constant 0 : i32
    %c0_i32_1 = arith.constant 0 : i32
    return %arg0, %c0_i32, %c0_i32_0 : i32, i32, i32
  }
  func.func @transform_1(%arg0: i32) -> (i32, i32, i32) {
    %c0_i32 = arith.constant 0 : i32
    %c0_i32_0 = arith.constant 0 : i32
    %c0_i32_1 = arith.constant 0 : i32
    return %arg0, %c0_i32, %c0_i32_0 : i32, i32, i32
  }
  func.func @transform_2(%arg0: i32) -> (i32, i32, i32) {
    %c0_i32 = arith.constant 0 : i32
    %c0_i32_0 = arith.constant 0 : i32
    %c0_i32_1 = arith.constant 0 : i32
    %c0_i32_2 = arith.constant 0 : i32
    return %c0_i32, %c0_i32_0, %c0_i32_1 : i32, i32, i32
  }
  func.func @transform_3(%arg0: i32) -> (i32, i32, i32) {
    %c0_i32 = arith.constant 0 : i32
    %c0_i32_0 = arith.constant 0 : i32
    %c0_i32_1 = arith.constant 0 : i32
    %c0_i32_2 = arith.constant 0 : i32
    return %c0_i32, %c0_i32_0, %c0_i32_1 : i32, i32, i32
  }
  func.func @transform_4(%arg0: i32) -> (i32, i32, i32) {
    %c0_i32 = arith.constant 0 : i32
    %c0_i32_0 = arith.constant 0 : i32
    %c0_i32_1 = arith.constant 0 : i32
    %c0_i32_2 = arith.constant 0 : i32
    return %c0_i32, %c0_i32_0, %c0_i32_1 : i32, i32, i32
  }
  func.func @transform_5(%arg0: i32) -> (i32, i32, i32) {
    %c0_i32 = arith.constant 0 : i32
    %c0_i32_0 = arith.constant 0 : i32
    %c0_i32_1 = arith.constant 0 : i32
    return %arg0, %c0_i32, %c0_i32_0 : i32, i32, i32
  }
  func.func @transform_6(%arg0: i32) -> (i32, i32, i32) {
    %c0_i32 = arith.constant 0 : i32
    %c0_i32_0 = arith.constant 0 : i32
    %c0_i32_1 = arith.constant 0 : i32
    return %arg0, %c0_i32, %c0_i32_0 : i32, i32, i32
  }
  func.func @transform_7(%arg0: i32) -> (i32, i32, i32) {
    %c0_i32 = arith.constant 0 : i32
    %c0_i32_0 = arith.constant 0 : i32
    %c0_i32_1 = arith.constant 0 : i32
    return %arg0, %c0_i32, %c0_i32_0 : i32, i32, i32
  }
  func.func @transform_8(%arg0: i32) -> (i32, i32, i32) {
    %c0_i32 = arith.constant 0 : i32
    %c0_i32_0 = arith.constant 0 : i32
    %c0_i32_1 = arith.constant 0 : i32
    return %arg0, %c0_i32, %c0_i32_0 : i32, i32, i32
  }
}

module attributes {stable_mosaic.version = 11 : i64} {
  func.func @_bn_relu_pool_kernel(%arg0: i32, %arg1: memref<1x8x2x8x16xf32, #tpu.memory_space<vmem>>, %arg2: memref<1x8x2x8x16xf32, #tpu.memory_space<vmem>>, %arg3: memref<1x16xf32, #tpu.memory_space<vmem>>, %arg4: memref<1x16xf32, #tpu.memory_space<vmem>>, %arg5: memref<1x8x8x8xf32, #tpu.memory_space<vmem>>, %arg6: memref<1x8x8x8xf32, #tpu.memory_space<vmem>>) attributes {dimension_semantics = [#tpu.dimension_semantics<parallel>], iteration_bounds = array<i64: 2>, scalar_prefetch = 0 : i64, scratch_operands = 0 : i64, tpu.core_type = #tpu.core_type<tc>, window_params = [{transform_indices = @transform_0, window_bounds = array<i64: 1, 8, 2, 8, 16>}, {transform_indices = @transform_1, window_bounds = array<i64: 1, 8, 2, 8, 16>}, {pipeline_mode = #tpu.pipeline_mode<synchronous>, transform_indices = @transform_2, window_bounds = array<i64: 1, 16>}, {pipeline_mode = #tpu.pipeline_mode<synchronous>, transform_indices = @transform_3, window_bounds = array<i64: 1, 16>}, {transform_indices = @transform_4, window_bounds = array<i64: 1, 8, 8, 8>}, {transform_indices = @transform_5, window_bounds = array<i64: 1, 8, 8, 8>}]} {
    %c0 = arith.constant 0 : index
    %c0_0 = arith.constant 0 : index
    %0 = vector.load %arg3[%c0, %c0_0] : memref<1x16xf32, #tpu.memory_space<vmem>>, vector<1x16xf32>
    %c0_1 = arith.constant 0 : index
    %c0_2 = arith.constant 0 : index
    %1 = vector.load %arg4[%c0_1, %c0_2] : memref<1x16xf32, #tpu.memory_space<vmem>>, vector<1x16xf32>
    %c0_3 = arith.constant 0 : index
    %c0_4 = arith.constant 0 : index
    %c0_5 = arith.constant 0 : index
    %c0_6 = arith.constant 0 : index
    %c0_7 = arith.constant 0 : index
    %2 = vector.load %arg1[%c0_3, %c0_4, %c0_5, %c0_6, %c0_7] : memref<1x8x2x8x16xf32, #tpu.memory_space<vmem>>, vector<1x8x2x8x16xf32>
    %3 = vector.shape_cast %2 : vector<1x8x2x8x16xf32> to vector<8x2x8x16xf32>
    %4 = vector.shape_cast %0 : vector<1x16xf32> to vector<1x1x1x16xf32>
    %5 = vector.broadcast %4 : vector<1x1x1x16xf32> to vector<8x2x8x16xf32>
    %6 = arith.mulf %3, %5 : vector<8x2x8x16xf32>
    %7 = vector.shape_cast %1 : vector<1x16xf32> to vector<1x1x1x16xf32>
    %8 = vector.broadcast %7 : vector<1x1x1x16xf32> to vector<8x2x8x16xf32>
    %9 = arith.addf %6, %8 : vector<8x2x8x16xf32>
    %cst = arith.constant 0.000000e+00 : f32
    %10 = vector.broadcast %cst : f32 to vector<8x2x8x16xf32>
    %11 = arith.maximumf %9, %10 : vector<8x2x8x16xf32>
    %12 = vector.extract_strided_slice %11 {offsets = [0, 0, 0, 0], sizes = [8, 1, 8, 16], strides = [1, 1, 1, 1]} : vector<8x2x8x16xf32> to vector<8x1x8x16xf32>
    %13 = vector.shape_cast %12 : vector<8x1x8x16xf32> to vector<8x8x16xf32>
    %14 = vector.extract_strided_slice %11 {offsets = [0, 1, 0, 0], sizes = [8, 1, 8, 16], strides = [1, 1, 1, 1]} : vector<8x2x8x16xf32> to vector<8x1x8x16xf32>
    %15 = vector.shape_cast %14 : vector<8x1x8x16xf32> to vector<8x8x16xf32>
    %16 = arith.maximumf %13, %15 : vector<8x8x16xf32>
    %17 = vector.extract_strided_slice %16 {offsets = [0, 0, 0], sizes = [8, 8, 8], strides = [1, 1, 1]} : vector<8x8x16xf32> to vector<8x8x8xf32>
    %18 = vector.extract_strided_slice %16 {offsets = [0, 0, 8], sizes = [8, 8, 8], strides = [1, 1, 1]} : vector<8x8x16xf32> to vector<8x8x8xf32>
    %19 = arith.maximumf %17, %18 : vector<8x8x8xf32>
    %c0_8 = arith.constant 0 : index
    %c0_9 = arith.constant 0 : index
    %c0_10 = arith.constant 0 : index
    %c0_11 = arith.constant 0 : index
    %20 = vector.load %arg5[%c0_8, %c0_9, %c0_10, %c0_11] : memref<1x8x8x8xf32, #tpu.memory_space<vmem>>, vector<1x8x8x8xf32>
    %21 = vector.shape_cast %20 : vector<1x8x8x8xf32> to vector<8x8x8xf32>
    %22 = vector.shape_cast %19 : vector<8x8x8xf32> to vector<1x8x8x8xf32>
    tpu.vector_store %arg5[%c0_8, %c0_9, %c0_10, %c0_11], %22 {strides = array<i32>} : memref<1x8x8x8xf32, #tpu.memory_space<vmem>>, vector<1x8x8x8xf32>,
    %c0_12 = arith.constant 0 : index
    %c0_13 = arith.constant 0 : index
    %c0_14 = arith.constant 0 : index
    %c0_15 = arith.constant 0 : index
    %c0_16 = arith.constant 0 : index
    %23 = vector.load %arg2[%c0_12, %c0_13, %c0_14, %c0_15, %c0_16] : memref<1x8x2x8x16xf32, #tpu.memory_space<vmem>>, vector<1x8x2x8x16xf32>
    %24 = vector.shape_cast %23 : vector<1x8x2x8x16xf32> to vector<8x2x8x16xf32>
    %25 = vector.shape_cast %0 : vector<1x16xf32> to vector<1x1x1x16xf32>
    %26 = vector.broadcast %25 : vector<1x1x1x16xf32> to vector<8x2x8x16xf32>
    %27 = arith.mulf %24, %26 : vector<8x2x8x16xf32>
    %28 = vector.shape_cast %1 : vector<1x16xf32> to vector<1x1x1x16xf32>
    %29 = vector.broadcast %28 : vector<1x1x1x16xf32> to vector<8x2x8x16xf32>
    %30 = arith.addf %27, %29 : vector<8x2x8x16xf32>
    %cst_17 = arith.constant 0.000000e+00 : f32
    %31 = vector.broadcast %cst_17 : f32 to vector<8x2x8x16xf32>
    %32 = arith.maximumf %30, %31 : vector<8x2x8x16xf32>
    %33 = vector.extract_strided_slice %32 {offsets = [0, 0, 0, 0], sizes = [8, 1, 8, 16], strides = [1, 1, 1, 1]} : vector<8x2x8x16xf32> to vector<8x1x8x16xf32>
    %34 = vector.shape_cast %33 : vector<8x1x8x16xf32> to vector<8x8x16xf32>
    %35 = vector.extract_strided_slice %32 {offsets = [0, 1, 0, 0], sizes = [8, 1, 8, 16], strides = [1, 1, 1, 1]} : vector<8x2x8x16xf32> to vector<8x1x8x16xf32>
    %36 = vector.shape_cast %35 : vector<8x1x8x16xf32> to vector<8x8x16xf32>
    %37 = arith.maximumf %34, %36 : vector<8x8x16xf32>
    %38 = vector.extract_strided_slice %37 {offsets = [0, 0, 0], sizes = [8, 8, 8], strides = [1, 1, 1]} : vector<8x8x16xf32> to vector<8x8x8xf32>
    %39 = vector.extract_strided_slice %37 {offsets = [0, 0, 8], sizes = [8, 8, 8], strides = [1, 1, 1]} : vector<8x8x16xf32> to vector<8x8x8xf32>
    %40 = arith.maximumf %38, %39 : vector<8x8x8xf32>
    %c0_18 = arith.constant 0 : index
    %c0_19 = arith.constant 0 : index
    %c0_20 = arith.constant 0 : index
    %c0_21 = arith.constant 0 : index
    %41 = vector.load %arg6[%c0_18, %c0_19, %c0_20, %c0_21] : memref<1x8x8x8xf32, #tpu.memory_space<vmem>>, vector<1x8x8x8xf32>
    %42 = vector.shape_cast %41 : vector<1x8x8x8xf32> to vector<8x8x8xf32>
    %43 = vector.shape_cast %40 : vector<8x8x8xf32> to vector<1x8x8x8xf32>
    tpu.vector_store %arg6[%c0_18, %c0_19, %c0_20, %c0_21], %43 {strides = array<i32>} : memref<1x8x8x8xf32, #tpu.memory_space<vmem>>, vector<1x8x8x8xf32>,
    return
  }
  func.func @transform_0(%arg0: i32) -> (i32, i32, i32, i32, i32) {
    %c0_i32 = arith.constant 0 : i32
    %c0_i32_0 = arith.constant 0 : i32
    %c0_i32_1 = arith.constant 0 : i32
    %c0_i32_2 = arith.constant 0 : i32
    %c0_i32_3 = arith.constant 0 : i32
    return %arg0, %c0_i32, %c0_i32_0, %c0_i32_1, %c0_i32_2 : i32, i32, i32, i32, i32
  }
  func.func @transform_1(%arg0: i32) -> (i32, i32, i32, i32, i32) {
    %c0_i32 = arith.constant 0 : i32
    %c0_i32_0 = arith.constant 0 : i32
    %c0_i32_1 = arith.constant 0 : i32
    %c0_i32_2 = arith.constant 0 : i32
    %c0_i32_3 = arith.constant 0 : i32
    return %arg0, %c0_i32, %c0_i32_0, %c0_i32_1, %c0_i32_2 : i32, i32, i32, i32, i32
  }
  func.func @transform_2(%arg0: i32) -> (i32, i32) {
    %c0_i32 = arith.constant 0 : i32
    %c0_i32_0 = arith.constant 0 : i32
    %c0_i32_1 = arith.constant 0 : i32
    return %c0_i32, %c0_i32_0 : i32, i32
  }
  func.func @transform_3(%arg0: i32) -> (i32, i32) {
    %c0_i32 = arith.constant 0 : i32
    %c0_i32_0 = arith.constant 0 : i32
    %c0_i32_1 = arith.constant 0 : i32
    return %c0_i32, %c0_i32_0 : i32, i32
  }
  func.func @transform_4(%arg0: i32) -> (i32, i32, i32, i32) {
    %c0_i32 = arith.constant 0 : i32
    %c0_i32_0 = arith.constant 0 : i32
    %c0_i32_1 = arith.constant 0 : i32
    %c0_i32_2 = arith.constant 0 : i32
    return %arg0, %c0_i32, %c0_i32_0, %c0_i32_1 : i32, i32, i32, i32
  }
  func.func @transform_5(%arg0: i32) -> (i32, i32, i32, i32) {
    %c0_i32 = arith.constant 0 : i32
    %c0_i32_0 = arith.constant 0 : i32
    %c0_i32_1 = arith.constant 0 : i32
    %c0_i32_2 = arith.constant 0 : i32
    return %arg0, %c0_i32, %c0_i32_0, %c0_i32_1 : i32, i32, i32, i32
  }
}

</mosaic_0001>

<bundles_post_ra>
// kernel: braid_block_forward.3
= control target key start
LH: loop header
LB: loop body
LE: loop exit
PB: predicated region body
PF: predicated region fallthrough
CT: control target
= control target key end

     0   :  { %s676_s18 = smov 0   ;;  %s917_s0 = inlined_call_operand.vmem [shape: f32[2,8,2,8,16], index: 0, kind: input, shape index: {}]   ;;  %s918_s1 = inlined_call_operand.vmem [shape: f32[2,8,2,8,16], index: 1, kind: input, shape index: {}]   ;;  %s919_s2 = inlined_call_operand.vmem [shape: f32[1,16], index: 2, kind: input, shape index: {}]   ;;  %s920_s3 = inlined_call_operand.vmem [shape: f32[1,16], index: 3, kind: input, shape index: {}]   ;;  %s921_s4 = inlined_call_operand.vmem [shape: f32[2,8,8,8], index: 4, kind: output, shape index: {0}]   ;;  %s922_s5 = inlined_call_operand.vmem [shape: f32[2,8,8,8], index: 5, kind: output, shape index: {1}]  }
   0x1 LB: > { %s607_s19 = sadd.s32 4294967295, %s643_s18   ;;  %p611_p0 = scmp.ge.s32.totalorder %s643_s18, 1  ;;  %s643_s18 = sphi %s676_s18, %s16_s18  }
   0x2   : > { %p200_p1 = scmp.lt.s32.totalorder %s643_s18, 3 }
   0x4   : > { %p201_p2 = pnand %p611_p0, %p200_p1 }
   0x5   : > { %p238_p3 = scmp.lt.s32.totalorder (!%p201_p2), %s607_s19, 1  ;;  %s645_s6 = smov (!%p201_p2), 120  }
   0x6   : > { %204 = sbr.rel (%p201_p2) target bundleno = 181 (0xb5), region = 36 }
   0xb   : > { %s924_s19 = smov (!%p238_p3, %s607_s19), 1  ;;  %v689_v0 = vld [vmem:[%s919_s2] ss:$0 sm:$0xff]  ;;  %vm378_vm0 = vcmask 64512  }
   0xc   : > { %s622_s22 = sshll.u32 %s924_s19, 7  ;;  %v702_v1 = vld [vmem:[%s920_s3] ss:$0 sm:$0xff]  ;;  %s624_s7 = sshll.u32 %s924_s19, 6 }
   0xd   : > { %s697_s25 = scalar_lea.vmem %s917_s0, %s622_s22  ;;  %s743_s30 = scalar_lea.vmem %s918_s1, %s622_s22 }
   0xe   : > { %v260_v2 = vld [vmem:[%s697_s25] sm:$0xff]  ;;  %v261_v3 = vld [vmem:[%s697_s25 + $0x8] sm:$0xff]  ;;  %v262_v9 = vld [vmem:[%s697_s25 + $0x10] sm:$0xff]  ;;  %s864_s10 = scalar_lea.vmem %s921_s4, %s624_s7  ;;  %s878_s13 = scalar_lea.vmem %s922_s5, %s624_s7 }
   0xf   : > { %v264_v4 = vld [vmem:[%s697_s25 + $0x20] sm:$0xff]  ;;  %v279_v5 = vmul.f32 %v689_v0, %v260_v2  ;;  %v280_v6 = vmul.f32 %v689_v0, %v261_v3  ;;  %v265_v7 = vld [vmem:[%s697_s25 + $0x28] sm:$0xff]  ;;  %v263_v10 = vld [vmem:[%s697_s25 + $0x18] sm:$0xff]  ;;  %v281_v12 = vmul.f32 %v689_v0, %v262_v9 }
  0x10   : > { %v283_v8 = vmul.f32 %v689_v0, %v264_v4  ;;  %v284_v11 = vmul.f32 %v689_v0, %v265_v7  ;;  %v282_v13 = vmul.f32 %v689_v0, %v263_v10  ;;  %v266_v14 = vld [vmem:[%s697_s25 + $0x30] sm:$0xff]  ;;  %v267_v15 = vld [vmem:[%s697_s25 + $0x38] sm:$0xff]  ;;  %v272_v27 = vld [vmem:[%s697_s25 + $0x60] sm:$0xff] }
  0x11   : > { %v298_v16 = vadd.f32 %v702_v1, %v279_v5  ;;  %v299_v17 = vadd.f32 %v702_v1, %v280_v6  ;;  %v285_v19 = vmul.f32 %v689_v0, %v266_v14  ;;  %v300_v21 = vadd.f32 %v702_v1, %v281_v12  ;;  %v273_v31 = vld [vmem:[%s697_s25 + $0x68] sm:$0xff]  ;;  %v274_v32 = vld [vmem:[%s697_s25 + $0x70] sm:$0xff]  ;;  %v275_v33 = vld [vmem:[%s697_s25 + $0x78] sm:$0xff] }
  0x12   : > { %v302_v18 = vadd.f32 %v702_v1, %v283_v8  ;;  %v303_v20 = vadd.f32 %v702_v1, %v284_v11  ;;  %v286_v22 = vmul.f32 %v689_v0, %v267_v15  ;;  %v301_v26 = vadd.f32 %v702_v1, %v282_v13  ;;  %v268_v35 = vld [vmem:[%s697_s25 + $0x40] sm:$0xff]  ;;  %v269_v43 = vld [vmem:[%s697_s25 + $0x48] sm:$0xff]  ;;  %v389_v48 = vld [vmem:[%s743_s30 + $0x10] sm:$0xff] }
  0x13   : > { %v314_v23 = vmax.f32 %v298_v16, 0.0  ;;  %v315_v24 = vmax.f32 %v299_v17, 0.0  ;;  %v304_v29 = vadd.f32 %v702_v1, %v285_v19  ;;  %v316_v37 = vmax.f32 %v300_v21, 0.0  ;;  %v390_v55 = vld [vmem:[%s743_s30 + $0x18] sm:$0xff]  ;;  %v270_v56 = vld [vmem:[%s697_s25 + $0x50] sm:$0xff]  ;;  %v391_v62 = vld [vmem:[%s743_s30 + $0x20] sm:$0xff] }
  0x14   : > { %v318_v25 = vmax.f32 %v302_v18, 0.0  ;;  %v319_v28 = vmax.f32 %v303_v20, 0.0  ;;  %v305_v30 = vadd.f32 %v702_v1, %v286_v22  ;;  %v291_v38 = vmul.f32 %v689_v0, %v272_v27  ;;  %v271_v60 = vld [vmem:[%s697_s25 + $0x58] sm:$0xff]  ;;  %v392_v63 = vld [vmem:[%s743_s30 + $0x28] sm:$0xff]  ;;  %v387_v15 = vld [vmem:[%s743_s30] sm:$0xff] }
  0x15   : > { %v732_v34 = vmax.f32 %v314_v23, %v315_v24  ;;  %v317_v39 = vmax.f32 %v301_v26, 0.0  ;;  %v292_v40 = vmul.f32 %v689_v0, %v273_v31  ;;  %v293_v41 = vmul.f32 %v689_v0, %v274_v32  ;;  %v388_v16 = vld [vmem:[%s743_s30 + $0x8] sm:$0xff] }
  0x16   : > { %v735_v36 = vmax.f32 %v318_v25, %v319_v28  ;;  %v294_v42 = vmul.f32 %v689_v0, %v275_v33  ;;  %v320_v44 = vmax.f32 %v304_v29, 0.0  ;;  %v321_v45 = vmax.f32 %v305_v30, 0.0  ;;  %v395_v25 = vld [vmem:[%s743_s30 + $0x40] sm:$0xff]  ;;  %v396_v26 = vld [vmem:[%s743_s30 + $0x48] sm:$0xff]  ;;  %v397_v29 = vld [vmem:[%s743_s30 + $0x50] sm:$0xff] }
  0x17   : > { %346 = vrot.lane.b32.xlu0 %v732_v34, %s645_s6  ;;  %v287_v46 = vmul.f32 %v689_v0, %v268_v35  ;;  %v310_v47 = vadd.f32 %v702_v1, %v291_v38  ;;  %v288_v49 = vmul.f32 %v689_v0, %v269_v43  ;;  %v758_v51 = vmax.f32 %v316_v37, %v317_v39  ;;  %v398_v30 = vld [vmem:[%s743_s30 + $0x58] sm:$0xff] }
  0x18   : > { %350 = vrot.lane.b32.xlu1 %v735_v36, %s645_s6  ;;  %v311_v52 = vadd.f32 %v702_v1, %v292_v40  ;;  %v312_v53 = vadd.f32 %v702_v1, %v293_v41  ;;  %v313_v54 = vadd.f32 %v702_v1, %v294_v42  ;;  %v765_v57 = vmax.f32 %v320_v44, %v321_v45  ;;  %v393_v40 = vld [vmem:[%s743_s30 + $0x30] sm:$0xff]  ;;  %v394_v41 = vld [vmem:[%s743_s30 + $0x38] sm:$0xff] }
  0x19   : > { %v306_v50 = vadd.f32 %v702_v1, %v287_v46  ;;  %v307_v58 = vadd.f32 %v702_v1, %v288_v49  ;;  %v405_v61 = vmul.f32 %v689_v0, %v389_v48  ;;  %v326_v2 = vmax.f32 %v310_v47, 0.0 }
  0x1a   : > { %v406_v3 = vmul.f32 %v689_v0, %v390_v55  ;;  %v289_v5 = vmul.f32 %v689_v0, %v270_v56  ;;  %v327_v6 = vmax.f32 %v311_v52, 0.0  ;;  %v328_v7 = vmax.f32 %v312_v53, 0.0 }
  0x1b   : > { %v322_v59 = vmax.f32 %v306_v50, 0.0  ;;  %v323_v4 = vmax.f32 %v307_v58, 0.0  ;;  %v329_v8 = vmax.f32 %v313_v54, 0.0  ;;  %v290_v9 = vmul.f32 %v689_v0, %v271_v60  ;;  %v401_v58 = vld [vmem:[%s743_s30 + $0x70] sm:$0xff] }
  0x1c   : > { %v407_v11 = vmul.f32 %v689_v0, %v391_v62  ;;  %v408_v12 = vmul.f32 %v689_v0, %v392_v63  ;;  %v308_v13 = vadd.f32 %v702_v1, %v289_v5  ;;  %v421_v17 = vadd.f32 %v702_v1, %v405_v61  ;;  %v399_v5 = vld [vmem:[%s743_s30 + $0x60] sm:$0xff] }
  0x1d   : > { %v779_v10 = vmax.f32 %v322_v59, %v323_v4  ;;  %v309_v14 = vadd.f32 %v702_v1, %v290_v9  ;;  %v790_v19 = vmax.f32 %v326_v2, %v327_v6  ;;  %v792_v20 = vmax.f32 %v328_v7, %v329_v8  ;;  %v402_v59 = vld [vmem:[%s743_s30 + $0x78] sm:$0xff]  ;;  %v400_v6 = vld [vmem:[%s743_s30 + $0x68] sm:$0xff] }
  0x1e   : > { %v324_v18 = vmax.f32 %v308_v13, 0.0  ;;  %v422_v21 = vadd.f32 %v702_v1, %v406_v3  ;;  %v423_v23 = vadd.f32 %v702_v1, %v407_v11  ;;  %v424_v24 = vadd.f32 %v702_v1, %v408_v12 }
  0x1f   : > { %348 = vrot.lane.b32.xlu0 %v758_v51, %s645_s6  ;;  %354 = vrot.lane.b32.xlu2 %v779_v10, %s645_s6  ;;  %v325_v22 = vmax.f32 %v309_v14, 0.0  ;;  %v403_v27 = vmul.f32 %v689_v0, %v387_v15  ;;  %v404_v28 = vmul.f32 %v689_v0, %v388_v16  ;;  %v437_v35 = vmax.f32 %v421_v17, 0.0 }
  0x20   : > { %352 = vrot.lane.b32.xlu1 %v765_v57, %s645_s6  ;;  %v438_v37 = vmax.f32 %v422_v21, 0.0  ;;  %v411_v38 = vmul.f32 %v689_v0, %v395_v25  ;;  %v412_v39 = vmul.f32 %v689_v0, %v396_v26  ;;  %v439_v42 = vmax.f32 %v423_v23, 0.0 }
  0x21   : > { %v803_v31 = vmax.f32 %v324_v18, %v325_v22  ;;  %v419_v32 = vadd.f32 %v702_v1, %v403_v27  ;;  %v420_v33 = vadd.f32 %v702_v1, %v404_v28  ;;  %v440_v43 = vmax.f32 %v424_v24, 0.0 }
  0x22   : > { %v413_v44 = vmul.f32 %v689_v0, %v397_v29  ;;  %v414_v45 = vmul.f32 %v689_v0, %v398_v30  ;;  %v409_v48 = vmul.f32 %v689_v0, %v393_v40  ;;  %v410_v49 = vmul.f32 %v689_v0, %v394_v41 }
  0x23   : > { %v435_v46 = vmax.f32 %v419_v32, 0.0  ;;  %v436_v47 = vmax.f32 %v420_v33, 0.0  ;;  %v821_v50 = vmax.f32 %v437_v35, %v438_v37  ;;  %v427_v52 = vadd.f32 %v702_v1, %v411_v38 }
  0x24   : > { %v428_v53 = vadd.f32 %v702_v1, %v412_v39  ;;  %v825_v54 = vmax.f32 %v439_v42, %v440_v43  ;;  %v429_v55 = vadd.f32 %v702_v1, %v413_v44  ;;  %v430_v56 = vadd.f32 %v702_v1, %v414_v45 }
  0x25   : > { %v451_v60 = vmax.f32 %v435_v46, %v436_v47  ;;  %v425_v61 = vadd.f32 %v702_v1, %v409_v48  ;;  %v426_v62 = vadd.f32 %v702_v1, %v410_v49  ;;  %v443_v63 = vmax.f32 %v427_v52, 0.0 }
  0x26   : > { %v444_v2 = vmax.f32 %v428_v53, 0.0  ;;  %v417_v3 = vmul.f32 %v689_v0, %v401_v58  ;;  %v418_v4 = vmul.f32 %v689_v0, %v402_v59  ;;  %v445_v7 = vmax.f32 %v429_v55, 0.0 }
  0x27   : > { %358 = vrot.lane.b32.xlu0 %v790_v19, %s645_s6  ;;  %356 = vrot.lane.b32.xlu2 %v803_v31, %s645_s6  ;;  %v446_v8 = vmax.f32 %v430_v56, 0.0  ;;  %v441_v9 = vmax.f32 %v425_v61, 0.0  ;;  %v442_v11 = vmax.f32 %v426_v62, 0.0  ;;  %v415_v12 = vmul.f32 %v689_v0, %v399_v5 }
  0x28   : > { %360 = vrot.lane.b32.xlu1 %v792_v20, %s645_s6  ;;  %v416_v13 = vmul.f32 %v689_v0, %v400_v6  ;;  %v844_v14 = vmax.f32 %v443_v63, %v444_v2  ;;  %v433_v15 = vadd.f32 %v702_v1, %v417_v3  ;;  %v434_v16 = vadd.f32 %v702_v1, %v418_v4 }
  0x29   : > { %v848_v17 = vmax.f32 %v445_v7, %v446_v8  ;;  %v454_v18 = vmax.f32 %v441_v9, %v442_v11  ;;  %v431_v21 = vadd.f32 %v702_v1, %v415_v12 }
  0x2a   : > { %v432_v22 = vadd.f32 %v702_v1, %v416_v13  ;;  %v449_v23 = vmax.f32 %v433_v15, 0.0  ;;  %v450_v24 = vmax.f32 %v434_v16, 0.0 }
  0x2b   : > { %v447_v0 = vmax.f32 %v431_v21, 0.0 }
  0x2c   : > { %v448_v25 = vmax.f32 %v432_v22, 0.0  ;;  %v458_v26 = vmax.f32 %v449_v23, %v450_v24 }
  0x2e   : > { %v457_v27 = vmax.f32 %v447_v0, %v448_v25 }
  0x2f   : > { %469 = vrot.lane.b32.xlu0 %v821_v50, %s645_s6  ;;  %467 = vrot.lane.b32.xlu2 %v451_v60, %s645_s6 }
  0x30   : > { %471 = vrot.lane.b32.xlu1 %v825_v54, %s645_s6 }
  0x37   : > { %475 = vrot.lane.b32.xlu0 %v844_v14, %s645_s6  ;;  %473 = vrot.lane.b32.xlu2 %v454_v18, %s645_s6 }
  0x38   : > { %477 = vrot.lane.b32.xlu1 %v848_v17, %s645_s6 }
  0x3f   : > { %481 = vrot.lane.b32.xlu0 %v458_v26, %s645_s6  ;;  %479 = vrot.lane.b32.xlu2 %v457_v27, %s645_s6 }
  0x79   : > { %v355_v1 = vpop.permute.xlu2 %354 }
  0x7a   : > { %v374_v28 = vmax.f32 %v779_v10, %v355_v1 }
  0x7c   : > { %383 = vst.msk [vmem:[%s864_s10 + $0x20] sm:$0xff] %vm378_vm0, %v374_v28 }
  0x81   : > { %v357_v29 = vpop.permute.xlu2 %356 }
  0x82   : > { %v375_v30 = vmax.f32 %v803_v31, %v357_v29 }
  0x84   : > { %384 = vst.msk [vmem:[%s864_s10 + $0x28] sm:$0xff] %vm378_vm0, %v375_v30 }
  0x89   : > { %v347_v32 = vpop.permute.xlu0 %346  ;;  %v468_v31 = vpop.permute.xlu2 %467 }
  0x8a   : > { %v370_v10 = vmax.f32 %v732_v34, %v347_v32  ;;  %v351_v33 = vpop.permute.xlu1 %350  ;;  %v491_v37 = vmax.f32 %v451_v60, %v468_v31 }
  0x8b   : > { %v372_v35 = vmax.f32 %v735_v36, %v351_v33 }
  0x8c   : > { %379 = vst.msk [vmem:[%s864_s10] sm:$0xff] %vm378_vm0, %v370_v10 }
  0x8d   : > { %381 = vst.msk [vmem:[%s864_s10 + $0x10] sm:$0xff] %vm378_vm0, %v372_v35 }
  0x8e   : > { %499 = vst.msk [vmem:[%s878_s13] sm:$0xff] %vm378_vm0, %v491_v37 }
  0x91   : > { %v349_v34 = vpop.permute.xlu0 %348  ;;  %v474_v40 = vpop.permute.xlu2 %473 }
  0x92   : > { %v371_v36 = vmax.f32 %v758_v51, %v349_v34  ;;  %v353_v38 = vpop.permute.xlu1 %352  ;;  %v494_v41 = vmax.f32 %v454_v18, %v474_v40 }
  0x93   : > { %v373_v39 = vmax.f32 %v765_v57, %v353_v38 }
  0x94   : > { %380 = vst.msk [vmem:[%s864_s10 + $0x8] sm:$0xff] %vm378_vm0, %v371_v36 }
  0x95   : > { %382 = vst.msk [vmem:[%s864_s10 + $0x18] sm:$0xff] %vm378_vm0, %v373_v39 }
  0x96   : > { %502 = vst.msk [vmem:[%s878_s13 + $0x18] sm:$0xff] %vm378_vm0, %v494_v41 }
  0x99   : > { %v359_v42 = vpop.permute.xlu0 %358  ;;  %v480_v57 = vpop.permute.xlu2 %479 }
  0x9a   : > { %v376_v43 = vmax.f32 %v790_v19, %v359_v42  ;;  %v361_v44 = vpop.permute.xlu1 %360  ;;  %v497_v45 = vmax.f32 %v457_v27, %v480_v57 }
  0x9b   : > { %v377_v51 = vmax.f32 %v792_v20, %v361_v44 }
  0x9c   : > { %385 = vst.msk [vmem:[%s864_s10 + $0x30] sm:$0xff] %vm378_vm0, %v376_v43 }
  0x9d   : > { %386 = vst.msk [vmem:[%s864_s10 + $0x38] sm:$0xff] %vm378_vm0, %v377_v51 }
  0x9e   : > { %505 = vst.msk [vmem:[%s878_s13 + $0x30] sm:$0xff] %vm378_vm0, %v497_v45 }
  0xa1   : > { %v470_v46 = vpop.permute.xlu0 %469 }
  0xa2   : > { %v492_v47 = vmax.f32 %v821_v50, %v470_v46  ;;  %v472_v48 = vpop.permute.xlu1 %471 }
  0xa3   : > { %v493_v19 = vmax.f32 %v825_v54, %v472_v48 }
  0xa4   : > { %500 = vst.msk [vmem:[%s878_s13 + $0x8] sm:$0xff] %vm378_vm0, %v492_v47 }
  0xa5   : > { %501 = vst.msk [vmem:[%s878_s13 + $0x10] sm:$0xff] %vm378_vm0, %v493_v19 }
  0xa9   : > { %v476_v20 = vpop.permute.xlu0 %475 }
  0xaa   : > { %v495_v49 = vmax.f32 %v844_v14, %v476_v20  ;;  %v478_v52 = vpop.permute.xlu1 %477 }
  0xab   : > { %v496_v53 = vmax.f32 %v848_v17, %v478_v52 }
  0xac   : > { %503 = vst.msk [vmem:[%s878_s13 + $0x20] sm:$0xff] %vm378_vm0, %v495_v49 }
  0xad   : > { %504 = vst.msk [vmem:[%s878_s13 + $0x28] sm:$0xff] %vm378_vm0, %v496_v53 }
  0xb1   : > { %v482_v55 = vpop.permute.xlu0 %481 }
  0xb2   : > { %v498_v56 = vmax.f32 %v458_v26, %v482_v55 }
  0xb4   : > { %506 = vst.msk [vmem:[%s878_s13 + $0x38] sm:$0xff] %vm378_vm0, %v498_v56 }
  0xb5 PF: > { %s16_s18 = sadd.s32 1, %s643_s18  }
  0xb6   : > { %p13_p4 = scmp.ge.s32.totalorder %s16_s18, 4  }
  0xb8   :  { %15 = sbr.rel (!%p13_p4) target bundleno = 1 (0x1), region = 81 }

// kernel: braid_block_forward.2
= control target key start
LH: loop header
LB: loop body
LE: loop exit
PB: predicated region body
PF: predicated region fallthrough
CT: control target
= control target key end

     0   :  { %14 = vsyncpa [#allocation3], 0  ;;  %s8940_s27 = smov 0   ;;  %s13613_s0 = inlined_call_operand.vmem [shape: f32[2,256,4], index: 0, kind: input, shape index: {}]   ;;  %s13614_s1 = inlined_call_operand.vmem [shape: f32[2,256,4], index: 1, kind: input, shape index: {}]   ;;  %s13615_s2 = inlined_call_operand.vmem [shape: f32[9,4,8], index: 2, kind: input, shape index: {}]   ;;  %s13616_s3 = inlined_call_operand.vmem [shape: f32[9,4,8], index: 3, kind: input, shape index: {}]   ;;  %s13617_s4 = inlined_call_operand.hbm [shape: f32[9,256,1], index: 4, kind: input, shape index: {}]   ;;  %s13618_s5 = inlined_call_operand.vmem [shape: f32[2,256,8], index: 5, kind: output, shape index: {0}]   ;;  %s13619_s6 = inlined_call_operand.vmem [shape: f32[2,256,8], index: 6, kind: output, shape index: {1}]   ;;  %s13620_s7 = inlined_call_operand.vmem [shape: f32[2,1,8], index: 7, kind: output, shape index: {2}]   ;;  %s13621_s8 = inlined_call_operand.vmem [shape: f32[2,1,8], index: 8, kind: output, shape index: {3}]  }
   0x1 LB: > { %s261_s30 = sshll.u32 %s13617_s4, 4  ;;  %s8949_s9 = sadd.s32 4294967295, %s8889_s27   ;;  %s8889_s27 = sphi %s8940_s27, %s20_s27   ;;  %s262_s30 = int_to_ptr.hbm [resolvable:$true] %s261_s30 }
   0x2   : > { %p8034_p0 = scmp.ge.s32.totalorder %s8889_s27, 1  ;;  %p244_p1 = scmp.lt.s32.totalorder %s8889_s27, 3 }
   0x3   : > { %p8673_p2 = scmp.eq.s32.totalorder %s8949_s9, 0  ;;  %s8891_s10 = smov [#allocation2]  }
   0x4   : > { %p245_p3 = pnand %p8034_p0, %p244_p1  ;;  %s263_s11 = sshll.u32 %s8891_s10, 4  ;;  %s264_s11 = int_to_ptr.vmem [resolvable:$true] %s263_s11 }
   0x5   : > { %s8892_s12 = smov 128   ;;  %s8893_s13 = smov 8  }
   0x6   : > { %p8669_p4 = pneg %p245_p3  ;;  %295 = sbr.rel (%p245_p3) target bundleno = 1563 (0x61b), region = 40 }
   0x8   : > { %p8670_p5 = pnand %p8673_p2, %p8669_p4 }
   0xa   : > { %8672 = dma.hbm_to_vmem [thread:$0]  (!%p8670_p5), %s262_s30, 36864, %s264_s11, [#allocation3], %s8892_s12, %s8892_s12, %s8893_s13  }
   0xb   : > { %8884 = dma.done.wait (%p8673_p2), [#allocation3], 36864  }
   0xc   : > { %8886 = vsyncadd (%p8673_p2), [#allocation3], 4294930432  ;;  %v8894_v0 = vmov 0   ;;  %v699_v1 = vld [vmem:[#allocation2 + $0x20] sm:$0xff]  ;;  %v697_v2 = vld [vmem:[#allocation2 + $0x10] sm:$0xff]  ;;  %vm1277_vm0 = vcmask 1043456  }
   0xd   : > { %8689 = vset.pattern.permute.xlu2 %v8894_v0  ;;  %8688 = vset.pattern.permute.xlu1 %v8894_v0  ;;  %v695_v3 = vld [vmem:[#allocation2] sm:$0xff]  ;;  %v700_v4 = vld [vmem:[#allocation2 + $0x28] sm:$0xff]  ;;  %v698_v5 = vld [vmem:[#allocation2 + $0x18] sm:$0xff]  ;;  %p346_p6 = scmp.lt.s32.totalorder %s8949_s9, 1  ;;  %vm439_vm1 = vcmask 1040384   ;;  %vm1180_vm2 = vcmask 31744  }
   0xe   : > { %8687 = vset.pattern.permute.xlu0 %v8894_v0  ;;  %749 = vperm.xlu2 %8689, %v699_v1   ;;  %v696_v6 = vld [vmem:[#allocation2 + $0x8] sm:$0xff]  ;;  %v703_v7 = vld [vmem:[#allocation2 + $0x40] sm:$0xff]  ;;  %v702_v8 = vld [vmem:[#allocation2 + $0x38] sm:$0xff]  ;;  %vm2064_vm3 = vcmask 1046528   ;;  %vm7534_vm4 = vcmask 64512   ;;  %vm7701_vm5 = vcmask 57344  }
   0xf   : > { %739 = vperm.xlu1 %8688, %v697_v2   ;;  %729 = vperm.xlu0 %8687, %v695_v3   ;;  %v701_v9 = vld [vmem:[#allocation2 + $0x30] sm:$0xff]  ;;  %v706_v10 = vld [vmem:[#allocation2 + $0x58] sm:$0xff]  ;;  %v704_v12 = vld [vmem:[#allocation2 + $0x48] sm:$0xff]  ;;  %s14968_s9 = smov (!%p346_p6, %s8949_s9), 1 }
  0x10   : > { %v705_v11 = vld [vmem:[#allocation2 + $0x50] sm:$0xff]  ;;  %v708_v14 = vld [vmem:[#allocation2 + $0x68] sm:$0xff]  ;;  %v707_v15 = vld [vmem:[#allocation2 + $0x60] sm:$0xff]  ;;  %s8968_s16 = sshll.u32 %s14968_s9, 8  ;;  %s371_s10 = scalar_lea.vmem %s13621_s8, %s14968_s9 }
  0x11   : > { %v709_v13 = vld [vmem:[#allocation2 + $0x70] sm:$0xff]  ;;  %v712_v16 = vld [vmem:[#allocation2 + $0x88] sm:$0xff]  ;;  %v711_v17 = vld [vmem:[#allocation2 + $0x80] sm:$0xff]  ;;  %s8974_s19 = scalar_lea.vmem %s13613_s0, %s8968_s16  ;;  %s9480_s12 = scalar_lea.vmem %s13614_s1, %s8968_s16 }
  0x12   : > { %v710_v18 = vld [vmem:[#allocation2 + $0x78] sm:$0xff]  ;;  %v715_v19 = vld [vmem:[#allocation2 + $0xa0] sm:$0xff]  ;;  %v713_v21 = vld [vmem:[#allocation2 + $0x90] sm:$0xff]  ;;  %s13123_s24 = scalar_lea.vmem %s13618_s5, %s8968_s16  ;;  %s13133_s28 = scalar_lea.vmem %s13619_s6, %s8968_s16 }
  0x13   : > { %v714_v20 = vld [vmem:[#allocation2 + $0x98] sm:$0xff]  ;;  %v717_v23 = vld [vmem:[#allocation2 + $0xb0] sm:$0xff]  ;;  %v716_v24 = vld [vmem:[#allocation2 + $0xa8] sm:$0xff] }
  0x14   : > { %v718_v22 = vld [vmem:[#allocation2 + $0xb8] sm:$0xff]  ;;  %v721_v25 = vld [vmem:[#allocation2 + $0xd0] sm:$0xff]  ;;  %v720_v26 = vld [vmem:[#allocation2 + $0xc8] sm:$0xff] }
  0x15   : > { %v719_v27 = vld [vmem:[#allocation2 + $0xc0] sm:$0xff]  ;;  %v724_v28 = vld [vmem:[#allocation2 + $0xe8] sm:$0xff]  ;;  %v722_v30 = vld [vmem:[#allocation2 + $0xd8] sm:$0xff] }
  0x16   : > { %754 = vperm.xlu2 %8689, %v700_v4   ;;  %v723_v29 = vld [vmem:[#allocation2 + $0xe0] sm:$0xff]  ;;  %v726_v32 = vld [vmem:[#allocation2 + $0xf8] sm:$0xff]  ;;  %v725_v33 = vld [vmem:[#allocation2 + $0xf0] sm:$0xff] }
  0x17   : > { %744 = vperm.xlu1 %8688, %v698_v5   ;;  %734 = vperm.xlu0 %8687, %v696_v6   ;;  %v954_v31 = vld [vmem:[#allocation2 + $0x100] sm:$0xff]  ;;  %v957_v34 = vld [vmem:[#allocation2 + $0x118] sm:$0xff]  ;;  %v956_v35 = vld [vmem:[#allocation2 + $0x110] sm:$0xff] }
  0x18   : > { %v919_v36 = vld [vmem:[%s13615_s2] sm:$0xf]  ;;  %v955_v37 = vld [vmem:[#allocation2 + $0x108] sm:$0xff]  ;;  %v960_v39 = vld [vmem:[#allocation2 + $0x130] sm:$0xff] }
  0x19   : > { %8081 = vmatpush.msk.msra.mxu1 %vm1277_vm0, %v919_v36  ;;  %8664 = vmatpush.msk.msra.mxu3 %vm1277_vm0, %v919_v36  ;;  %v959_v40 = vld [vmem:[#allocation2 + $0x128] sm:$0xff]  ;;  %v958_v41 = vld [vmem:[#allocation2 + $0x120] sm:$0xff]  ;;  %v961_v45 = vld [vmem:[#allocation2 + $0x138] sm:$0xff] }
  0x1a   : > { %v963_v43 = vld [vmem:[#allocation2 + $0x148] sm:$0xff]  ;;  %v962_v44 = vld [vmem:[#allocation2 + $0x140] sm:$0xff]  ;;  %v8982_v48 = vld [vmem:[%s8974_s19 + $0xf0] sm:$0xff] }
  0x1b   : > { %v8979_v47 = vld [vmem:[%s8974_s19 + $0xe8] sm:$0xff]  ;;  %13929 = vst [vmem:[#allocation6_spill] sm:$0xff] %v8982_v48  ;;  %v966_v49 = vld [vmem:[#allocation2 + $0x160] sm:$0xff]  ;;  %v965_v50 = vld [vmem:[#allocation2 + $0x158] sm:$0xff]  ;;  %v441_v52 = vrot.slane %v8982_v48, 7 }
  0x1c   : > { %v13622_v51 = vrot.slane %v8979_v47, 7  ;;  %v964_v53 = vld [vmem:[#allocation2 + $0x150] sm:$0xff]  ;;  %v8996_v57 = vld [vmem:[%s8974_s19 + $0xf8] sm:$0xff]  ;;  %v967_v63 = vld [vmem:[#allocation2 + $0x168] sm:$0xff] }
  0x1d   : > { %v443_v60 = vrot.slane %v8996_v57, 7  ;;  %v969_v61 = vld [vmem:[#allocation2 + $0x178] sm:$0xff]  ;;  %v968_v62 = vld [vmem:[#allocation2 + $0x170] sm:$0xff]  ;;  %v9008_v1 = vld [vmem:[%s8974_s19] sm:$0xff] }
  0x1e   : > { %769 = vperm.xlu2 %8689, %v703_v7   ;;  %v8989_v54 = vsel %vm439_vm1, %v13622_v51, %v441_v52  ;;  %v477_v6 = vrot.slane %v9008_v1, 7  ;;  %v972_v7 = vld [vmem:[#allocation2 + $0x190] sm:$0xff] }
  0x1f   : > { %764 = vperm.xlu1 %8688, %v702_v8   ;;  %759 = vperm.xlu0 %8687, %v701_v9   ;;  %13930 = vst [vmem:[#allocation7_spill] sm:$0xff] %v8989_v54  ;;  %v9005_v0 = vsel %vm439_vm1, %v441_v52, %v443_v60  ;;  %v971_v8 = vld [vmem:[#allocation2 + $0x188] sm:$0xff]  ;;  %v970_v9 = vld [vmem:[#allocation2 + $0x180] sm:$0xff]  ;;  %v9071_v36 = vld [vmem:[%s8974_s19 + $0x70] sm:$0xff] }
  0x20   : > { %13932 = vst [vmem:[#allocation9_spill] sm:$0xff] %v9005_v0  ;;  %v2262_v51 = vld [vmem:[#allocation2 + $0x210] sm:$0xff] }
  0x26   : > { %784 = vperm.xlu2 %8689, %v706_v10   ;;  %v9021_v10 = vsel %vm439_vm1, %v443_v60, %v477_v6 }
  0x27   : > { %779 = vperm.xlu1 %8688, %v705_v11   ;;  %774 = vperm.xlu0 %8687, %v704_v12   ;;  %13934 = vst [vmem:[#allocation11_spill] sm:$0xff] %v9021_v10  ;;  %v9024_v11 = vld [vmem:[%s8974_s19 + $0x8] sm:$0xff] }
  0x2e   : > { %799 = vperm.xlu2 %8689, %v709_v13  }
  0x2f   : > { %794 = vperm.xlu1 %8688, %v708_v14   ;;  %789 = vperm.xlu0 %8687, %v707_v15  }
  0x36   : > { %814 = vperm.xlu2 %8689, %v712_v16   ;;  %v478_v16 = vrot.slane %v9024_v11, 7 }
  0x37   : > { %809 = vperm.xlu1 %8688, %v711_v17   ;;  %804 = vperm.xlu0 %8687, %v710_v18   ;;  %v975_v17 = vld [vmem:[#allocation2 + $0x1a8] sm:$0xff]  ;;  %v974_v18 = vld [vmem:[#allocation2 + $0x1a0] sm:$0xff] }
  0x3e   : > { %829 = vperm.xlu2 %8689, %v715_v19   ;;  %v973_v19 = vld [vmem:[#allocation2 + $0x198] sm:$0xff] }
  0x3f   : > { %824 = vperm.xlu1 %8688, %v714_v20   ;;  %819 = vperm.xlu0 %8687, %v713_v21   ;;  %v9037_v20 = vsel %vm439_vm1, %v477_v6, %v478_v16  ;;  %v9040_v21 = vld [vmem:[%s8974_s19 + $0x10] sm:$0xff] }
  0x40   : > { %13937 = vst [vmem:[#allocation14_spill] sm:$0xff] %v9037_v20 }
  0x46   : > { %844 = vperm.xlu2 %8689, %v718_v22  }
  0x47   : > { %839 = vperm.xlu1 %8688, %v717_v23   ;;  %834 = vperm.xlu0 %8687, %v716_v24  }
  0x4e   : > { %859 = vperm.xlu2 %8689, %v721_v25  }
  0x4f   : > { %854 = vperm.xlu1 %8688, %v720_v26   ;;  %849 = vperm.xlu0 %8687, %v719_v27   ;;  %v8047_v26 = vld [vmem:[%s13615_s2 + $0x4] sm:$0xf]  ;;  %v480_v27 = vrot.slane %v9040_v21, 7 }
  0x50   : > { %8048 = vmatpush.msk.msra.mxu0 %vm1277_vm0, %v8047_v26  ;;  %8663 = vmatpush.msk.msra.mxu2 %vm1277_vm0, %v8047_v26 }
  0x56   : > { %874 = vperm.xlu2 %8689, %v724_v28   ;;  %v978_v28 = vld [vmem:[#allocation2 + $0x1c0] sm:$0xff] }
  0x57   : > { %869 = vperm.xlu1 %8688, %v723_v29   ;;  %864 = vperm.xlu0 %8687, %v722_v30   ;;  %v977_v29 = vld [vmem:[#allocation2 + $0x1b8] sm:$0xff]  ;;  %v976_v30 = vld [vmem:[#allocation2 + $0x1b0] sm:$0xff] }
  0x5e   : > { %988 = vperm.xlu2 %8689, %v954_v31   ;;  %v9058_v31 = vsel %vm439_vm1, %v478_v16, %v480_v27 }
  0x5f   : > { %884 = vperm.xlu1 %8688, %v726_v32   ;;  %879 = vperm.xlu0 %8687, %v725_v33   ;;  %13941 = vst [vmem:[#allocation18_spill] sm:$0xff] %v9058_v31  ;;  %v9061_v32 = vld [vmem:[%s8974_s19 + $0x68] sm:$0xff]  ;;  %v9064_v33 = vld [vmem:[%s8974_s19 + $0x18] sm:$0xff] }
  0x66   : > { %1003 = vperm.xlu2 %8689, %v957_v34  }
  0x67   : > { %998 = vperm.xlu1 %8688, %v956_v35   ;;  %993 = vperm.xlu0 %8687, %v955_v37  }
  0x68   : > { %v8959_v38 = vpop.permute.xlu2 %749 }
  0x6e   : > { %1018 = vperm.xlu2 %8689, %v960_v39   ;;  %v891_v39 = vmul.f32 %v8959_v38, %v9058_v31 }
  0x6f   : > { %1013 = vperm.xlu1 %8688, %v959_v40   ;;  %1008 = vperm.xlu0 %8687, %v958_v41   ;;  %v13623_v40 = vrot.slane %v9061_v32, 7  ;;  %v482_v41 = vrot.slane %v9064_v33, 7 }
  0x70   : > { %v8965_v42 = vpop.permute.xlu2 %754 }
  0x71   : > { %v9087_v52 = vsel %vm439_vm1, %v480_v27, %v482_v41 }
  0x72   : > { %13945 = vst [vmem:[#allocation22_spill] sm:$0xff] %v9087_v52 }
  0x76   : > { %1033 = vperm.xlu2 %8689, %v963_v43   ;;  %v981_v43 = vld [vmem:[#allocation2 + $0x1d8] sm:$0xff] }
  0x77   : > { %1028 = vperm.xlu1 %8688, %v962_v44   ;;  %1023 = vperm.xlu0 %8687, %v961_v45   ;;  %v980_v44 = vld [vmem:[#allocation2 + $0x1d0] sm:$0xff]  ;;  %v504_v45 = vrot.slane %v9071_v36, 7 }
  0x78   : > { %v8976_v46 = vpop.permute.xlu2 %769 }
  0x79   : > { %13928 = vst [vmem:[#allocation5_spill] sm:$0xff] %v8976_v46 }
  0x7e   : > { %1048 = vperm.xlu2 %8689, %v966_v49   ;;  %v979_v49 = vld [vmem:[#allocation2 + $0x1c8] sm:$0xff] }
  0x7f   : > { %1043 = vperm.xlu1 %8688, %v965_v50   ;;  %1038 = vperm.xlu0 %8687, %v964_v53   ;;  %v9084_v50 = vsel %vm439_vm1, %v13623_v40, %v504_v45  ;;  %v9090_v53 = vld [vmem:[%s8974_s19 + $0x78] sm:$0xff] }
  0x80   : > { %v8991_v55 = vpop.permute.xlu2 %784  ;;  %13944 = vst [vmem:[#allocation21_spill] sm:$0xff] %v9084_v50  ;;  %v506_v6 = vrot.slane %v9090_v53, 7 }
  0x81   : > { %13931 = vst [vmem:[#allocation8_spill] sm:$0xff] %v8991_v55  ;;  %v8993_v56 = vpop.permute.xlu1 %739  ;;  %v8998_v58 = vpop.permute.xlu0 %729 }
  0x82   : > { %v887_v59 = vmul.f32 %v8998_v58, %v8989_v54  ;;  %v889_v15 = vmul.f32 %v8993_v56, %v9021_v10  ;;  %v9110_v16 = vsel %vm439_vm1, %v504_v45, %v506_v6  ;;  %v9171_v54 = vld [vmem:[%s8974_s19 + $0x90] sm:$0xff] }
  0x83   : > { %13948 = vst [vmem:[#allocation25_spill] sm:$0xff] %v9110_v16 }
  0x84   : > { %8082 = vmatmul.msk.f32.vlgmr.msra.gmra.mxu1 %vm1180_vm2, %v887_v59  ;;  %v9093_v59 = vld [vmem:[%s8974_s19 + $0x20] sm:$0xff] }
  0x86   : > { %1063 = vperm.xlu2 %8689, %v969_v61  }
  0x87   : > { %1058 = vperm.xlu1 %8688, %v968_v62   ;;  %1053 = vperm.xlu0 %8687, %v967_v63  }
  0x88   : > { %v9010_v2 = vpop.permute.xlu2 %799 }
  0x89   : > { %13933 = vst [vmem:[#allocation10_spill] sm:$0xff] %v9010_v2  ;;  %v9012_v3 = vpop.permute.xlu1 %744  ;;  %v9014_v4 = vpop.permute.xlu0 %734 }
  0x8a   : > { %v888_v5 = vmul.f32 %v9014_v4, %v9005_v0  ;;  %v890_v25 = vmul.f32 %v9012_v3, %v9037_v20  ;;  %v9221_v20 = vld [vmem:[%s8974_s19 + $0x48] sm:$0xff] }
  0x8c   : > { %8083 = vmatmul.msk.f32.gmra.mxu1 %vm1180_vm2, %v888_v5  ;;  %v892_v5 = vmul.f32 %v8965_v42, %v9087_v52 }
  0x8e   : > { %1078 = vperm.xlu2 %8689, %v972_v7   ;;  %v484_v7 = vrot.slane %v9093_v59, 7 }
  0x8f   : > { %1073 = vperm.xlu1 %8688, %v971_v8   ;;  %1068 = vperm.xlu0 %8687, %v970_v9   ;;  %v984_v8 = vld [vmem:[#allocation2 + $0x1f0] sm:$0xff]  ;;  %v983_v9 = vld [vmem:[#allocation2 + $0x1e8] sm:$0xff] }
  0x90   : > { %v9026_v12 = vpop.permute.xlu2 %814 }
  0x91   : > { %13935 = vst [vmem:[#allocation12_spill] sm:$0xff] %v9026_v12  ;;  %v9028_v13 = vpop.permute.xlu1 %764  ;;  %v9030_v14 = vpop.permute.xlu0 %759  ;;  %v904_v27 = vmul.f32 %v9026_v12, %v9110_v16  ;;  %v2265_v16 = vld [vmem:[#allocation2 + $0x228] sm:$0xff] }
  0x92   : > { %13936 = vst [vmem:[#allocation13_spill] sm:$0xff] %v9028_v13 }
  0x94   : > { %8084 = vmatmul.msk.f32.gmra.mxu1 %vm1180_vm2, %v889_v15  ;;  %v982_v15 = vld [vmem:[#allocation2 + $0x1e0] sm:$0xff] }
  0x96   : > { %1093 = vperm.xlu2 %8689, %v975_v17   ;;  %v9113_v17 = vsel %vm439_vm1, %v482_v41, %v484_v7  ;;  %v2261_v41 = vld [vmem:[#allocation2 + $0x208] sm:$0xff] }
  0x97   : > { %1088 = vperm.xlu1 %8688, %v974_v18   ;;  %1083 = vperm.xlu0 %8687, %v973_v19   ;;  %13949 = vst [vmem:[#allocation26_spill] sm:$0xff] %v9113_v17  ;;  %v9116_v18 = vld [vmem:[%s8974_s19 + $0x80] sm:$0xff]  ;;  %v9119_v19 = vld [vmem:[%s8974_s19 + $0x28] sm:$0xff] }
  0x98   : > { %v9042_v22 = vpop.permute.xlu2 %829 }
  0x99   : > { %13938 = vst [vmem:[#allocation15_spill] sm:$0xff] %v9042_v22  ;;  %v9044_v23 = vpop.permute.xlu1 %779  ;;  %v9046_v24 = vpop.permute.xlu0 %774 }
  0x9a   : > { %13939 = vst [vmem:[#allocation16_spill] sm:$0xff] %v9044_v23 }
  0x9b   : > { %13940 = vst [vmem:[#allocation17_spill] sm:$0xff] %v9046_v24 }
  0x9c   : > { %8085 = vmatmul.msk.f32.gmra.mxu1 %vm1180_vm2, %v890_v25 }
  0x9e   : > { %1108 = vperm.xlu2 %8689, %v978_v28  }
  0x9f   : > { %1103 = vperm.xlu1 %8688, %v977_v29   ;;  %1098 = vperm.xlu0 %8687, %v976_v30   ;;  %v893_v29 = vmul.f32 %v9030_v14, %v9113_v17  ;;  %v508_v30 = vrot.slane %v9116_v18, 7 }
  0xa0   : > { %v9066_v34 = vpop.permute.xlu2 %844 }
  0xa1   : > { %13942 = vst [vmem:[#allocation19_spill] sm:$0xff] %v9066_v34  ;;  %v9068_v35 = vpop.permute.xlu1 %794  ;;  %v9073_v37 = vpop.permute.xlu0 %789  ;;  %v9136_v45 = vsel %vm439_vm1, %v506_v6, %v508_v30 }
  0xa2   : > { %13943 = vst [vmem:[#allocation20_spill] sm:$0xff] %v9073_v37 }
  0xa3   : > { %13953 = vst [vmem:[#allocation30_spill] sm:$0xff] %v9136_v45 }
  0xa4   : > { %8086 = vmatmul.msk.f32.gmra.mxu1 %vm1180_vm2, %v891_v39  ;;  %v486_v39 = vrot.slane %v9119_v19, 7 }
  0xa6   : > { %1123 = vperm.xlu2 %8689, %v981_v43   ;;  %v2260_v43 = vld [vmem:[#allocation2 + $0x200] sm:$0xff] }
  0xa7   : > { %1118 = vperm.xlu1 %8688, %v980_v44   ;;  %1113 = vperm.xlu0 %8687, %v979_v49   ;;  %v985_v44 = vld [vmem:[#allocation2 + $0x1f8] sm:$0xff]  ;;  %v9139_v49 = vsel %vm439_vm1, %v484_v7, %v486_v39 }
  0xa8   : > { %v9095_v60 = vpop.permute.xlu2 %859  ;;  %13954 = vst [vmem:[#allocation31_spill] sm:$0xff] %v9139_v49  ;;  %v894_v7 = vmul.f32 %v9028_v13, %v9139_v49 }
  0xa9   : > { %13946 = vst [vmem:[#allocation23_spill] sm:$0xff] %v9095_v60  ;;  %v9097_v61 = vpop.permute.xlu1 %809  ;;  %v9101_v63 = vpop.permute.xlu0 %804 }
  0xaa   : > { %13947 = vst [vmem:[#allocation24_spill] sm:$0xff] %v9097_v61  ;;  %v903_v62 = vmul.f32 %v9097_v61, %v9084_v50 }
  0xac   : > { %8098 = vmatmul.msk.f32.vlgmr.msra.gmra.mxu3 %vm1180_vm2, %v903_v62  ;;  %8087 = vmatmul.msk.f32.gmra.mxu1 %vm1180_vm2, %v892_v5  ;;  %v9142_v62 = vld [vmem:[%s8974_s19 + $0x30] sm:$0xff] }
  0xae   : > { %1138 = vperm.xlu2 %8689, %v984_v8  }
  0xaf   : > { %1133 = vperm.xlu1 %8688, %v983_v9   ;;  %1128 = vperm.xlu0 %8687, %v982_v15   ;;  %v9149_v9 = vld [vmem:[%s8974_s19 + $0x88] sm:$0xff] }
  0xb0   : > { %v9121_v25 = vpop.permute.xlu2 %874 }
  0xb1   : > { %13950 = vst [vmem:[#allocation27_spill] sm:$0xff] %v9121_v25  ;;  %v9123_v26 = vpop.permute.xlu1 %824  ;;  %v9127_v28 = vpop.permute.xlu0 %819 }
  0xb2   : > { %13951 = vst [vmem:[#allocation28_spill] sm:$0xff] %v9123_v26  ;;  %v905_v15 = vmul.f32 %v9127_v28, %v9136_v45 }
  0xb3   : > { %13952 = vst [vmem:[#allocation29_spill] sm:$0xff] %v9127_v28  ;;  %v2271_v28 = vld [vmem:[#allocation2 + $0x258] sm:$0xff] }
  0xb4   : > { %8099 = vmatmul.msk.f32.gmra.mxu3 %vm1180_vm2, %v904_v27  ;;  %8088 = vmatmul.msk.f32.gmra.mxu1 %vm1180_vm2, %v893_v29  ;;  %v488_v29 = vrot.slane %v9142_v62, 7 }
  0xb6   : > { %2299 = vperm.xlu2 %8689, %v2261_v41   ;;  %v2264_v41 = vld [vmem:[#allocation2 + $0x220] sm:$0xff]  ;;  %v9168_v0 = vsel %vm439_vm1, %v486_v39, %v488_v29 }
  0xb7   : > { %2294 = vperm.xlu1 %8688, %v2260_v43   ;;  %1143 = vperm.xlu0 %8687, %v985_v44   ;;  %v2263_v43 = vld [vmem:[#allocation2 + $0x218] sm:$0xff]  ;;  %v510_v44 = vrot.slane %v9149_v9, 7  ;;  %13959 = vst [vmem:[#allocation36_spill] sm:$0xff] %v9168_v0 }
  0xb8   : > { %v9144_v5 = vpop.permute.xlu2 %988 }
  0xb9   : > { %13955 = vst [vmem:[#allocation32_spill] sm:$0xff] %v9144_v5  ;;  %v9146_v8 = vpop.permute.xlu1 %839  ;;  %v1146_v6 = vmul.f32 %v9144_v5, %v8982_v48  ;;  %v9155_v27 = vpop.permute.xlu0 %834  ;;  %v9165_v40 = vsel %vm439_vm1, %v508_v30, %v510_v44  ;;  %v895_v30 = vmul.f32 %v8976_v46, %v9168_v0  ;;  %v9195_v0 = vld [vmem:[%s8974_s19 + $0x98] sm:$0xff] }
  0xba   : > { %13956 = vst [vmem:[#allocation33_spill] sm:$0xff] %v9146_v8  ;;  %v2275_v5 = vld [vmem:[#allocation2 + $0x278] sm:$0xff] }
  0xbb   : > { %13957 = vst [vmem:[#allocation34_spill] sm:$0xff] %v9155_v27  ;;  %8049 = vmatmul.msk.f32.vlgmr.msra.gmra.mxu0 %vm1180_vm2, %v1146_v6  ;;  %v9174_v6 = vld [vmem:[%s8974_s19 + $0x38] sm:$0xff] }
  0xbc   : > { %8100 = vmatmul.msk.f32.gmra.mxu3 %vm1180_vm2, %v905_v15  ;;  %8089 = vmatmul.msk.f32.gmra.mxu1 %vm1180_vm2, %v894_v7  ;;  %13958 = vst [vmem:[#allocation35_spill] sm:$0xff] %v9165_v40  ;;  %v906_v7 = vmul.f32 %v9123_v26, %v9165_v40  ;;  %v490_v39 = vrot.slane %v9174_v6, 7  ;;  %v9318_v46 = vld [vmem:[%s8974_s19 + $0xb8] sm:$0xff] }
  0xbd   : > { %v522_v13 = vrot.slane %v9318_v46, 7 }
  0xbe   : > { %2314 = vperm.xlu2 %8689, %v2264_v41   ;;  %v512_v41 = vrot.slane %v9171_v54, 7  ;;  %v9192_v40 = vsel %vm439_vm1, %v488_v29, %v490_v39  ;;  %v514_v29 = vrot.slane %v9195_v0, 7 }
  0xbf   : > { %2309 = vperm.xlu1 %8688, %v2263_v43   ;;  %2304 = vperm.xlu0 %8687, %v2262_v51   ;;  %v2267_v51 = vld [vmem:[#allocation2 + $0x238] sm:$0xff]  ;;  %v2266_v43 = vld [vmem:[#allocation2 + $0x230] sm:$0xff]  ;;  %13963 = vst [vmem:[#allocation40_spill] sm:$0xff] %v9192_v40 }
  0xc0   : > { %v9189_v50 = vsel %vm439_vm1, %v510_v44, %v512_v41  ;;  %v896_v44 = vmul.f32 %v9046_v24, %v9192_v40  ;;  %v9215_v31 = vsel %vm439_vm1, %v512_v41, %v514_v29 }
  0xc1   : > { %v9176_v15 = vpop.permute.xlu1 %854  ;;  %v9180_v45 = vpop.permute.xlu0 %849  ;;  %13962 = vst [vmem:[#allocation39_spill] sm:$0xff] %v9189_v50 }
  0xc2   : > { %13960 = vst [vmem:[#allocation37_spill] sm:$0xff] %v9176_v15 }
  0xc3   : > { %13961 = vst [vmem:[#allocation38_spill] sm:$0xff] %v9180_v45 }
  0xc4   : > { %8101 = vmatmul.msk.f32.gmra.mxu3 %vm1180_vm2, %v906_v7  ;;  %8090 = vmatmul.msk.f32.gmra.mxu1 %vm1180_vm2, %v895_v30  ;;  %v907_v7 = vmul.f32 %v9042_v22, %v9189_v50  ;;  %v9204_v30 = vld [vmem:[%s8974_s19 + $0x40] sm:$0xff]  ;;  %13967 = vst [vmem:[#allocation44_spill] sm:$0xff] %v9215_v31 }
  0xc5   : > { %v2268_v50 = vld [vmem:[#allocation2 + $0x240] sm:$0xff]  ;;  %v492_v52 = vrot.slane %v9204_v30, 7 }
  0xc6   : > { %2329 = vperm.xlu2 %8689, %v2267_v51   ;;  %v9209_v51 = vpop.permute.xlu2 %1003 }
  0xc7   : > { %2324 = vperm.xlu1 %8688, %v2266_v43   ;;  %2319 = vperm.xlu0 %8687, %v2265_v16   ;;  %13966 = vst [vmem:[#allocation43_spill] sm:$0xff] %v9209_v51  ;;  %v2270_v16 = vld [vmem:[#allocation2 + $0x250] sm:$0xff]  ;;  %v2269_v43 = vld [vmem:[#allocation2 + $0x248] sm:$0xff]  ;;  %v9218_v40 = vsel %vm439_vm1, %v490_v39, %v492_v52  ;;  %v494_v39 = vrot.slane %v9221_v20, 7 }
  0xc8   : > { %13968 = vst [vmem:[#allocation45_spill] sm:$0xff] %v9218_v40  ;;  %v897_v41 = vmul.f32 %v9044_v23, %v9218_v40  ;;  %v9285_v23 = vld [vmem:[%s8974_s19 + $0x58] sm:$0xff] }
  0xc9   : > { %v9197_v49 = vpop.permute.xlu1 %869  ;;  %v9201_v17 = vpop.permute.xlu0 %864  ;;  %v9244_v40 = vsel %vm439_vm1, %v492_v52, %v494_v39 }
  0xca   : > { %13964 = vst [vmem:[#allocation41_spill] sm:$0xff] %v9197_v49 }
  0xcb   : > { %13965 = vst [vmem:[#allocation42_spill] sm:$0xff] %v9201_v17 }
  0xcc   : > { %8102 = vmatmul.msk.f32.gmra.mxu3 %vm1180_vm2, %v907_v7  ;;  %8091 = vmatmul.msk.f32.gmra.mxu1 %vm1180_vm2, %v896_v44  ;;  %v9226_v7 = vld [vmem:[%s8974_s19 + $0xa0] sm:$0xff]  ;;  %v908_v44 = vmul.f32 %v9155_v27, %v9215_v31  ;;  %13972 = vst [vmem:[#allocation49_spill] sm:$0xff] %v9244_v40  ;;  %v9247_v27 = vld [vmem:[%s8974_s19 + $0xa8] sm:$0xff] }
  0xce   : > { %2344 = vperm.xlu2 %8689, %v2270_v16   ;;  %v2272_v16 = vld [vmem:[#allocation2 + $0x260] sm:$0xff]  ;;  %v9237_v26 = vpop.permute.xlu2 %1018 }
  0xcf   : > { %2339 = vperm.xlu1 %8688, %v2269_v43   ;;  %2334 = vperm.xlu0 %8687, %v2268_v50   ;;  %v2273_v50 = vld [vmem:[#allocation2 + $0x268] sm:$0xff]  ;;  %v516_v43 = vrot.slane %v9226_v7, 7 }
  0xd1   : > { %v9223_v10 = vpop.permute.xlu1 %884  ;;  %v9230_v22 = vpop.permute.xlu0 %879  ;;  %v9241_v31 = vsel %vm439_vm1, %v514_v29, %v516_v43  ;;  %v898_v29 = vmul.f32 %v8991_v55, %v9244_v40  ;;  %v9276_v55 = vld [vmem:[%s8974_s19 + $0xb0] sm:$0xff] }
  0xd2   : > { %13969 = vst [vmem:[#allocation46_spill] sm:$0xff] %v9223_v10  ;;  %v909_v61 = vmul.f32 %v9146_v8, %v9241_v31 }
  0xd3   : > { %13970 = vst [vmem:[#allocation47_spill] sm:$0xff] %v9230_v22 }
  0xd4   : > { %8103 = vmatmul.msk.f32.gmra.mxu3 %vm1180_vm2, %v908_v44  ;;  %8092 = vmatmul.msk.f32.gmra.mxu1 %vm1180_vm2, %v897_v41  ;;  %13971 = vst [vmem:[#allocation48_spill] sm:$0xff] %v9241_v31  ;;  %v9250_v44 = vld [vmem:[%s8974_s19 + $0x50] sm:$0xff] }
  0xd5   : > { %v2274_v31 = vld [vmem:[#allocation2 + $0x270] sm:$0xff] }
  0xd6   : > { %2359 = vperm.xlu2 %8689, %v2273_v50   ;;  %v518_v50 = vrot.slane %v9247_v27, 7  ;;  %v9270_v40 = vpop.permute.xlu2 %1033 }
  0xd7   : > { %2354 = vperm.xlu1 %8688, %v2272_v16   ;;  %2349 = vperm.xlu0 %8687, %v2271_v28   ;;  %v496_v28 = vrot.slane %v9250_v44, 7  ;;  %v2276_v16 = vld [vmem:[#allocation2 + $0x280] sm:$0xff] }
  0xd8   : > { %v9268_v8 = vsel %vm439_vm1, %v516_v43, %v518_v50 }
  0xd9   : > { %v9252_v12 = vpop.permute.xlu1 %998  ;;  %v9256_v41 = vpop.permute.xlu0 %993  ;;  %13975 = vst [vmem:[#allocation52_spill] sm:$0xff] %v9268_v8 }
  0xda   : > { %13973 = vst [vmem:[#allocation50_spill] sm:$0xff] %v9252_v12  ;;  %v1147_v52 = vmul.f32 %v9256_v41, %v8996_v57 }
  0xdb   : > { %13974 = vst [vmem:[#allocation51_spill] sm:$0xff] %v9256_v41  ;;  %v9273_v41 = vsel %vm439_vm1, %v494_v39, %v496_v28  ;;  %v1148_v39 = vmul.f32 %v9252_v12, %v9008_v1  ;;  %v498_v12 = vrot.slane %v9285_v23, 7 }
  0xdc   : > { %8104 = vmatmul.msk.f32.gmra.mxu3 %vm1180_vm2, %v909_v61  ;;  %8050 = vmatmul.msk.f32.gmra.mxu0 %vm1180_vm2, %v1147_v52  ;;  %13976 = vst [vmem:[#allocation53_spill] sm:$0xff] %v9273_v41  ;;  %v910_v52 = vmul.f32 %v9066_v34, %v9268_v8  ;;  %v899_v43 = vmul.f32 %v9073_v37, %v9273_v41  ;;  %v2277_v8 = vld [vmem:[#allocation2 + $0x288] sm:$0xff]  ;;  %v8114_v41 = vld [vmem:[%s13616_s3 + $0x4] sm:$0xf]  ;;  %v952_v34 = vld [vmem:[%s13616_s3] sm:$0xf] }
  0xdd   : > { %8093 = vmatmul.msk.f32.gmra.mxu1 %vm1180_vm2, %v898_v29  ;;  %8115 = vmatpush.msk.msrb.mxu2 %vm1277_vm0, %v8114_v41 }
  0xde   : > { %2374 = vperm.xlu2 %8689, %v2276_v16   ;;  %v2278_v16 = vld [vmem:[#allocation2 + $0x290] sm:$0xff]  ;;  %8148 = vmatpush.msk.msrb.mxu3 %vm1277_vm0, %v952_v34  ;;  %v9313_v37 = vpop.permute.xlu2 %1048 }
  0xdf   : > { %2369 = vperm.xlu1 %8688, %v2275_v5   ;;  %2364 = vperm.xlu0 %8687, %v2274_v31   ;;  %v520_v5 = vrot.slane %v9276_v55, 7  ;;  %v2279_v31 = vld [vmem:[#allocation2 + $0x298] sm:$0xff] }
  0xe1   : > { %v9278_v61 = vpop.permute.xlu1 %1013  ;;  %v9282_v29 = vpop.permute.xlu0 %1008 }
  0xe2   : > { %13977 = vst [vmem:[#allocation54_spill] sm:$0xff] %v9278_v61 }
  0xe4   : > { %8105 = vmatmul.msk.f32.gmra.mxu3 %vm1180_vm2, %v910_v52  ;;  %8051 = vmatmul.msk.f32.gmra.mxu0 %vm1180_vm2, %v1148_v39  ;;  %v9305_v52 = vsel %vm439_vm1, %v518_v50, %v520_v5  ;;  %v9311_v39 = vld [vmem:[%s8974_s19 + $0x60] sm:$0xff] }
  0xe5   : > { %8094 = vmatmul.msk.f32.gmra.mxu1 %vm1180_vm2, %v899_v43  ;;  %13978 = vst [vmem:[#allocation55_spill] sm:$0xff] %v9305_v52  ;;  %v9308_v43 = vsel %vm439_vm1, %v496_v28, %v498_v12  ;;  %v911_v34 = vmul.f32 %v9180_v45, %v9305_v52  ;;  %v1149_v28 = vmul.f32 %v9209_v51, %v9024_v11  ;;  %v2280_v52 = vld [vmem:[#allocation2 + $0x2a0] sm:$0xff]  ;;  %v8215_v11 = vld [vmem:[%s13616_s3 + $0x8] sm:$0xf] }
  0xe6   : > { %2389 = vperm.xlu2 %8689, %v2279_v31   ;;  %13979 = vst [vmem:[#allocation56_spill] sm:$0xff] %v9308_v43  ;;  %v900_v50 = vmul.f32 %v9068_v35, %v9308_v43  ;;  %v2282_v31 = vld [vmem:[#allocation2 + $0x2b0] sm:$0xff]  ;;  %v8181_v43 = vld [vmem:[%s13615_s2 + $0x8] sm:$0xf]  ;;  %8216 = vmatpush.msk.msrb.mxu1 %vm1277_vm0, %v8215_v11  ;;  %v2284_v11 = vld [vmem:[#allocation2 + $0x2c0] sm:$0xff] }
  0xe7   : > { %2384 = vperm.xlu1 %8688, %v2278_v16   ;;  %2379 = vperm.xlu0 %8687, %v2277_v8   ;;  %v500_v8 = vrot.slane %v9311_v39, 7  ;;  %v2281_v16 = vld [vmem:[#allocation2 + $0x2a8] sm:$0xff] }
  0xe8   : > { %8182 = vmatpush.msk.msrb.mxu0 %vm1277_vm0, %v8181_v43 }
  0xe9   : > { %v9315_v24 = vpop.permute.xlu1 %1028  ;;  %v9322_v41 = vpop.permute.xlu0 %1023 }
  0xec   : > { %8106 = vmatmul.msk.f32.gmra.mxu3 %vm1180_vm2, %v911_v34  ;;  %8052 = vmatmul.msk.f32.gmra.mxu0 %vm1180_vm2, %v1149_v28  ;;  %v9342_v34 = vsel %vm439_vm1, %v520_v5, %v522_v13  ;;  %v9348_v28 = vld [vmem:[%s8974_s19 + $0xc0] sm:$0xff] }
  0xed   : > { %8095 = vmatmul.msk.f32.gmra.mxu1 %vm1180_vm2, %v900_v50  ;;  %13980 = vst [vmem:[#allocation57_spill] sm:$0xff] %v9342_v34  ;;  %v9345_v50 = vsel %vm439_vm1, %v498_v12, %v500_v8  ;;  %v912_v51 = vmul.f32 %v9176_v15, %v9342_v34  ;;  %v1150_v12 = vmul.f32 %v9282_v29, %v9040_v21  ;;  %v2283_v34 = vld [vmem:[#allocation2 + $0x2b8] sm:$0xff]  ;;  %v9375_v21 = vld [vmem:[%s8974_s19 + $0xc8] sm:$0xff] }
  0xee   : > { %2404 = vperm.xlu2 %8689, %v2282_v31   ;;  %13981 = vst [vmem:[#allocation58_spill] sm:$0xff] %v9345_v50  ;;  %v901_v5 = vmul.f32 %v9010_v2, %v9345_v50  ;;  %v524_v31 = vrot.slane %v9348_v28, 7  ;;  %v13983_v50 = vrot.slane %v9061_v32, 7 }
  0xef   : > { %2399 = vperm.xlu1 %8688, %v2281_v16   ;;  %2394 = vperm.xlu0 %8687, %v2280_v52   ;;  %v9359_v16 = vpop.permute.xlu2 %1063  ;;  %v2285_v52 = vld [vmem:[#allocation2 + $0x2c8] sm:$0xff] }
  0xf0   : > { %v9367_v15 = vsel %vm439_vm1, %v522_v13, %v524_v31  ;;  %v9372_v2 = vsel %vm439_vm1, %v500_v8, %v13983_v50  ;;  %v1151_v8 = vmul.f32 %v9278_v61, %v9064_v33  ;;  %v2288_v50 = vld [vmem:[#allocation2 + $0x2e0] sm:$0xff]  ;;  %v9399_v33 = vld [vmem:[%s8974_s19 + $0xd0] sm:$0xff] }
  0xf1   : > { %v9350_v45 = vpop.permute.xlu1 %1043  ;;  %v9354_v43 = vpop.permute.xlu0 %1038  ;;  %13982 = vst [vmem:[#allocation59_spill] sm:$0xff] %v9367_v15  ;;  %v902_v13 = vmul.f32 %v9101_v63, %v9372_v2 }
  0xf2   : > { %13984 = vst [vmem:[#allocation60_spill] sm:$0xff] %v9372_v2 }
  0xf4   : > { %8107 = vmatmul.msk.f32.gmra.mxu3 %vm1180_vm2, %v912_v51  ;;  %8053 = vmatmul.msk.f32.gmra.mxu0 %vm1180_vm2, %v1150_v12  ;;  %v913_v12 = vmul.f32 %v9095_v60, %v9367_v15  ;;  %v2286_v15 = vld [vmem:[#allocation2 + $0x2d0] sm:$0xff] }
  0xf5   : > { %8096 = vmatmul.msk.f32.gmra.mxu1 %vm1180_vm2, %v901_v5 }
  0xf6   : > { %2419 = vperm.xlu2 %8689, %v2285_v52   ;;  %v526_v52 = vrot.slane %v9375_v21, 7 }
  0xf7   : > { %2414 = vperm.xlu1 %8688, %v2284_v11   ;;  %2409 = vperm.xlu0 %8687, %v2283_v34   ;;  %v2287_v34 = vld [vmem:[#allocation2 + $0x2d8] sm:$0xff]  ;;  %v9389_v11 = vpop.permute.xlu2 %1078 }
  0xf8   : > { %13985 = vst [vmem:[#allocation61_spill] sm:$0xff] %v9389_v11  ;;  %v9394_v60 = vsel %vm439_vm1, %v524_v31, %v526_v52 }
  0xf9   : > { %v9377_v51 = vpop.permute.xlu1 %1058  ;;  %v9381_v5 = vpop.permute.xlu0 %1053  ;;  %13986 = vst [vmem:[#allocation62_spill] sm:$0xff] %v9394_v60 }
  0xfc   : > { %8108 = vmatmul.msk.f32.gmra.mxu3 %vm1180_vm2, %v913_v12  ;;  %8054 = vmatmul.msk.f32.gmra.mxu0 %vm1180_vm2, %v1151_v8  ;;  %v914_v12 = vmul.f32 %v9201_v17, %v9394_v60  ;;  %v2291_v8 = vld [vmem:[#allocation2 + $0x2f8] sm:$0xff] }
  0xfd   : > { %8097 = vmatmul.msk.f32.gmra.mxu1 %vm1180_vm2, %v902_v13  ;;  %v1152_v13 = vmul.f32 %v9237_v26, %v9093_v59  ;;  %v9419_v59 = vld [vmem:[%s8974_s19 + $0xd8] sm:$0xff] }
  0xfe   : > { %2434 = vperm.xlu2 %8689, %v2288_v50   ;;  %v528_v50 = vrot.slane %v9399_v33, 7 }
  0xff   : > { %2429 = vperm.xlu1 %8688, %v2287_v34   ;;  %2424 = vperm.xlu0 %8687, %v2286_v15   ;;  %v2290_v15 = vld [vmem:[#allocation2 + $0x2f0] sm:$0xff]  ;;  %v2289_v34 = vld [vmem:[#allocation2 + $0x2e8] sm:$0xff]  ;;  %v9416_v17 = vpop.permute.xlu2 %1093 }
 0x100   : > { %v9414_v60 = vsel %vm439_vm1, %v526_v52, %v528_v50  ;;  %13990 = vst [vmem:[#allocation66_spill] sm:$0xff] %v9416_v17  ;;  %v1153_v52 = vmul.f32 %v9322_v41, %v9119_v19  ;;  %v9441_v19 = vld [vmem:[%s8974_s19 + $0xe0] sm:$0xff] }
 0x101   : > { %v9396_v2 = vpop.permute.xlu1 %1073  ;;  %v9403_v61 = vpop.permute.xlu0 %1068  ;;  %13989 = vst [vmem:[#allocation65_spill] sm:$0xff] %v9414_v60 }
 0x102   : > { %13987 = vst [vmem:[#allocation63_spill] sm:$0xff] %v9396_v2  ;;  %v1162_v31 = vmul.f32 %v9403_v61, %v9071_v36 }
 0x103   : > { %13988 = vst [vmem:[#allocation64_spill] sm:$0xff] %v9403_v61  ;;  %v3010_v61 = vld [vmem:[#allocation2 + $0x308] sm:$0xff] }
 0x104   : > { %8109 = vmatmul.msk.f32.gmra.mxu3 %vm1180_vm2, %v914_v12  ;;  %8055 = vmatmul.msk.f32.gmra.mxu0 %vm1180_vm2, %v1152_v13  ;;  %v915_v12 = vmul.f32 %v9197_v49, %v9414_v60  ;;  %v3009_v60 = vld [vmem:[#allocation2 + $0x300] sm:$0xff] }
 0x105   : > { %8065 = vmatmul.msk.f32.vlgmr.msra.gmra.mxu2 %vm1180_vm2, %v1162_v31  ;;  %v530_v31 = vrot.slane %v9419_v59, 7 }
 0x106   : > { %2449 = vperm.xlu2 %8689, %v2291_v8   ;;  %v1163_v8 = vmul.f32 %v9396_v2, %v9090_v53 }
 0x107   : > { %2444 = vperm.xlu1 %8688, %v2290_v15   ;;  %2439 = vperm.xlu0 %8687, %v2289_v34   ;;  %v9432_v15 = vpop.f32.mrf.mxu1  ;;  %v3011_v34 = vld [vmem:[#allocation2 + $0x310] sm:$0xff]  ;;  %v9438_v49 = vsel %vm439_vm1, %v528_v50, %v530_v31  ;;  %v9443_v53 = vpop.permute.xlu2 %1108  ;;  %v1164_v50 = vmul.f32 %v9389_v11, %v9116_v18 }
 0x108   : > { %13993 = vst [vmem:[#allocation69_spill] sm:$0xff] %v9432_v15 }
 0x109   : > { %v9421_v36 = vpop.permute.xlu1 %1088  ;;  %v9425_v13 = vpop.permute.xlu0 %1083  ;;  %13994 = vst [vmem:[#allocation70_spill] sm:$0xff] %v9438_v49 }
 0x10a   : > { %13991 = vst [vmem:[#allocation67_spill] sm:$0xff] %v9421_v36 }
 0x10b   : > { %13992 = vst [vmem:[#allocation68_spill] sm:$0xff] %v9425_v13 }
 0x10c   : > { %8110 = vmatmul.msk.f32.gmra.mxu3 %vm1180_vm2, %v915_v12  ;;  %8056 = vmatmul.msk.f32.gmra.mxu0 %vm1180_vm2, %v1153_v52  ;;  %13995 = vst [vmem:[#allocation71_spill] sm:$0xff] %v9443_v53  ;;  %v916_v12 = vmul.f32 %v9121_v25, %v9438_v49  ;;  %v532_v52 = vrot.slane %v9441_v19, 7 }
 0x10d   : > { %8066 = vmatmul.msk.f32.gmra.mxu2 %vm1180_vm2, %v1163_v8  ;;  %v3013_v8 = vld [vmem:[#allocation2 + $0x320] sm:$0xff] }
 0x10e   : > { %3053 = vperm.xlu2 %8689, %v3011_v34   ;;  %v3012_v34 = vld [vmem:[#allocation2 + $0x318] sm:$0xff]  ;;  %v9462_v25 = vsel %vm439_vm1, %v530_v31, %v532_v52  ;;  %v3017_v31 = vld [vmem:[#allocation2 + $0x340] sm:$0xff] }
 0x10f   : > { %3048 = vperm.xlu1 %8688, %v3010_v61   ;;  %3043 = vperm.xlu0 %8687, %v3009_v60   ;;  %v1154_v61 = vmul.f32 %v9315_v24, %v9142_v62  ;;  %v3014_v60 = vld [vmem:[#allocation2 + $0x328] sm:$0xff]  ;;  %v9459_v49 = vpop.f32.mrf.mxu1  ;;  %13997 = vst [vmem:[#allocation73_spill] sm:$0xff] %v9462_v25  ;;  %v917_v62 = vmul.f32 %v9230_v22, %v9462_v25  ;;  %v9494_v25 = vld [vmem:[%s9480_s12 + $0xf0] sm:$0xff] }
 0x110   : > { %13996 = vst [vmem:[#allocation72_spill] sm:$0xff] %v9459_v49  ;;  %v1165_v49 = vmul.f32 %v9425_v13, %v9149_v9  ;;  %v14002_v9 = vrot.slane %v8979_v47, 7  ;;  %v570_v22 = vrot.slane %v9494_v25, 7  ;;  %v1156_v47 = vmul.f32 %v9354_v43, %v9204_v30 }
 0x111   : > { %v9445_v15 = vpop.permute.xlu1 %1103  ;;  %v9449_v2 = vpop.permute.xlu0 %1098 }
 0x114   : > { %8111 = vmatmul.msk.f32.gmra.mxu3 %vm1180_vm2, %v916_v12  ;;  %8057 = vmatmul.msk.f32.gmra.mxu0 %vm1180_vm2, %v1154_v61  ;;  %v1155_v61 = vmul.f32 %v9270_v40, %v9174_v6  ;;  %v3015_v6 = vld [vmem:[#allocation2 + $0x330] sm:$0xff] }
 0x115   : > { %8067 = vmatmul.msk.f32.gmra.mxu2 %vm1180_vm2, %v1164_v50  ;;  %v9472_v50 = vpop.permute.xlu2 %1123 }
 0x116   : > { %3068 = vperm.xlu2 %8689, %v3014_v60   ;;  %14000 = vst [vmem:[#allocation76_spill] sm:$0xff] %v9472_v50  ;;  %v3016_v60 = vld [vmem:[#allocation2 + $0x338] sm:$0xff] }
 0x117   : > { %3063 = vperm.xlu1 %8688, %v3013_v8   ;;  %3058 = vperm.xlu0 %8687, %v3012_v34   ;;  %v9486_v8 = vld [vmem:[%s9480_s12 + $0xe8] sm:$0xff]  ;;  %v9491_v34 = vsel %vm439_vm1, %v532_v52, %v14002_v9  ;;  %v1166_v52 = vmul.f32 %v9421_v36, %v9171_v54  ;;  %v3020_v9 = vld [vmem:[#allocation2 + $0x358] sm:$0xff] }
 0x118   : > { %14001 = vst [vmem:[#allocation77_spill] sm:$0xff] %v9486_v8  ;;  %v3018_v54 = vld [vmem:[#allocation2 + $0x348] sm:$0xff]  ;;  %v14008_v30 = vrot.slane %v9486_v8, 7  ;;  %v1158_v8 = vmul.f32 %v9313_v37, %v9250_v44 }
 0x119   : > { %v9464_v18 = vpop.permute.xlu1 %1118  ;;  %v9468_v12 = vpop.permute.xlu0 %1113  ;;  %14003 = vst [vmem:[#allocation78_spill] sm:$0xff] %v9491_v34 }
 0x11a   : > { %13998 = vst [vmem:[#allocation74_spill] sm:$0xff] %v9464_v18 }
 0x11b   : > { %13999 = vst [vmem:[#allocation75_spill] sm:$0xff] %v9468_v12 }
 0x11c   : > { %8112 = vmatmul.msk.f32.gmra.mxu3 %vm1180_vm2, %v917_v62  ;;  %8058 = vmatmul.msk.f32.gmra.mxu0 %vm1180_vm2, %v1155_v61  ;;  %v9496_v62 = vpop.f32.mrf.mxu1  ;;  %v918_v61 = vmul.f32 %v9223_v10, %v9491_v34 }
 0x11d   : > { %8068 = vmatmul.msk.f32.gmra.mxu2 %vm1180_vm2, %v1165_v49  ;;  %14004 = vst [vmem:[#allocation79_spill] sm:$0xff] %v9496_v62  ;;  %v3019_v49 = vld [vmem:[#allocation2 + $0x350] sm:$0xff]  ;;  %v9515_v34 = vpop.permute.xlu2 %1138 }
 0x11e   : > { %3083 = vperm.xlu2 %8689, %v3017_v31   ;;  %14007 = vst [vmem:[#allocation82_spill] sm:$0xff] %v9515_v34 }
 0x11f   : > { %3078 = vperm.xlu1 %8688, %v3016_v60   ;;  %3073 = vperm.xlu0 %8687, %v3015_v6   ;;  %v9512_v6 = vld [vmem:[%s9480_s12 + $0xf8] sm:$0xff]  ;;  %v9523_v60 = vsel %vm439_vm1, %v14008_v30, %v570_v22 }
 0x120   : > { %v2163_v62 = vrot.slane %v9512_v6, 1  ;;  %14009 = vst [vmem:[#allocation83_spill] sm:$0xff] %v9523_v60 }
 0x121   : > { %v9498_v13 = vpop.permute.xlu1 %1133  ;;  %v9508_v31 = vpop.permute.xlu0 %1128 }
 0x122   : > { %14005 = vst [vmem:[#allocation80_spill] sm:$0xff] %v9498_v13 }
 0x123   : > { %14006 = vst [vmem:[#allocation81_spill] sm:$0xff] %v9508_v31 }
 0x124   : > { %8113 = vmatmul.msk.f32.gmra.mxu3 %vm1180_vm2, %v918_v61  ;;  %8059 = vmatmul.msk.f32.gmra.mxu0 %vm1180_vm2, %v1156_v47  ;;  %v14010_v61 = vrot.slane %v9494_v25, 1  ;;  %v9533_v47 = vld [vmem:[%s9480_s12] sm:$0xff]  ;;  %v9537_v11 = vpop.f32.mrf.mxu1 }
 0x125   : > { %8069 = vmatmul.msk.f32.gmra.mxu2 %vm1180_vm2, %v1166_v52  ;;  %v920_v52 = vmul.f32 %v8998_v58, %v9523_v60  ;;  %14012 = vst [vmem:[#allocation85_spill] sm:$0xff] %v9537_v11  ;;  %v3023_v58 = vld [vmem:[#allocation2 + $0x370] sm:$0xff]  ;;  %v3022_v11 = vld [vmem:[#allocation2 + $0x368] sm:$0xff] }
 0x126   : > { %3098 = vperm.xlu2 %8689, %v3020_v9   ;;  %v9528_v36 = vsel %vm2064_vm3, %v14010_v61, %v2163_v62  ;;  %v1167_v9 = vmul.f32 %v9416_v17, %v9195_v0  ;;  %v2167_v61 = vrot.slane %v9533_v47, 1 }
 0x127   : > { %3093 = vperm.xlu1 %8688, %v3019_v49   ;;  %14011 = vst [vmem:[#allocation84_spill] sm:$0xff] %v9528_v36  ;;  %3088 = vperm.xlu0 %8687, %v3018_v54   ;;  %v572_v49 = vrot.slane %v9512_v6, 7  ;;  %v1157_v54 = vmul.f32 %v9350_v45, %v9221_v20  ;;  %v9556_v20 = vpop.permute.xlu2 %2299 }
 0x128   : > { %v9559_v17 = vsel %vm2064_vm3, %v2163_v62, %v2167_v61  ;;  %v1168_v62 = vmul.f32 %v9449_v2, %v9226_v7 }
 0x129   : > { %v9530_v10 = vpop.permute.xlu1 %2294  ;;  %v9549_v60 = vpop.permute.xlu0 %1143  ;;  %v9554_v0 = vsel %vm439_vm1, %v570_v22, %v572_v49  ;;  %14015 = vst [vmem:[#allocation88_spill] sm:$0xff] %v9559_v17  ;;  %v606_v22 = vrot.slane %v9533_v47, 7 }
 0x12a   : > { %v2730_v30 = vmul.f32 %v9530_v10, %v9528_v36  ;;  %14013 = vst [vmem:[#allocation86_spill] sm:$0xff] %v9549_v60  ;;  %v3021_v36 = vld [vmem:[#allocation2 + $0x360] sm:$0xff] }
 0x12b   : > { %14014 = vst [vmem:[#allocation87_spill] sm:$0xff] %v9554_v0  ;;  %v9583_v44 = vsel %vm439_vm1, %v572_v49, %v606_v22  ;;  %v1159_v49 = vmul.f32 %v9381_v5, %v9285_v23 }
 0x12c   : > { %8149 = vmatmul.msk.f32.vlgmr.msrb.gmra.mxu3 %vm1180_vm2, %v920_v52  ;;  %8217 = vmatmul.msk.f32.vlgmr.msrb.gmra.mxu1 %vm1180_vm2, %v2730_v30  ;;  %v9564_v30 = vld [vmem:[%s9480_s12 + $0x8] sm:$0xff]  ;;  %14018 = vst [vmem:[#allocation91_spill] sm:$0xff] %v9583_v44 }
 0x12d   : > { %8060 = vmatmul.msk.f32.gmra.mxu0 %vm1180_vm2, %v1157_v54  ;;  %8070 = vmatmul.msk.f32.gmra.mxu2 %vm1180_vm2, %v1167_v9  ;;  %v921_v54 = vmul.f32 %v9014_v4, %v9554_v0  ;;  %v2731_v9 = vmul.f32 %v9556_v20, %v9559_v17  ;;  %v3026_v4 = vld [vmem:[#allocation2 + $0x388] sm:$0xff]  ;;  %v3024_v17 = vld [vmem:[#allocation2 + $0x378] sm:$0xff] }
 0x12e   : > { %3113 = vperm.xlu2 %8689, %v3023_v58   ;;  %v9576_v58 = vpop.f32.mrf.mxu1 }
 0x12f   : > { %3108 = vperm.xlu1 %8688, %v3022_v11   ;;  %v9561_v52 = vpop.f32.mrf.mxu3  ;;  %3103 = vperm.xlu0 %8687, %v3021_v36   ;;  %v2168_v11 = vrot.slane %v9564_v30, 1  ;;  %14017 = vst [vmem:[#allocation90_spill] sm:$0xff] %v9576_v58  ;;  %v3025_v36 = vld [vmem:[#allocation2 + $0x380] sm:$0xff]  ;;  %v9602_v58 = vld [vmem:[%s9480_s12 + $0x10] sm:$0xff] }
 0x130   : > { %14016 = vst [vmem:[#allocation89_spill] sm:$0xff] %v9561_v52 }
 0x131   : > { %v9585_v7 = vpop.permute.xlu0 %2304  ;;  %v9588_v52 = vsel %vm2064_vm3, %v2167_v61, %v2168_v11  ;;  %v1169_v61 = vmul.f32 %v9445_v15, %v9247_v27 }
 0x132   : > { %14019 = vst [vmem:[#allocation92_spill] sm:$0xff] %v9588_v52 }
 0x134   : > { %8150 = vmatmul.msk.f32.gmra.mxu3 %vm1180_vm2, %v921_v54  ;;  %8218 = vmatmul.msk.f32.gmra.mxu1 %vm1180_vm2, %v2731_v9  ;;  %v922_v9 = vmul.f32 %v8993_v56, %v9583_v44  ;;  %v3028_v56 = vld [vmem:[#allocation2 + $0x398] sm:$0xff] }
 0x135   : > { %8061 = vmatmul.msk.f32.gmra.mxu0 %vm1180_vm2, %v1158_v8  ;;  %8071 = vmatmul.msk.f32.gmra.mxu2 %vm1180_vm2, %v1168_v62  ;;  %v2732_v8 = vmul.f32 %v9585_v7, %v9588_v52  ;;  %v607_v62 = vrot.slane %v9564_v30, 7  ;;  %v9622_v52 = vld [vmem:[%s9480_s12 + $0x18] sm:$0xff] }
 0x136   : > { %3128 = vperm.xlu2 %8689, %v3026_v4   ;;  %v2170_v4 = vrot.slane %v9602_v58, 1  ;;  %v9609_v23 = vpop.f32.mrf.mxu1 }
 0x137   : > { %3123 = vperm.xlu1 %8688, %v3025_v36   ;;  %v9590_v54 = vpop.f32.mrf.mxu3  ;;  %3118 = vperm.xlu0 %8687, %v3024_v17   ;;  %v3029_v17 = vld [vmem:[#allocation2 + $0x3a0] sm:$0xff]  ;;  %v3027_v36 = vld [vmem:[#allocation2 + $0x390] sm:$0xff]  ;;  %14021 = vst [vmem:[#allocation94_spill] sm:$0xff] %v9609_v23  ;;  %v9612_v27 = vsel %vm439_vm1, %v606_v22, %v607_v62  ;;  %v609_v22 = vrot.slane %v9602_v58, 7  ;;  %v1170_v23 = vmul.f32 %v9443_v53, %v9276_v55  ;;  %v9641_v55 = vpop.permute.xlu2 %2314 }
 0x138   : > { %14020 = vst [vmem:[#allocation93_spill] sm:$0xff] %v9590_v54  ;;  %v9614_v54 = vpop.permute.xlu1 %2309 }
 0x139   : > { %14022 = vst [vmem:[#allocation95_spill] sm:$0xff] %v9612_v27 }
 0x13c   : > { %8151 = vmatmul.msk.f32.gmra.mxu3 %vm1180_vm2, %v922_v9  ;;  %8219 = vmatmul.msk.f32.gmra.mxu1 %vm1180_vm2, %v2732_v8  ;;  %v9617_v9 = vsel %vm2064_vm3, %v2168_v11, %v2170_v4  ;;  %v1160_v11 = vmul.f32 %v9377_v51, %v9311_v39 }
 0x13d   : > { %8062 = vmatmul.msk.f32.gmra.mxu0 %vm1180_vm2, %v1159_v49  ;;  %8072 = vmatmul.msk.f32.gmra.mxu2 %vm1180_vm2, %v1169_v61  ;;  %14023 = vst [vmem:[#allocation96_spill] sm:$0xff] %v9617_v9  ;;  %v923_v49 = vmul.f32 %v9012_v3, %v9612_v27  ;;  %v2733_v61 = vmul.f32 %v9614_v54, %v9617_v9  ;;  %v3031_v3 = vld [vmem:[#allocation2 + $0x3b0] sm:$0xff]  ;;  %v611_v9 = vrot.slane %v9622_v52, 7 }
 0x13e   : > { %3143 = vperm.xlu2 %8689, %v3029_v17   ;;  %v2172_v17 = vrot.slane %v9622_v52, 1 }
 0x13f   : > { %3138 = vperm.xlu1 %8688, %v3028_v56   ;;  %v9619_v8 = vpop.f32.mrf.mxu3  ;;  %3133 = vperm.xlu0 %8687, %v3027_v36   ;;  %v3032_v56 = vld [vmem:[#allocation2 + $0x3b8] sm:$0xff]  ;;  %v3030_v36 = vld [vmem:[#allocation2 + $0x3a8] sm:$0xff] }
 0x140   : > { %14024 = vst [vmem:[#allocation97_spill] sm:$0xff] %v9619_v8  ;;  %v9639_v8 = vsel %vm439_vm1, %v607_v62, %v609_v22  ;;  %v9644_v39 = vsel %vm2064_vm3, %v2170_v4, %v2172_v17  ;;  %v1161_v4 = vmul.f32 %v9359_v16, %v9061_v32  ;;  %v2066_v32 = vrot.slane %v8996_v57, 1 }
 0x141   : > { %14025 = vst [vmem:[#allocation98_spill] sm:$0xff] %v9644_v39  ;;  %v2734_v62 = vmul.f32 %v9641_v55, %v9644_v39  ;;  %v3033_v39 = vld [vmem:[#allocation2 + $0x3c0] sm:$0xff] }
 0x144   : > { %8152 = vmatmul.msk.f32.gmra.mxu3 %vm1180_vm2, %v923_v49  ;;  %8220 = vmatmul.msk.f32.gmra.mxu1 %vm1180_vm2, %v2733_v61  ;;  %v9648_v61 = vpop.f32.mrf.mxu1 }
 0x145   : > { %8063 = vmatmul.msk.f32.gmra.mxu0 %vm1180_vm2, %v1160_v11  ;;  %8073 = vmatmul.msk.f32.gmra.mxu2 %vm1180_vm2, %v1170_v23  ;;  %14027 = vst [vmem:[#allocation100_spill] sm:$0xff] %v9648_v61  ;;  %v924_v11 = vmul.f32 %v8959_v38, %v9639_v8  ;;  %v9653_v23 = vld [vmem:[%s9480_s12 + $0x20] sm:$0xff]  ;;  %v3035_v38 = vld [vmem:[#allocation2 + $0x3d0] sm:$0xff]  ;;  %v9672_v61 = vpop.permute.xlu0 %2319 }
 0x146   : > { %3158 = vperm.xlu2 %8689, %v3032_v56   ;;  %v1171_v56 = vmul.f32 %v9468_v12, %v9318_v46  ;;  %v9670_v46 = vsel %vm439_vm1, %v609_v22, %v611_v9  ;;  %v10045_v12 = vld [vmem:[%s9480_s12 + $0x70] sm:$0xff] }
 0x147   : > { %3153 = vperm.xlu1 %8688, %v3031_v3   ;;  %v9646_v49 = vpop.f32.mrf.mxu3  ;;  %3148 = vperm.xlu0 %8687, %v3030_v36   ;;  %v2174_v3 = vrot.slane %v9653_v23, 1  ;;  %v925_v57 = vmul.f32 %v8965_v42, %v9670_v46  ;;  %v3038_v42 = vld [vmem:[#allocation2 + $0x3e8] sm:$0xff] }
 0x148   : > { %14026 = vst [vmem:[#allocation99_spill] sm:$0xff] %v9646_v49  ;;  %v3034_v49 = vld [vmem:[#allocation2 + $0x3c8] sm:$0xff] }
 0x149   : > { %v9675_v36 = vsel %vm2064_vm3, %v2172_v17, %v2174_v3  ;;  %v613_v17 = vrot.slane %v9653_v23, 7 }
 0x14a   : > { %14028 = vst [vmem:[#allocation101_spill] sm:$0xff] %v9675_v36  ;;  %v2735_v22 = vmul.f32 %v9672_v61, %v9675_v36  ;;  %v3037_v36 = vld [vmem:[#allocation2 + $0x3e0] sm:$0xff] }
 0x14c   : > { %8153 = vmatmul.msk.f32.gmra.mxu3 %vm1180_vm2, %v924_v11  ;;  %8221 = vmatmul.msk.f32.gmra.mxu1 %vm1180_vm2, %v2734_v62  ;;  %v14030_v62 = vrot.slane %v8982_v48, 1 }
 0x14d   : > { %8064 = vmatmul.msk.f32.gmra.mxu0 %vm1180_vm2, %v1161_v4  ;;  %8074 = vmatmul.msk.f32.gmra.mxu2 %vm1180_vm2, %v1171_v56  ;;  %v9688_v56 = vpop.f32.mrf.mxu0 }
 0x14e   : > { %3173 = vperm.xlu2 %8689, %v3035_v38   ;;  %v9682_v4 = vsel %vm2064_vm3, %v14030_v62, %v2066_v32  ;;  %14032 = vst [vmem:[#allocation104_spill] sm:$0xff] %v9688_v56  ;;  %v9698_v62 = vld [vmem:[%s9480_s12 + $0x28] sm:$0xff] }
 0x14f   : > { %3168 = vperm.xlu1 %8688, %v3034_v49   ;;  %v9677_v11 = vpop.f32.mrf.mxu3  ;;  %14031 = vst [vmem:[#allocation103_spill] sm:$0xff] %v9682_v4  ;;  %3163 = vperm.xlu0 %8687, %v3033_v39   ;;  %v1172_v49 = vmul.f32 %v9464_v18, %v9348_v28  ;;  %v2452_v38 = vmul.f32 %v9530_v10, %v9682_v4  ;;  %v2070_v39 = vrot.slane %v9008_v1, 1  ;;  %v2176_v0 = vrot.slane %v9698_v62, 1  ;;  %v3036_v10 = vld [vmem:[#allocation2 + $0x3d8] sm:$0xff]  ;;  %v9709_v4 = vpop.permute.xlu1 %2324 }
 0x150   : > { %14029 = vst [vmem:[#allocation102_spill] sm:$0xff] %v9677_v11  ;;  %v9695_v11 = vpop.f32.mrf.mxu1  ;;  %v9707_v28 = vsel %vm439_vm1, %v611_v9, %v613_v17 }
 0x151   : > { %14033 = vst [vmem:[#allocation105_spill] sm:$0xff] %v9695_v11  ;;  %v9712_v1 = vsel %vm2064_vm3, %v2174_v3, %v2176_v0  ;;  %v926_v9 = vmul.f32 %v9030_v14, %v9707_v28  ;;  %v615_v3 = vrot.slane %v9698_v62, 7  ;;  %v3758_v14 = vld [vmem:[#allocation2 + $0x400] sm:$0xff] }
 0x152   : > { %14034 = vst [vmem:[#allocation106_spill] sm:$0xff] %v9707_v28 }
 0x153   : > { %14035 = vst [vmem:[#allocation107_spill] sm:$0xff] %v9712_v1 }
 0x154   : > { %8154 = vmatmul.msk.f32.gmra.mxu3 %vm1180_vm2, %v925_v57  ;;  %8222 = vmatmul.msk.f32.gmra.mxu1 %vm1180_vm2, %v2735_v22  ;;  %v9717_v22 = vsel %vm2064_vm3, %v2066_v32, %v2070_v39 }
 0x155   : > { %8075 = vmatmul.msk.f32.gmra.mxu2 %vm1180_vm2, %v1172_v49  ;;  %8183 = vmatmul.msk.f32.vlgmr.msrb.gmra.mxu0 %vm1180_vm2, %v2452_v38  ;;  %14037 = vst [vmem:[#allocation109_spill] sm:$0xff] %v9717_v22  ;;  %v9720_v49 = vld [vmem:[%s9480_s12 + $0x30] sm:$0xff]  ;;  %v2736_v38 = vmul.f32 %v9709_v4, %v9712_v1  ;;  %v2453_v32 = vmul.f32 %v9556_v20, %v9717_v22  ;;  %v3040_v1 = vld [vmem:[#allocation2 + $0x3f8] sm:$0xff]  ;;  %v9744_v22 = vpop.permute.xlu2 %2329 }
 0x156   : > { %3188 = vperm.xlu2 %8689, %v3038_v42   ;;  %v2178_v42 = vrot.slane %v9720_v49, 1  ;;  %v9742_v20 = vsel %vm439_vm1, %v613_v17, %v615_v3 }
 0x157   : > { %3183 = vperm.xlu1 %8688, %v3037_v36   ;;  %v9714_v57 = vpop.f32.mrf.mxu3  ;;  %3178 = vperm.xlu0 %8687, %v3036_v10   ;;  %v1173_v36 = vmul.f32 %v9472_v50, %v9375_v21  ;;  %v8690_v10 = vld [vmem:[%s8974_s19 + $0x8] sm:$0xff]  ;;  %v3039_v21 = vld [vmem:[#allocation2 + $0x3f0] sm:$0xff]  ;;  %14040 = vst [vmem:[#allocation112_spill] sm:$0xff] %v9742_v20 }
 0x158   : > { %14036 = vst [vmem:[#allocation108_spill] sm:$0xff] %v9714_v57  ;;  %v2071_v57 = vrot.slane %v8690_v10, 1  ;;  %v9747_v10 = vsel %vm2064_vm3, %v2176_v0, %v2178_v42  ;;  %v617_v0 = vrot.slane %v9720_v49, 7 }
 0x159   : > { %v9726_v11 = vpop.f32.mrf.mxu0  ;;  %14041 = vst [vmem:[#allocation113_spill] sm:$0xff] %v9747_v10  ;;  %v2737_v17 = vmul.f32 %v9744_v22, %v9747_v10 }
 0x15a   : > { %14038 = vst [vmem:[#allocation110_spill] sm:$0xff] %v9726_v11  ;;  %v9737_v11 = vpop.f32.mrf.mxu1 }
 0x15b   : > { %14039 = vst [vmem:[#allocation111_spill] sm:$0xff] %v9737_v11  ;;  %v9757_v11 = vld [vmem:[%s9480_s12 + $0x38] sm:$0xff] }
 0x15c   : > { %8155 = vmatmul.msk.f32.gmra.mxu3 %vm1180_vm2, %v926_v9  ;;  %8223 = vmatmul.msk.f32.gmra.mxu1 %vm1180_vm2, %v2736_v38  ;;  %v9752_v38 = vsel %vm2064_vm3, %v2070_v39, %v2071_v57 }
 0x15d   : > { %8076 = vmatmul.msk.f32.gmra.mxu2 %vm1180_vm2, %v1173_v36  ;;  %8184 = vmatmul.msk.f32.gmra.mxu0 %vm1180_vm2, %v2453_v32  ;;  %14043 = vst [vmem:[#allocation115_spill] sm:$0xff] %v9752_v38  ;;  %v14044_v36 = vld [vmem:[#allocation13_spill] sm:$0xff]  ;;  %v2454_v39 = vmul.f32 %v9585_v7, %v9752_v38  ;;  %v8283_v7 = vld [vmem:[%s13616_s3 + $0xc] sm:$0xf]  ;;  %v8691_v38 = vld [vmem:[%s8974_s19 + $0x10] sm:$0xff] }
 0x15e   : > { %3792 = vperm.xlu2 %8689, %v3758_v14   ;;  %v927_v32 = vmul.f32 %v14044_v36, %v9742_v20  ;;  %v2180_v14 = vrot.slane %v9757_v11, 1  ;;  %v3760_v36 = vld [vmem:[#allocation2 + $0x410] sm:$0xff]  ;;  %v2073_v10 = vrot.slane %v8691_v38, 1  ;;  %8284 = vmatpush.msk.msra.mxu3 %vm1277_vm0, %v8283_v7 }
 0x15f   : > { %3198 = vperm.xlu1 %8688, %v3040_v1   ;;  %v9749_v9 = vpop.f32.mrf.mxu3  ;;  %3193 = vperm.xlu0 %8687, %v3039_v21   ;;  %v1174_v1 = vmul.f32 %v9508_v31, %v9399_v33  ;;  %v3761_v21 = vld [vmem:[#allocation2 + $0x418] sm:$0xff]  ;;  %v8249_v33 = vld [vmem:[%s13615_s2 + $0xc] sm:$0xf] }
 0x160   : > { %14042 = vst [vmem:[#allocation114_spill] sm:$0xff] %v9749_v9  ;;  %v3759_v9 = vld [vmem:[#allocation2 + $0x408] sm:$0xff]  ;;  %8250 = vmatpush.msk.msra.mxu2 %vm1277_vm0, %v8249_v33  ;;  %v9795_v38 = vsel %vm2064_vm3, %v2071_v57, %v2073_v10  ;;  %v14051_v33 = vld [vmem:[#allocation5_spill] sm:$0xff]  ;;  %v8692_v57 = vld [vmem:[%s8974_s19 + $0x18] sm:$0xff] }
 0x161   : > { %v9761_v56 = vpop.f32.mrf.mxu0  ;;  %14050 = vst [vmem:[#allocation120_spill] sm:$0xff] %v9795_v38 }
 0x162   : > { %14045 = vst [vmem:[#allocation13_spill] sm:$0xff] %v9761_v56 }
 0x164   : > { %8156 = vmatmul.msk.f32.gmra.mxu3 %vm1180_vm2, %v927_v32  ;;  %8224 = vmatmul.msk.f32.gmra.mxu1 %vm1180_vm2, %v2737_v17  ;;  %v9780_v32 = vpop.permute.xlu0 %2334  ;;  %v9785_v17 = vsel %vm439_vm1, %v615_v3, %v617_v0 }
 0x165   : > { %8077 = vmatmul.msk.f32.gmra.mxu2 %vm1180_vm2, %v1174_v1  ;;  %8185 = vmatmul.msk.f32.gmra.mxu0 %vm1180_vm2, %v2454_v39  ;;  %14046 = vst [vmem:[#allocation116_spill] sm:$0xff] %v9785_v17  ;;  %v9788_v1 = vsel %vm2064_vm3, %v2178_v42, %v2180_v14  ;;  %v9790_v39 = vpop.f32.mrf.mxu1  ;;  %v928_v7 = vmul.f32 %v14051_v33, %v9785_v17  ;;  %v619_v42 = vrot.slane %v9757_v11, 7  ;;  %v3764_v33 = vld [vmem:[#allocation2 + $0x430] sm:$0xff] }
 0x166   : > { %14047 = vst [vmem:[#allocation117_spill] sm:$0xff] %v9788_v1  ;;  %3807 = vperm.xlu2 %8689, %v3761_v21   ;;  %v2738_v3 = vmul.f32 %v9780_v32, %v9788_v1  ;;  %v1175_v21 = vmul.f32 %v9498_v13, %v9419_v59  ;;  %v3763_v1 = vld [vmem:[#allocation2 + $0x428] sm:$0xff]  ;;  %v3762_v59 = vld [vmem:[#allocation2 + $0x420] sm:$0xff] }
 0x167   : > { %14048 = vst [vmem:[#allocation118_spill] sm:$0xff] %v9790_v39  ;;  %3802 = vperm.xlu1 %8688, %v3760_v36   ;;  %v9792_v56 = vpop.f32.mrf.mxu3  ;;  %3797 = vperm.xlu0 %8687, %v3759_v9   ;;  %v2455_v36 = vmul.f32 %v9614_v54, %v9795_v38  ;;  %v2075_v9 = vrot.slane %v8692_v57, 1  ;;  %v8317_v54 = vld [vmem:[%s13615_s2 + $0x10] sm:$0xf] }
 0x168   : > { %14049 = vst [vmem:[#allocation119_spill] sm:$0xff] %v9792_v56  ;;  %v9809_v56 = vld [vmem:[%s9480_s12 + $0x40] sm:$0xff]  ;;  %8318 = vmatpush.msk.msra.mxu0 %vm1277_vm0, %v8317_v54 }
 0x169   : > { %v9801_v31 = vpop.f32.mrf.mxu0  ;;  %v2182_v39 = vrot.slane %v9809_v56, 1  ;;  %v9836_v38 = vsel %vm2064_vm3, %v2073_v10, %v2075_v9 }
 0x16a   : > { %14052 = vst [vmem:[#allocation5_spill] sm:$0xff] %v9801_v31  ;;  %v2456_v10 = vmul.f32 %v9641_v55, %v9836_v38 }
 0x16b   : > { %14056 = vst [vmem:[#allocation124_spill] sm:$0xff] %v9836_v38 }
 0x16c   : > { %8157 = vmatmul.msk.f32.gmra.mxu3 %vm1180_vm2, %v928_v7  ;;  %8225 = vmatmul.msk.f32.gmra.mxu1 %vm1180_vm2, %v2738_v3  ;;  %v8351_v7 = vld [vmem:[%s13616_s3 + $0x10] sm:$0xf]  ;;  %v9826_v3 = vsel %vm439_vm1, %v617_v0, %v619_v42  ;;  %v14058_v0 = vld [vmem:[#allocation17_spill] sm:$0xff] }
 0x16d   : > { %8078 = vmatmul.msk.f32.gmra.mxu2 %vm1180_vm2, %v1175_v21  ;;  %8186 = vmatmul.msk.f32.gmra.mxu0 %vm1180_vm2, %v2455_v36  ;;  %14053 = vst [vmem:[#allocation121_spill] sm:$0xff] %v9826_v3  ;;  %v9828_v21 = vpop.permute.xlu1 %2339  ;;  %v9831_v36 = vsel %vm2064_vm3, %v2180_v14, %v2182_v39  ;;  %v9838_v54 = vpop.f32.mrf.mxu1  ;;  %v929_v31 = vmul.f32 %v14058_v0, %v9826_v3  ;;  %v3767_v0 = vld [vmem:[#allocation2 + $0x448] sm:$0xff] }
 0x16e   : > { %8352 = vmatpush.msk.msra.mxu1 %vm1277_vm0, %v8351_v7  ;;  %14054 = vst [vmem:[#allocation122_spill] sm:$0xff] %v9831_v36  ;;  %3822 = vperm.xlu2 %8689, %v3764_v33   ;;  %v9841_v7 = vld [vmem:[%s9480_s12 + $0x48] sm:$0xff]  ;;  %v2739_v13 = vmul.f32 %v9828_v21, %v9831_v36  ;;  %v9853_v33 = vpop.permute.xlu2 %2344  ;;  %v3766_v36 = vld [vmem:[#allocation2 + $0x440] sm:$0xff] }
 0x16f   : > { %3817 = vperm.xlu1 %8688, %v3763_v1   ;;  %v9833_v57 = vpop.f32.mrf.mxu3  ;;  %3812 = vperm.xlu0 %8687, %v3762_v59   ;;  %14057 = vst [vmem:[#allocation125_spill] sm:$0xff] %v9838_v54  ;;  %v1176_v1 = vmul.f32 %v9515_v34, %v9441_v19  ;;  %v2184_v59 = vrot.slane %v9841_v7, 1  ;;  %v3765_v19 = vld [vmem:[#allocation2 + $0x438] sm:$0xff]  ;;  %v9876_v34 = vld [vmem:[%s9480_s12 + $0x50] sm:$0xff] }
 0x170   : > { %14055 = vst [vmem:[#allocation123_spill] sm:$0xff] %v9833_v57  ;;  %v8693_v57 = vld [vmem:[%s8974_s19 + $0x20] sm:$0xff] }
 0x171   : > { %v9847_v14 = vpop.f32.mrf.mxu0  ;;  %v2077_v54 = vrot.slane %v8693_v57, 1  ;;  %v9866_v57 = vsel %vm2064_vm3, %v2182_v39, %v2184_v59 }
 0x172   : > { %14059 = vst [vmem:[#allocation17_spill] sm:$0xff] %v9847_v14  ;;  %v621_v14 = vrot.slane %v9809_v56, 7 }
 0x173   : > { %14061 = vst [vmem:[#allocation127_spill] sm:$0xff] %v9866_v57 }
 0x174   : > { %8158 = vmatmul.msk.f32.gmra.mxu3 %vm1180_vm2, %v929_v31  ;;  %8226 = vmatmul.msk.f32.gmra.mxu1 %vm1180_vm2, %v2739_v13  ;;  %v9863_v55 = vsel %vm439_vm1, %v619_v42, %v621_v14  ;;  %v9871_v13 = vsel %vm2064_vm3, %v2075_v9, %v2077_v54  ;;  %v2740_v42 = vmul.f32 %v9853_v33, %v9866_v57  ;;  %v3770_v57 = vld [vmem:[#allocation2 + $0x460] sm:$0xff] }
 0x175   : > { %8079 = vmatmul.msk.f32.gmra.mxu2 %vm1180_vm2, %v1176_v1  ;;  %8187 = vmatmul.msk.f32.gmra.mxu0 %vm1180_vm2, %v2456_v10  ;;  %14060 = vst [vmem:[#allocation126_spill] sm:$0xff] %v9863_v55  ;;  %v14064_v1 = vld [vmem:[#allocation16_spill] sm:$0xff]  ;;  %v9880_v10 = vpop.permute.xlu0 %2349 }
 0x176   : > { %3837 = vperm.xlu2 %8689, %v3767_v0   ;;  %14063 = vst [vmem:[#allocation129_spill] sm:$0xff] %v9871_v13  ;;  %v930_v38 = vmul.f32 %v14064_v1, %v9863_v55  ;;  %v8694_v0 = vld [vmem:[%s8974_s19 + $0xe8] sm:$0xff]  ;;  %v2186_v1 = vrot.slane %v9876_v34, 1  ;;  %v3769_v55 = vld [vmem:[#allocation2 + $0x458] sm:$0xff]  ;;  %v9894_v3 = vpop.permute.xlu2 %2359 }
 0x177   : > { %3832 = vperm.xlu1 %8688, %v3766_v36   ;;  %v9868_v31 = vpop.f32.mrf.mxu3  ;;  %3827 = vperm.xlu0 %8687, %v3765_v19   ;;  %v623_v36 = vrot.slane %v9841_v7, 7  ;;  %v1177_v9 = vmul.f32 %v8694_v0, %v9549_v60  ;;  %v2457_v19 = vmul.f32 %v9672_v61, %v9871_v13  ;;  %v3768_v0 = vld [vmem:[#allocation2 + $0x450] sm:$0xff] }
 0x178   : > { %14062 = vst [vmem:[#allocation128_spill] sm:$0xff] %v9868_v31  ;;  %v9890_v31 = vpop.f32.mrf.mxu1 }
 0x179   : > { %v9882_v39 = vpop.f32.mrf.mxu0  ;;  %14066 = vst [vmem:[#allocation130_spill] sm:$0xff] %v9890_v31  ;;  %v9900_v13 = vsel %vm439_vm1, %v621_v14, %v623_v36  ;;  %v625_v14 = vrot.slane %v9876_v34, 7 }
 0x17a   : > { %14065 = vst [vmem:[#allocation16_spill] sm:$0xff] %v9882_v39  ;;  %v8695_v39 = vld [vmem:[%s8974_s19 + $0x28] sm:$0xff] }
 0x17b   : > { %v2079_v61 = vrot.slane %v8695_v39, 1  ;;  %14067 = vst [vmem:[#allocation131_spill] sm:$0xff] %v9900_v13 }
 0x17c   : > { %8159 = vmatmul.msk.f32.gmra.mxu3 %vm1180_vm2, %v930_v38  ;;  %8227 = vmatmul.msk.f32.gmra.mxu1 %vm1180_vm2, %v2740_v42  ;;  %v9903_v38 = vsel %vm2064_vm3, %v2184_v59, %v2186_v1  ;;  %v14073_v59 = vld [vmem:[#allocation32_spill] sm:$0xff] }
 0x17d   : > { %8080 = vmatmul.msk.f32.gmra.mxu2 %vm1180_vm2, %v1177_v9  ;;  %8188 = vmatmul.msk.f32.gmra.mxu0 %vm1180_vm2, %v2457_v19  ;;  %14068 = vst [vmem:[#allocation132_spill] sm:$0xff] %v9903_v38  ;;  %v9908_v31 = vsel %vm2064_vm3, %v2077_v54, %v2079_v61  ;;  %v14071_v9 = vld [vmem:[#allocation8_spill] sm:$0xff]  ;;  %v2741_v39 = vmul.f32 %v9880_v10, %v9903_v38 }
 0x17e   : > { %3852 = vperm.xlu2 %8689, %v3770_v57   ;;  %14070 = vst [vmem:[#allocation134_spill] sm:$0xff] %v9908_v31  ;;  %v931_v19 = vmul.f32 %v14071_v9, %v9900_v13  ;;  %v1606_v57 = vmul.f32 %v14073_v59, %v9494_v25  ;;  %v9924_v54 = vld [vmem:[%s9480_s12 + $0x58] sm:$0xff]  ;;  %v9927_v9 = vpop.permute.xlu0 %2364 }
 0x17f   : > { %3847 = vperm.xlu1 %8688, %v3769_v55   ;;  %v9905_v42 = vpop.f32.mrf.mxu3  ;;  %3842 = vperm.xlu0 %8687, %v3768_v0   ;;  %v2458_v55 = vmul.f32 %v9709_v4, %v9908_v31  ;;  %v8696_v0 = vld [vmem:[%s8974_s19 + $0x30] sm:$0xff]  ;;  %v3773_v38 = vld [vmem:[#allocation2 + $0x478] sm:$0xff]  ;;  %v2188_v59 = vrot.slane %v9924_v54, 1  ;;  %v3771_v4 = vld [vmem:[#allocation2 + $0x468] sm:$0xff]  ;;  %v9939_v31 = vpop.permute.xlu2 %2374 }
 0x180   : > { %14069 = vst [vmem:[#allocation133_spill] sm:$0xff] %v9905_v42  ;;  %v9921_v42 = vpop.permute.xlu1 %2354  ;;  %v2081_v50 = vrot.slane %v8696_v0, 1  ;;  %v9932_v13 = vpop.f32.mrf.mxu1  ;;  %v9937_v0 = vsel %vm439_vm1, %v623_v36, %v625_v14  ;;  %v14080_v36 = vld [vmem:[#allocation20_spill] sm:$0xff] }
 0x181   : > { %v9914_v60 = vpop.f32.mrf.mxu0  ;;  %14074 = vst [vmem:[#allocation32_spill] sm:$0xff] %v9932_v13  ;;  %v932_v17 = vmul.f32 %v14080_v36, %v9937_v0  ;;  %v3776_v36 = vld [vmem:[#allocation2 + $0x490] sm:$0xff] }
 0x182   : > { %14072 = vst [vmem:[#allocation8_spill] sm:$0xff] %v9914_v60  ;;  %v3772_v60 = vld [vmem:[#allocation2 + $0x470] sm:$0xff]  ;;  %v9947_v13 = vsel %vm2064_vm3, %v2079_v61, %v2081_v50 }
 0x183   : > { %14075 = vst [vmem:[#allocation135_spill] sm:$0xff] %v9937_v0  ;;  %v2459_v61 = vmul.f32 %v9744_v22, %v9947_v13  ;;  %v3775_v0 = vld [vmem:[#allocation2 + $0x488] sm:$0xff] }
 0x184   : > { %8160 = vmatmul.msk.f32.gmra.mxu3 %vm1180_vm2, %v931_v19  ;;  %8228 = vmatmul.msk.f32.gmra.mxu1 %vm1180_vm2, %v2741_v39  ;;  %v9942_v19 = vsel %vm2064_vm3, %v2186_v1, %v2188_v59  ;;  %14078 = vst [vmem:[#allocation138_spill] sm:$0xff] %v9947_v13 }
 0x185   : > { %8116 = vmatmul.msk.f32.vlgmr.msrb.gmra.mxu2 %vm1180_vm2, %v1606_v57  ;;  %8189 = vmatmul.msk.f32.gmra.mxu0 %vm1180_vm2, %v2458_v55  ;;  %14076 = vst [vmem:[#allocation136_spill] sm:$0xff] %v9942_v19  ;;  %v9952_v55 = vld [vmem:[%s9480_s12 + $0x60] sm:$0xff]  ;;  %v2742_v18 = vmul.f32 %v9921_v42, %v9942_v19  ;;  %v627_v19 = vrot.slane %v9924_v54, 7 }
 0x186   : > { %3867 = vperm.xlu2 %8689, %v3773_v38   ;;  %v9973_v22 = vpop.permute.xlu0 %2379 }
 0x187   : > { %3862 = vperm.xlu1 %8688, %v3772_v60   ;;  %v9944_v39 = vpop.f32.mrf.mxu3  ;;  %3857 = vperm.xlu0 %8687, %v3771_v4   ;;  %v14082_v60 = vld [vmem:[#allocation51_spill] sm:$0xff]  ;;  %v2190_v4 = vrot.slane %v9952_v55, 1 }
 0x188   : > { %14077 = vst [vmem:[#allocation137_spill] sm:$0xff] %v9944_v39  ;;  %v9949_v57 = vpop.f32.mrf.mxu2  ;;  %v1607_v38 = vmul.f32 %v14082_v60, %v9512_v6  ;;  %v8697_v39 = vld [vmem:[%s8974_s19 + $0x38] sm:$0xff]  ;;  %v9969_v20 = vpop.permute.xlu1 %2369  ;;  %v3774_v6 = vld [vmem:[#allocation2 + $0x480] sm:$0xff] }
 0x189   : > { %14079 = vst [vmem:[#allocation139_spill] sm:$0xff] %v9949_v57  ;;  %v9958_v1 = vpop.f32.mrf.mxu0  ;;  %v2083_v57 = vrot.slane %v8697_v39, 1  ;;  %v9976_v39 = vsel %vm439_vm1, %v625_v14, %v627_v19 }
 0x18a   : > { %14081 = vst [vmem:[#allocation20_spill] sm:$0xff] %v9958_v1  ;;  %v933_v14 = vmul.f32 %v9068_v35, %v9976_v39  ;;  %v3779_v35 = vld [vmem:[#allocation2 + $0x4a8] sm:$0xff]  ;;  %v3778_v1 = vld [vmem:[#allocation2 + $0x4a0] sm:$0xff] }
 0x18b   : > { %14083 = vst [vmem:[#allocation51_spill] sm:$0xff] %v9976_v39  ;;  %v9986_v13 = vsel %vm2064_vm3, %v2081_v50, %v2083_v57  ;;  %v14090_v50 = vld [vmem:[#allocation50_spill] sm:$0xff] }
 0x18c   : > { %8161 = vmatmul.msk.f32.gmra.mxu3 %vm1180_vm2, %v932_v17  ;;  %8229 = vmatmul.msk.f32.gmra.mxu1 %vm1180_vm2, %v2742_v18  ;;  %v9979_v17 = vsel %vm2064_vm3, %v2188_v59, %v2190_v4  ;;  %v9981_v18 = vpop.f32.mrf.mxu1  ;;  %14087 = vst [vmem:[#allocation143_spill] sm:$0xff] %v9986_v13  ;;  %v9995_v59 = vld [vmem:[%s9480_s12 + $0x68] sm:$0xff] }
 0x18d   : > { %8117 = vmatmul.msk.f32.gmra.mxu2 %vm1180_vm2, %v1607_v38  ;;  %8190 = vmatmul.msk.f32.gmra.mxu0 %vm1180_vm2, %v2459_v61  ;;  %14084 = vst [vmem:[#allocation140_spill] sm:$0xff] %v9979_v17  ;;  %v9990_v61 = vpop.permute.xlu2 %2389 }
 0x18e   : > { %14085 = vst [vmem:[#allocation141_spill] sm:$0xff] %v9981_v18  ;;  %3882 = vperm.xlu2 %8689, %v3776_v36   ;;  %v2743_v36 = vmul.f32 %v9894_v3, %v9979_v17  ;;  %v2192_v18 = vrot.slane %v9995_v59, 1  ;;  %v3777_v17 = vld [vmem:[#allocation2 + $0x498] sm:$0xff] }
 0x18f   : > { %3877 = vperm.xlu1 %8688, %v3775_v0   ;;  %v9983_v60 = vpop.f32.mrf.mxu3  ;;  %3872 = vperm.xlu0 %8687, %v3774_v6   ;;  %v1608_v6 = vmul.f32 %v14090_v50, %v9533_v47 }
 0x190   : > { %14086 = vst [vmem:[#allocation142_spill] sm:$0xff] %v9983_v60  ;;  %v9988_v38 = vpop.f32.mrf.mxu2  ;;  %v629_v60 = vrot.slane %v9952_v55, 7  ;;  %v10018_v50 = vpop.permute.xlu1 %2384 }
 0x191   : > { %14088 = vst [vmem:[#allocation144_spill] sm:$0xff] %v9988_v38  ;;  %v9999_v0 = vpop.f32.mrf.mxu0  ;;  %v2460_v38 = vmul.f32 %v9780_v32, %v9986_v13  ;;  %v10016_v32 = vsel %vm2064_vm3, %v2190_v4, %v2192_v18  ;;  %v14097_v4 = vld [vmem:[#allocation10_spill] sm:$0xff] }
 0x192   : > { %14089 = vst [vmem:[#allocation145_spill] sm:$0xff] %v9999_v0  ;;  %v8698_v0 = vld [vmem:[%s8974_s19 + $0x40] sm:$0xff]  ;;  %v10013_v47 = vsel %vm439_vm1, %v627_v19, %v629_v60 }
 0x193   : > { %v2085_v39 = vrot.slane %v8698_v0, 1  ;;  %14091 = vst [vmem:[#allocation50_spill] sm:$0xff] %v10013_v47  ;;  %v10027_v0 = vpop.permute.xlu0 %2394 }
 0x194   : > { %8162 = vmatmul.msk.f32.gmra.mxu3 %vm1180_vm2, %v933_v14  ;;  %8230 = vmatmul.msk.f32.gmra.mxu1 %vm1180_vm2, %v2743_v36  ;;  %14092 = vst [vmem:[#allocation146_spill] sm:$0xff] %v10016_v32  ;;  %v10029_v19 = vpop.f32.mrf.mxu1 }
 0x195   : > { %8118 = vmatmul.msk.f32.gmra.mxu2 %vm1180_vm2, %v1608_v6  ;;  %8191 = vmatmul.msk.f32.gmra.mxu0 %vm1180_vm2, %v2460_v38  ;;  %v10023_v36 = vsel %vm2064_vm3, %v2083_v57, %v2085_v39  ;;  %14096 = vst [vmem:[#allocation150_spill] sm:$0xff] %v10029_v19  ;;  %v934_v6 = vmul.f32 %v14097_v4, %v10013_v47  ;;  %v14099_v57 = vld [vmem:[#allocation43_spill] sm:$0xff]  ;;  %v8699_v19 = vld [vmem:[%s8974_s19 + $0x48] sm:$0xff]  ;;  %v3782_v4 = vld [vmem:[#allocation2 + $0x4c0] sm:$0xff] }
 0x196   : > { %3897 = vperm.xlu2 %8689, %v3779_v35   ;;  %14094 = vst [vmem:[#allocation148_spill] sm:$0xff] %v10023_v36  ;;  %v2744_v35 = vmul.f32 %v9927_v9, %v10016_v32  ;;  %v2087_v28 = vrot.slane %v8699_v19, 1  ;;  %v3781_v32 = vld [vmem:[#allocation2 + $0x4b8] sm:$0xff] }
 0x197   : > { %3892 = vperm.xlu1 %8688, %v3778_v1   ;;  %v10020_v14 = vpop.f32.mrf.mxu3  ;;  %3887 = vperm.xlu0 %8687, %v3777_v17   ;;  %v631_v1 = vrot.slane %v9995_v59, 7  ;;  %v2461_v17 = vmul.f32 %v9828_v21, %v10023_v36 }
 0x198   : > { %14093 = vst [vmem:[#allocation147_spill] sm:$0xff] %v10020_v14  ;;  %v10025_v38 = vpop.f32.mrf.mxu2  ;;  %v1609_v14 = vmul.f32 %v14099_v57, %v9564_v30  ;;  %v3780_v30 = vld [vmem:[#allocation2 + $0x4b0] sm:$0xff] }
 0x199   : > { %14095 = vst [vmem:[#allocation149_spill] sm:$0xff] %v10025_v38  ;;  %v10035_v13 = vpop.f32.mrf.mxu0  ;;  %v10042_v38 = vpop.permute.xlu2 %2404  ;;  %v10054_v21 = vsel %vm439_vm1, %v629_v60, %v631_v1 }
 0x19a   : > { %14098 = vst [vmem:[#allocation10_spill] sm:$0xff] %v10035_v13  ;;  %v2194_v13 = vrot.slane %v10045_v12, 1  ;;  %v935_v60 = vmul.f32 %v9101_v63, %v10054_v21  ;;  %v3785_v63 = vld [vmem:[#allocation2 + $0x4d8] sm:$0xff] }
 0x19b   : > { %14100 = vst [vmem:[#allocation43_spill] sm:$0xff] %v10054_v21 }
 0x19c   : > { %8163 = vmatmul.msk.f32.gmra.mxu3 %vm1180_vm2, %v934_v6  ;;  %8231 = vmatmul.msk.f32.gmra.mxu1 %vm1180_vm2, %v2744_v35  ;;  %v10057_v57 = vsel %vm2064_vm3, %v2192_v18, %v2194_v13  ;;  %v10062_v6 = vsel %vm2064_vm3, %v2085_v39, %v2087_v28  ;;  %v10084_v36 = vpop.f32.mrf.mxu1 }
 0x19d   : > { %8119 = vmatmul.msk.f32.gmra.mxu2 %vm1180_vm2, %v1609_v14  ;;  %8192 = vmatmul.msk.f32.gmra.mxu0 %vm1180_vm2, %v2461_v17  ;;  %14101 = vst [vmem:[#allocation151_spill] sm:$0xff] %v10057_v57  ;;  %v10066_v14 = vpop.permute.xlu1 %2399  ;;  %v10069_v17 = vld [vmem:[%s9480_s12 + $0x78] sm:$0xff]  ;;  %v2745_v18 = vmul.f32 %v9969_v20, %v10057_v57  ;;  %v2462_v39 = vmul.f32 %v9853_v33, %v10062_v6  ;;  %v3784_v57 = vld [vmem:[#allocation2 + $0x4d0] sm:$0xff]  ;;  %v3783_v33 = vld [vmem:[#allocation2 + $0x4c8] sm:$0xff] }
 0x19e   : > { %3912 = vperm.xlu2 %8689, %v3782_v4   ;;  %14103 = vst [vmem:[#allocation153_spill] sm:$0xff] %v10062_v6 }
 0x19f   : > { %3907 = vperm.xlu1 %8688, %v3781_v32   ;;  %v10059_v19 = vpop.f32.mrf.mxu3  ;;  %3902 = vperm.xlu0 %8687, %v3780_v30   ;;  %v1610_v32 = vmul.f32 %v9282_v29, %v9602_v58  ;;  %v2196_v30 = vrot.slane %v10069_v17, 1  ;;  %14106 = vst [vmem:[#allocation156_spill] sm:$0xff] %v10084_v36  ;;  %v633_v29 = vrot.slane %v10045_v12, 7 }
 0x1a0   : > { %14102 = vst [vmem:[#allocation152_spill] sm:$0xff] %v10059_v19  ;;  %v10064_v35 = vpop.f32.mrf.mxu2  ;;  %v10082_v19 = vpop.permute.xlu0 %2409 }
 0x1a1   : > { %14104 = vst [vmem:[#allocation154_spill] sm:$0xff] %v10064_v35  ;;  %v10075_v4 = vpop.f32.mrf.mxu0  ;;  %v8700_v35 = vld [vmem:[%s8974_s19 + $0x50] sm:$0xff]  ;;  %v10090_v58 = vpop.permute.xlu2 %2419  ;;  %v10095_v6 = vsel %vm439_vm1, %v631_v1, %v633_v29 }
 0x1a2   : > { %14105 = vst [vmem:[#allocation155_spill] sm:$0xff] %v10075_v4  ;;  %v2089_v47 = vrot.slane %v8700_v35, 1  ;;  %v10098_v35 = vsel %vm2064_vm3, %v2194_v13, %v2196_v30  ;;  %v10110_v4 = vld [vmem:[%s9480_s12 + $0x80] sm:$0xff] }
 0x1a3   : > { %14107 = vst [vmem:[#allocation157_spill] sm:$0xff] %v10095_v6  ;;  %v2746_v1 = vmul.f32 %v9939_v31, %v10098_v35 }
 0x1a4   : > { %8164 = vmatmul.msk.f32.gmra.mxu3 %vm1180_vm2, %v935_v60  ;;  %8232 = vmatmul.msk.f32.gmra.mxu1 %vm1180_vm2, %v2745_v18  ;;  %14108 = vst [vmem:[#allocation158_spill] sm:$0xff] %v10098_v35  ;;  %v10103_v18 = vsel %vm2064_vm3, %v2087_v28, %v2089_v47  ;;  %v3788_v35 = vld [vmem:[#allocation2 + $0x4f0] sm:$0xff] }
 0x1a5   : > { %8120 = vmatmul.msk.f32.gmra.mxu2 %vm1180_vm2, %v1610_v32  ;;  %8193 = vmatmul.msk.f32.gmra.mxu0 %vm1180_vm2, %v2462_v39  ;;  %14110 = vst [vmem:[#allocation160_spill] sm:$0xff] %v10103_v18  ;;  %v14112_v32 = vld [vmem:[#allocation24_spill] sm:$0xff] }
 0x1a6   : > { %3927 = vperm.xlu2 %8689, %v3785_v63   ;;  %v936_v39 = vmul.f32 %v14112_v32, %v10095_v6  ;;  %v14114_v63 = vld [vmem:[#allocation54_spill] sm:$0xff] }
 0x1a7   : > { %3922 = vperm.xlu1 %8688, %v3784_v57   ;;  %v10100_v60 = vpop.f32.mrf.mxu3  ;;  %3917 = vperm.xlu0 %8687, %v3783_v33   ;;  %v635_v57 = vrot.slane %v10069_v17, 7  ;;  %v1611_v28 = vmul.f32 %v14114_v63, %v9622_v52  ;;  %v2463_v33 = vmul.f32 %v9880_v10, %v10103_v18  ;;  %v3786_v52 = vld [vmem:[#allocation2 + $0x4e0] sm:$0xff]  ;;  %v8701_v10 = vld [vmem:[%s8974_s19 + $0x58] sm:$0xff] }
 0x1a8   : > { %14109 = vst [vmem:[#allocation159_spill] sm:$0xff] %v10100_v60  ;;  %v10105_v36 = vpop.f32.mrf.mxu2  ;;  %v2198_v60 = vrot.slane %v10110_v4, 1  ;;  %v10128_v6 = vpop.permute.xlu0 %2424  ;;  %v2091_v63 = vrot.slane %v8701_v10, 1 }
 0x1a9   : > { %14111 = vst [vmem:[#allocation161_spill] sm:$0xff] %v10105_v36  ;;  %v10122_v36 = vpop.permute.xlu1 %2414  ;;  %v10124_v32 = vpop.f32.mrf.mxu1  ;;  %v10134_v18 = vsel %vm439_vm1, %v633_v29, %v635_v57  ;;  %v14121_v29 = vld [vmem:[#allocation12_spill] sm:$0xff] }
 0x1aa   : > { %v10114_v13 = vpop.f32.mrf.mxu0  ;;  %14115 = vst [vmem:[#allocation54_spill] sm:$0xff] %v10124_v32  ;;  %v10136_v32 = vpop.permute.xlu2 %2434  ;;  %v937_v10 = vmul.f32 %v14121_v29, %v10134_v18  ;;  %v4508_v29 = vld [vmem:[#allocation2 + $0x508] sm:$0xff] }
 0x1ab   : > { %14113 = vst [vmem:[#allocation24_spill] sm:$0xff] %v10114_v13  ;;  %v3787_v13 = vld [vmem:[#allocation2 + $0x4e8] sm:$0xff] }
 0x1ac   : > { %8165 = vmatmul.msk.f32.gmra.mxu3 %vm1180_vm2, %v936_v39  ;;  %8233 = vmatmul.msk.f32.gmra.mxu1 %vm1180_vm2, %v2746_v1  ;;  %14116 = vst [vmem:[#allocation162_spill] sm:$0xff] %v10134_v18  ;;  %v10139_v39 = vsel %vm2064_vm3, %v2196_v30, %v2198_v60  ;;  %v637_v30 = vrot.slane %v10110_v4, 7 }
 0x1ad   : > { %8121 = vmatmul.msk.f32.gmra.mxu2 %vm1180_vm2, %v1611_v28  ;;  %8194 = vmatmul.msk.f32.gmra.mxu0 %vm1180_vm2, %v2463_v33  ;;  %14117 = vst [vmem:[#allocation163_spill] sm:$0xff] %v10139_v39  ;;  %v10144_v28 = vsel %vm2064_vm3, %v2089_v47, %v2091_v63  ;;  %v2747_v21 = vmul.f32 %v9973_v22, %v10139_v39  ;;  %v4507_v39 = vld [vmem:[#allocation2 + $0x500] sm:$0xff] }
 0x1ae   : > { %3942 = vperm.xlu2 %8689, %v3788_v35   ;;  %14119 = vst [vmem:[#allocation165_spill] sm:$0xff] %v10144_v28  ;;  %v1612_v35 = vmul.f32 %v9237_v26, %v9653_v23  ;;  %v2464_v47 = vmul.f32 %v9921_v42, %v10144_v28  ;;  %v3789_v26 = vld [vmem:[#allocation2 + $0x4f8] sm:$0xff]  ;;  %v10173_v23 = vsel %vm439_vm1, %v635_v57, %v637_v30  ;;  %v10190_v57 = vld [vmem:[%s9480_s12 + $0x90] sm:$0xff] }
 0x1af   : > { %3937 = vperm.xlu1 %8688, %v3787_v13   ;;  %v10141_v1 = vpop.f32.mrf.mxu3  ;;  %3932 = vperm.xlu0 %8687, %v3786_v52   ;;  %v10162_v52 = vld [vmem:[%s9480_s12 + $0x88] sm:$0xff]  ;;  %14124 = vst [vmem:[#allocation168_spill] sm:$0xff] %v10173_v23 }
 0x1b0   : > { %14118 = vst [vmem:[#allocation164_spill] sm:$0xff] %v10141_v1  ;;  %v10146_v33 = vpop.f32.mrf.mxu2 }
 0x1b1   : > { %14120 = vst [vmem:[#allocation166_spill] sm:$0xff] %v10146_v33  ;;  %v10159_v13 = vpop.f32.mrf.mxu1  ;;  %v8702_v33 = vld [vmem:[%s8974_s19 + $0x60] sm:$0xff]  ;;  %v10168_v18 = vpop.permute.xlu1 %2429 }
 0x1b2   : > { %v10152_v48 = vpop.f32.mrf.mxu0  ;;  %14123 = vst [vmem:[#allocation167_spill] sm:$0xff] %v10159_v13  ;;  %v2093_v1 = vrot.slane %v8702_v33, 1  ;;  %v10178_v33 = vpop.permute.xlu0 %2439 }
 0x1b3   : > { %14122 = vst [vmem:[#allocation12_spill] sm:$0xff] %v10152_v48  ;;  %v2200_v48 = vrot.slane %v10162_v52, 1 }
 0x1b4   : > { %8166 = vmatmul.msk.f32.gmra.mxu3 %vm1180_vm2, %v937_v10  ;;  %8234 = vmatmul.msk.f32.gmra.mxu1 %vm1180_vm2, %v2747_v21  ;;  %v10183_v10 = vsel %vm2064_vm3, %v2091_v63, %v2093_v1 }
 0x1b5   : > { %8122 = vmatmul.msk.f32.gmra.mxu2 %vm1180_vm2, %v1612_v35  ;;  %8195 = vmatmul.msk.f32.gmra.mxu0 %vm1180_vm2, %v2464_v47  ;;  %v10176_v42 = vsel %vm2064_vm3, %v2198_v60, %v2200_v48  ;;  %14127 = vst [vmem:[#allocation171_spill] sm:$0xff] %v10183_v10  ;;  %v10187_v47 = vpop.permute.xlu2 %2449  ;;  %v14129_v60 = vld [vmem:[#allocation29_spill] sm:$0xff]  ;;  %v2465_v63 = vmul.f32 %v9894_v3, %v10183_v10 }
 0x1b6   : > { %14125 = vst [vmem:[#allocation169_spill] sm:$0xff] %v10176_v42  ;;  %4546 = vperm.xlu2 %8689, %v4508_v29   ;;  %v938_v28 = vmul.f32 %v14129_v60, %v10173_v23  ;;  %v2748_v13 = vmul.f32 %v10018_v50, %v10176_v42  ;;  %v4511_v60 = vld [vmem:[#allocation2 + $0x520] sm:$0xff]  ;;  %v4510_v42 = vld [vmem:[#allocation2 + $0x518] sm:$0xff] }
 0x1b7   : > { %4541 = vperm.xlu1 %8688, %v4507_v39   ;;  %v10180_v21 = vpop.f32.mrf.mxu3  ;;  %3947 = vperm.xlu0 %8687, %v3789_v26   ;;  %v1613_v39 = vmul.f32 %v9322_v41, %v9698_v62  ;;  %v2202_v26 = vrot.slane %v10190_v57, 1  ;;  %v4509_v41 = vld [vmem:[#allocation2 + $0x510] sm:$0xff] }
 0x1b8   : > { %14126 = vst [vmem:[#allocation170_spill] sm:$0xff] %v10180_v21  ;;  %v10185_v35 = vpop.f32.mrf.mxu2  ;;  %v8703_v21 = vld [vmem:[%s8974_s19 + $0x68] sm:$0xff] }
 0x1b9   : > { %14128 = vst [vmem:[#allocation172_spill] sm:$0xff] %v10185_v35  ;;  %v10203_v35 = vpop.f32.mrf.mxu1  ;;  %v2095_v53 = vrot.slane %v8703_v21, 1  ;;  %v10215_v3 = vsel %vm2064_vm3, %v2200_v48, %v2202_v26  ;;  %v10217_v21 = vpop.permute.xlu1 %2444 }
 0x1ba   : > { %v10196_v29 = vpop.f32.mrf.mxu0  ;;  %14131 = vst [vmem:[#allocation173_spill] sm:$0xff] %v10203_v35  ;;  %v10231_v35 = vld [vmem:[%s9480_s12 + $0x98] sm:$0xff]  ;;  %v2749_v48 = vmul.f32 %v9990_v61, %v10215_v3 }
 0x1bb   : > { %14130 = vst [vmem:[#allocation29_spill] sm:$0xff] %v10196_v29  ;;  %v639_v29 = vrot.slane %v10162_v52, 7 }
 0x1bc   : > { %8167 = vmatmul.msk.f32.gmra.mxu3 %vm1180_vm2, %v938_v28  ;;  %8235 = vmatmul.msk.f32.gmra.mxu1 %vm1180_vm2, %v2748_v13  ;;  %14133 = vst [vmem:[#allocation175_spill] sm:$0xff] %v10215_v3  ;;  %v10222_v13 = vsel %vm2064_vm3, %v2093_v1, %v2095_v53  ;;  %v1614_v1 = vmul.f32 %v9315_v24, %v9720_v49  ;;  %v4514_v3 = vld [vmem:[#allocation2 + $0x538] sm:$0xff]  ;;  %v4512_v24 = vld [vmem:[#allocation2 + $0x528] sm:$0xff]  ;;  %v8704_v49 = vld [vmem:[%s8974_s19 + $0x70] sm:$0xff] }
 0x1bd   : > { %8123 = vmatmul.msk.f32.gmra.mxu2 %vm1180_vm2, %v1613_v39  ;;  %8196 = vmatmul.msk.f32.gmra.mxu0 %vm1180_vm2, %v2465_v63  ;;  %v10212_v62 = vsel %vm439_vm1, %v637_v30, %v639_v29  ;;  %14135 = vst [vmem:[#allocation177_spill] sm:$0xff] %v10222_v13  ;;  %v10226_v63 = vpop.permute.xlu0 %3043  ;;  %v14137_v30 = vld [vmem:[#allocation28_spill] sm:$0xff] }
 0x1be   : > { %14132 = vst [vmem:[#allocation174_spill] sm:$0xff] %v10212_v62  ;;  %4561 = vperm.xlu2 %8689, %v4511_v60   ;;  %v939_v10 = vmul.f32 %v14137_v30, %v10212_v62  ;;  %v641_v60 = vrot.slane %v10190_v57, 7  ;;  %v2097_v62 = vrot.slane %v8704_v49, 1 }
 0x1bf   : > { %4556 = vperm.xlu1 %8688, %v4510_v42   ;;  %v10219_v28 = vpop.f32.mrf.mxu3  ;;  %4551 = vperm.xlu0 %8687, %v4509_v41   ;;  %v2466_v41 = vmul.f32 %v9927_v9, %v10222_v13 }
 0x1c0   : > { %14134 = vst [vmem:[#allocation176_spill] sm:$0xff] %v10219_v28  ;;  %v10224_v39 = vpop.f32.mrf.mxu2  ;;  %v10243_v28 = vpop.permute.xlu2 %3053  ;;  %v10253_v9 = vsel %vm439_vm1, %v639_v29, %v641_v60  ;;  %v14145_v29 = vld [vmem:[#allocation15_spill] sm:$0xff] }
 0x1c1   : > { %14136 = vst [vmem:[#allocation178_spill] sm:$0xff] %v10224_v39  ;;  %v2204_v39 = vrot.slane %v10231_v35, 1  ;;  %v10245_v30 = vpop.f32.mrf.mxu1  ;;  %v940_v49 = vmul.f32 %v14145_v29, %v10253_v9  ;;  %v8705_v29 = vld [vmem:[%s8974_s19 + $0x78] sm:$0xff] }
 0x1c2   : > { %v10235_v42 = vpop.f32.mrf.mxu0  ;;  %14139 = vst [vmem:[#allocation179_spill] sm:$0xff] %v10245_v30 }
 0x1c3   : > { %14138 = vst [vmem:[#allocation28_spill] sm:$0xff] %v10235_v42  ;;  %v4513_v42 = vld [vmem:[#allocation2 + $0x530] sm:$0xff]  ;;  %v10256_v13 = vsel %vm2064_vm3, %v2202_v26, %v2204_v39 }
 0x1c4   : > { %8168 = vmatmul.msk.f32.gmra.mxu3 %vm1180_vm2, %v939_v10  ;;  %8236 = vmatmul.msk.f32.gmra.mxu1 %vm1180_vm2, %v2749_v48  ;;  %14140 = vst [vmem:[#allocation180_spill] sm:$0xff] %v10253_v9  ;;  %v10261_v48 = vsel %vm2064_vm3, %v2095_v53, %v2097_v62  ;;  %v2750_v26 = vmul.f32 %v10027_v0, %v10256_v13  ;;  %v2099_v9 = vrot.slane %v8705_v29, 1 }
 0x1c5   : > { %8124 = vmatmul.msk.f32.gmra.mxu2 %vm1180_vm2, %v1614_v1  ;;  %8197 = vmatmul.msk.f32.gmra.mxu0 %vm1180_vm2, %v2466_v41  ;;  %14141 = vst [vmem:[#allocation181_spill] sm:$0xff] %v10256_v13  ;;  %v10265_v41 = vpop.permute.xlu1 %3048  ;;  %v2467_v53 = vmul.f32 %v9969_v20, %v10261_v48  ;;  %v4517_v13 = vld [vmem:[#allocation2 + $0x550] sm:$0xff]  ;;  %v4515_v20 = vld [vmem:[#allocation2 + $0x540] sm:$0xff] }
 0x1c6   : > { %4576 = vperm.xlu2 %8689, %v4514_v3   ;;  %14143 = vst [vmem:[#allocation183_spill] sm:$0xff] %v10261_v48  ;;  %v643_v3 = vrot.slane %v10231_v35, 7 }
 0x1c7   : > { %4571 = vperm.xlu1 %8688, %v4513_v42   ;;  %v10258_v10 = vpop.f32.mrf.mxu3  ;;  %4566 = vperm.xlu0 %8687, %v4512_v24   ;;  %v1615_v42 = vmul.f32 %v9270_v40, %v9757_v11  ;;  %v10278_v24 = vpop.permute.xlu0 %3058 }
 0x1c8   : > { %14142 = vst [vmem:[#allocation182_spill] sm:$0xff] %v10258_v10  ;;  %v10263_v1 = vpop.f32.mrf.mxu2  ;;  %v10283_v10 = vld [vmem:[%s9480_s12 + $0xa0] sm:$0xff]  ;;  %v10289_v11 = vpop.permute.xlu2 %3068  ;;  %v10294_v48 = vsel %vm439_vm1, %v641_v60, %v643_v3 }
 0x1c9   : > { %14144 = vst [vmem:[#allocation184_spill] sm:$0xff] %v10263_v1  ;;  %v10280_v1 = vpop.f32.mrf.mxu1  ;;  %v2206_v40 = vrot.slane %v10283_v10, 1 }
 0x1ca   : > { %v10271_v30 = vpop.f32.mrf.mxu0  ;;  %14147 = vst [vmem:[#allocation185_spill] sm:$0xff] %v10280_v1 }
 0x1cb   : > { %14146 = vst [vmem:[#allocation15_spill] sm:$0xff] %v10271_v30  ;;  %v4516_v30 = vld [vmem:[#allocation2 + $0x548] sm:$0xff]  ;;  %v10297_v29 = vsel %vm2064_vm3, %v2204_v39, %v2206_v40 }
 0x1cc   : > { %8169 = vmatmul.msk.f32.gmra.mxu3 %vm1180_vm2, %v940_v49  ;;  %8237 = vmatmul.msk.f32.gmra.mxu1 %vm1180_vm2, %v2750_v26  ;;  %14148 = vst [vmem:[#allocation186_spill] sm:$0xff] %v10289_v11  ;;  %v10302_v26 = vsel %vm2064_vm3, %v2097_v62, %v2099_v9  ;;  %v2751_v39 = vmul.f32 %v10066_v14, %v10297_v29 }
 0x1cd   : > { %8125 = vmatmul.msk.f32.gmra.mxu2 %vm1180_vm2, %v1615_v42  ;;  %8198 = vmatmul.msk.f32.gmra.mxu0 %vm1180_vm2, %v2467_v53  ;;  %14149 = vst [vmem:[#allocation187_spill] sm:$0xff] %v10294_v48  ;;  %v10307_v42 = vld [vmem:[%s9480_s12 + $0xa8] sm:$0xff]  ;;  %v2468_v62 = vmul.f32 %v9939_v31, %v10302_v26  ;;  %v4518_v31 = vld [vmem:[#allocation2 + $0x558] sm:$0xff] }
 0x1ce   : > { %14150 = vst [vmem:[#allocation188_spill] sm:$0xff] %v10297_v29  ;;  %4591 = vperm.xlu2 %8689, %v4517_v13   ;;  %v14154_v53 = vld [vmem:[#allocation34_spill] sm:$0xff]  ;;  %v1616_v13 = vmul.f32 %v9354_v43, %v9809_v56  ;;  %v4519_v29 = vld [vmem:[#allocation2 + $0x560] sm:$0xff]  ;;  %v645_v43 = vrot.slane %v10283_v10, 7 }
 0x1cf   : > { %4586 = vperm.xlu1 %8688, %v4516_v30   ;;  %v10299_v49 = vpop.f32.mrf.mxu3  ;;  %14152 = vst [vmem:[#allocation190_spill] sm:$0xff] %v10302_v26  ;;  %4581 = vperm.xlu0 %8687, %v4515_v20   ;;  %v941_v60 = vmul.f32 %v14154_v53, %v10294_v48  ;;  %v2208_v30 = vrot.slane %v10307_v42, 1  ;;  %v10320_v20 = vpop.permute.xlu1 %3063  ;;  %v5256_v53 = vld [vmem:[#allocation2 + $0x600] sm:$0xff] }
 0x1d0   : > { %14151 = vst [vmem:[#allocation189_spill] sm:$0xff] %v10299_v49  ;;  %v10304_v1 = vpop.f32.mrf.mxu2  ;;  %v8706_v49 = vld [vmem:[%s8974_s19 + $0x80] sm:$0xff]  ;;  %v10328_v56 = vpop.permute.xlu0 %3073  ;;  %v10333_v26 = vsel %vm439_vm1, %v643_v3, %v645_v43  ;;  %v10350_v3 = vld [vmem:[%s9480_s12 + $0xb0] sm:$0xff] }
 0x1d1   : > { %14153 = vst [vmem:[#allocation191_spill] sm:$0xff] %v10304_v1  ;;  %v10322_v1 = vpop.f32.mrf.mxu1  ;;  %v2101_v11 = vrot.slane %v8706_v49, 1  ;;  %v10336_v49 = vsel %vm2064_vm3, %v2206_v40, %v2208_v30 }
 0x1d2   : > { %v10313_v23 = vpop.f32.mrf.mxu0  ;;  %14156 = vst [vmem:[#allocation192_spill] sm:$0xff] %v10322_v1  ;;  %v2752_v40 = vmul.f32 %v10042_v38, %v10336_v49 }
 0x1d3   : > { %14155 = vst [vmem:[#allocation34_spill] sm:$0xff] %v10313_v23  ;;  %v10343_v23 = vsel %vm2064_vm3, %v2099_v9, %v2101_v11  ;;  %v1617_v9 = vmul.f32 %v9350_v45, %v9841_v7  ;;  %v5257_v45 = vld [vmem:[#allocation2 + $0x608] sm:$0xff] }
 0x1d4   : > { %8170 = vmatmul.msk.f32.gmra.mxu3 %vm1180_vm2, %v941_v60  ;;  %8238 = vmatmul.msk.f32.gmra.mxu1 %vm1180_vm2, %v2751_v39  ;;  %14157 = vst [vmem:[#allocation193_spill] sm:$0xff] %v10333_v26  ;;  %v10338_v60 = vpop.permute.xlu2 %3083  ;;  %v8707_v7 = vld [vmem:[%s8974_s19 + $0x88] sm:$0xff] }
 0x1d5   : > { %8126 = vmatmul.msk.f32.gmra.mxu2 %vm1180_vm2, %v1616_v13  ;;  %8199 = vmatmul.msk.f32.gmra.mxu0 %vm1180_vm2, %v2468_v62  ;;  %14158 = vst [vmem:[#allocation194_spill] sm:$0xff] %v10336_v49  ;;  %v14162_v62 = vld [vmem:[#allocation33_spill] sm:$0xff]  ;;  %v5258_v49 = vld [vmem:[#allocation2 + $0x610] sm:$0xff] }
 0x1d6   : > { %5290 = vperm.xlu2 %8689, %v5256_v53   ;;  %14160 = vst [vmem:[#allocation196_spill] sm:$0xff] %v10343_v23  ;;  %v942_v1 = vmul.f32 %v14162_v62, %v10333_v26  ;;  %v2469_v53 = vmul.f32 %v9973_v22, %v10343_v23  ;;  %v4520_v62 = vld [vmem:[#allocation2 + $0x568] sm:$0xff] }
 0x1d7   : > { %4601 = vperm.xlu1 %8688, %v4519_v29   ;;  %v10340_v39 = vpop.f32.mrf.mxu3  ;;  %4596 = vperm.xlu0 %8687, %v4518_v31   ;;  %v647_v29 = vrot.slane %v10307_v42, 7  ;;  %v2210_v31 = vrot.slane %v10350_v3, 1 }
 0x1d8   : > { %14159 = vst [vmem:[#allocation195_spill] sm:$0xff] %v10340_v39  ;;  %v10345_v13 = vpop.f32.mrf.mxu2  ;;  %v10366_v39 = vpop.permute.xlu1 %3078 }
 0x1d9   : > { %14161 = vst [vmem:[#allocation197_spill] sm:$0xff] %v10345_v13  ;;  %v10362_v13 = vpop.f32.mrf.mxu1  ;;  %v10372_v22 = vsel %vm439_vm1, %v645_v43, %v647_v29  ;;  %v10375_v23 = vsel %vm2064_vm3, %v2208_v30, %v2210_v31  ;;  %v14171_v43 = vld [vmem:[#allocation19_spill] sm:$0xff] }
 0x1da   : > { %v10354_v48 = vpop.f32.mrf.mxu0  ;;  %14164 = vst [vmem:[#allocation198_spill] sm:$0xff] %v10362_v13  ;;  %v943_v30 = vmul.f32 %v14171_v43, %v10372_v22  ;;  %v2753_v13 = vmul.f32 %v10082_v19, %v10375_v23  ;;  %v5261_v43 = vld [vmem:[#allocation2 + $0x628] sm:$0xff] }
 0x1db   : > { %14163 = vst [vmem:[#allocation33_spill] sm:$0xff] %v10354_v48  ;;  %v2103_v48 = vrot.slane %v8707_v7, 1 }
 0x1dc   : > { %8171 = vmatmul.msk.f32.gmra.mxu3 %vm1180_vm2, %v942_v1  ;;  %8239 = vmatmul.msk.f32.gmra.mxu1 %vm1180_vm2, %v2752_v40  ;;  %14165 = vst [vmem:[#allocation199_spill] sm:$0xff] %v10372_v22  ;;  %v10377_v1 = vpop.permute.xlu0 %3088  ;;  %v10386_v7 = vpop.permute.xlu2 %3098  ;;  %v8709_v22 = vld [vmem:[%s8974_s19 + $0x98] sm:$0xff] }
 0x1dd   : > { %8127 = vmatmul.msk.f32.gmra.mxu2 %vm1180_vm2, %v1617_v9  ;;  %8200 = vmatmul.msk.f32.gmra.mxu0 %vm1180_vm2, %v2469_v53  ;;  %14166 = vst [vmem:[#allocation200_spill] sm:$0xff] %v10375_v23  ;;  %v10382_v9 = vsel %vm2064_vm3, %v2101_v11, %v2103_v48  ;;  %v5260_v23 = vld [vmem:[#allocation2 + $0x620] sm:$0xff] }
 0x1de   : > { %4606 = vperm.xlu2 %8689, %v4520_v62   ;;  %14168 = vst [vmem:[#allocation202_spill] sm:$0xff] %v10382_v9  ;;  %v1618_v62 = vmul.f32 %v9313_v37, %v9876_v34  ;;  %v2470_v11 = vmul.f32 %v10018_v50, %v10382_v9  ;;  %v5259_v37 = vld [vmem:[#allocation2 + $0x618] sm:$0xff] }
 0x1df   : > { %5300 = vperm.xlu1 %8688, %v5258_v49   ;;  %v10379_v40 = vpop.f32.mrf.mxu3  ;;  %5295 = vperm.xlu0 %8687, %v5257_v45   ;;  %14170 = vst [vmem:[#allocation204_spill] sm:$0xff] %v10386_v7  ;;  %v649_v49 = vrot.slane %v10350_v3, 7 }
 0x1e0   : > { %14167 = vst [vmem:[#allocation201_spill] sm:$0xff] %v10379_v40  ;;  %v10384_v53 = vpop.f32.mrf.mxu2  ;;  %v8708_v40 = vld [vmem:[%s8974_s19 + $0x90] sm:$0xff] }
 0x1e1   : > { %14169 = vst [vmem:[#allocation203_spill] sm:$0xff] %v10384_v53  ;;  %v10399_v45 = vpop.f32.mrf.mxu1  ;;  %v10402_v53 = vld [vmem:[%s9480_s12 + $0xb8] sm:$0xff]  ;;  %v2105_v7 = vrot.slane %v8708_v40, 1  ;;  %v10411_v34 = vsel %vm439_vm1, %v647_v29, %v649_v49  ;;  %v10416_v40 = vpop.permute.xlu1 %3093  ;;  %v10428_v29 = vld [vmem:[%s9480_s12 + $0xc0] sm:$0xff] }
 0x1e2   : > { %v10392_v26 = vpop.f32.mrf.mxu0  ;;  %14173 = vst [vmem:[#allocation205_spill] sm:$0xff] %v10399_v45 }
 0x1e3   : > { %14172 = vst [vmem:[#allocation19_spill] sm:$0xff] %v10392_v26  ;;  %v2212_v26 = vrot.slane %v10402_v53, 1 }
 0x1e4   : > { %8172 = vmatmul.msk.f32.gmra.mxu3 %vm1180_vm2, %v943_v30  ;;  %8240 = vmatmul.msk.f32.gmra.mxu1 %vm1180_vm2, %v2753_v13  ;;  %14174 = vst [vmem:[#allocation206_spill] sm:$0xff] %v10411_v34  ;;  %v10421_v30 = vsel %vm2064_vm3, %v2103_v48, %v2105_v7 }
 0x1e5   : > { %8128 = vmatmul.msk.f32.gmra.mxu2 %vm1180_vm2, %v1618_v62  ;;  %8201 = vmatmul.msk.f32.gmra.mxu0 %vm1180_vm2, %v2470_v11  ;;  %v10414_v50 = vsel %vm2064_vm3, %v2210_v31, %v2212_v26  ;;  %14177 = vst [vmem:[#allocation209_spill] sm:$0xff] %v10421_v30  ;;  %v10425_v11 = vpop.permute.xlu0 %3103  ;;  %v14180_v31 = vld [vmem:[#allocation38_spill] sm:$0xff]  ;;  %v2471_v48 = vmul.f32 %v9990_v61, %v10421_v30 }
 0x1e6   : > { %14175 = vst [vmem:[#allocation207_spill] sm:$0xff] %v10414_v50  ;;  %5315 = vperm.xlu2 %8689, %v5261_v43   ;;  %v944_v9 = vmul.f32 %v14180_v31, %v10411_v34  ;;  %v2754_v43 = vmul.f32 %v10122_v36, %v10414_v50  ;;  %v5263_v31 = vld [vmem:[#allocation2 + $0x638] sm:$0xff]  ;;  %v5262_v50 = vld [vmem:[#allocation2 + $0x630] sm:$0xff] }
 0x1e7   : > { %5310 = vperm.xlu1 %8688, %v5260_v23   ;;  %v10418_v13 = vpop.f32.mrf.mxu3  ;;  %5305 = vperm.xlu0 %8687, %v5259_v37   ;;  %14179 = vst [vmem:[#allocation211_spill] sm:$0xff] %v10425_v11  ;;  %v1619_v23 = vmul.f32 %v9381_v5, %v9924_v54  ;;  %v2214_v37 = vrot.slane %v10428_v29, 1  ;;  %v2107_v11 = vrot.slane %v8709_v22, 1  ;;  %v651_v5 = vrot.slane %v10402_v53, 7  ;;  %v4521_v54 = vld [vmem:[#allocation2 + $0x570] sm:$0xff] }
 0x1e8   : > { %14176 = vst [vmem:[#allocation208_spill] sm:$0xff] %v10418_v13  ;;  %v10423_v62 = vpop.f32.mrf.mxu2 }
 0x1e9   : > { %14178 = vst [vmem:[#allocation210_spill] sm:$0xff] %v10423_v62  ;;  %v10441_v62 = vpop.permute.xlu2 %3113  ;;  %v10443_v13 = vpop.f32.mrf.mxu1  ;;  %v10452_v61 = vsel %vm439_vm1, %v649_v49, %v651_v5  ;;  %v10455_v30 = vsel %vm2064_vm3, %v2212_v26, %v2214_v37  ;;  %v10469_v49 = vld [vmem:[%s9480_s12 + $0xc8] sm:$0xff] }
 0x1ea   : > { %v10434_v45 = vpop.f32.mrf.mxu0  ;;  %14182 = vst [vmem:[#allocation212_spill] sm:$0xff] %v10443_v13  ;;  %v2755_v26 = vmul.f32 %v10090_v58, %v10455_v30 }
 0x1eb   : > { %14181 = vst [vmem:[#allocation38_spill] sm:$0xff] %v10434_v45 }
 0x1ec   : > { %8173 = vmatmul.msk.f32.gmra.mxu3 %vm1180_vm2, %v944_v9  ;;  %8241 = vmatmul.msk.f32.gmra.mxu1 %vm1180_vm2, %v2754_v43  ;;  %14183 = vst [vmem:[#allocation213_spill] sm:$0xff] %v10452_v61  ;;  %v10460_v9 = vsel %vm2064_vm3, %v2105_v7, %v2107_v11  ;;  %v1620_v7 = vmul.f32 %v9377_v51, %v9952_v55  ;;  %v5264_v51 = vld [vmem:[#allocation2 + $0x640] sm:$0xff] }
 0x1ed   : > { %8129 = vmatmul.msk.f32.gmra.mxu2 %vm1180_vm2, %v1619_v23  ;;  %8202 = vmatmul.msk.f32.gmra.mxu0 %vm1180_vm2, %v2471_v48  ;;  %14184 = vst [vmem:[#allocation214_spill] sm:$0xff] %v10455_v30  ;;  %v10464_v23 = vpop.permute.xlu1 %3108  ;;  %v14188_v48 = vld [vmem:[#allocation37_spill] sm:$0xff]  ;;  %v10481_v13 = vpop.permute.xlu0 %3118  ;;  %v5265_v30 = vld [vmem:[#allocation2 + $0x648] sm:$0xff] }
 0x1ee   : > { %5325 = vperm.xlu2 %8689, %v5263_v31   ;;  %14186 = vst [vmem:[#allocation216_spill] sm:$0xff] %v10460_v9  ;;  %v945_v45 = vmul.f32 %v14188_v48, %v10452_v61  ;;  %v653_v31 = vrot.slane %v10428_v29, 7  ;;  %v8710_v55 = vld [vmem:[%s8974_s19 + $0xa0] sm:$0xff] }
 0x1ef   : > { %5320 = vperm.xlu1 %8688, %v5262_v50   ;;  %v10457_v22 = vpop.f32.mrf.mxu3  ;;  %4611 = vperm.xlu0 %8687, %v4521_v54   ;;  %v2472_v54 = vmul.f32 %v10027_v0, %v10460_v9  ;;  %v2109_v0 = vrot.slane %v8710_v55, 1 }
 0x1f0   : > { %14185 = vst [vmem:[#allocation215_spill] sm:$0xff] %v10457_v22  ;;  %v10462_v43 = vpop.f32.mrf.mxu2  ;;  %v10493_v9 = vsel %vm439_vm1, %v651_v5, %v653_v31 }
 0x1f1   : > { %14187 = vst [vmem:[#allocation217_spill] sm:$0xff] %v10462_v43  ;;  %v2216_v43 = vrot.slane %v10469_v49, 1  ;;  %v10483_v48 = vpop.f32.mrf.mxu1  ;;  %v10487_v22 = vpop.permute.xlu2 %3128 }
 0x1f2   : > { %v10473_v50 = vpop.f32.mrf.mxu0  ;;  %14190 = vst [vmem:[#allocation218_spill] sm:$0xff] %v10483_v48 }
 0x1f3   : > { %14189 = vst [vmem:[#allocation37_spill] sm:$0xff] %v10473_v50  ;;  %v4522_v50 = vld [vmem:[#allocation2 + $0x578] sm:$0xff]  ;;  %v10496_v48 = vsel %vm2064_vm3, %v2214_v37, %v2216_v43  ;;  %v655_v37 = vrot.slane %v10469_v49, 7 }
 0x1f4   : > { %8174 = vmatmul.msk.f32.gmra.mxu3 %vm1180_vm2, %v945_v45  ;;  %8242 = vmatmul.msk.f32.gmra.mxu1 %vm1180_vm2, %v2755_v26  ;;  %14191 = vst [vmem:[#allocation219_spill] sm:$0xff] %v10493_v9  ;;  %v10501_v26 = vsel %vm2064_vm3, %v2107_v11, %v2109_v0  ;;  %v2756_v5 = vmul.f32 %v10128_v6, %v10496_v48 }
 0x1f5   : > { %8130 = vmatmul.msk.f32.gmra.mxu2 %vm1180_vm2, %v1620_v7  ;;  %8203 = vmatmul.msk.f32.gmra.mxu0 %vm1180_vm2, %v2472_v54  ;;  %14192 = vst [vmem:[#allocation220_spill] sm:$0xff] %v10496_v48  ;;  %v14196_v54 = vld [vmem:[#allocation23_spill] sm:$0xff]  ;;  %v2473_v11 = vmul.f32 %v10066_v14, %v10501_v26  ;;  %v4523_v48 = vld [vmem:[#allocation2 + $0x580] sm:$0xff] }
 0x1f6   : > { %5335 = vperm.xlu2 %8689, %v5265_v30   ;;  %14194 = vst [vmem:[#allocation222_spill] sm:$0xff] %v10501_v26  ;;  %v946_v55 = vmul.f32 %v14196_v54, %v10493_v9  ;;  %v1621_v30 = vmul.f32 %v9359_v16, %v9995_v59  ;;  %v8711_v54 = vld [vmem:[%s8974_s19 + $0xa8] sm:$0xff]  ;;  %v10527_v59 = vpop.permute.xlu0 %3133  ;;  %v5266_v14 = vld [vmem:[#allocation2 + $0x650] sm:$0xff]  ;;  %v10532_v26 = vsel %vm439_vm1, %v653_v31, %v655_v37 }
 0x1f7   : > { %4616 = vperm.xlu1 %8688, %v4522_v50   ;;  %v10498_v45 = vpop.f32.mrf.mxu3  ;;  %5330 = vperm.xlu0 %8687, %v5264_v51   ;;  %v10516_v50 = vpop.permute.xlu1 %3123  ;;  %14199 = vst [vmem:[#allocation225_spill] sm:$0xff] %v10532_v26  ;;  %v14205_v31 = vld [vmem:[#allocation42_spill] sm:$0xff] }
 0x1f8   : > { %14193 = vst [vmem:[#allocation221_spill] sm:$0xff] %v10498_v45  ;;  %v10503_v7 = vpop.f32.mrf.mxu2  ;;  %v2111_v45 = vrot.slane %v8711_v54, 1  ;;  %v947_v9 = vmul.f32 %v14205_v31, %v10532_v26  ;;  %v5270_v31 = vld [vmem:[#allocation2 + $0x670] sm:$0xff] }
 0x1f9   : > { %14195 = vst [vmem:[#allocation223_spill] sm:$0xff] %v10503_v7  ;;  %v10518_v51 = vpop.f32.mrf.mxu1  ;;  %v10521_v7 = vld [vmem:[%s9480_s12 + $0xd0] sm:$0xff] }
 0x1fa   : > { %v10509_v61 = vpop.f32.mrf.mxu0  ;;  %14198 = vst [vmem:[#allocation224_spill] sm:$0xff] %v10518_v51  ;;  %v2218_v16 = vrot.slane %v10521_v7, 1  ;;  %v10542_v51 = vsel %vm2064_vm3, %v2109_v0, %v2111_v45 }
 0x1fb   : > { %14197 = vst [vmem:[#allocation23_spill] sm:$0xff] %v10509_v61  ;;  %v5267_v61 = vld [vmem:[#allocation2 + $0x658] sm:$0xff]  ;;  %v2474_v0 = vmul.f32 %v10042_v38, %v10542_v51 }
 0x1fc   : > { %8175 = vmatmul.msk.f32.gmra.mxu3 %vm1180_vm2, %v946_v55  ;;  %8243 = vmatmul.msk.f32.gmra.mxu1 %vm1180_vm2, %v2756_v5  ;;  %v10535_v54 = vsel %vm2064_vm3, %v2216_v43, %v2218_v16  ;;  %v10537_v55 = vpop.permute.xlu2 %3143  ;;  %14203 = vst [vmem:[#allocation229_spill] sm:$0xff] %v10542_v51 }
 0x1fd   : > { %8131 = vmatmul.msk.f32.gmra.mxu2 %vm1180_vm2, %v1621_v30  ;;  %8204 = vmatmul.msk.f32.gmra.mxu0 %vm1180_vm2, %v2473_v11  ;;  %14200 = vst [vmem:[#allocation226_spill] sm:$0xff] %v10535_v54  ;;  %v10547_v11 = vld [vmem:[%s9480_s12 + $0xd8] sm:$0xff]  ;;  %v2757_v43 = vmul.f32 %v10168_v18, %v10535_v54  ;;  %v5269_v54 = vld [vmem:[#allocation2 + $0x668] sm:$0xff] }
 0x1fe   : > { %14201 = vst [vmem:[#allocation227_spill] sm:$0xff] %v10537_v55  ;;  %4621 = vperm.xlu2 %8689, %v4523_v48  }
 0x1ff   : > { %5345 = vperm.xlu1 %8688, %v5267_v61   ;;  %v10539_v5 = vpop.f32.mrf.mxu3  ;;  %5340 = vperm.xlu0 %8687, %v5266_v14   ;;  %v14207_v61 = vld [vmem:[#allocation64_spill] sm:$0xff]  ;;  %v2220_v14 = vrot.slane %v10547_v11, 1  ;;  %v10566_v26 = vpop.permute.xlu1 %3138 }
 0x200   : > { %14202 = vst [vmem:[#allocation228_spill] sm:$0xff] %v10539_v5  ;;  %v10544_v30 = vpop.f32.mrf.mxu2  ;;  %v1622_v48 = vmul.f32 %v14207_v61, %v10045_v12  ;;  %v5268_v12 = vld [vmem:[#allocation2 + $0x660] sm:$0xff] }
 0x201   : > { %14204 = vst [vmem:[#allocation230_spill] sm:$0xff] %v10544_v30  ;;  %v10560_v5 = vpop.f32.mrf.mxu1  ;;  %v8712_v30 = vld [vmem:[%s8974_s19 + $0xb0] sm:$0xff] }
 0x202   : > { %v10553_v34 = vpop.f32.mrf.mxu0  ;;  %14208 = vst [vmem:[#allocation64_spill] sm:$0xff] %v10560_v5  ;;  %v2113_v55 = vrot.slane %v8712_v30, 1  ;;  %v10574_v30 = vsel %vm2064_vm3, %v2218_v16, %v2220_v14  ;;  %v10590_v16 = vld [vmem:[%s9480_s12 + $0xe0] sm:$0xff]  ;;  %v659_v5 = vrot.slane %v10547_v11, 7 }
 0x203   : > { %14206 = vst [vmem:[#allocation42_spill] sm:$0xff] %v10553_v34  ;;  %v657_v34 = vrot.slane %v10521_v7, 7 }
 0x204   : > { %8176 = vmatmul.msk.f32.gmra.mxu3 %vm1180_vm2, %v947_v9  ;;  %8244 = vmatmul.msk.f32.gmra.mxu1 %vm1180_vm2, %v2757_v43  ;;  %14209 = vst [vmem:[#allocation231_spill] sm:$0xff] %v10566_v26  ;;  %v10576_v9 = vpop.permute.xlu0 %3148  ;;  %v10581_v61 = vsel %vm2064_vm3, %v2111_v45, %v2113_v55  ;;  %v14218_v45 = vld [vmem:[#allocation63_spill] sm:$0xff] }
 0x205   : > { %8132 = vmatmul.msk.f32.gmra.mxu2 %vm1180_vm2, %v1622_v48  ;;  %8205 = vmatmul.msk.f32.gmra.mxu0 %vm1180_vm2, %v2474_v0  ;;  %v10571_v38 = vsel %vm439_vm1, %v655_v37, %v657_v34  ;;  %14211 = vst [vmem:[#allocation233_spill] sm:$0xff] %v10574_v30  ;;  %v10585_v0 = vpop.permute.xlu2 %3158  ;;  %v14216_v37 = vld [vmem:[#allocation41_spill] sm:$0xff] }
 0x206   : > { %14210 = vst [vmem:[#allocation232_spill] sm:$0xff] %v10571_v38  ;;  %5360 = vperm.xlu2 %8689, %v5270_v31   ;;  %v948_v51 = vmul.f32 %v14216_v37, %v10571_v38  ;;  %v2758_v31 = vmul.f32 %v10136_v32, %v10574_v30  ;;  %v5272_v37 = vld [vmem:[#allocation2 + $0x680] sm:$0xff]  ;;  %v5271_v30 = vld [vmem:[#allocation2 + $0x678] sm:$0xff] }
 0x207   : > { %14212 = vst [vmem:[#allocation234_spill] sm:$0xff] %v10576_v9  ;;  %5355 = vperm.xlu1 %8688, %v5269_v54   ;;  %v10578_v43 = vpop.f32.mrf.mxu3  ;;  %5350 = vperm.xlu0 %8687, %v5268_v12   ;;  %v1623_v12 = vmul.f32 %v14218_v45, %v10069_v17  ;;  %v8713_v38 = vld [vmem:[%s8974_s19 + $0xb8] sm:$0xff]  ;;  %v10610_v45 = vsel %vm439_vm1, %v657_v34, %v659_v5  ;;  %v14226_v34 = vld [vmem:[#allocation27_spill] sm:$0xff] }
 0x208   : > { %14213 = vst [vmem:[#allocation235_spill] sm:$0xff] %v10578_v43  ;;  %v10583_v48 = vpop.f32.mrf.mxu2  ;;  %v2475_v43 = vmul.f32 %v10082_v19, %v10581_v61  ;;  %v2115_v17 = vrot.slane %v8713_v38, 1 }
 0x209   : > { %14214 = vst [vmem:[#allocation236_spill] sm:$0xff] %v10581_v61  ;;  %v10602_v9 = vpop.f32.mrf.mxu1  ;;  %v10615_v61 = vpop.permute.xlu1 %3153 }
 0x20a   : > { %14215 = vst [vmem:[#allocation237_spill] sm:$0xff] %v10585_v0  ;;  %v10594_v54 = vpop.f32.mrf.mxu0  ;;  %v2222_v0 = vrot.slane %v10590_v16, 1 }
 0x20b   : > { %14217 = vst [vmem:[#allocation41_spill] sm:$0xff] %v10594_v54  ;;  %v4524_v54 = vld [vmem:[#allocation2 + $0x588] sm:$0xff] }
 0x20c   : > { %14219 = vst [vmem:[#allocation63_spill] sm:$0xff] %v10602_v9  ;;  %8177 = vmatmul.msk.f32.gmra.mxu3 %vm1180_vm2, %v948_v51  ;;  %8245 = vmatmul.msk.f32.gmra.mxu1 %vm1180_vm2, %v2758_v31  ;;  %v10613_v19 = vsel %vm2064_vm3, %v2220_v14, %v2222_v0  ;;  %v10620_v31 = vsel %vm2064_vm3, %v2113_v55, %v2115_v17  ;;  %v10624_v38 = vpop.permute.xlu0 %3163 }
 0x20d   : > { %8133 = vmatmul.msk.f32.gmra.mxu2 %vm1180_vm2, %v1623_v12  ;;  %8206 = vmatmul.msk.f32.gmra.mxu0 %vm1180_vm2, %v2475_v43  ;;  %14220 = vst [vmem:[#allocation238_spill] sm:$0xff] %v10610_v45  ;;  %v949_v14 = vmul.f32 %v14226_v34, %v10610_v45  ;;  %v2759_v12 = vmul.f32 %v10178_v33, %v10613_v19  ;;  %v4526_v34 = vld [vmem:[#allocation2 + $0x598] sm:$0xff] }
 0x20e   : > { %14221 = vst [vmem:[#allocation239_spill] sm:$0xff] %v10613_v19  ;;  %5370 = vperm.xlu2 %8689, %v5272_v37   ;;  %v14228_v37 = vld [vmem:[#allocation61_spill] sm:$0xff]  ;;  %v5273_v19 = vld [vmem:[#allocation2 + $0x688] sm:$0xff] }
 0x20f   : > { %14222 = vst [vmem:[#allocation240_spill] sm:$0xff] %v10615_v61  ;;  %5365 = vperm.xlu1 %8688, %v5271_v30   ;;  %v10617_v51 = vpop.f32.mrf.mxu3  ;;  %4626 = vperm.xlu0 %8687, %v4524_v54   ;;  %v661_v30 = vrot.slane %v10590_v16, 7  ;;  %v1624_v55 = vmul.f32 %v14228_v37, %v10110_v4  ;;  %v2476_v54 = vmul.f32 %v10122_v36, %v10620_v31  ;;  %v4525_v36 = vld [vmem:[#allocation2 + $0x590] sm:$0xff] }
 0x210   : > { %14223 = vst [vmem:[#allocation241_spill] sm:$0xff] %v10617_v51  ;;  %v10622_v43 = vpop.f32.mrf.mxu2  ;;  %v10637_v51 = vpop.permute.xlu2 %3173 }
 0x211   : > { %14224 = vst [vmem:[#allocation242_spill] sm:$0xff] %v10620_v31  ;;  %v10639_v61 = vpop.f32.mrf.mxu1  ;;  %v10651_v4 = vsel %vm439_vm1, %v659_v5, %v661_v30 }
 0x212   : > { %14225 = vst [vmem:[#allocation243_spill] sm:$0xff] %v10624_v38  ;;  %v10630_v9 = vpop.f32.mrf.mxu0  ;;  %v8714_v38 = vld [vmem:[%s8974_s19 + $0xc0] sm:$0xff] }
 0x213   : > { %14227 = vst [vmem:[#allocation27_spill] sm:$0xff] %v10630_v9  ;;  %v2117_v26 = vrot.slane %v8714_v38, 1  ;;  %v10645_v9 = vld [vmem:[%s9480_s12 + $0xe8] sm:$0xff] }
 0x214   : > { %14229 = vst [vmem:[#allocation61_spill] sm:$0xff] %v10637_v51  ;;  %8178 = vmatmul.msk.f32.gmra.mxu3 %vm1180_vm2, %v949_v14  ;;  %8246 = vmatmul.msk.f32.gmra.mxu1 %vm1180_vm2, %v2759_v12  ;;  %v2224_v45 = vrot.slane %v10645_v9, 1 }
 0x215   : > { %14230 = vst [vmem:[#allocation244_spill] sm:$0xff] %v10639_v61  ;;  %8134 = vmatmul.msk.f32.gmra.mxu2 %vm1180_vm2, %v1624_v55  ;;  %8207 = vmatmul.msk.f32.gmra.mxu0 %vm1180_vm2, %v2476_v54  ;;  %v10659_v12 = vsel %vm2064_vm3, %v2115_v17, %v2117_v26  ;;  %v10663_v55 = vpop.permute.xlu1 %3168  ;;  %v14235_v54 = vld [vmem:[#allocation47_spill] sm:$0xff]  ;;  %v10675_v61 = vpop.permute.xlu0 %3178 }
 0x216   : > { %14231 = vst [vmem:[#allocation245_spill] sm:$0xff] %v10651_v4  ;;  %v10654_v38 = vsel %vm2064_vm3, %v2222_v0, %v2224_v45  ;;  %4636 = vperm.xlu2 %8689, %v4526_v34   ;;  %v950_v5 = vmul.f32 %v14235_v54, %v10651_v4  ;;  %v2477_v17 = vmul.f32 %v10090_v58, %v10659_v12  ;;  %v5275_v54 = vld [vmem:[#allocation2 + $0x698] sm:$0xff]  ;;  %v14240_v58 = vld [vmem:[#allocation77_spill] sm:$0xff] }
 0x217   : > { %14232 = vst [vmem:[#allocation246_spill] sm:$0xff] %v10654_v38  ;;  %5375 = vperm.xlu1 %8688, %v5273_v19   ;;  %v10656_v14 = vpop.f32.mrf.mxu3  ;;  %4631 = vperm.xlu0 %8687, %v4525_v36   ;;  %v2760_v31 = vmul.f32 %v10217_v21, %v10654_v38  ;;  %v14237_v19 = vld [vmem:[#allocation68_spill] sm:$0xff]  ;;  %v4527_v38 = vld [vmem:[#allocation2 + $0x5a0] sm:$0xff] }
 0x218   : > { %14233 = vst [vmem:[#allocation247_spill] sm:$0xff] %v10656_v14  ;;  %v10661_v37 = vpop.f32.mrf.mxu2  ;;  %v1625_v34 = vmul.f32 %v14237_v19, %v10162_v52  ;;  %v8716_v14 = vld [vmem:[%s8974_s19 + $0xc8] sm:$0xff]  ;;  %v10682_v4 = vpop.permute.xlu2 %3188  ;;  %v5274_v52 = vld [vmem:[#allocation2 + $0x690] sm:$0xff]  ;;  %v14241_v19 = vrot.slane %v14240_v58, 7 }
 0x219   : > { %14234 = vst [vmem:[#allocation248_spill] sm:$0xff] %v10659_v12  ;;  %v10677_v36 = vpop.f32.mrf.mxu1  ;;  %v2119_v51 = vrot.slane %v8716_v14, 1  ;;  %v14243_v14 = vrot.slane %v9494_v25, 1 }
 0x21a   : > { %v10669_v0 = vpop.f32.mrf.mxu0  ;;  %14238 = vst [vmem:[#allocation68_spill] sm:$0xff] %v10675_v61  ;;  %v10689_v12 = vsel %vm439_vm1, %v661_v30, %v14241_v19  ;;  %v4529_v19 = vld [vmem:[#allocation2 + $0x5b0] sm:$0xff] }
 0x21b   : > { %14236 = vst [vmem:[#allocation47_spill] sm:$0xff] %v10669_v0  ;;  %v10699_v0 = vsel %vm2064_vm3, %v2117_v26, %v2119_v51 }
 0x21c   : > { %14239 = vst [vmem:[#allocation249_spill] sm:$0xff] %v10677_v36  ;;  %8179 = vmatmul.msk.f32.gmra.mxu3 %vm1180_vm2, %v950_v5  ;;  %8247 = vmatmul.msk.f32.gmra.mxu1 %vm1180_vm2, %v2760_v31  ;;  %v10694_v5 = vsel %vm2064_vm3, %v2224_v45, %v14243_v14  ;;  %v14248_v45 = vld [vmem:[#allocation67_spill] sm:$0xff]  ;;  %v5276_v14 = vld [vmem:[#allocation2 + $0x6a0] sm:$0xff]  ;;  %v4530_v36 = vld [vmem:[#allocation2 + $0x5b8] sm:$0xff] }
 0x21d   : > { %8135 = vmatmul.msk.f32.gmra.mxu2 %vm1180_vm2, %v1625_v34  ;;  %8208 = vmatmul.msk.f32.gmra.mxu0 %vm1180_vm2, %v2477_v17  ;;  %14242 = vst [vmem:[#allocation77_spill] sm:$0xff] %v10689_v12  ;;  %v14246_v17 = vld [vmem:[#allocation46_spill] sm:$0xff]  ;;  %v2761_v25 = vmul.f32 %v10187_v47, %v10694_v5  ;;  %v10713_v26 = vpop.permute.xlu1 %3183 }
 0x21e   : > { %14244 = vst [vmem:[#allocation250_spill] sm:$0xff] %v10694_v5  ;;  %5385 = vperm.xlu2 %8689, %v5275_v54   ;;  %v951_v30 = vmul.f32 %v14246_v17, %v10689_v12  ;;  %v2478_v54 = vmul.f32 %v10128_v6, %v10699_v0  ;;  %v10719_v17 = vpop.permute.xlu0 %3193 }
 0x21f   : > { %4641 = vperm.xlu1 %8688, %v4527_v38   ;;  %v10696_v31 = vpop.f32.mrf.mxu3  ;;  %14245 = vst [vmem:[#allocation251_spill] sm:$0xff] %v10699_v0  ;;  %5380 = vperm.xlu0 %8687, %v5274_v52   ;;  %v1626_v38 = vmul.f32 %v14248_v45, %v10190_v57  ;;  %v4528_v57 = vld [vmem:[#allocation2 + $0x5a8] sm:$0xff]  ;;  %v8717_v45 = vld [vmem:[%s8974_s19 + $0xd0] sm:$0xff] }
 0x220   : > { %v10701_v34 = vpop.f32.mrf.mxu2  ;;  %v2121_v6 = vrot.slane %v8717_v45, 1  ;;  %v10724_v0 = vpop.permute.xlu2 %3792  ;;  %v14253_v45 = vld [vmem:[#allocation66_spill] sm:$0xff] }
 0x221   : > { %v10715_v52 = vpop.f32.mrf.mxu1 }
 0x222   : > { %v10707_v58 = vpop.f32.mrf.mxu0  ;;  %14249 = vst [vmem:[#allocation67_spill] sm:$0xff] %v10715_v52 }
 0x223   : > { %14247 = vst [vmem:[#allocation46_spill] sm:$0xff] %v10707_v58 }
 0x224   : > { %8180 = vmatmul.msk.f32.gmra.mxu3 %vm1180_vm2, %v951_v30  ;;  %8248 = vmatmul.msk.f32.gmra.mxu1 %vm1180_vm2, %v2761_v25  ;;  %v10729_v25 = vsel %vm2064_vm3, %v2119_v51, %v2121_v6  ;;  %v8719_v51 = vld [vmem:[%s8974_s19 + $0xd8] sm:$0xff] }
 0x225   : > { %8136 = vmatmul.msk.f32.gmra.mxu2 %vm1180_vm2, %v1626_v38  ;;  %8209 = vmatmul.msk.f32.gmra.mxu0 %vm1180_vm2, %v2478_v54  ;;  %14251 = vst [vmem:[#allocation253_spill] sm:$0xff] %v10729_v25  ;;  %v3479_v38 = vmul.f32 %v10226_v63, %v9583_v44  ;;  %v8718_v54 = vld [vmem:[%s9480_s12] sm:$0xff]  ;;  %v5278_v44 = vld [vmem:[#allocation2 + $0x6b0] sm:$0xff] }
 0x226   : > { %4651 = vperm.xlu2 %8689, %v4529_v19   ;;  %v4228_v58 = vmul.f32 %v8718_v54, %v10724_v0  ;;  %v1627_v19 = vmul.f32 %v14253_v45, %v10231_v35  ;;  %v10748_v54 = vpop.permute.xlu1 %3198  ;;  %v5277_v35 = vld [vmem:[#allocation2 + $0x6a8] sm:$0xff] }
 0x227   : > { %5390 = vperm.xlu1 %8688, %v5276_v14   ;;  %v10726_v30 = vpop.f32.mrf.mxu3  ;;  %4646 = vperm.xlu0 %8687, %v4528_v57   ;;  %v2479_v14 = vmul.f32 %v10168_v18, %v10729_v25  ;;  %v2123_v57 = vrot.slane %v8719_v51, 1  ;;  %v10752_v18 = vpop.permute.xlu0 %3797  ;;  %v3480_v51 = vmul.f32 %v10265_v41, %v9612_v27  ;;  %v4532_v27 = vld [vmem:[#allocation2 + $0x5c8] sm:$0xff] }
 0x228   : > { %14250 = vst [vmem:[#allocation252_spill] sm:$0xff] %v10726_v30  ;;  %v10731_v5 = vpop.f32.mrf.mxu2 }
 0x229   : > { %v10743_v30 = vpop.f32.mrf.mxu1 }
 0x22a   : > { %v10737_v52 = vpop.f32.mrf.mxu0  ;;  %14254 = vst [vmem:[#allocation66_spill] sm:$0xff] %v10743_v30  ;;  %v5279_v30 = vld [vmem:[#allocation2 + $0x6b8] sm:$0xff] }
 0x22b   : > { %14252 = vst [vmem:[#allocation254_spill] sm:$0xff] %v10737_v52 }
 0x22c   : > { %8285 = vmatmul.msk.f32.vlgmr.msra.gmra.mxu3 %vm1180_vm2, %v3479_v38  ;;  %8353 = vmatmul.msk.f32.vlgmr.msra.gmra.mxu1 %vm1180_vm2, %v4228_v58  ;;  %v10757_v38 = vsel %vm2064_vm3, %v2121_v6, %v2123_v57  ;;  %v8721_v6 = vld [vmem:[%s8974_s19 + $0xe0] sm:$0xff] }
 0x22d   : > { %8137 = vmatmul.msk.f32.gmra.mxu2 %vm1180_vm2, %v1627_v19  ;;  %8210 = vmatmul.msk.f32.gmra.mxu0 %vm1180_vm2, %v2479_v14  ;;  %14255 = vst [vmem:[#allocation255_spill] sm:$0xff] %v10757_v38  ;;  %v8720_v19 = vld [vmem:[%s9480_s12 + $0x8] sm:$0xff] }
 0x22e   : > { %5400 = vperm.xlu2 %8689, %v5278_v44   ;;  %v4229_v14 = vmul.f32 %v8720_v19, %v10752_v18  ;;  %v1628_v44 = vmul.f32 %v9449_v2, %v10283_v10  ;;  %v4531_v19 = vld [vmem:[#allocation2 + $0x5c0] sm:$0xff]  ;;  %v10778_v2 = vpop.permute.xlu1 %3802 }
 0x22f   : > { %4656 = vperm.xlu1 %8688, %v4530_v36   ;;  %v10754_v45 = vpop.f32.mrf.mxu3  ;;  %5395 = vperm.xlu0 %8687, %v5277_v35   ;;  %v2480_v36 = vmul.f32 %v10136_v32, %v10757_v38  ;;  %v2125_v35 = vrot.slane %v8721_v6, 1  ;;  %v4533_v38 = vld [vmem:[#allocation2 + $0x5d0] sm:$0xff] }
 0x230   : > { %v10759_v58 = vpop.f32.mrf.mxu2 }
 0x231   : > { %v10771_v52 = vpop.f32.mrf.mxu1  ;;  %v10783_v10 = vsel %vm2064_vm3, %v2123_v57, %v2125_v35 }
 0x232   : > { %v10765_v25 = vpop.f32.mrf.mxu0  ;;  %14257 = vst [vmem:[#allocation257_spill] sm:$0xff] %v10771_v52  ;;  %v8739_v52 = vld [vmem:[%s8974_s19 + $0x30] sm:$0xff] }
 0x233   : > { %14256 = vst [vmem:[#allocation256_spill] sm:$0xff] %v10765_v25 }
 0x234   : > { %8286 = vmatmul.msk.f32.gmra.mxu3 %vm1180_vm2, %v3480_v51  ;;  %8354 = vmatmul.msk.f32.gmra.mxu1 %vm1180_vm2, %v4229_v14  ;;  %14259 = vst [vmem:[#allocation259_spill] sm:$0xff] %v10783_v10  ;;  %v3481_v14 = vmul.f32 %v10243_v28, %v9639_v8 }
 0x235   : > { %8138 = vmatmul.msk.f32.gmra.mxu2 %vm1180_vm2, %v1628_v44  ;;  %8211 = vmatmul.msk.f32.gmra.mxu0 %vm1180_vm2, %v2480_v36  ;;  %v8722_v44 = vld [vmem:[%s9480_s12 + $0x10] sm:$0xff] }
 0x236   : > { %4666 = vperm.xlu2 %8689, %v4532_v27   ;;  %v4230_v36 = vmul.f32 %v8722_v44, %v10778_v2  ;;  %v1629_v27 = vmul.f32 %v9445_v15, %v10307_v42  ;;  %v5280_v44 = vld [vmem:[#allocation2 + $0x6c0] sm:$0xff]  ;;  %v10804_v15 = vpop.permute.xlu2 %3807 }
 0x237   : > { %5405 = vperm.xlu1 %8688, %v5279_v30   ;;  %v10780_v32 = vpop.f32.mrf.mxu3  ;;  %4661 = vperm.xlu0 %8687, %v4531_v19   ;;  %v2481_v30 = vmul.f32 %v10178_v33, %v10783_v10  ;;  %v5281_v19 = vld [vmem:[#allocation2 + $0x6c8] sm:$0xff] }
 0x238   : > { %14258 = vst [vmem:[#allocation258_spill] sm:$0xff] %v10780_v32  ;;  %v10785_v51 = vpop.f32.mrf.mxu2  ;;  %v8741_v32 = vld [vmem:[%s8974_s19 + $0x38] sm:$0xff] }
 0x239   : > { %v10797_v57 = vpop.f32.mrf.mxu1 }
 0x23a   : > { %v10791_v6 = vpop.f32.mrf.mxu0  ;;  %14261 = vst [vmem:[#allocation261_spill] sm:$0xff] %v10797_v57 }
 0x23b   : > { %14260 = vst [vmem:[#allocation260_spill] sm:$0xff] %v10791_v6  ;;  %v8723_v6 = vld [vmem:[%s8974_s19 + $0xe8] sm:$0xff] }
 0x23c   : > { %8287 = vmatmul.msk.f32.gmra.mxu3 %vm1180_vm2, %v3481_v14  ;;  %8355 = vmatmul.msk.f32.gmra.mxu1 %vm1180_vm2, %v4230_v36  ;;  %v2127_v25 = vrot.slane %v8723_v6, 1  ;;  %v3482_v36 = vmul.f32 %v10278_v24, %v9670_v46  ;;  %v14265_v6 = vld [vmem:[#allocation71_spill] sm:$0xff] }
 0x23d   : > { %8139 = vmatmul.msk.f32.gmra.mxu2 %vm1180_vm2, %v1629_v27  ;;  %8212 = vmatmul.msk.f32.gmra.mxu0 %vm1180_vm2, %v2481_v30  ;;  %v8724_v27 = vld [vmem:[%s9480_s12 + $0x18] sm:$0xff] }
 0x23e   : > { %5415 = vperm.xlu2 %8689, %v5281_v19   ;;  %v10809_v42 = vsel %vm2064_vm3, %v2125_v35, %v2127_v25  ;;  %v4231_v30 = vmul.f32 %v8724_v27, %v10804_v15  ;;  %v1630_v19 = vmul.f32 %v14265_v6, %v10350_v3  ;;  %v4535_v35 = vld [vmem:[#allocation2 + $0x5e0] sm:$0xff]  ;;  %v4534_v27 = vld [vmem:[#allocation2 + $0x5d8] sm:$0xff] }
 0x23f   : > { %4671 = vperm.xlu1 %8688, %v4533_v38   ;;  %v10806_v33 = vpop.f32.mrf.mxu3  ;;  %14263 = vst [vmem:[#allocation263_spill] sm:$0xff] %v10809_v42  ;;  %5410 = vperm.xlu0 %8687, %v5280_v44   ;;  %v2482_v38 = vmul.f32 %v10217_v21, %v10809_v42  ;;  %v5282_v44 = vld [vmem:[#allocation2 + $0x6d0] sm:$0xff]  ;;  %v14268_v21 = vld [vmem:[#allocation6_spill] sm:$0xff] }
 0x240   : > { %14262 = vst [vmem:[#allocation262_spill] sm:$0xff] %v10806_v33  ;;  %v10811_v14 = vpop.f32.mrf.mxu2  ;;  %v14269_v6 = vrot.slane %v14268_v21, 1 }
 0x241   : > { %v10823_v57 = vpop.f32.mrf.mxu1 }
 0x242   : > { %v10817_v10 = vpop.f32.mrf.mxu0  ;;  %14266 = vst [vmem:[#allocation71_spill] sm:$0xff] %v10823_v57  ;;  %v10836_v42 = vsel %vm2064_vm3, %v2127_v25, %v14269_v6  ;;  %v8725_v57 = vld [vmem:[%s9480_s12 + $0x20] sm:$0xff]  ;;  %v4536_v6 = vld [vmem:[#allocation2 + $0x5e8] sm:$0xff] }
 0x243   : > { %14264 = vst [vmem:[#allocation264_spill] sm:$0xff] %v10817_v10  ;;  %v10829_v10 = vpop.permute.xlu0 %3812  ;;  %v2483_v21 = vmul.f32 %v10187_v47, %v10836_v42 }
 0x244   : > { %8288 = vmatmul.msk.f32.gmra.mxu3 %vm1180_vm2, %v3482_v36  ;;  %8356 = vmatmul.msk.f32.gmra.mxu1 %vm1180_vm2, %v4231_v30  ;;  %14270 = vst [vmem:[#allocation6_spill] sm:$0xff] %v10836_v42  ;;  %v14271_v30 = vld [vmem:[#allocation106_spill] sm:$0xff] }
 0x245   : > { %8140 = vmatmul.msk.f32.gmra.mxu2 %vm1180_vm2, %v1630_v19  ;;  %8213 = vmatmul.msk.f32.gmra.mxu0 %vm1180_vm2, %v2482_v38  ;;  %v3483_v19 = vmul.f32 %v10320_v20, %v14271_v30  ;;  %v4232_v38 = vmul.f32 %v8725_v57, %v10829_v10  ;;  %v5283_v57 = vld [vmem:[#allocation2 + $0x6d8] sm:$0xff]  ;;  %v8726_v42 = vld [vmem:[%s9480_s12 + $0x28] sm:$0xff]  ;;  %v8727_v30 = vld [vmem:[%s8974_s19] sm:$0xff] }
 0x246   : > { %4681 = vperm.xlu2 %8689, %v4535_v35   ;;  %v14273_v35 = vld [vmem:[#allocation75_spill] sm:$0xff] }
 0x247   : > { %5420 = vperm.xlu1 %8688, %v5282_v44   ;;  %v10831_v3 = vpop.f32.mrf.mxu3  ;;  %4676 = vperm.xlu0 %8687, %v4534_v27   ;;  %v1631_v44 = vmul.f32 %v14273_v35, %v10402_v53  ;;  %v5284_v27 = vld [vmem:[#allocation2 + $0x6e0] sm:$0xff]  ;;  %v14277_v35 = vld [vmem:[#allocation186_spill] sm:$0xff] }
 0x248   : > { %14267 = vst [vmem:[#allocation265_spill] sm:$0xff] %v10831_v3  ;;  %v10838_v36 = vpop.f32.mrf.mxu2 }
 0x249   : > { %v10850_v25 = vpop.f32.mrf.mxu1 }
 0x24a   : > { %v10844_v33 = vpop.f32.mrf.mxu0  ;;  %14274 = vst [vmem:[#allocation75_spill] sm:$0xff] %v10850_v25 }
 0x24b   : > { %14272 = vst [vmem:[#allocation266_spill] sm:$0xff] %v10844_v33  ;;  %v10856_v33 = vpop.permute.xlu1 %3817 }
 0x24c   : > { %8289 = vmatmul.msk.f32.gmra.mxu3 %vm1180_vm2, %v3483_v19  ;;  %8357 = vmatmul.msk.f32.gmra.mxu1 %vm1180_vm2, %v4232_v38  ;;  %v14276_v19 = vld [vmem:[#allocation112_spill] sm:$0xff]  ;;  %v4233_v25 = vmul.f32 %v8726_v42, %v10856_v33  ;;  %v4537_v42 = vld [vmem:[#allocation2 + $0x5f0] sm:$0xff] }
 0x24d   : > { %8141 = vmatmul.msk.f32.gmra.mxu2 %vm1180_vm2, %v1631_v44  ;;  %8214 = vmatmul.msk.f32.gmra.mxu0 %vm1180_vm2, %v2483_v21  ;;  %v3484_v38 = vmul.f32 %v14277_v35, %v14276_v19  ;;  %v14279_v44 = vld [vmem:[#allocation74_spill] sm:$0xff] }
 0x24e   : > { %5430 = vperm.xlu2 %8689, %v5284_v27   ;;  %v1632_v21 = vmul.f32 %v14279_v44, %v10428_v29  ;;  %v3950_v27 = vmul.f32 %v8727_v30, %v10724_v0  ;;  %v14282_v30 = vld [vmem:[#allocation116_spill] sm:$0xff]  ;;  %v8729_v19 = vld [vmem:[%s8974_s19 + $0x8] sm:$0xff] }
 0x24f   : > { %4686 = vperm.xlu1 %8688, %v4536_v6   ;;  %v10858_v47 = vpop.f32.mrf.mxu3  ;;  %5425 = vperm.xlu0 %8687, %v5283_v57   ;;  %v4538_v57 = vld [vmem:[#allocation2 + $0x5f8] sm:$0xff] }
 0x250   : > { %14275 = vst [vmem:[#allocation267_spill] sm:$0xff] %v10858_v47  ;;  %v10860_v53 = vpop.f32.mrf.mxu2  ;;  %v5285_v47 = vld [vmem:[#allocation2 + $0x6e8] sm:$0xff] }
 0x251   : > { %v10872_v6 = vpop.f32.mrf.mxu1 }
 0x252   : > { %v10866_v3 = vpop.f32.mrf.mxu0  ;;  %14280 = vst [vmem:[#allocation74_spill] sm:$0xff] %v10872_v6 }
 0x253   : > { %14278 = vst [vmem:[#allocation186_spill] sm:$0xff] %v10866_v3  ;;  %v10878_v3 = vpop.permute.xlu2 %3822 }
 0x254   : > { %8290 = vmatmul.msk.f32.gmra.mxu3 %vm1180_vm2, %v3484_v38  ;;  %8358 = vmatmul.msk.f32.gmra.mxu1 %vm1180_vm2, %v4233_v25  ;;  %v3485_v25 = vmul.f32 %v10328_v56, %v14282_v30  ;;  %v8728_v38 = vld [vmem:[%s9480_s12 + $0x30] sm:$0xff] }
 0x255   : > { %8142 = vmatmul.msk.f32.gmra.mxu2 %vm1180_vm2, %v1632_v21  ;;  %8319 = vmatmul.msk.f32.vlgmr.msra.gmra.mxu0 %vm1180_vm2, %v3950_v27  ;;  %v4234_v44 = vmul.f32 %v8728_v38, %v10878_v3  ;;  %v14284_v21 = vld [vmem:[#allocation76_spill] sm:$0xff]  ;;  %v5286_v38 = vld [vmem:[#allocation2 + $0x6f0] sm:$0xff] }
 0x256   : > { %4696 = vperm.xlu2 %8689, %v4538_v57   ;;  %v1633_v27 = vmul.f32 %v14284_v21, %v10469_v49  ;;  %v3951_v57 = vmul.f32 %v8729_v19, %v10752_v18  ;;  %v14287_v19 = vld [vmem:[#allocation121_spill] sm:$0xff]  ;;  %v8731_v30 = vld [vmem:[%s8974_s19 + $0x10] sm:$0xff] }
 0x257   : > { %5435 = vperm.xlu1 %8688, %v5285_v47   ;;  %v10880_v29 = vpop.f32.mrf.mxu3  ;;  %4691 = vperm.xlu0 %8687, %v4537_v42   ;;  %v6005_v42 = vld [vmem:[#allocation2 + $0x700] sm:$0xff] }
 0x258   : > { %14281 = vst [vmem:[#allocation268_spill] sm:$0xff] %v10880_v29  ;;  %v10882_v0 = vpop.f32.mrf.mxu2  ;;  %v5287_v29 = vld [vmem:[#allocation2 + $0x6f8] sm:$0xff] }
 0x259   : > { %v10894_v47 = vpop.f32.mrf.mxu1 }
 0x25a   : > { %v10888_v6 = vpop.f32.mrf.mxu0  ;;  %14285 = vst [vmem:[#allocation76_spill] sm:$0xff] %v10894_v47 }
 0x25b   : > { %14283 = vst [vmem:[#allocation269_spill] sm:$0xff] %v10888_v6  ;;  %v10900_v6 = vpop.permute.xlu0 %3827 }
 0x25c   : > { %8291 = vmatmul.msk.f32.gmra.mxu3 %vm1180_vm2, %v3485_v25  ;;  %8359 = vmatmul.msk.f32.gmra.mxu1 %vm1180_vm2, %v4234_v44  ;;  %v3486_v25 = vmul.f32 %v10366_v39, %v14287_v19  ;;  %v8730_v44 = vld [vmem:[%s9480_s12 + $0x38] sm:$0xff] }
 0x25d   : > { %8143 = vmatmul.msk.f32.gmra.mxu2 %vm1180_vm2, %v1633_v27  ;;  %8320 = vmatmul.msk.f32.gmra.mxu0 %vm1180_vm2, %v3951_v57  ;;  %v4235_v21 = vmul.f32 %v8730_v44, %v10900_v6  ;;  %v14289_v27 = vld [vmem:[#allocation81_spill] sm:$0xff]  ;;  %v6006_v44 = vld [vmem:[#allocation2 + $0x708] sm:$0xff]  ;;  %v8733_v19 = vld [vmem:[%s8974_s19 + $0x18] sm:$0xff] }
 0x25e   : > { %6039 = vperm.xlu2 %8689, %v6005_v42   ;;  %v1634_v57 = vmul.f32 %v14289_v27, %v10521_v7  ;;  %v3952_v42 = vmul.f32 %v8731_v30, %v10778_v2  ;;  %v8385_v7 = vld [vmem:[%s13615_s2 + $0x14] sm:$0xf]  ;;  %v10930_v30 = vpop.permute.xlu1 %3832  ;;  %v14292_v27 = vld [vmem:[#allocation126_spill] sm:$0xff] }
 0x25f   : > { %5445 = vperm.xlu1 %8688, %v5287_v29   ;;  %v10902_v49 = vpop.f32.mrf.mxu3  ;;  %5440 = vperm.xlu0 %8687, %v5286_v38   ;;  %v6007_v38 = vld [vmem:[#allocation2 + $0x710] sm:$0xff] }
 0x260   : > { %14286 = vst [vmem:[#allocation270_spill] sm:$0xff] %v10902_v49  ;;  %v10904_v18 = vpop.f32.mrf.mxu2  ;;  %v6754_v49 = vld [vmem:[#allocation2 + $0x800] sm:$0xff]  ;;  %v8419_v2 = vld [vmem:[%s13616_s3 + $0x14] sm:$0xf]  ;;  %8386 = vmatpush.msk.msrb.mxu2 %vm1277_vm0, %v8385_v7  ;;  %v14294_v7 = vld [vmem:[#allocation80_spill] sm:$0xff] }
 0x261   : > { %v10916_v29 = vpop.f32.mrf.mxu1  ;;  %8420 = vmatpush.msk.msrb.mxu3 %vm1277_vm0, %v8419_v2  ;;  %v1635_v2 = vmul.f32 %v14294_v7, %v10547_v11  ;;  %v8453_v11 = vld [vmem:[%s13615_s2 + $0x18] sm:$0xf]  ;;  %v14297_v7 = vld [vmem:[#allocation131_spill] sm:$0xff] }
 0x262   : > { %v10910_v47 = vpop.f32.mrf.mxu0  ;;  %14290 = vst [vmem:[#allocation81_spill] sm:$0xff] %v10916_v29  ;;  %8454 = vmatpush.msk.msrb.mxu0 %vm1277_vm0, %v8453_v11  ;;  %v14299_v11 = vld [vmem:[#allocation82_spill] sm:$0xff] }
 0x263   : > { %14288 = vst [vmem:[#allocation271_spill] sm:$0xff] %v10910_v47 }
 0x264   : > { %8292 = vmatmul.msk.f32.gmra.mxu3 %vm1180_vm2, %v3486_v25  ;;  %8360 = vmatmul.msk.f32.gmra.mxu1 %vm1180_vm2, %v4235_v21 }
 0x265   : > { %8144 = vmatmul.msk.f32.gmra.mxu2 %vm1180_vm2, %v1634_v57  ;;  %8321 = vmatmul.msk.f32.gmra.mxu0 %vm1180_vm2, %v3952_v42  ;;  %v3487_v57 = vmul.f32 %v10338_v60, %v14292_v27  ;;  %v8732_v42 = vld [vmem:[%s9480_s12 + $0x40] sm:$0xff] }
 0x266   : > { %6049 = vperm.xlu2 %8689, %v6007_v38   ;;  %v4236_v47 = vmul.f32 %v8732_v42, %v10930_v30  ;;  %v3953_v38 = vmul.f32 %v8733_v19, %v10804_v15  ;;  %v6755_v42 = vld [vmem:[#allocation2 + $0x808] sm:$0xff]  ;;  %v8487_v15 = vld [vmem:[%s13616_s3 + $0x18] sm:$0xf]  ;;  %v8735_v27 = vld [vmem:[%s8974_s19 + $0x20] sm:$0xff] }
 0x267   : > { %6788 = vperm.xlu1 %8688, %v6754_v49   ;;  %v10932_v25 = vpop.f32.mrf.mxu3  ;;  %6044 = vperm.xlu0 %8687, %v6006_v44   ;;  %v6756_v44 = vld [vmem:[#allocation2 + $0x810] sm:$0xff] }
 0x268   : > { %14291 = vst [vmem:[#allocation272_spill] sm:$0xff] %v10932_v25  ;;  %v10934_v21 = vpop.f32.mrf.mxu2  ;;  %v6008_v25 = vld [vmem:[#allocation2 + $0x718] sm:$0xff]  ;;  %8488 = vmatpush.msk.msrb.mxu1 %vm1277_vm0, %v8487_v15  ;;  %v1636_v15 = vmul.f32 %v14299_v11, %v10590_v16 }
 0x269   : > { %v10946_v49 = vpop.f32.mrf.mxu1 }
 0x26a   : > { %v10940_v29 = vpop.f32.mrf.mxu0  ;;  %14295 = vst [vmem:[#allocation80_spill] sm:$0xff] %v10946_v49 }
 0x26b   : > { %14293 = vst [vmem:[#allocation273_spill] sm:$0xff] %v10940_v29 }
 0x26c   : > { %8293 = vmatmul.msk.f32.gmra.mxu3 %vm1180_vm2, %v3487_v57  ;;  %8361 = vmatmul.msk.f32.gmra.mxu1 %vm1180_vm2, %v4236_v47  ;;  %v10960_v47 = vpop.permute.xlu2 %3837 }
 0x26d   : > { %8145 = vmatmul.msk.f32.gmra.mxu2 %vm1180_vm2, %v1635_v2  ;;  %8322 = vmatmul.msk.f32.gmra.mxu0 %vm1180_vm2, %v3953_v38  ;;  %v3488_v2 = vmul.f32 %v10377_v1, %v14297_v7  ;;  %v8734_v38 = vld [vmem:[%s9480_s12 + $0x48] sm:$0xff] }
 0x26e   : > { %6798 = vperm.xlu2 %8689, %v6756_v44   ;;  %v4237_v29 = vmul.f32 %v8734_v38, %v10960_v47  ;;  %v3954_v44 = vmul.f32 %v8735_v27, %v10829_v10  ;;  %v6009_v38 = vld [vmem:[#allocation2 + $0x720] sm:$0xff]  ;;  %v14302_v27 = vld [vmem:[#allocation135_spill] sm:$0xff]  ;;  %v8737_v7 = vld [vmem:[%s8974_s19 + $0x28] sm:$0xff] }
 0x26f   : > { %6054 = vperm.xlu1 %8688, %v6008_v25   ;;  %v10962_v19 = vpop.f32.mrf.mxu3  ;;  %6793 = vperm.xlu0 %8687, %v6755_v42   ;;  %v6010_v42 = vld [vmem:[#allocation2 + $0x728] sm:$0xff] }
 0x270   : > { %14296 = vst [vmem:[#allocation274_spill] sm:$0xff] %v10962_v19  ;;  %v10964_v57 = vpop.f32.mrf.mxu2  ;;  %v6757_v19 = vld [vmem:[#allocation2 + $0x818] sm:$0xff] }
 0x271   : > { %v10976_v25 = vpop.f32.mrf.mxu1 }
 0x272   : > { %v10970_v49 = vpop.f32.mrf.mxu0  ;;  %14300 = vst [vmem:[#allocation82_spill] sm:$0xff] %v10976_v25 }
 0x273   : > { %14298 = vst [vmem:[#allocation275_spill] sm:$0xff] %v10970_v49  ;;  %v10982_v49 = vpop.permute.xlu0 %3842 }
 0x274   : > { %8294 = vmatmul.msk.f32.gmra.mxu3 %vm1180_vm2, %v3488_v2  ;;  %8362 = vmatmul.msk.f32.gmra.mxu1 %vm1180_vm2, %v4237_v29  ;;  %v3489_v29 = vmul.f32 %v10416_v40, %v14302_v27  ;;  %v8736_v2 = vld [vmem:[%s9480_s12 + $0x50] sm:$0xff] }
 0x275   : > { %8146 = vmatmul.msk.f32.gmra.mxu2 %vm1180_vm2, %v1636_v15  ;;  %8323 = vmatmul.msk.f32.gmra.mxu0 %vm1180_vm2, %v3954_v44  ;;  %v4238_v11 = vmul.f32 %v8736_v2, %v10982_v49  ;;  %v14304_v15 = vld [vmem:[#allocation86_spill] sm:$0xff]  ;;  %v6758_v2 = vld [vmem:[#allocation2 + $0x820] sm:$0xff] }
 0x276   : > { %6064 = vperm.xlu2 %8689, %v6010_v42   ;;  %v1637_v44 = vmul.f32 %v10645_v9, %v14304_v15  ;;  %v3955_v42 = vmul.f32 %v8737_v7, %v10856_v33  ;;  %v14307_v7 = vld [vmem:[#allocation51_spill] sm:$0xff]  ;;  %v8738_v15 = vld [vmem:[%s9480_s12 + $0x58] sm:$0xff] }
 0x277   : > { %6803 = vperm.xlu1 %8688, %v6757_v19   ;;  %v10984_v16 = vpop.f32.mrf.mxu3  ;;  %6059 = vperm.xlu0 %8687, %v6009_v38   ;;  %v6759_v38 = vld [vmem:[#allocation2 + $0x828] sm:$0xff] }
 0x278   : > { %14301 = vst [vmem:[#allocation276_spill] sm:$0xff] %v10984_v16  ;;  %v10986_v10 = vpop.f32.mrf.mxu2  ;;  %v6011_v16 = vld [vmem:[#allocation2 + $0x730] sm:$0xff] }
 0x279   : > { %v10998_v19 = vpop.f32.mrf.mxu1 }
 0x27a   : > { %v10992_v25 = vpop.f32.mrf.mxu0  ;;  %14305 = vst [vmem:[#allocation86_spill] sm:$0xff] %v10998_v19 }
 0x27b   : > { %14303 = vst [vmem:[#allocation277_spill] sm:$0xff] %v10992_v25  ;;  %v11004_v25 = vpop.permute.xlu1 %3847 }
 0x27c   : > { %8295 = vmatmul.msk.f32.gmra.mxu3 %vm1180_vm2, %v3489_v29  ;;  %8363 = vmatmul.msk.f32.gmra.mxu1 %vm1180_vm2, %v4238_v11  ;;  %v14308_v29 = vld [vmem:[#allocation204_spill] sm:$0xff]  ;;  %v4239_v19 = vmul.f32 %v8738_v15, %v11004_v25 }
 0x27d   : > { %8147 = vmatmul.msk.f32.gmra.mxu2 %vm1180_vm2, %v1637_v44  ;;  %8324 = vmatmul.msk.f32.gmra.mxu0 %vm1180_vm2, %v3955_v42  ;;  %v3490_v11 = vmul.f32 %v14308_v29, %v14307_v7  ;;  %v14310_v44 = vld [vmem:[#allocation11_spill] sm:$0xff]  ;;  %v6012_v15 = vld [vmem:[#allocation2 + $0x738] sm:$0xff] }
 0x27e   : > { %6813 = vperm.xlu2 %8689, %v6759_v38   ;;  %v3201_v42 = vmul.f32 %v10226_v63, %v14310_v44  ;;  %v3956_v38 = vmul.f32 %v8739_v52, %v10878_v3  ;;  %v14313_v3 = vld [vmem:[#allocation50_spill] sm:$0xff]  ;;  %v8740_v44 = vld [vmem:[%s9480_s12 + $0x60] sm:$0xff] }
 0x27f   : > { %6069 = vperm.xlu1 %8688, %v6011_v16   ;;  %v11006_v9 = vpop.f32.mrf.mxu3  ;;  %6808 = vperm.xlu0 %8687, %v6758_v2   ;;  %v6013_v2 = vld [vmem:[#allocation2 + $0x740] sm:$0xff] }
 0x280   : > { %14306 = vst [vmem:[#allocation278_spill] sm:$0xff] %v11006_v9  ;;  %v11008_v33 = vpop.f32.mrf.mxu2  ;;  %v6760_v9 = vld [vmem:[#allocation2 + $0x830] sm:$0xff] }
 0x281   : > { %v11020_v16 = vpop.f32.mrf.mxu1 }
 0x282   : > { %v11014_v27 = vpop.f32.mrf.mxu0  ;;  %14311 = vst [vmem:[#allocation279_spill] sm:$0xff] %v11020_v16 }
 0x283   : > { %14309 = vst [vmem:[#allocation204_spill] sm:$0xff] %v11014_v27  ;;  %v11026_v27 = vpop.permute.xlu2 %3852 }
 0x284   : > { %8296 = vmatmul.msk.f32.gmra.mxu3 %vm1180_vm2, %v3490_v11  ;;  %8364 = vmatmul.msk.f32.gmra.mxu1 %vm1180_vm2, %v4239_v19  ;;  %v14314_v11 = vld [vmem:[#allocation211_spill] sm:$0xff]  ;;  %v4240_v16 = vmul.f32 %v8740_v44, %v11026_v27  ;;  %v6761_v44 = vld [vmem:[#allocation2 + $0x838] sm:$0xff] }
 0x285   : > { %8251 = vmatmul.msk.f32.vlgmr.msra.gmra.mxu2 %vm1180_vm2, %v3201_v42  ;;  %8325 = vmatmul.msk.f32.gmra.mxu0 %vm1180_vm2, %v3956_v38  ;;  %v3491_v19 = vmul.f32 %v14314_v11, %v14313_v3  ;;  %v14316_v42 = vld [vmem:[#allocation14_spill] sm:$0xff]  ;;  %v8743_v3 = vld [vmem:[%s8974_s19 + $0x40] sm:$0xff] }
 0x286   : > { %6079 = vperm.xlu2 %8689, %v6013_v2   ;;  %v3202_v38 = vmul.f32 %v10265_v41, %v14316_v42  ;;  %v3957_v2 = vmul.f32 %v8741_v32, %v10900_v6  ;;  %v14319_v6 = vld [vmem:[#allocation43_spill] sm:$0xff] }
 0x287   : > { %6818 = vperm.xlu1 %8688, %v6760_v9   ;;  %v11028_v63 = vpop.f32.mrf.mxu3  ;;  %6074 = vperm.xlu0 %8687, %v6012_v15   ;;  %v6762_v15 = vld [vmem:[#allocation2 + $0x840] sm:$0xff] }
 0x288   : > { %14312 = vst [vmem:[#allocation280_spill] sm:$0xff] %v11028_v63  ;;  %v11030_v52 = vpop.f32.mrf.mxu2  ;;  %v6014_v63 = vld [vmem:[#allocation2 + $0x748] sm:$0xff] }
 0x289   : > { %v11042_v9 = vpop.f32.mrf.mxu1 }
 0x28a   : > { %v11036_v7 = vpop.f32.mrf.mxu0  ;;  %14317 = vst [vmem:[#allocation281_spill] sm:$0xff] %v11042_v9 }
 0x28b   : > { %14315 = vst [vmem:[#allocation211_spill] sm:$0xff] %v11036_v7  ;;  %v11048_v7 = vpop.permute.xlu0 %3857 }
 0x28c   : > { %8297 = vmatmul.msk.f32.gmra.mxu3 %vm1180_vm2, %v3491_v19  ;;  %8365 = vmatmul.msk.f32.gmra.mxu1 %vm1180_vm2, %v4240_v16  ;;  %v3492_v16 = vmul.f32 %v10464_v23, %v14319_v6  ;;  %v8742_v19 = vld [vmem:[%s9480_s12 + $0x68] sm:$0xff] }
 0x28d   : > { %8252 = vmatmul.msk.f32.gmra.mxu2 %vm1180_vm2, %v3202_v38  ;;  %8326 = vmatmul.msk.f32.gmra.mxu0 %vm1180_vm2, %v3957_v2  ;;  %v4241_v42 = vmul.f32 %v8742_v19, %v11048_v7  ;;  %v14321_v38 = vld [vmem:[#allocation18_spill] sm:$0xff]  ;;  %v6015_v19 = vld [vmem:[#allocation2 + $0x750] sm:$0xff] }
 0x28e   : > { %6828 = vperm.xlu2 %8689, %v6762_v15   ;;  %v3203_v2 = vmul.f32 %v10243_v28, %v14321_v38  ;;  %v3958_v15 = vmul.f32 %v8743_v3, %v10930_v30  ;;  %v14325_v3 = vld [vmem:[#allocation157_spill] sm:$0xff]  ;;  %v8745_v38 = vld [vmem:[%s8974_s19 + $0x48] sm:$0xff] }
 0x28f   : > { %6084 = vperm.xlu1 %8688, %v6014_v63   ;;  %v11050_v41 = vpop.f32.mrf.mxu3  ;;  %6823 = vperm.xlu0 %8687, %v6761_v44   ;;  %v6016_v44 = vld [vmem:[#allocation2 + $0x758] sm:$0xff] }
 0x290   : > { %14318 = vst [vmem:[#allocation282_spill] sm:$0xff] %v11050_v41  ;;  %v11052_v32 = vpop.f32.mrf.mxu2  ;;  %v6763_v41 = vld [vmem:[#allocation2 + $0x848] sm:$0xff] }
 0x291   : > { %v11064_v63 = vpop.f32.mrf.mxu1 }
 0x292   : > { %v11058_v9 = vpop.f32.mrf.mxu0  ;;  %14322 = vst [vmem:[#allocation284_spill] sm:$0xff] %v11064_v63 }
 0x293   : > { %14320 = vst [vmem:[#allocation283_spill] sm:$0xff] %v11058_v9  ;;  %v11070_v9 = vpop.permute.xlu1 %3862 }
 0x294   : > { %8298 = vmatmul.msk.f32.gmra.mxu3 %vm1180_vm2, %v3492_v16  ;;  %8366 = vmatmul.msk.f32.gmra.mxu1 %vm1180_vm2, %v4241_v42  ;;  %v3493_v42 = vmul.f32 %v10441_v62, %v14325_v3  ;;  %v8744_v16 = vld [vmem:[%s9480_s12 + $0x70] sm:$0xff] }
 0x295   : > { %8253 = vmatmul.msk.f32.gmra.mxu2 %vm1180_vm2, %v3203_v2  ;;  %8327 = vmatmul.msk.f32.gmra.mxu0 %vm1180_vm2, %v3958_v15  ;;  %v4242_v63 = vmul.f32 %v8744_v16, %v11070_v9  ;;  %v14327_v2 = vld [vmem:[#allocation22_spill] sm:$0xff]  ;;  %v6764_v16 = vld [vmem:[#allocation2 + $0x850] sm:$0xff] }
 0x296   : > { %6094 = vperm.xlu2 %8689, %v6016_v44   ;;  %v3204_v15 = vmul.f32 %v10278_v24, %v14327_v2  ;;  %v3959_v44 = vmul.f32 %v8745_v38, %v10960_v47  ;;  %v14331_v38 = vld [vmem:[#allocation162_spill] sm:$0xff]  ;;  %v8747_v2 = vld [vmem:[%s8974_s19 + $0x50] sm:$0xff] }
 0x297   : > { %6833 = vperm.xlu1 %8688, %v6763_v41   ;;  %v11072_v28 = vpop.f32.mrf.mxu3  ;;  %6089 = vperm.xlu0 %8687, %v6015_v19   ;;  %v6765_v19 = vld [vmem:[#allocation2 + $0x858] sm:$0xff] }
 0x298   : > { %14323 = vst [vmem:[#allocation285_spill] sm:$0xff] %v11072_v28  ;;  %v11074_v30 = vpop.f32.mrf.mxu2  ;;  %v6017_v28 = vld [vmem:[#allocation2 + $0x760] sm:$0xff] }
 0x299   : > { %14324 = vst [vmem:[#allocation286_spill] sm:$0xff] %v11074_v30  ;;  %v11086_v41 = vpop.f32.mrf.mxu1 }
 0x29a   : > { %v11080_v6 = vpop.f32.mrf.mxu0  ;;  %14328 = vst [vmem:[#allocation288_spill] sm:$0xff] %v11086_v41 }
 0x29b   : > { %14326 = vst [vmem:[#allocation287_spill] sm:$0xff] %v11080_v6  ;;  %v11092_v6 = vpop.permute.xlu2 %3867 }
 0x29c   : > { %8299 = vmatmul.msk.f32.gmra.mxu3 %vm1180_vm2, %v3493_v42  ;;  %8367 = vmatmul.msk.f32.gmra.mxu1 %vm1180_vm2, %v4242_v63  ;;  %v3494_v63 = vmul.f32 %v10481_v13, %v14331_v38  ;;  %v8746_v42 = vld [vmem:[%s9480_s12 + $0x78] sm:$0xff] }
 0x29d   : > { %8254 = vmatmul.msk.f32.gmra.mxu2 %vm1180_vm2, %v3204_v15  ;;  %8328 = vmatmul.msk.f32.gmra.mxu0 %vm1180_vm2, %v3959_v44  ;;  %v4243_v41 = vmul.f32 %v8746_v42, %v11092_v6  ;;  %v14333_v15 = vld [vmem:[#allocation26_spill] sm:$0xff] }
 0x29e   : > { %6843 = vperm.xlu2 %8689, %v6765_v19   ;;  %v3205_v44 = vmul.f32 %v10320_v20, %v14333_v15  ;;  %v3960_v19 = vmul.f32 %v8747_v2, %v10982_v49  ;;  %v6018_v42 = vld [vmem:[#allocation2 + $0x768] sm:$0xff]  ;;  %v14337_v2 = vld [vmem:[#allocation168_spill] sm:$0xff]  ;;  %v14340_v15 = vld [vmem:[#allocation31_spill] sm:$0xff] }
 0x29f   : > { %6099 = vperm.xlu1 %8688, %v6017_v28   ;;  %v11094_v24 = vpop.f32.mrf.mxu3  ;;  %6838 = vperm.xlu0 %8687, %v6764_v16   ;;  %v6019_v16 = vld [vmem:[#allocation2 + $0x770] sm:$0xff] }
 0x2a0   : > { %14329 = vst [vmem:[#allocation289_spill] sm:$0xff] %v11094_v24  ;;  %v11096_v47 = vpop.f32.mrf.mxu2  ;;  %v6766_v24 = vld [vmem:[#allocation2 + $0x860] sm:$0xff] }
 0x2a1   : > { %14330 = vst [vmem:[#allocation290_spill] sm:$0xff] %v11096_v47  ;;  %v11108_v28 = vpop.f32.mrf.mxu1 }
 0x2a2   : > { %v11102_v3 = vpop.f32.mrf.mxu0  ;;  %14334 = vst [vmem:[#allocation292_spill] sm:$0xff] %v11108_v28 }
 0x2a3   : > { %14332 = vst [vmem:[#allocation291_spill] sm:$0xff] %v11102_v3  ;;  %v11114_v3 = vpop.permute.xlu0 %3872 }
 0x2a4   : > { %8300 = vmatmul.msk.f32.gmra.mxu3 %vm1180_vm2, %v3494_v63  ;;  %8368 = vmatmul.msk.f32.gmra.mxu1 %vm1180_vm2, %v4243_v41  ;;  %v3495_v41 = vmul.f32 %v10516_v50, %v14337_v2  ;;  %v8748_v63 = vld [vmem:[%s9480_s12 + $0x80] sm:$0xff]  ;;  %v6768_v2 = vld [vmem:[#allocation2 + $0x870] sm:$0xff] }
 0x2a5   : > { %8255 = vmatmul.msk.f32.gmra.mxu2 %vm1180_vm2, %v3205_v44  ;;  %8329 = vmatmul.msk.f32.gmra.mxu0 %vm1180_vm2, %v3960_v19  ;;  %v4244_v28 = vmul.f32 %v8748_v63, %v11114_v3  ;;  %v14338_v44 = vld [vmem:[#allocation164_spill] sm:$0xff]  ;;  %v14341_v63 = vld [vmem:[#allocation54_spill] sm:$0xff] }
 0x2a6   : > { %6109 = vperm.xlu2 %8689, %v6019_v16   ;;  %v1969_v38 = vadd.f32 %v14338_v44, %v10583_v48  ;;  %v3206_v16 = vmul.f32 %v14277_v35, %v14340_v15  ;;  %v6767_v48 = vld [vmem:[#allocation2 + $0x868] sm:$0xff]  ;;  %v11137_v35 = vpop.permute.xlu1 %3877 }
 0x2a7   : > { %6848 = vperm.xlu1 %8688, %v6766_v24   ;;  %v11116_v20 = vpop.f32.mrf.mxu3  ;;  %6104 = vperm.xlu0 %8687, %v6018_v42   ;;  %v8749_v24 = vld [vmem:[%s8974_s19 + $0x58] sm:$0xff]  ;;  %v8750_v15 = vld [vmem:[%s9480_s12 + $0x88] sm:$0xff] }
 0x2a8   : > { %14335 = vst [vmem:[#allocation293_spill] sm:$0xff] %v11116_v20  ;;  %v11118_v49 = vpop.f32.mrf.mxu2  ;;  %v3961_v20 = vmul.f32 %v8749_v24, %v11004_v25  ;;  %v2976_v44 = vadd.f32 %v14341_v63, %v1969_v38  ;;  %v14345_v38 = vld [vmem:[#allocation36_spill] sm:$0xff] }
 0x2a9   : > { %14336 = vst [vmem:[#allocation294_spill] sm:$0xff] %v11118_v49  ;;  %v4378_v42 = vpop.f32.mrf.mxu1  ;;  %v6020_v49 = vld [vmem:[#allocation2 + $0x778] sm:$0xff] }
 0x2aa   : > { %v11126_v19 = vpop.f32.mrf.mxu0 }
 0x2ab   : > { %14339 = vst [vmem:[#allocation164_spill] sm:$0xff] %v11126_v19 }
 0x2ac   : > { %8301 = vmatmul.msk.f32.gmra.mxu3 %vm1180_vm2, %v3495_v41  ;;  %8369 = vmatmul.msk.f32.gmra.mxu1 %vm1180_vm2, %v4244_v28  ;;  %v14342_v28 = vld [vmem:[#allocation174_spill] sm:$0xff] }
 0x2ad   : > { %8256 = vmatmul.msk.f32.gmra.mxu2 %vm1180_vm2, %v3206_v16  ;;  %8330 = vmatmul.msk.f32.gmra.mxu0 %vm1180_vm2, %v3961_v20  ;;  %v3496_v19 = vmul.f32 %v10487_v22, %v14342_v28  ;;  %v4245_v16 = vmul.f32 %v8750_v15, %v11137_v35  ;;  %v14343_v20 = vld [vmem:[#allocation170_spill] sm:$0xff] }
 0x2ae   : > { %6858 = vperm.xlu2 %8689, %v6768_v2   ;;  %v1972_v47 = vadd.f32 %v14343_v20, %v10622_v43  ;;  %v3207_v2 = vmul.f32 %v10328_v56, %v14345_v38  ;;  %v6021_v43 = vld [vmem:[#allocation2 + $0x780] sm:$0xff]  ;;  %v14347_v56 = vld [vmem:[#allocation167_spill] sm:$0xff] }
 0x2af   : > { %6114 = vperm.xlu1 %8688, %v6020_v49   ;;  %v3629_v25 = vpop.f32.mrf.mxu3  ;;  %6853 = vperm.xlu0 %8687, %v6767_v48   ;;  %v8751_v49 = vld [vmem:[%s8974_s19 + $0x60] sm:$0xff] }
 0x2b0   : > { %v11139_v41 = vpop.f32.mrf.mxu2  ;;  %v3725_v24 = vadd.f32 %v3629_v25, %v2976_v44  ;;  %v3962_v48 = vmul.f32 %v8751_v49, %v11026_v27  ;;  %v6022_v44 = vld [vmem:[#allocation2 + $0x788] sm:$0xff]  ;;  %v6769_v25 = vld [vmem:[#allocation2 + $0x878] sm:$0xff]  ;;  %v2977_v20 = vadd.f32 %v14347_v56, %v1972_v47 }
 0x2b1   : > { %v4381_v63 = vpop.f32.mrf.mxu1  ;;  %v14348_v49 = vld [vmem:[#allocation180_spill] sm:$0xff] }
 0x2b2   : > { %v11147_v30 = vpop.f32.mrf.mxu0  ;;  %v11155_v15 = vadd.f32 %v4378_v42, %v3725_v24  ;;  %v3497_v42 = vmul.f32 %v10527_v59, %v14348_v49  ;;  %v8752_v24 = vld [vmem:[%s9480_s12 + $0x90] sm:$0xff]  ;;  %v14351_v47 = vld [vmem:[#allocation40_spill] sm:$0xff] }
 0x2b3   : > { %14344 = vst [vmem:[#allocation54_spill] sm:$0xff] %v11147_v30  ;;  %v11160_v30 = vpop.permute.xlu2 %3882 }
 0x2b4   : > { %8302 = vmatmul.msk.f32.gmra.mxu3 %vm1180_vm2, %v3496_v19  ;;  %8370 = vmatmul.msk.f32.gmra.mxu1 %vm1180_vm2, %v4245_v16  ;;  %14346 = vst [vmem:[#allocation170_spill] sm:$0xff] %v11155_v15 }
 0x2b5   : > { %8257 = vmatmul.msk.f32.gmra.mxu2 %vm1180_vm2, %v3207_v2  ;;  %8331 = vmatmul.msk.f32.gmra.mxu0 %vm1180_vm2, %v3962_v48  ;;  %v4246_v2 = vmul.f32 %v8752_v24, %v11160_v30  ;;  %v14349_v48 = vld [vmem:[#allocation176_spill] sm:$0xff] }
 0x2b6   : > { %6124 = vperm.xlu2 %8689, %v6022_v44   ;;  %v1975_v15 = vadd.f32 %v14349_v48, %v10661_v37  ;;  %v3208_v44 = vmul.f32 %v10366_v39, %v14351_v47  ;;  %v6770_v37 = vld [vmem:[#allocation2 + $0x880] sm:$0xff] }
 0x2b7   : > { %6863 = vperm.xlu1 %8688, %v6769_v25   ;;  %v3632_v27 = vpop.f32.mrf.mxu3  ;;  %6119 = vperm.xlu0 %8687, %v6021_v43   ;;  %v8753_v25 = vld [vmem:[%s8974_s19 + $0x68] sm:$0xff]  ;;  %v14353_v39 = vld [vmem:[#allocation173_spill] sm:$0xff] }
 0x2b8   : > { %v11162_v19 = vpop.f32.mrf.mxu2  ;;  %v3726_v16 = vadd.f32 %v3632_v27, %v2977_v20  ;;  %v3963_v43 = vmul.f32 %v8753_v25, %v11048_v7  ;;  %v6771_v20 = vld [vmem:[#allocation2 + $0x888] sm:$0xff]  ;;  %v6023_v27 = vld [vmem:[#allocation2 + $0x790] sm:$0xff]  ;;  %v2978_v48 = vadd.f32 %v14353_v39, %v1975_v15  ;;  %v14359_v15 = vld [vmem:[#allocation45_spill] sm:$0xff] }
 0x2b9   : > { %v4384_v56 = vpop.f32.mrf.mxu1  ;;  %v14355_v25 = vld [vmem:[#allocation187_spill] sm:$0xff] }
 0x2ba   : > { %v11170_v28 = vpop.f32.mrf.mxu0  ;;  %v11178_v24 = vadd.f32 %v4381_v63, %v3726_v16  ;;  %v14356_v63 = vld [vmem:[#allocation231_spill] sm:$0xff] }
 0x2bb   : > { %14350 = vst [vmem:[#allocation167_spill] sm:$0xff] %v11170_v28  ;;  %v11183_v28 = vpop.permute.xlu0 %3887  ;;  %v3498_v16 = vmul.f32 %v14356_v63, %v14355_v25 }
 0x2bc   : > { %8303 = vmatmul.msk.f32.gmra.mxu3 %vm1180_vm2, %v3497_v42  ;;  %8371 = vmatmul.msk.f32.gmra.mxu1 %vm1180_vm2, %v4246_v2  ;;  %14352 = vst [vmem:[#allocation176_spill] sm:$0xff] %v11178_v24  ;;  %v8754_v24 = vld [vmem:[%s9480_s12 + $0x98] sm:$0xff] }
 0x2bd   : > { %8258 = vmatmul.msk.f32.gmra.mxu2 %vm1180_vm2, %v3208_v44  ;;  %8332 = vmatmul.msk.f32.gmra.mxu0 %vm1180_vm2, %v3963_v43  ;;  %v4247_v44 = vmul.f32 %v8754_v24, %v11183_v28  ;;  %v14357_v43 = vld [vmem:[#allocation182_spill] sm:$0xff] }
 0x2be   : > { %6873 = vperm.xlu2 %8689, %v6771_v20   ;;  %v1978_v49 = vadd.f32 %v14357_v43, %v10701_v34  ;;  %v3209_v20 = vmul.f32 %v10338_v60, %v14359_v15  ;;  %v6024_v34 = vld [vmem:[#allocation2 + $0x798] sm:$0xff]  ;;  %v14361_v60 = vld [vmem:[#allocation179_spill] sm:$0xff] }
 0x2bf   : > { %6129 = vperm.xlu1 %8688, %v6023_v27   ;;  %v3635_v7 = vpop.f32.mrf.mxu3  ;;  %6868 = vperm.xlu0 %8687, %v6770_v37   ;;  %v8755_v27 = vld [vmem:[%s8974_s19 + $0x70] sm:$0xff] }
 0x2c0   : > { %v11185_v42 = vpop.f32.mrf.mxu2  ;;  %v3727_v2 = vadd.f32 %v3635_v7, %v2978_v48  ;;  %v3964_v37 = vmul.f32 %v8755_v27, %v11070_v9  ;;  %v6025_v48 = vld [vmem:[#allocation2 + $0x7a0] sm:$0xff]  ;;  %v6772_v7 = vld [vmem:[#allocation2 + $0x890] sm:$0xff]  ;;  %v2979_v43 = vadd.f32 %v14361_v60, %v1978_v49 }
 0x2c1   : > { %14354 = vst [vmem:[#allocation173_spill] sm:$0xff] %v11185_v42  ;;  %v4387_v39 = vpop.f32.mrf.mxu1  ;;  %v14363_v27 = vld [vmem:[#allocation193_spill] sm:$0xff] }
 0x2c2   : > { %v11193_v47 = vpop.f32.mrf.mxu0  ;;  %v11201_v24 = vadd.f32 %v4384_v56, %v3727_v2  ;;  %v14364_v56 = vld [vmem:[#allocation227_spill] sm:$0xff]  ;;  %v14367_v49 = vld [vmem:[#allocation49_spill] sm:$0xff] }
 0x2c3   : > { %14358 = vst [vmem:[#allocation231_spill] sm:$0xff] %v11193_v47  ;;  %v11206_v47 = vpop.permute.xlu1 %3892  ;;  %v3499_v2 = vmul.f32 %v14364_v56, %v14363_v27  ;;  %v14408_v42 = vld [vmem:[#allocation25_spill] sm:$0xff] }
 0x2c4   : > { %8304 = vmatmul.msk.f32.gmra.mxu3 %vm1180_vm2, %v3498_v16  ;;  %8372 = vmatmul.msk.f32.gmra.mxu1 %vm1180_vm2, %v4247_v44  ;;  %14360 = vst [vmem:[#allocation182_spill] sm:$0xff] %v11201_v24  ;;  %v8756_v24 = vld [vmem:[%s9480_s12 + $0xa0] sm:$0xff] }
 0x2c5   : > { %8259 = vmatmul.msk.f32.gmra.mxu2 %vm1180_vm2, %v3209_v20  ;;  %8333 = vmatmul.msk.f32.gmra.mxu0 %vm1180_vm2, %v3964_v37  ;;  %v4248_v20 = vmul.f32 %v8756_v24, %v11206_v47  ;;  %v14365_v37 = vld [vmem:[#allocation189_spill] sm:$0xff] }
 0x2c6   : > { %6139 = vperm.xlu2 %8689, %v6025_v48   ;;  %v1981_v25 = vadd.f32 %v14365_v37, %v10731_v5  ;;  %v3210_v48 = vmul.f32 %v10377_v1, %v14367_v49  ;;  %v6773_v5 = vld [vmem:[#allocation2 + $0x898] sm:$0xff]  ;;  %v14369_v1 = vld [vmem:[#allocation185_spill] sm:$0xff] }
 0x2c7   : > { %6878 = vperm.xlu1 %8688, %v6772_v7   ;;  %v3638_v9 = vpop.f32.mrf.mxu3  ;;  %6134 = vperm.xlu0 %8687, %v6024_v34   ;;  %v8757_v7 = vld [vmem:[%s8974_s19 + $0x78] sm:$0xff] }
 0x2c8   : > { %v11208_v16 = vpop.f32.mrf.mxu2  ;;  %v3728_v44 = vadd.f32 %v3638_v9, %v2979_v43  ;;  %v3965_v34 = vmul.f32 %v8757_v7, %v11092_v6  ;;  %v6774_v43 = vld [vmem:[#allocation2 + $0x8a0] sm:$0xff]  ;;  %v6026_v9 = vld [vmem:[#allocation2 + $0x7a8] sm:$0xff]  ;;  %v2980_v37 = vadd.f32 %v14369_v1, %v1981_v25  ;;  %v14371_v7 = vld [vmem:[#allocation199_spill] sm:$0xff] }
 0x2c9   : > { %14362 = vst [vmem:[#allocation179_spill] sm:$0xff] %v11208_v16  ;;  %v4390_v60 = vpop.f32.mrf.mxu1  ;;  %v14374_v25 = vld [vmem:[#allocation53_spill] sm:$0xff] }
 0x2ca   : > { %v11216_v15 = vpop.f32.mrf.mxu0  ;;  %v11224_v24 = vadd.f32 %v4387_v39, %v3728_v44  ;;  %v14372_v39 = vld [vmem:[#allocation234_spill] sm:$0xff] }
 0x2cb   : > { %14366 = vst [vmem:[#allocation227_spill] sm:$0xff] %v11216_v15  ;;  %v11229_v15 = vpop.permute.xlu2 %3897  ;;  %v3500_v44 = vmul.f32 %v14372_v39, %v14371_v7 }
 0x2cc   : > { %8305 = vmatmul.msk.f32.gmra.mxu3 %vm1180_vm2, %v3499_v2  ;;  %8373 = vmatmul.msk.f32.gmra.mxu1 %vm1180_vm2, %v4248_v20  ;;  %14368 = vst [vmem:[#allocation189_spill] sm:$0xff] %v11224_v24  ;;  %v8758_v24 = vld [vmem:[%s9480_s12 + $0xa8] sm:$0xff] }
 0x2cd   : > { %8260 = vmatmul.msk.f32.gmra.mxu2 %vm1180_vm2, %v3210_v48  ;;  %8334 = vmatmul.msk.f32.gmra.mxu0 %vm1180_vm2, %v3965_v34  ;;  %v4249_v48 = vmul.f32 %v8758_v24, %v11229_v15  ;;  %v14373_v34 = vld [vmem:[#allocation195_spill] sm:$0xff]  ;;  %v6028_v24 = vld [vmem:[#allocation2 + $0x7b8] sm:$0xff] }
 0x2ce   : > { %6888 = vperm.xlu2 %8689, %v6774_v43   ;;  %v1984_v27 = vadd.f32 %v14373_v34, %v10759_v58  ;;  %v3211_v43 = vmul.f32 %v10416_v40, %v14374_v25  ;;  %v6027_v58 = vld [vmem:[#allocation2 + $0x7b0] sm:$0xff]  ;;  %v14376_v40 = vld [vmem:[#allocation192_spill] sm:$0xff]  ;;  %v11252_v34 = vpop.permute.xlu0 %3902 }
 0x2cf   : > { %6144 = vperm.xlu1 %8688, %v6026_v9   ;;  %v3641_v6 = vpop.f32.mrf.mxu3  ;;  %6883 = vperm.xlu0 %8687, %v6773_v5   ;;  %v8759_v9 = vld [vmem:[%s8974_s19 + $0x80] sm:$0xff] }
 0x2d0   : > { %v11231_v2 = vpop.f32.mrf.mxu2  ;;  %v3729_v20 = vadd.f32 %v3641_v6, %v2980_v37  ;;  %v3966_v5 = vmul.f32 %v8759_v9, %v11114_v3  ;;  %v6775_v37 = vld [vmem:[#allocation2 + $0x8a8] sm:$0xff]  ;;  %v2981_v6 = vadd.f32 %v14376_v40, %v1984_v27  ;;  %v14381_v27 = vld [vmem:[#allocation56_spill] sm:$0xff] }
 0x2d1   : > { %14370 = vst [vmem:[#allocation185_spill] sm:$0xff] %v11231_v2  ;;  %v4393_v1 = vpop.f32.mrf.mxu1 }
 0x2d2   : > { %v11239_v49 = vpop.f32.mrf.mxu0  ;;  %v11245_v38 = vadd.f32 %v4390_v60, %v3729_v20 }
 0x2d4   : > { %14375 = vst [vmem:[#allocation234_spill] sm:$0xff] %v11245_v38  ;;  %8306 = vmatmul.msk.f32.gmra.mxu3 %vm1180_vm2, %v3500_v44  ;;  %8374 = vmatmul.msk.f32.gmra.mxu1 %vm1180_vm2, %v4249_v48  ;;  %v14378_v44 = vld [vmem:[#allocation206_spill] sm:$0xff]  ;;  %v14379_v48 = vld [vmem:[#allocation240_spill] sm:$0xff]  ;;  %v8760_v38 = vld [vmem:[%s9480_s12 + $0xb0] sm:$0xff] }
 0x2d5   : > { %8261 = vmatmul.msk.f32.gmra.mxu2 %vm1180_vm2, %v3211_v43  ;;  %8335 = vmatmul.msk.f32.gmra.mxu0 %vm1180_vm2, %v3966_v5  ;;  %v3501_v9 = vmul.f32 %v14379_v48, %v14378_v44  ;;  %v4250_v43 = vmul.f32 %v8760_v38, %v11252_v34  ;;  %v14380_v5 = vld [vmem:[#allocation201_spill] sm:$0xff]  ;;  %v6777_v38 = vld [vmem:[#allocation2 + $0x8b8] sm:$0xff] }
 0x2d6   : > { %6154 = vperm.xlu2 %8689, %v6028_v24   ;;  %v1987_v7 = vadd.f32 %v14380_v5, %v10785_v51  ;;  %v3212_v24 = vmul.f32 %v14308_v29, %v14381_v27  ;;  %v6776_v51 = vld [vmem:[#allocation2 + $0x8b0] sm:$0xff]  ;;  %v11275_v5 = vpop.permute.xlu1 %3907  ;;  %v14387_v44 = vld [vmem:[#allocation208_spill] sm:$0xff] }
 0x2d7   : > { %6893 = vperm.xlu1 %8688, %v6775_v37   ;;  %v3644_v3 = vpop.f32.mrf.mxu3  ;;  %6149 = vperm.xlu0 %8687, %v6027_v58   ;;  %v8761_v37 = vld [vmem:[%s8974_s19 + $0x88] sm:$0xff] }
 0x2d8   : > { %v11254_v60 = vpop.f32.mrf.mxu2  ;;  %v3730_v20 = vadd.f32 %v3644_v3, %v2981_v6  ;;  %v3967_v58 = vmul.f32 %v8761_v37, %v11137_v35  ;;  %v6029_v6 = vld [vmem:[#allocation2 + $0x7c0] sm:$0xff]  ;;  %v14383_v3 = vld [vmem:[#allocation198_spill] sm:$0xff] }
 0x2d9   : > { %14377 = vst [vmem:[#allocation195_spill] sm:$0xff] %v11254_v60  ;;  %v4396_v40 = vpop.f32.mrf.mxu1  ;;  %v2982_v29 = vadd.f32 %v14383_v3, %v1987_v7  ;;  %v14386_v37 = vld [vmem:[#allocation237_spill] sm:$0xff]  ;;  %v1990_v7 = vadd.f32 %v14387_v44, %v10811_v14  ;;  %v6030_v14 = vld [vmem:[#allocation2 + $0x7c8] sm:$0xff] }
 0x2da   : > { %v11262_v25 = vpop.f32.mrf.mxu0  ;;  %v11268_v60 = vadd.f32 %v4393_v1, %v3730_v20  ;;  %v14390_v44 = vld [vmem:[#allocation205_spill] sm:$0xff] }
 0x2dc   : > { %14382 = vst [vmem:[#allocation192_spill] sm:$0xff] %v11268_v60  ;;  %8307 = vmatmul.msk.f32.gmra.mxu3 %vm1180_vm2, %v3501_v9  ;;  %8375 = vmatmul.msk.f32.gmra.mxu1 %vm1180_vm2, %v4250_v43  ;;  %v11279_v9 = vpop.permute.xlu2 %3912  ;;  %v14385_v43 = vld [vmem:[#allocation213_spill] sm:$0xff]  ;;  %v8762_v60 = vld [vmem:[%s9480_s12 + $0xb8] sm:$0xff] }
 0x2dd   : > { %8262 = vmatmul.msk.f32.gmra.mxu2 %vm1180_vm2, %v3212_v24  ;;  %8336 = vmatmul.msk.f32.gmra.mxu0 %vm1180_vm2, %v3967_v58  ;;  %v3502_v24 = vmul.f32 %v14386_v37, %v14385_v43  ;;  %v4251_v58 = vmul.f32 %v8762_v60, %v11275_v5  ;;  %v6031_v60 = vld [vmem:[#allocation2 + $0x7d0] sm:$0xff]  ;;  %v6778_v43 = vld [vmem:[#allocation2 + $0x8c0] sm:$0xff] }
 0x2de   : > { %6903 = vperm.xlu2 %8689, %v6777_v38   ;;  %v14388_v38 = vld [vmem:[#allocation58_spill] sm:$0xff] }
 0x2df   : > { %6159 = vperm.xlu1 %8688, %v6029_v6   ;;  %v3647_v35 = vpop.f32.mrf.mxu3  ;;  %6898 = vperm.xlu0 %8687, %v6776_v51   ;;  %v3213_v6 = vmul.f32 %v14314_v11, %v14388_v38  ;;  %v8763_v51 = vld [vmem:[%s8974_s19 + $0x90] sm:$0xff]  ;;  %v2983_v11 = vadd.f32 %v14390_v44, %v1990_v7  ;;  %v8764_v38 = vld [vmem:[%s9480_s12 + $0xc0] sm:$0xff]  ;;  %v14395_v7 = vld [vmem:[#allocation60_spill] sm:$0xff] }
 0x2e0   : > { %v11277_v1 = vpop.f32.mrf.mxu2  ;;  %v3731_v20 = vadd.f32 %v3647_v35, %v2982_v29  ;;  %v3968_v27 = vmul.f32 %v8763_v51, %v11160_v30  ;;  %v14393_v51 = vld [vmem:[#allocation243_spill] sm:$0xff] }
 0x2e1   : > { %14384 = vst [vmem:[#allocation240_spill] sm:$0xff] %v11277_v1  ;;  %v4399_v29 = vpop.f32.mrf.mxu1 }
 0x2e2   : > { %v11287_v3 = vpop.f32.mrf.mxu0  ;;  %v11293_v35 = vadd.f32 %v4396_v40, %v3731_v20 }
 0x2e4   : > { %14389 = vst [vmem:[#allocation201_spill] sm:$0xff] %v11293_v35  ;;  %8308 = vmatmul.msk.f32.gmra.mxu3 %vm1180_vm2, %v3502_v24  ;;  %8376 = vmatmul.msk.f32.gmra.mxu1 %vm1180_vm2, %v4251_v58  ;;  %v11302_v24 = vpop.permute.xlu0 %3917  ;;  %v14392_v58 = vld [vmem:[#allocation219_spill] sm:$0xff] }
 0x2e5   : > { %8263 = vmatmul.msk.f32.gmra.mxu2 %vm1180_vm2, %v3213_v6  ;;  %8337 = vmatmul.msk.f32.gmra.mxu0 %vm1180_vm2, %v3968_v27  ;;  %v3503_v35 = vmul.f32 %v14393_v51, %v14392_v58  ;;  %v4252_v6 = vmul.f32 %v8764_v38, %v11279_v9  ;;  %v14394_v27 = vld [vmem:[#allocation215_spill] sm:$0xff] }
 0x2e6   : > { %6169 = vperm.xlu2 %8689, %v6031_v60   ;;  %v1993_v1 = vadd.f32 %v14394_v27, %v10838_v36  ;;  %v11314_v60 = vpop.permute.xlu2 %3927  ;;  %v6780_v38 = vld [vmem:[#allocation2 + $0x8d0] sm:$0xff]  ;;  %v6032_v36 = vld [vmem:[#allocation2 + $0x7d8] sm:$0xff] }
 0x2e7   : > { %6908 = vperm.xlu1 %8688, %v6778_v43   ;;  %v3650_v30 = vpop.f32.mrf.mxu3  ;;  %6164 = vperm.xlu0 %8687, %v6030_v14   ;;  %v3214_v43 = vmul.f32 %v10464_v23, %v14395_v7  ;;  %v8765_v14 = vld [vmem:[%s8974_s19 + $0x98] sm:$0xff]  ;;  %v6779_v23 = vld [vmem:[#allocation2 + $0x8c8] sm:$0xff] }
 0x2e8   : > { %v11300_v40 = vpop.f32.mrf.mxu2  ;;  %v3732_v20 = vadd.f32 %v3650_v30, %v2983_v11  ;;  %v3969_v44 = vmul.f32 %v8765_v14, %v11183_v28  ;;  %v14397_v27 = vld [vmem:[#allocation212_spill] sm:$0xff] }
 0x2e9   : > { %14391 = vst [vmem:[#allocation198_spill] sm:$0xff] %v11300_v40  ;;  %v4402_v11 = vpop.f32.mrf.mxu1  ;;  %v2984_v58 = vadd.f32 %v14397_v27, %v1993_v1  ;;  %v14401_v1 = vld [vmem:[#allocation21_spill] sm:$0xff] }
 0x2ea   : > { %v11310_v2 = vpop.f32.mrf.mxu0  ;;  %v11318_v30 = vadd.f32 %v4399_v29, %v3732_v20  ;;  %v11327_v20 = vpop.permute.xlu1 %3922 }
 0x2ec   : > { %14396 = vst [vmem:[#allocation237_spill] sm:$0xff] %v11318_v30  ;;  %8309 = vmatmul.msk.f32.gmra.mxu3 %vm1180_vm2, %v3503_v35  ;;  %8377 = vmatmul.msk.f32.gmra.mxu1 %vm1180_vm2, %v4252_v6  ;;  %v14399_v6 = vld [vmem:[#allocation225_spill] sm:$0xff]  ;;  %v8766_v30 = vld [vmem:[%s9480_s12 + $0xc8] sm:$0xff] }
 0x2ed   : > { %8264 = vmatmul.msk.f32.gmra.mxu2 %vm1180_vm2, %v3214_v43  ;;  %8338 = vmatmul.msk.f32.gmra.mxu0 %vm1180_vm2, %v3969_v44  ;;  %v3504_v14 = vmul.f32 %v10663_v55, %v14399_v6  ;;  %v4253_v43 = vmul.f32 %v8766_v30, %v11302_v24  ;;  %v14400_v44 = vld [vmem:[#allocation221_spill] sm:$0xff]  ;;  %v6034_v30 = vld [vmem:[#allocation2 + $0x7e8] sm:$0xff] }
 0x2ee   : > { %6918 = vperm.xlu2 %8689, %v6780_v38   ;;  %v1996_v7 = vadd.f32 %v14400_v44, %v10860_v53  ;;  %v3215_v38 = vmul.f32 %v10441_v62, %v14401_v1  ;;  %v6781_v53 = vld [vmem:[#allocation2 + $0x8d8] sm:$0xff]  ;;  %v11347_v44 = vpop.permute.xlu2 %3942  ;;  %v6033_v62 = vld [vmem:[#allocation2 + $0x7e0] sm:$0xff]  ;;  %v8768_v1 = vld [vmem:[%s9480_s12 + $0xd0] sm:$0xff] }
 0x2ef   : > { %6174 = vperm.xlu1 %8688, %v6032_v36   ;;  %v3653_v28 = vpop.f32.mrf.mxu3  ;;  %6913 = vperm.xlu0 %8687, %v6779_v23   ;;  %v8767_v36 = vld [vmem:[%s8974_s19 + $0xa0] sm:$0xff] }
 0x2f0   : > { %v11325_v29 = vpop.f32.mrf.mxu2  ;;  %v3733_v35 = vadd.f32 %v3653_v28, %v2984_v58  ;;  %v3970_v23 = vmul.f32 %v8767_v36, %v11206_v47  ;;  %v11341_v58 = vpop.permute.xlu0 %3932  ;;  %v14403_v47 = vld [vmem:[#allocation218_spill] sm:$0xff] }
 0x2f1   : > { %14398 = vst [vmem:[#allocation208_spill] sm:$0xff] %v11325_v29  ;;  %v4405_v27 = vpop.f32.mrf.mxu1  ;;  %v2985_v36 = vadd.f32 %v14403_v47, %v1996_v7  ;;  %v4254_v29 = vmul.f32 %v8768_v1, %v11327_v20  ;;  %v3216_v7 = vmul.f32 %v10481_v13, %v14408_v42  ;;  %v6783_v1 = vld [vmem:[#allocation2 + $0x8e8] sm:$0xff]  ;;  %v6782_v13 = vld [vmem:[#allocation2 + $0x8e0] sm:$0xff] }
 0x2f2   : > { %v11335_v40 = vpop.f32.mrf.mxu0  ;;  %v11343_v28 = vadd.f32 %v4402_v11, %v3733_v35 }
 0x2f4   : > { %14402 = vst [vmem:[#allocation205_spill] sm:$0xff] %v11343_v28  ;;  %8310 = vmatmul.msk.f32.gmra.mxu3 %vm1180_vm2, %v3504_v14  ;;  %8378 = vmatmul.msk.f32.gmra.mxu1 %vm1180_vm2, %v4253_v43  ;;  %v14405_v43 = vld [vmem:[#allocation232_spill] sm:$0xff]  ;;  %v14406_v28 = vld [vmem:[#allocation61_spill] sm:$0xff] }
 0x2f5   : > { %8265 = vmatmul.msk.f32.gmra.mxu2 %vm1180_vm2, %v3215_v38  ;;  %8339 = vmatmul.msk.f32.gmra.mxu0 %vm1180_vm2, %v3970_v23  ;;  %v3505_v6 = vmul.f32 %v14406_v28, %v14405_v43  ;;  %v14407_v38 = vld [vmem:[#allocation228_spill] sm:$0xff] }
 0x2f6   : > { %6184 = vperm.xlu2 %8689, %v6034_v30   ;;  %v1999_v16 = vadd.f32 %v14407_v38, %v10882_v0  ;;  %v8769_v30 = vld [vmem:[%s8974_s19 + $0xa8] sm:$0xff]  ;;  %v6035_v0 = vld [vmem:[#allocation2 + $0x7f0] sm:$0xff]  ;;  %v8770_v43 = vld [vmem:[%s9480_s12 + $0xd8] sm:$0xff] }
 0x2f7   : > { %6923 = vperm.xlu1 %8688, %v6781_v53   ;;  %v3656_v11 = vpop.f32.mrf.mxu3  ;;  %6179 = vperm.xlu0 %8687, %v6033_v62   ;;  %v3971_v53 = vmul.f32 %v8769_v30, %v11229_v15  ;;  %v11366_v62 = vpop.permute.xlu1 %3937  ;;  %v14410_v15 = vld [vmem:[#allocation224_spill] sm:$0xff] }
 0x2f8   : > { %v11352_v35 = vpop.f32.mrf.mxu2  ;;  %v3734_v14 = vadd.f32 %v3656_v11, %v2985_v36  ;;  %v11372_v11 = vpop.permute.xlu0 %3947  ;;  %v2986_v38 = vadd.f32 %v14410_v15, %v1999_v16  ;;  %v14414_v16 = vld [vmem:[#allocation30_spill] sm:$0xff] }
 0x2f9   : > { %14404 = vst [vmem:[#allocation243_spill] sm:$0xff] %v11352_v35  ;;  %v4408_v47 = vpop.f32.mrf.mxu1  ;;  %v11377_v30 = vpop.permute.xlu2 %4546 }
 0x2fa   : > { %v11360_v23 = vpop.f32.mrf.mxu0  ;;  %v11368_v36 = vadd.f32 %v4405_v27, %v3734_v14  ;;  %v14412_v14 = vld [vmem:[#allocation238_spill] sm:$0xff] }
 0x2fc   : > { %14409 = vst [vmem:[#allocation215_spill] sm:$0xff] %v11368_v36  ;;  %8311 = vmatmul.msk.f32.gmra.mxu3 %vm1180_vm2, %v3505_v6  ;;  %8379 = vmatmul.msk.f32.gmra.mxu1 %vm1180_vm2, %v4254_v29  ;;  %v3506_v36 = vmul.f32 %v10675_v61, %v14412_v14  ;;  %v14417_v14 = vld [vmem:[#allocation69_spill] sm:$0xff] }
 0x2fd   : > { %8266 = vmatmul.msk.f32.gmra.mxu2 %vm1180_vm2, %v3216_v7  ;;  %8340 = vmatmul.msk.f32.gmra.mxu0 %vm1180_vm2, %v3971_v53  ;;  %v4255_v7 = vmul.f32 %v8770_v43, %v11314_v60  ;;  %v14413_v53 = vld [vmem:[#allocation235_spill] sm:$0xff]  ;;  %v8772_v61 = vld [vmem:[%s9480_s12 + $0xe0] sm:$0xff] }
 0x2fe   : > { %6933 = vperm.xlu2 %8689, %v6783_v1   ;;  %v2002_v42 = vadd.f32 %v14413_v53, %v10904_v18  ;;  %v3217_v1 = vmul.f32 %v10516_v50, %v14414_v16  ;;  %v6784_v43 = vld [vmem:[#allocation2 + $0x8f0] sm:$0xff]  ;;  %v6036_v50 = vld [vmem:[#allocation2 + $0x7f8] sm:$0xff] }
 0x2ff   : > { %6189 = vperm.xlu1 %8688, %v6035_v0   ;;  %v3659_v6 = vpop.f32.mrf.mxu3  ;;  %6928 = vperm.xlu0 %8687, %v6782_v13   ;;  %v8771_v0 = vld [vmem:[%s8974_s19 + $0xb0] sm:$0xff]  ;;  %v11399_v53 = vpop.permute.xlu1 %4541 }
 0x300   : > { %v11379_v29 = vpop.f32.mrf.mxu2  ;;  %v3735_v27 = vadd.f32 %v3659_v6, %v2986_v38  ;;  %v3972_v13 = vmul.f32 %v8771_v0, %v11252_v34  ;;  %v6785_v38 = vld [vmem:[#allocation2 + $0x8f8] sm:$0xff] }
 0x301   : > { %14411 = vst [vmem:[#allocation212_spill] sm:$0xff] %v11379_v29  ;;  %v4411_v15 = vpop.f32.mrf.mxu1  ;;  %v14416_v6 = vld [vmem:[#allocation104_spill] sm:$0xff] }
 0x302   : > { %v11387_v35 = vpop.f32.mrf.mxu0  ;;  %v11393_v29 = vadd.f32 %v4408_v47, %v3735_v27  ;;  %v1511_v18 = vadd.f32 %v14417_v14, %v14416_v6  ;;  %v14418_v34 = vld [vmem:[#allocation64_spill] sm:$0xff]  ;;  %v14419_v27 = vld [vmem:[#allocation34_spill] sm:$0xff] }
 0x303   : > { %v2987_v47 = vadd.f32 %v14418_v34, %v2002_v42  ;;  %v4256_v42 = vmul.f32 %v8772_v61, %v11341_v58  ;;  %v14425_v61 = vld [vmem:[#allocation110_spill] sm:$0xff] }
 0x304   : > { %14415 = vst [vmem:[#allocation221_spill] sm:$0xff] %v11393_v29  ;;  %8312 = vmatmul.msk.f32.gmra.mxu3 %vm1180_vm2, %v3506_v36  ;;  %8380 = vmatmul.msk.f32.gmra.mxu1 %vm1180_vm2, %v4255_v7  ;;  %v2698_v0 = vadd.f32 %v14419_v27, %v1511_v18  ;;  %v11405_v36 = vpop.permute.xlu0 %4551  ;;  %v11407_v29 = vpop.permute.xlu2 %4561  ;;  %v14421_v18 = vld [vmem:[#allocation241_spill] sm:$0xff] }
 0x305   : > { %8267 = vmatmul.msk.f32.gmra.mxu2 %vm1180_vm2, %v3217_v1  ;;  %8341 = vmatmul.msk.f32.gmra.mxu0 %vm1180_vm2, %v3972_v13  ;;  %v14420_v1 = vld [vmem:[#allocation245_spill] sm:$0xff]  ;;  %v2005_v34 = vadd.f32 %v14421_v18, %v10934_v21  ;;  %v14426_v21 = vld [vmem:[#allocation72_spill] sm:$0xff] }
 0x306   : > { %6943 = vperm.xlu2 %8689, %v6785_v38   ;;  %v3507_v13 = vmul.f32 %v10713_v26, %v14420_v1  ;;  %v14422_v38 = vld [vmem:[#allocation35_spill] sm:$0xff]  ;;  %v1514_v18 = vadd.f32 %v14426_v21, %v14425_v61  ;;  %v3508_v61 = vmul.f32 %v10682_v4, %v10689_v12  ;;  %v8774_v21 = vld [vmem:[%s9480_s12 + $0xe8] sm:$0xff] }
 0x307   : > { %6938 = vperm.xlu1 %8688, %v6784_v43   ;;  %v3662_v7 = vpop.f32.mrf.mxu3  ;;  %6194 = vperm.xlu0 %8687, %v6036_v50   ;;  %v3218_v43 = vmul.f32 %v10487_v22, %v14422_v38  ;;  %v8773_v50 = vld [vmem:[%s8974_s19 + $0xb8] sm:$0xff]  ;;  %v14427_v22 = vld [vmem:[#allocation63_spill] sm:$0xff] }
 0x308   : > { %v3351_v14 = vpop.f32.mrf.mxu2  ;;  %v3736_v6 = vadd.f32 %v3662_v7, %v2987_v47  ;;  %v3973_v47 = vmul.f32 %v8773_v50, %v11275_v5  ;;  %v2988_v5 = vadd.f32 %v14427_v22, %v2005_v34  ;;  %v14428_v50 = vld [vmem:[#allocation33_spill] sm:$0xff] }
 0x309   : > { %v3447_v16 = vadd.f32 %v3351_v14, %v2698_v0  ;;  %v4414_v7 = vpop.f32.mrf.mxu1 }
 0x30a   : > { %v11415_v27 = vpop.f32.mrf.mxu0  ;;  %v11424_v14 = vadd.f32 %v4411_v15, %v3736_v6 }
 0x30b   : > { %v11422_v0 = vadd.f32 %v11239_v49, %v3447_v16  ;;  %v2699_v49 = vadd.f32 %v14428_v50, %v1514_v18  ;;  %v11434_v16 = vpop.permute.xlu1 %4556  ;;  %v14430_v18 = vld [vmem:[#allocation39_spill] sm:$0xff]  ;;  %v8775_v50 = vld [vmem:[%s8974_s19 + $0xc0] sm:$0xff] }
 0x30c   : > { %14424 = vst [vmem:[#allocation61_spill] sm:$0xff] %v11424_v14  ;;  %8313 = vmatmul.msk.f32.gmra.mxu3 %vm1180_vm2, %v3507_v13  ;;  %8381 = vmatmul.msk.f32.gmra.mxu1 %vm1180_vm2, %v4256_v42  ;;  %v11436_v13 = vpop.permute.xlu0 %4566  ;;  %v3219_v22 = vmul.f32 %v10527_v59, %v14430_v18  ;;  %v14435_v59 = vld [vmem:[#allocation244_spill] sm:$0xff] }
 0x30d   : > { %14423 = vst [vmem:[#allocation218_spill] sm:$0xff] %v11422_v0  ;;  %8268 = vmatmul.msk.f32.gmra.mxu2 %vm1180_vm2, %v3218_v43  ;;  %8342 = vmatmul.msk.f32.gmra.mxu0 %vm1180_vm2, %v3973_v47  ;;  %v4257_v43 = vmul.f32 %v8774_v21, %v11366_v62  ;;  %v14429_v47 = vld [vmem:[#allocation247_spill] sm:$0xff] }
 0x30e   : > { %v2008_v14 = vadd.f32 %v14429_v47, %v10964_v57  ;;  %v14433_v57 = vld [vmem:[#allocation13_spill] sm:$0xff]  ;;  %v14434_v21 = vld [vmem:[#allocation79_spill] sm:$0xff] }
 0x30f   : > { %v3665_v15 = vpop.f32.mrf.mxu3  ;;  %v1517_v47 = vadd.f32 %v14434_v21, %v14433_v57 }
 0x310   : > { %v3354_v6 = vpop.f32.mrf.mxu2  ;;  %v3737_v0 = vadd.f32 %v3665_v15, %v2988_v5  ;;  %v3974_v5 = vmul.f32 %v8775_v50, %v11279_v9  ;;  %v11450_v15 = vpop.permute.xlu2 %4576  ;;  %v2989_v9 = vadd.f32 %v14435_v59, %v2008_v14  ;;  %v14436_v50 = vld [vmem:[#allocation19_spill] sm:$0xff]  ;;  %v14438_v14 = vld [vmem:[#allocation44_spill] sm:$0xff] }
 0x311   : > { %v3448_v42 = vadd.f32 %v3354_v6, %v2699_v49  ;;  %v4417_v49 = vpop.f32.mrf.mxu1  ;;  %v2700_v1 = vadd.f32 %v14436_v50, %v1517_v47  ;;  %v3220_v21 = vmul.f32 %v14356_v63, %v14438_v14  ;;  %v8777_v47 = vld [vmem:[%s8974_s19 + $0xc8] sm:$0xff] }
 0x312   : > { %v11444_v34 = vpop.f32.mrf.mxu0  ;;  %v11455_v12 = vadd.f32 %v4414_v7, %v3737_v0  ;;  %v3975_v59 = vmul.f32 %v8777_v47, %v11302_v24  ;;  %v14443_v24 = vld [vmem:[#allocation249_spill] sm:$0xff] }
 0x313   : > { %v11453_v6 = vadd.f32 %v11262_v25, %v3448_v42  ;;  %v11465_v0 = vpop.permute.xlu1 %4571 }
 0x314   : > { %14432 = vst [vmem:[#allocation224_spill] sm:$0xff] %v11455_v12  ;;  %8314 = vmatmul.msk.f32.gmra.mxu3 %vm1180_vm2, %v3508_v61  ;;  %8382 = vmatmul.msk.f32.gmra.mxu1 %vm1180_vm2, %v4257_v43  ;;  %v8776_v12 = vld [vmem:[%s9480_s12 + $0xf0] sm:$0xff] }
 0x315   : > { %14431 = vst [vmem:[#allocation228_spill] sm:$0xff] %v11453_v6  ;;  %8269 = vmatmul.msk.f32.gmra.mxu2 %vm1180_vm2, %v3219_v22  ;;  %8343 = vmatmul.msk.f32.gmra.mxu0 %vm1180_vm2, %v3974_v5  ;;  %v14437_v6 = vld [vmem:[#allocation83_spill] sm:$0xff]  ;;  %v4258_v57 = vmul.f32 %v8776_v12, %v11347_v44  ;;  %v2011_v22 = vadd.f32 %v10696_v31, %v10986_v10  ;;  %v14441_v12 = vld [vmem:[#allocation5_spill] sm:$0xff] }
 0x316   : > { %v3509_v43 = vmul.f32 %v10719_v17, %v14437_v6  ;;  %v14442_v31 = vld [vmem:[#allocation85_spill] sm:$0xff] }
 0x317   : > { %v3668_v25 = vpop.f32.mrf.mxu3  ;;  %v1520_v10 = vadd.f32 %v14442_v31, %v14441_v12  ;;  %v14446_v31 = vld [vmem:[#allocation252_spill] sm:$0xff] }
 0x318   : > { %v3357_v42 = vpop.f32.mrf.mxu2  ;;  %v3738_v7 = vadd.f32 %v3668_v25, %v2989_v9  ;;  %v11479_v9 = vpop.permute.xlu0 %4581  ;;  %v2014_v6 = vadd.f32 %v14446_v31, %v11008_v33  ;;  %v14450_v33 = vld [vmem:[#allocation17_spill] sm:$0xff] }
 0x319   : > { %v3449_v61 = vadd.f32 %v3357_v42, %v2700_v1  ;;  %v4420_v1 = vpop.f32.mrf.mxu1  ;;  %v11490_v63 = vpop.permute.xlu2 %4591  ;;  %v2990_v42 = vadd.f32 %v14443_v24, %v2011_v22  ;;  %v8779_v24 = vld [vmem:[%s8974_s19 + $0xd0] sm:$0xff] }
 0x31a   : > { %v11473_v5 = vpop.f32.mrf.mxu0  ;;  %v11484_v25 = vadd.f32 %v4417_v49, %v3738_v7 }
 0x31b   : > { %v11482_v50 = vadd.f32 %v11287_v3, %v3449_v61  ;;  %v14444_v3 = vld [vmem:[#allocation38_spill] sm:$0xff] }
 0x31c   : > { %14440 = vst [vmem:[#allocation104_spill] sm:$0xff] %v11484_v25  ;;  %8315 = vmatmul.msk.f32.gmra.mxu3 %vm1180_vm2, %v3509_v43  ;;  %8383 = vmatmul.msk.f32.gmra.mxu1 %vm1180_vm2, %v4258_v57  ;;  %v2701_v61 = vadd.f32 %v14444_v3, %v1520_v10  ;;  %v8778_v25 = vld [vmem:[%s9480_s12 + $0xf8] sm:$0xff]  ;;  %v3976_v10 = vmul.f32 %v8779_v24, %v11327_v20  ;;  %v11508_v3 = vpop.permute.xlu1 %4586  ;;  %v14452_v20 = vld [vmem:[#allocation67_spill] sm:$0xff] }
 0x31d   : > { %14439 = vst [vmem:[#allocation235_spill] sm:$0xff] %v11482_v50  ;;  %8270 = vmatmul.msk.f32.gmra.mxu2 %vm1180_vm2, %v3220_v21  ;;  %8344 = vmatmul.msk.f32.gmra.mxu0 %vm1180_vm2, %v3975_v59  ;;  %v14445_v50 = vld [vmem:[#allocation87_spill] sm:$0xff]  ;;  %v4259_v12 = vmul.f32 %v8778_v25, %v11372_v11  ;;  %v14447_v59 = vld [vmem:[#allocation48_spill] sm:$0xff]  ;;  %v14451_v25 = vld [vmem:[#allocation90_spill] sm:$0xff]  ;;  %v2991_v31 = vadd.f32 %v14452_v20, %v2014_v6 }
 0x31e   : > { %v3510_v57 = vmul.f32 %v10748_v54, %v14445_v50  ;;  %v3221_v22 = vmul.f32 %v14364_v56, %v14447_v59  ;;  %v14455_v6 = vld [vmem:[#allocation52_spill] sm:$0xff] }
 0x31f   : > { %v3671_v49 = vpop.f32.mrf.mxu3  ;;  %v8780_v20 = vld [vmem:[%s8974_s19 + $0xd8] sm:$0xff] }
 0x320   : > { %v3360_v7 = vpop.f32.mrf.mxu2  ;;  %v3739_v47 = vadd.f32 %v3671_v49, %v2990_v42  ;;  %v11519_v56 = vpop.permute.xlu0 %4596 }
 0x321   : > { %v3450_v43 = vadd.f32 %v3360_v7, %v2701_v61  ;;  %v4423_v42 = vpop.f32.mrf.mxu1  ;;  %v1523_v7 = vadd.f32 %v14451_v25, %v14450_v33 }
 0x322   : > { %v11502_v21 = vpop.f32.mrf.mxu0  ;;  %v11513_v49 = vadd.f32 %v4420_v1, %v3739_v47  ;;  %v11525_v1 = vpop.permute.xlu2 %5290 }
 0x323   : > { %v11511_v61 = vadd.f32 %v11310_v2, %v3450_v43  ;;  %v14453_v2 = vld [vmem:[#allocation37_spill] sm:$0xff]  ;;  %v5726_v25 = vmul.f32 %v11525_v1, %v9639_v8  ;;  %v14458_v8 = vld [vmem:[#allocation16_spill] sm:$0xff] }
 0x324   : > { %14449 = vst [vmem:[#allocation64_spill] sm:$0xff] %v11513_v49  ;;  %8316 = vmatmul.msk.f32.gmra.mxu3 %vm1180_vm2, %v3510_v57  ;;  %8384 = vmatmul.msk.f32.gmra.mxu1 %vm1180_vm2, %v4259_v12  ;;  %v2702_v43 = vadd.f32 %v14453_v2, %v1523_v7  ;;  %v3222_v7 = vmul.f32 %v14372_v39, %v14455_v6  ;;  %v14460_v39 = vld [vmem:[#allocation66_spill] sm:$0xff] }
 0x325   : > { %14448 = vst [vmem:[#allocation69_spill] sm:$0xff] %v11511_v61  ;;  %8271 = vmatmul.msk.f32.gmra.mxu2 %vm1180_vm2, %v3221_v22  ;;  %8345 = vmatmul.msk.f32.gmra.mxu0 %vm1180_vm2, %v3976_v10  ;;  %v14454_v61 = vld [vmem:[#allocation92_spill] sm:$0xff]  ;;  %v2017_v22 = vadd.f32 %v10754_v45, %v11030_v52  ;;  %v3977_v2 = vmul.f32 %v8780_v20, %v11314_v60  ;;  %v14459_v45 = vld [vmem:[#allocation94_spill] sm:$0xff] }
 0x326   : > { %v4977_v33 = vmul.f32 %v11399_v53, %v14454_v61  ;;  %v1526_v52 = vadd.f32 %v14459_v45, %v14458_v8  ;;  %v14462_v20 = vld [vmem:[#allocation96_spill] sm:$0xff] }
 0x327   : > { %v3674_v47 = vpop.f32.mrf.mxu3  ;;  %v2992_v60 = vadd.f32 %v14460_v39, %v2017_v22  ;;  %v4978_v8 = vmul.f32 %v11377_v30, %v14462_v20  ;;  %v14464_v22 = vld [vmem:[#allocation55_spill] sm:$0xff]  ;;  %v8781_v39 = vld [vmem:[%s8974_s19 + $0xe0] sm:$0xff]  ;;  %v14472_v20 = vld [vmem:[#allocation106_spill] sm:$0xff] }
 0x328   : > { %v3363_v57 = vpop.f32.mrf.mxu2  ;;  %v3740_v24 = vadd.f32 %v3674_v47, %v2991_v31  ;;  %v11548_v47 = vpop.permute.xlu1 %4601 }
 0x329   : > { %v3451_v12 = vadd.f32 %v3363_v57, %v2702_v43  ;;  %v4426_v49 = vpop.f32.mrf.mxu1 }
 0x32a   : > { %v11533_v10 = vpop.f32.mrf.mxu0  ;;  %v11542_v43 = vadd.f32 %v4423_v42, %v3740_v24  ;;  %v11554_v42 = vpop.permute.xlu0 %5295 }
 0x32b   : > { %v11540_v31 = vadd.f32 %v11335_v40, %v3451_v12  ;;  %v14461_v40 = vld [vmem:[#allocation23_spill] sm:$0xff]  ;;  %v5727_v45 = vmul.f32 %v11554_v42, %v9670_v46  ;;  %v14467_v46 = vld [vmem:[#allocation8_spill] sm:$0xff] }
 0x32c   : > { %14457 = vst [vmem:[#allocation241_spill] sm:$0xff] %v11542_v43  ;;  %8421 = vmatmul.msk.f32.vlgmr.msrb.gmra.mxu3 %vm1180_vm2, %v4977_v33  ;;  %8489 = vmatmul.msk.f32.vlgmr.msrb.gmra.mxu1 %vm1180_vm2, %v5726_v25  ;;  %v2703_v57 = vadd.f32 %v14461_v40, %v1526_v52  ;;  %v3223_v52 = vmul.f32 %v14379_v48, %v14464_v22  ;;  %v14469_v48 = vld [vmem:[#allocation257_spill] sm:$0xff] }
 0x32d   : > { %14456 = vst [vmem:[#allocation34_spill] sm:$0xff] %v11540_v31  ;;  %8272 = vmatmul.msk.f32.gmra.mxu2 %vm1180_vm2, %v3222_v7  ;;  %8346 = vmatmul.msk.f32.gmra.mxu0 %vm1180_vm2, %v3977_v2  ;;  %v14463_v7 = vld [vmem:[#allocation258_spill] sm:$0xff]  ;;  %v3978_v40 = vmul.f32 %v8781_v39, %v11341_v58 }
 0x32e   : > { %v2020_v61 = vadd.f32 %v14463_v7, %v11052_v32  ;;  %v14468_v32 = vld [vmem:[#allocation100_spill] sm:$0xff]  ;;  %v14471_v39 = vld [vmem:[#allocation98_spill] sm:$0xff] }
 0x32f   : > { %v3677_v24 = vpop.f32.mrf.mxu3 }
 0x330   : > { %v3366_v12 = vpop.f32.mrf.mxu2  ;;  %v3741_v33 = vadd.f32 %v3677_v24, %v2992_v60  ;;  %v1529_v24 = vadd.f32 %v14468_v32, %v14467_v46  ;;  %v2993_v58 = vadd.f32 %v14469_v48, %v2020_v61  ;;  %v14473_v32 = vld [vmem:[#allocation286_spill] sm:$0xff]  ;;  %v14475_v61 = vld [vmem:[#allocation57_spill] sm:$0xff] }
 0x331   : > { %v3452_v25 = vadd.f32 %v3366_v12, %v2703_v57  ;;  %v4429_v31 = vpop.f32.mrf.mxu1  ;;  %v14470_v12 = vld [vmem:[#allocation42_spill] sm:$0xff] }
 0x332   : > { %v11562_v2 = vpop.f32.mrf.mxu0  ;;  %v11571_v57 = vadd.f32 %v4426_v49, %v3741_v33  ;;  %v2704_v7 = vadd.f32 %v14470_v12, %v1529_v24  ;;  %v3224_v24 = vmul.f32 %v14386_v37, %v14475_v61  ;;  %v8782_v48 = vld [vmem:[%s8974_s19 + $0xe8] sm:$0xff]  ;;  %v14480_v37 = vld [vmem:[#allocation261_spill] sm:$0xff] }
 0x333   : > { %v11569_v60 = vadd.f32 %v11360_v23, %v3452_v25  ;;  %v11581_v23 = vpop.permute.xlu1 %5300  ;;  %v3979_v12 = vmul.f32 %v8782_v48, %v11366_v62  ;;  %v14482_v48 = vld [vmem:[#allocation101_spill] sm:$0xff] }
 0x334   : > { %14466 = vst [vmem:[#allocation110_spill] sm:$0xff] %v11571_v57  ;;  %8422 = vmatmul.msk.f32.gmra.mxu3 %vm1180_vm2, %v4978_v8  ;;  %8490 = vmatmul.msk.f32.gmra.mxu1 %vm1180_vm2, %v5727_v45  ;;  %v4979_v45 = vmul.f32 %v11405_v36, %v14471_v39  ;;  %v5728_v46 = vmul.f32 %v11581_v23, %v14472_v20  ;;  %v14478_v20 = vld [vmem:[#allocation20_spill] sm:$0xff] }
 0x335   : > { %14465 = vst [vmem:[#allocation35_spill] sm:$0xff] %v11569_v60  ;;  %8273 = vmatmul.msk.f32.gmra.mxu2 %vm1180_vm2, %v3223_v52  ;;  %8347 = vmatmul.msk.f32.gmra.mxu0 %vm1180_vm2, %v3978_v40  ;;  %v14474_v52 = vld [vmem:[#allocation262_spill] sm:$0xff] }
 0x336   : > { %v2023_v60 = vadd.f32 %v14474_v52, %v14473_v32  ;;  %v14481_v32 = vld [vmem:[#allocation41_spill] sm:$0xff] }
 0x337   : > { %v3680_v49 = vpop.f32.mrf.mxu3 }
 0x338   : > { %v3369_v33 = vpop.f32.mrf.mxu2  ;;  %v3742_v25 = vadd.f32 %v3680_v49, %v2993_v58  ;;  %v14479_v49 = vld [vmem:[#allocation105_spill] sm:$0xff]  ;;  %v2994_v62 = vadd.f32 %v14480_v37, %v2023_v60  ;;  %v14486_v60 = vld [vmem:[#allocation59_spill] sm:$0xff] }
 0x339   : > { %v3453_v8 = vadd.f32 %v3369_v33, %v2704_v7  ;;  %v4432_v57 = vpop.f32.mrf.mxu1  ;;  %v1532_v33 = vadd.f32 %v14479_v49, %v14478_v20  ;;  %v14484_v49 = vld [vmem:[#allocation290_spill] sm:$0xff]  ;;  %v8783_v37 = vld [vmem:[%s8974_s19 + $0xf0] sm:$0xff] }
 0x33a   : > { %v11589_v40 = vpop.f32.mrf.mxu0  ;;  %v11598_v7 = vadd.f32 %v4429_v31, %v3742_v25 }
 0x33b   : > { %v11596_v58 = vadd.f32 %v11387_v35, %v3453_v8  ;;  %v2705_v52 = vadd.f32 %v14481_v32, %v1532_v33  ;;  %v11608_v35 = vpop.permute.xlu0 %5305  ;;  %v3225_v33 = vmul.f32 %v14393_v51, %v14486_v60  ;;  %v3980_v32 = vmul.f32 %v8783_v37, %v11347_v44  ;;  %v14491_v51 = vld [vmem:[#allocation71_spill] sm:$0xff] }
 0x33c   : > { %14477 = vst [vmem:[#allocation63_spill] sm:$0xff] %v11598_v7  ;;  %8423 = vmatmul.msk.f32.gmra.mxu3 %vm1180_vm2, %v4979_v45  ;;  %8491 = vmatmul.msk.f32.gmra.mxu1 %vm1180_vm2, %v5728_v46  ;;  %v4980_v46 = vmul.f32 %v11434_v16, %v14482_v48  ;;  %v14493_v37 = vld [vmem:[#allocation107_spill] sm:$0xff] }
 0x33d   : > { %14476 = vst [vmem:[#allocation72_spill] sm:$0xff] %v11596_v58  ;;  %8274 = vmatmul.msk.f32.gmra.mxu2 %vm1180_vm2, %v3224_v24  ;;  %8348 = vmatmul.msk.f32.gmra.mxu0 %vm1180_vm2, %v3979_v12  ;;  %v14483_v58 = vld [vmem:[#allocation112_spill] sm:$0xff]  ;;  %v14485_v24 = vld [vmem:[#allocation265_spill] sm:$0xff] }
 0x33e   : > { %v5729_v20 = vmul.f32 %v11608_v35, %v14483_v58  ;;  %v2026_v7 = vadd.f32 %v14485_v24, %v14484_v49  ;;  %v14489_v58 = vld [vmem:[#allocation145_spill] sm:$0xff]  ;;  %v11631_v49 = vpop.permute.xlu2 %4606 }
 0x33f   : > { %v3683_v31 = vpop.f32.mrf.mxu3 }
 0x340   : > { %v3372_v25 = vpop.f32.mrf.mxu2  ;;  %v3743_v8 = vadd.f32 %v3683_v31, %v2994_v62  ;;  %v14490_v31 = vld [vmem:[#allocation111_spill] sm:$0xff]  ;;  %v2995_v44 = vadd.f32 %v14491_v51, %v2026_v7  ;;  %v14497_v7 = vld [vmem:[#allocation62_spill] sm:$0xff]  ;;  %v8784_v51 = vld [vmem:[%s8974_s19 + $0xf8] sm:$0xff] }
 0x341   : > { %v3454_v45 = vadd.f32 %v3372_v25, %v2705_v52  ;;  %v4435_v39 = vpop.f32.mrf.mxu1  ;;  %v1535_v25 = vadd.f32 %v14490_v31, %v14489_v58  ;;  %v4981_v58 = vmul.f32 %v11407_v29, %v14493_v37  ;;  %v14494_v31 = vld [vmem:[#allocation116_spill] sm:$0xff] }
 0x342   : > { %v11616_v12 = vpop.f32.mrf.mxu0  ;;  %v11625_v52 = vadd.f32 %v4432_v57, %v3743_v8  ;;  %v11637_v57 = vpop.permute.xlu1 %5310 }
 0x343   : > { %v11623_v62 = vadd.f32 %v11415_v27, %v3454_v45  ;;  %v14492_v27 = vld [vmem:[#allocation27_spill] sm:$0xff] }
 0x344   : > { %14488 = vst [vmem:[#allocation247_spill] sm:$0xff] %v11625_v52  ;;  %8424 = vmatmul.msk.f32.gmra.mxu3 %vm1180_vm2, %v4980_v46  ;;  %8492 = vmatmul.msk.f32.gmra.mxu1 %vm1180_vm2, %v5729_v20  ;;  %v2706_v45 = vadd.f32 %v14492_v27, %v1535_v25  ;;  %v14495_v52 = vld [vmem:[#allocation294_spill] sm:$0xff]  ;;  %v3226_v25 = vmul.f32 %v10663_v55, %v14497_v7  ;;  %v14502_v55 = vld [vmem:[#allocation75_spill] sm:$0xff] }
 0x345   : > { %14487 = vst [vmem:[#allocation33_spill] sm:$0xff] %v11623_v62  ;;  %8275 = vmatmul.msk.f32.gmra.mxu2 %vm1180_vm2, %v3225_v33  ;;  %8349 = vmatmul.msk.f32.gmra.mxu0 %vm1180_vm2, %v3980_v32  ;;  %v5730_v62 = vmul.f32 %v11637_v57, %v14494_v31  ;;  %v14496_v33 = vld [vmem:[#allocation267_spill] sm:$0xff]  ;;  %v3981_v27 = vmul.f32 %v8784_v51, %v11372_v11 }
 0x346   : > { %v2029_v48 = vadd.f32 %v14496_v33, %v14495_v52  ;;  %v14501_v52 = vld [vmem:[#allocation118_spill] sm:$0xff]  ;;  %v14503_v11 = vld [vmem:[#allocation47_spill] sm:$0xff]  ;;  %v11664_v51 = vpop.permute.xlu2 %5315 }
 0x347   : > { %v3686_v8 = vpop.f32.mrf.mxu3 }
 0x348   : > { %v3375_v46 = vpop.f32.mrf.mxu2  ;;  %v3744_v24 = vadd.f32 %v3686_v8, %v2995_v44  ;;  %v14500_v8 = vld [vmem:[#allocation10_spill] sm:$0xff]  ;;  %v2996_v31 = vadd.f32 %v14502_v55, %v2029_v48  ;;  %v14507_v48 = vld [vmem:[#allocation65_spill] sm:$0xff] }
 0x349   : > { %v3455_v20 = vadd.f32 %v3375_v46, %v2706_v45  ;;  %v4438_v43 = vpop.f32.mrf.mxu1  ;;  %v1538_v46 = vadd.f32 %v14501_v52, %v14500_v8  ;;  %v14508_v55 = vld [vmem:[#allocation18_spill] sm:$0xff] }
 0x34a   : > { %v11645_v32 = vpop.f32.mrf.mxu0  ;;  %v11654_v45 = vadd.f32 %v4435_v39, %v3744_v24 }
 0x34b   : > { %v11652_v44 = vadd.f32 %v11444_v34, %v3455_v20  ;;  %v2707_v33 = vadd.f32 %v14503_v11, %v1538_v46  ;;  %v3227_v46 = vmul.f32 %v14406_v28, %v14507_v48  ;;  %v5448_v11 = vmul.f32 %v11525_v1, %v14508_v55  ;;  %v14513_v28 = vld [vmem:[#allocation74_spill] sm:$0xff]  ;;  %v11691_v55 = vpop.permute.xlu1 %5320 }
 0x34c   : > { %14499 = vst [vmem:[#allocation13_spill] sm:$0xff] %v11654_v45  ;;  %8425 = vmatmul.msk.f32.gmra.mxu3 %vm1180_vm2, %v4981_v58  ;;  %8493 = vmatmul.msk.f32.gmra.mxu1 %vm1180_vm2, %v5730_v62  ;;  %v14504_v58 = vld [vmem:[#allocation113_spill] sm:$0xff]  ;;  %v14514_v1 = vld [vmem:[#allocation46_spill] sm:$0xff] }
 0x34d   : > { %14498 = vst [vmem:[#allocation39_spill] sm:$0xff] %v11652_v44  ;;  %8276 = vmatmul.msk.f32.gmra.mxu2 %vm1180_vm2, %v3226_v25  ;;  %8350 = vmatmul.msk.f32.gmra.mxu0 %vm1180_vm2, %v3981_v27  ;;  %v4982_v62 = vmul.f32 %v11436_v13, %v14504_v58  ;;  %v14505_v44 = vld [vmem:[#allocation121_spill] sm:$0xff]  ;;  %v14506_v25 = vld [vmem:[#allocation268_spill] sm:$0xff] }
 0x34e   : > { %v5731_v8 = vmul.f32 %v11664_v51, %v14505_v44  ;;  %v2032_v52 = vadd.f32 %v14506_v25, %v11139_v41  ;;  %v14511_v44 = vld [vmem:[#allocation155_spill] sm:$0xff]  ;;  %v14512_v41 = vld [vmem:[#allocation125_spill] sm:$0xff] }
 0x34f   : > { %v3689_v34 = vpop.f32.mrf.mxu3 }
 0x350   : > { %v3378_v39 = vpop.f32.mrf.mxu2  ;;  %v3745_v24 = vadd.f32 %v3689_v34, %v2996_v31  ;;  %v1541_v34 = vadd.f32 %v14512_v41, %v14511_v44 }
 0x351   : > { %v3456_v20 = vadd.f32 %v3378_v39, %v2707_v33  ;;  %v4441_v45 = vpop.f32.mrf.mxu1  ;;  %v2997_v39 = vadd.f32 %v14513_v28, %v2032_v52  ;;  %v14518_v52 = vld [vmem:[#allocation70_spill] sm:$0xff]  ;;  %v14519_v28 = vld [vmem:[#allocation68_spill] sm:$0xff] }
 0x352   : > { %v11672_v27 = vpop.f32.mrf.mxu0  ;;  %v11681_v33 = vadd.f32 %v4438_v43, %v3745_v24  ;;  %v2708_v25 = vadd.f32 %v14514_v1, %v1541_v34  ;;  %v3228_v34 = vmul.f32 %v14519_v28, %v14518_v52  ;;  %v14520_v1 = vld [vmem:[#allocation22_spill] sm:$0xff] }
 0x353   : > { %v11679_v31 = vadd.f32 %v11473_v5, %v3456_v20  ;;  %v14526_v28 = vld [vmem:[#allocation254_spill] sm:$0xff] }
 0x354   : > { %14510 = vst [vmem:[#allocation244_spill] sm:$0xff] %v11681_v33  ;;  %8426 = vmatmul.msk.f32.gmra.mxu3 %vm1180_vm2, %v4982_v62  ;;  %8494 = vmatmul.msk.f32.gmra.mxu1 %vm1180_vm2, %v5731_v8  ;;  %v14515_v62 = vld [vmem:[#allocation117_spill] sm:$0xff]  ;;  %v5449_v33 = vmul.f32 %v11554_v42, %v14520_v1  ;;  %v14525_v42 = vld [vmem:[#allocation76_spill] sm:$0xff] }
 0x355   : > { %14509 = vst [vmem:[#allocation79_spill] sm:$0xff] %v11679_v31  ;;  %8277 = vmatmul.msk.f32.gmra.mxu2 %vm1180_vm2, %v3227_v46  ;;  %8455 = vmatmul.msk.f32.vlgmr.msrb.gmra.mxu0 %vm1180_vm2, %v5448_v11  ;;  %v4983_v8 = vmul.f32 %v11465_v0, %v14515_v62  ;;  %v14516_v31 = vld [vmem:[#allocation126_spill] sm:$0xff] }
 0x356   : > { %v5732_v44 = vmul.f32 %v11691_v55, %v14516_v31  ;;  %v14517_v46 = vld [vmem:[#allocation270_spill] sm:$0xff]  ;;  %v14523_v31 = vld [vmem:[#allocation24_spill] sm:$0xff] }
 0x357   : > { %v3692_v5 = vpop.f32.mrf.mxu3  ;;  %v2035_v41 = vadd.f32 %v14517_v46, %v11162_v19  ;;  %v14524_v19 = vld [vmem:[#allocation130_spill] sm:$0xff] }
 0x358   : > { %v3381_v43 = vpop.f32.mrf.mxu2  ;;  %v3746_v24 = vadd.f32 %v3692_v5, %v2997_v39  ;;  %v1544_v5 = vadd.f32 %v14524_v19, %v14523_v31  ;;  %v14528_v31 = vld [vmem:[#allocation131_spill] sm:$0xff] }
 0x359   : > { %v3457_v20 = vadd.f32 %v3381_v43, %v2708_v25  ;;  %v4444_v58 = vpop.f32.mrf.mxu1  ;;  %v11714_v43 = vpop.permute.xlu0 %4611  ;;  %v2998_v46 = vadd.f32 %v14525_v42, %v2035_v41  ;;  %v14531_v41 = vld [vmem:[#allocation73_spill] sm:$0xff]  ;;  %v14532_v42 = vld [vmem:[#allocation26_spill] sm:$0xff] }
 0x35a   : > { %v11699_v11 = vpop.f32.mrf.mxu0  ;;  %v11708_v25 = vadd.f32 %v4441_v45, %v3746_v24 }
 0x35b   : > { %v11706_v39 = vadd.f32 %v11502_v21, %v3457_v20  ;;  %v2709_v21 = vadd.f32 %v14526_v28, %v1544_v5  ;;  %v11720_v20 = vpop.permute.xlu2 %5325  ;;  %v3229_v5 = vmul.f32 %v10713_v26, %v14531_v41  ;;  %v5450_v28 = vmul.f32 %v11581_v23, %v14532_v42  ;;  %v8521_v26 = vld [vmem:[%s13615_s2 + $0x1c] sm:$0xf]  ;;  %v14537_v23 = vld [vmem:[#allocation81_spill] sm:$0xff]  ;;  %v14539_v42 = vld [vmem:[#allocation127_spill] sm:$0xff] }
 0x35c   : > { %14522 = vst [vmem:[#allocation44_spill] sm:$0xff] %v11708_v25  ;;  %8427 = vmatmul.msk.f32.gmra.mxu3 %vm1180_vm2, %v4983_v8  ;;  %8495 = vmatmul.msk.f32.gmra.mxu1 %vm1180_vm2, %v5732_v44  ;;  %v14527_v44 = vld [vmem:[#allocation122_spill] sm:$0xff]  ;;  %v5733_v19 = vmul.f32 %v11720_v20, %v14528_v31  ;;  %v14529_v25 = vld [vmem:[#allocation173_spill] sm:$0xff] }
 0x35d   : > { %14521 = vst [vmem:[#allocation19_spill] sm:$0xff] %v11706_v39  ;;  %8278 = vmatmul.msk.f32.gmra.mxu2 %vm1180_vm2, %v3228_v34  ;;  %8456 = vmatmul.msk.f32.gmra.mxu0 %vm1180_vm2, %v5449_v33  ;;  %v4984_v39 = vmul.f32 %v11450_v15, %v14527_v44  ;;  %v14530_v34 = vld [vmem:[#allocation272_spill] sm:$0xff] }
 0x35e   : > { %v2038_v62 = vadd.f32 %v14530_v34, %v14529_v25  ;;  %v14536_v25 = vld [vmem:[#allocation32_spill] sm:$0xff]  ;;  %8522 = vmatpush.msk.msra.mxu2 %vm1277_vm0, %v8521_v26 }
 0x35f   : > { %v3695_v45 = vpop.f32.mrf.mxu3 }
 0x360   : > { %v3384_v24 = vpop.f32.mrf.mxu2  ;;  %v3747_v8 = vadd.f32 %v3695_v45, %v2998_v46  ;;  %v14535_v45 = vld [vmem:[#allocation12_spill] sm:$0xff] }
 0x361   : > { %v3458_v1 = vadd.f32 %v3384_v24, %v2709_v21  ;;  %v4447_v37 = vpop.f32.mrf.mxu1  ;;  %v1547_v24 = vadd.f32 %v14536_v25, %v14535_v45  ;;  %v14540_v45 = vld [vmem:[#allocation135_spill] sm:$0xff] }
 0x362   : > { %v11728_v33 = vpop.f32.mrf.mxu0  ;;  %v11737_v21 = vadd.f32 %v4444_v58, %v3747_v8  ;;  %v2999_v58 = vadd.f32 %v14537_v23, %v2038_v62  ;;  %v14542_v62 = vld [vmem:[#allocation274_spill] sm:$0xff] }
 0x363   : > { %v11735_v46 = vadd.f32 %v11533_v10, %v3458_v1  ;;  %v8555_v10 = vld [vmem:[%s13616_s3 + $0x1c] sm:$0xf]  ;;  %v11755_v1 = vpop.permute.xlu0 %5330 }
 0x364   : > { %14534 = vst [vmem:[#allocation85_spill] sm:$0xff] %v11737_v21  ;;  %8428 = vmatmul.msk.f32.gmra.mxu3 %vm1180_vm2, %v4984_v39  ;;  %8496 = vmatmul.msk.f32.gmra.mxu1 %vm1180_vm2, %v5733_v19  ;;  %v14538_v39 = vld [vmem:[#allocation256_spill] sm:$0xff]  ;;  %v5734_v25 = vmul.f32 %v11755_v1, %v14540_v45  ;;  %v14545_v21 = vld [vmem:[#allocation31_spill] sm:$0xff] }
 0x365   : > { %14533 = vst [vmem:[#allocation5_spill] sm:$0xff] %v11735_v46  ;;  %8279 = vmatmul.msk.f32.gmra.mxu2 %vm1180_vm2, %v3229_v5  ;;  %8457 = vmatmul.msk.f32.gmra.mxu0 %vm1180_vm2, %v5450_v28  ;;  %v2710_v8 = vadd.f32 %v14538_v39, %v1547_v24  ;;  %v4985_v28 = vmul.f32 %v11479_v9, %v14539_v42  ;;  %v14541_v46 = vld [vmem:[#allocation179_spill] sm:$0xff]  ;;  %v14544_v24 = vld [vmem:[#allocation78_spill] sm:$0xff]  ;;  %v14557_v42 = vld [vmem:[#allocation36_spill] sm:$0xff] }
 0x366   : > { %8556 = vmatpush.msk.msra.mxu3 %vm1277_vm0, %v8555_v10  ;;  %v2041_v23 = vadd.f32 %v14542_v62, %v14541_v46  ;;  %v3230_v39 = vmul.f32 %v10682_v4, %v14544_v24  ;;  %v14548_v46 = vld [vmem:[#allocation141_spill] sm:$0xff] }
 0x367   : > { %v3698_v31 = vpop.f32.mrf.mxu3  ;;  %v8589_v4 = vld [vmem:[%s13615_s2 + $0x20] sm:$0xf] }
 0x368   : > { %v3387_v19 = vpop.f32.mrf.mxu2  ;;  %v3748_v34 = vadd.f32 %v3698_v31, %v2999_v58  ;;  %v5451_v58 = vmul.f32 %v11608_v35, %v14545_v21  ;;  %v14549_v35 = vld [vmem:[#allocation80_spill] sm:$0xff]  ;;  %8590 = vmatpush.msk.msra.mxu0 %vm1277_vm0, %v8589_v4 }
 0x369   : > { %v3459_v5 = vadd.f32 %v3387_v19, %v2710_v8  ;;  %v4450_v8 = vpop.f32.mrf.mxu1  ;;  %v14547_v19 = vld [vmem:[#allocation29_spill] sm:$0xff]  ;;  %v14550_v21 = vld [vmem:[#allocation260_spill] sm:$0xff] }
 0x36a   : > { %v11763_v26 = vpop.f32.mrf.mxu0  ;;  %v11765_v10 = vadd.f32 %v4447_v37, %v3748_v34  ;;  %v1550_v45 = vadd.f32 %v14548_v46, %v14547_v19  ;;  %v3000_v37 = vadd.f32 %v14549_v35, %v2041_v23  ;;  %v14552_v46 = vld [vmem:[#allocation51_spill] sm:$0xff]  ;;  %v14554_v23 = vld [vmem:[#allocation276_spill] sm:$0xff] }
 0x36b   : > { %v11772_v31 = vadd.f32 %v11562_v2, %v3459_v5  ;;  %v8623_v2 = vld [vmem:[%s13616_s3 + $0x20] sm:$0xf]  ;;  %v11790_v5 = vpop.permute.xlu2 %5335 }
 0x36c   : > { %14543 = vst [vmem:[#allocation249_spill] sm:$0xff] %v11765_v10  ;;  %8429 = vmatmul.msk.f32.gmra.mxu3 %vm1180_vm2, %v4985_v28  ;;  %8497 = vmatmul.msk.f32.gmra.mxu1 %vm1180_vm2, %v5734_v25  ;;  %v2711_v34 = vadd.f32 %v14550_v21, %v1550_v45  ;;  %v14553_v10 = vld [vmem:[#allocation185_spill] sm:$0xff]  ;;  %v14556_v45 = vld [vmem:[#allocation7_spill] sm:$0xff] }
 0x36d   : > { %14546 = vst [vmem:[#allocation38_spill] sm:$0xff] %v11772_v31  ;;  %8280 = vmatmul.msk.f32.gmra.mxu2 %vm1180_vm2, %v3230_v39  ;;  %8458 = vmatmul.msk.f32.gmra.mxu0 %vm1180_vm2, %v5451_v58  ;;  %v14551_v58 = vld [vmem:[#allocation132_spill] sm:$0xff]  ;;  %v5735_v31 = vmul.f32 %v11790_v5, %v14552_v46  ;;  %v2044_v35 = vadd.f32 %v14554_v23, %v14553_v10  ;;  %v14560_v10 = vld [vmem:[#allocation150_spill] sm:$0xff]  ;;  %v11813_v23 = vpop.permute.xlu1 %4616 }
 0x36e   : > { %8624 = vmatpush.msk.msra.mxu1 %vm1277_vm0, %v8623_v2  ;;  %v4986_v19 = vmul.f32 %v11508_v3, %v14551_v58  ;;  %v3231_v21 = vmul.f32 %v10719_v17, %v14556_v45  ;;  %v14561_v17 = vld [vmem:[#allocation82_spill] sm:$0xff]  ;;  %v14565_v58 = vld [vmem:[#allocation195_spill] sm:$0xff] }
 0x36f   : > { %v3701_v28 = vpop.f32.mrf.mxu3 }
 0x370   : > { %v3390_v25 = vpop.f32.mrf.mxu2  ;;  %v3749_v62 = vadd.f32 %v3701_v28, %v3000_v37  ;;  %v5452_v37 = vmul.f32 %v11637_v57, %v14557_v42  ;;  %v14562_v57 = vld [vmem:[#allocation264_spill] sm:$0xff] }
 0x371   : > { %v3460_v39 = vadd.f32 %v3390_v25, %v2711_v34  ;;  %v4453_v34 = vpop.f32.mrf.mxu1  ;;  %v14559_v25 = vld [vmem:[#allocation28_spill] sm:$0xff] }
 0x372   : > { %v11798_v4 = vpop.f32.mrf.mxu0  ;;  %v11800_v2 = vadd.f32 %v4450_v8, %v3749_v62  ;;  %v1553_v46 = vadd.f32 %v14560_v10, %v14559_v25  ;;  %v3001_v8 = vadd.f32 %v14561_v17, %v2044_v35  ;;  %v11819_v62 = vpop.permute.xlu0 %5340  ;;  %v14564_v25 = vld [vmem:[#allocation50_spill] sm:$0xff] }
 0x373   : > { %v11807_v28 = vadd.f32 %v11589_v40, %v3460_v39  ;;  %v5736_v10 = vmul.f32 %v11819_v62, %v14564_v25 }
 0x374   : > { %14555 = vst [vmem:[#allocation87_spill] sm:$0xff] %v11800_v2  ;;  %8430 = vmatmul.msk.f32.gmra.mxu3 %vm1180_vm2, %v4986_v19  ;;  %8498 = vmatmul.msk.f32.gmra.mxu1 %vm1180_vm2, %v5735_v31  ;;  %v2712_v42 = vadd.f32 %v14562_v57, %v1553_v46  ;;  %v14563_v31 = vld [vmem:[#allocation136_spill] sm:$0xff]  ;;  %v14568_v46 = vld [vmem:[#allocation9_spill] sm:$0xff] }
 0x375   : > { %14558 = vst [vmem:[#allocation252_spill] sm:$0xff] %v11807_v28  ;;  %8281 = vmatmul.msk.f32.gmra.mxu2 %vm1180_vm2, %v3231_v21  ;;  %8459 = vmatmul.msk.f32.gmra.mxu0 %vm1180_vm2, %v5452_v37  ;;  %v4987_v2 = vmul.f32 %v11490_v63, %v14563_v31  ;;  %v14566_v21 = vld [vmem:[#allocation278_spill] sm:$0xff]  ;;  %v3232_v17 = vmul.f32 %v10748_v54, %v14568_v46  ;;  %v14569_v57 = vld [vmem:[#allocation40_spill] sm:$0xff] }
 0x376   : > { %v2047_v44 = vadd.f32 %v14566_v21, %v14565_v58  ;;  %v14572_v58 = vld [vmem:[#allocation156_spill] sm:$0xff] }
 0x377   : > { %v3704_v40 = vpop.f32.mrf.mxu3 }
 0x378   : > { %v3393_v39 = vpop.f32.mrf.mxu2  ;;  %v3750_v19 = vadd.f32 %v3704_v40, %v3001_v8  ;;  %v5453_v8 = vmul.f32 %v11664_v51, %v14569_v57  ;;  %v11846_v51 = vpop.permute.xlu1 %5345 }
 0x379   : > { %v3461_v28 = vadd.f32 %v3393_v39, %v2712_v42  ;;  %v4456_v42 = vpop.f32.mrf.mxu1  ;;  %v14571_v39 = vld [vmem:[#allocation15_spill] sm:$0xff] }
 0x37a   : > { %v11827_v37 = vpop.f32.mrf.mxu0  ;;  %v11829_v35 = vadd.f32 %v4453_v34, %v3750_v19  ;;  %v1556_v25 = vadd.f32 %v14572_v58, %v14571_v39  ;;  %v14573_v34 = vld [vmem:[#allocation86_spill] sm:$0xff]  ;;  %v14577_v58 = vld [vmem:[#allocation240_spill] sm:$0xff] }
 0x37b   : > { %v11836_v40 = vadd.f32 %v11616_v12, %v3461_v28  ;;  %v3002_v54 = vadd.f32 %v14573_v34, %v2047_v44  ;;  %v14574_v19 = vld [vmem:[#allocation266_spill] sm:$0xff] }
 0x37c   : > { %14567 = vst [vmem:[#allocation48_spill] sm:$0xff] %v11829_v35  ;;  %8431 = vmatmul.msk.f32.gmra.mxu3 %vm1180_vm2, %v4987_v2  ;;  %8499 = vmatmul.msk.f32.gmra.mxu1 %vm1180_vm2, %v5736_v10  ;;  %v2713_v21 = vadd.f32 %v14574_v19, %v1556_v25  ;;  %v14575_v2 = vld [vmem:[#allocation140_spill] sm:$0xff]  ;;  %v14576_v35 = vld [vmem:[#allocation43_spill] sm:$0xff]  ;;  %v14581_v19 = vld [vmem:[#allocation45_spill] sm:$0xff] }
 0x37d   : > { %14570 = vst [vmem:[#allocation17_spill] sm:$0xff] %v11836_v40  ;;  %8282 = vmatmul.msk.f32.gmra.mxu2 %vm1180_vm2, %v3232_v17  ;;  %8460 = vmatmul.msk.f32.gmra.mxu0 %vm1180_vm2, %v5453_v8  ;;  %v4988_v10 = vmul.f32 %v11519_v56, %v14575_v2  ;;  %v5737_v39 = vmul.f32 %v11846_v51, %v14576_v35  ;;  %v14578_v17 = vld [vmem:[#allocation280_spill] sm:$0xff]  ;;  %v14580_v25 = vld [vmem:[#allocation115_spill] sm:$0xff] }
 0x37e   : > { %v2050_v31 = vadd.f32 %v14578_v17, %v14577_v58  ;;  %v4699_v34 = vmul.f32 %v11399_v53, %v14580_v25  ;;  %v14583_v35 = vld [vmem:[#allocation139_spill] sm:$0xff] }
 0x37f   : > { %v3707_v57 = vpop.f32.mrf.mxu3 }
 0x380   : > { %v3396_v12 = vpop.f32.mrf.mxu2  ;;  %v3751_v28 = vadd.f32 %v3707_v57, %v3002_v54  ;;  %v5454_v54 = vmul.f32 %v11691_v55, %v14581_v19  ;;  %v11873_v55 = vpop.permute.xlu0 %5350 }
 0x381   : > { %v3462_v40 = vadd.f32 %v3396_v12, %v2713_v21  ;;  %v4459_v21 = vpop.f32.mrf.mxu1  ;;  %v14584_v12 = vld [vmem:[#allocation89_spill] sm:$0xff] }
 0x382   : > { %v11854_v8 = vpop.f32.mrf.mxu0  ;;  %v11856_v44 = vadd.f32 %v4456_v42, %v3751_v28  ;;  %v1559_v58 = vadd.f32 %v14584_v12, %v14583_v35  ;;  %v14585_v42 = vld [vmem:[#allocation279_spill] sm:$0xff]  ;;  %v14586_v28 = vld [vmem:[#allocation186_spill] sm:$0xff] }
 0x383   : > { %v11863_v57 = vadd.f32 %v11645_v32, %v3462_v40  ;;  %v3003_v53 = vadd.f32 %v14585_v42, %v2050_v31  ;;  %v14589_v12 = vld [vmem:[#allocation198_spill] sm:$0xff] }
 0x384   : > { %14579 = vst [vmem:[#allocation90_spill] sm:$0xff] %v11856_v44  ;;  %8432 = vmatmul.msk.f32.gmra.mxu3 %vm1180_vm2, %v4988_v10  ;;  %8500 = vmatmul.msk.f32.gmra.mxu1 %vm1180_vm2, %v5737_v39  ;;  %v2714_v17 = vadd.f32 %v14586_v28, %v1559_v58  ;;  %v14587_v10 = vld [vmem:[#allocation146_spill] sm:$0xff]  ;;  %v14592_v58 = vld [vmem:[#allocation120_spill] sm:$0xff]  ;;  %v14593_v28 = vld [vmem:[#allocation49_spill] sm:$0xff] }
 0x385   : > { %14582 = vst [vmem:[#allocation67_spill] sm:$0xff] %v11863_v57  ;;  %8387 = vmatmul.msk.f32.vlgmr.msrb.gmra.mxu2 %vm1180_vm2, %v4699_v34  ;;  %8461 = vmatmul.msk.f32.gmra.mxu0 %vm1180_vm2, %v5454_v54  ;;  %v4989_v39 = vmul.f32 %v11548_v47, %v14587_v10  ;;  %v14588_v57 = vld [vmem:[#allocation157_spill] sm:$0xff]  ;;  %v14590_v34 = vld [vmem:[#allocation282_spill] sm:$0xff]  ;;  %v4700_v42 = vmul.f32 %v11377_v30, %v14592_v58 }
 0x386   : > { %v5738_v35 = vmul.f32 %v11873_v55, %v14588_v57  ;;  %v2053_v44 = vadd.f32 %v14590_v34, %v14589_v12  ;;  %v14595_v57 = vld [vmem:[#allocation144_spill] sm:$0xff]  ;;  %v11896_v34 = vpop.permute.xlu2 %4621  ;;  %v14597_v30 = vld [vmem:[#allocation281_spill] sm:$0xff] }
 0x387   : > { %v3710_v19 = vpop.f32.mrf.mxu3 }
 0x388   : > { %v3399_v32 = vpop.f32.mrf.mxu2  ;;  %v3752_v40 = vadd.f32 %v3710_v19, %v3003_v53  ;;  %v5455_v53 = vmul.f32 %v11720_v20, %v14593_v28  ;;  %v14598_v20 = vld [vmem:[#allocation269_spill] sm:$0xff]  ;;  %v11902_v28 = vpop.permute.xlu1 %5355 }
 0x389   : > { %v3463_v25 = vadd.f32 %v3399_v32, %v2714_v17  ;;  %v4462_v17 = vpop.f32.mrf.mxu1  ;;  %v14596_v32 = vld [vmem:[#allocation93_spill] sm:$0xff] }
 0x38a   : > { %v11881_v54 = vpop.f32.mrf.mxu0  ;;  %v11883_v31 = vadd.f32 %v4459_v21, %v3752_v40  ;;  %v1562_v12 = vadd.f32 %v14596_v32, %v14595_v57  ;;  %v3004_v21 = vadd.f32 %v14597_v30, %v2053_v44  ;;  %v14600_v57 = vld [vmem:[#allocation162_spill] sm:$0xff] }
 0x38b   : > { %v11890_v19 = vadd.f32 %v11672_v27, %v3463_v25  ;;  %v5739_v32 = vmul.f32 %v11902_v28, %v14600_v57 }
 0x38c   : > { %14591 = vst [vmem:[#allocation37_spill] sm:$0xff] %v11883_v31  ;;  %8433 = vmatmul.msk.f32.gmra.mxu3 %vm1180_vm2, %v4989_v39  ;;  %8501 = vmatmul.msk.f32.gmra.mxu1 %vm1180_vm2, %v5738_v35  ;;  %v2715_v40 = vadd.f32 %v14598_v20, %v1562_v12  ;;  %v14599_v35 = vld [vmem:[#allocation151_spill] sm:$0xff]  ;;  %v14601_v31 = vld [vmem:[#allocation208_spill] sm:$0xff]  ;;  %v14605_v20 = vld [vmem:[#allocation53_spill] sm:$0xff] }
 0x38d   : > { %14594 = vst [vmem:[#allocation52_spill] sm:$0xff] %v11890_v19  ;;  %8388 = vmatmul.msk.f32.gmra.mxu2 %vm1180_vm2, %v4700_v42  ;;  %8462 = vmatmul.msk.f32.gmra.mxu0 %vm1180_vm2, %v5455_v53  ;;  %v4990_v19 = vmul.f32 %v11631_v49, %v14599_v35  ;;  %v14602_v42 = vld [vmem:[#allocation285_spill] sm:$0xff]  ;;  %v14604_v12 = vld [vmem:[#allocation124_spill] sm:$0xff] }
 0x38e   : > { %v2056_v10 = vadd.f32 %v14602_v42, %v14601_v31  ;;  %v4701_v30 = vmul.f32 %v11405_v36, %v14604_v12  ;;  %v14608_v31 = vld [vmem:[#allocation97_spill] sm:$0xff] }
 0x38f   : > { %v3713_v27 = vpop.f32.mrf.mxu3 }
 0x390   : > { %v3402_v25 = vpop.f32.mrf.mxu2  ;;  %v3753_v39 = vadd.f32 %v3713_v27, %v3004_v21  ;;  %v5456_v21 = vmul.f32 %v11755_v1, %v14605_v20  ;;  %v14610_v1 = vld [vmem:[#allocation271_spill] sm:$0xff] }
 0x391   : > { %v3464_v58 = vadd.f32 %v3402_v25, %v2715_v40  ;;  %v4465_v40 = vpop.f32.mrf.mxu1  ;;  %v14607_v25 = vld [vmem:[#allocation149_spill] sm:$0xff] }
 0x392   : > { %v11910_v53 = vpop.f32.mrf.mxu0  ;;  %v11912_v44 = vadd.f32 %v4462_v17, %v3753_v39  ;;  %v1565_v57 = vadd.f32 %v14608_v31, %v14607_v25  ;;  %v14609_v17 = vld [vmem:[#allocation284_spill] sm:$0xff]  ;;  %v11928_v39 = vpop.permute.xlu2 %5360  ;;  %v14613_v31 = vld [vmem:[#allocation243_spill] sm:$0xff] }
 0x393   : > { %v11919_v27 = vadd.f32 %v11699_v11, %v3464_v58  ;;  %v3005_v36 = vadd.f32 %v14609_v17, %v2056_v10  ;;  %v14616_v17 = vld [vmem:[#allocation129_spill] sm:$0xff] }
 0x394   : > { %14603 = vst [vmem:[#allocation16_spill] sm:$0xff] %v11912_v44  ;;  %8434 = vmatmul.msk.f32.gmra.mxu3 %vm1180_vm2, %v4990_v19  ;;  %8502 = vmatmul.msk.f32.gmra.mxu1 %vm1180_vm2, %v5739_v32  ;;  %v2716_v42 = vadd.f32 %v14610_v1, %v1565_v57  ;;  %v14611_v19 = vld [vmem:[#allocation168_spill] sm:$0xff]  ;;  %v14612_v44 = vld [vmem:[#allocation158_spill] sm:$0xff]  ;;  %v4702_v57 = vmul.f32 %v11434_v16, %v14616_v17 }
 0x395   : > { %14606 = vst [vmem:[#allocation94_spill] sm:$0xff] %v11919_v27  ;;  %8389 = vmatmul.msk.f32.gmra.mxu2 %vm1180_vm2, %v4701_v30  ;;  %8463 = vmatmul.msk.f32.gmra.mxu0 %vm1180_vm2, %v5456_v21  ;;  %v5740_v32 = vmul.f32 %v11928_v39, %v14611_v19  ;;  %v4991_v25 = vmul.f32 %v11714_v43, %v14612_v44  ;;  %v14614_v30 = vld [vmem:[#allocation289_spill] sm:$0xff]  ;;  %v14617_v1 = vld [vmem:[#allocation56_spill] sm:$0xff]  ;;  %v14620_v19 = vld [vmem:[#allocation99_spill] sm:$0xff] }
 0x396   : > { %v2059_v35 = vadd.f32 %v14614_v30, %v14613_v31 }
 0x397   : > { %v3716_v20 = vpop.f32.mrf.mxu3 }
 0x398   : > { %v3405_v11 = vpop.f32.mrf.mxu2  ;;  %v3754_v58 = vadd.f32 %v3716_v20, %v3005_v36  ;;  %v5457_v36 = vmul.f32 %v11790_v5, %v14617_v1  ;;  %v11956_v5 = vpop.permute.xlu1 %5365 }
 0x399   : > { %v3465_v27 = vadd.f32 %v3405_v11, %v2716_v42  ;;  %v4468_v42 = vpop.f32.mrf.mxu1  ;;  %v14619_v11 = vld [vmem:[#allocation154_spill] sm:$0xff] }
 0x39a   : > { %v11937_v21 = vpop.f32.mrf.mxu0  ;;  %v11939_v10 = vadd.f32 %v4465_v40, %v3754_v58  ;;  %v1568_v31 = vadd.f32 %v14620_v19, %v14619_v11  ;;  %v14621_v40 = vld [vmem:[#allocation288_spill] sm:$0xff]  ;;  %v14622_v58 = vld [vmem:[#allocation273_spill] sm:$0xff] }
 0x39b   : > { %v11946_v20 = vadd.f32 %v11728_v33, %v3465_v27  ;;  %v3006_v16 = vadd.f32 %v14621_v40, %v2059_v35  ;;  %v14625_v19 = vld [vmem:[#allocation212_spill] sm:$0xff] }
 0x39c   : > { %14615 = vst [vmem:[#allocation66_spill] sm:$0xff] %v11939_v10  ;;  %8435 = vmatmul.msk.f32.gmra.mxu3 %vm1180_vm2, %v4991_v25  ;;  %8503 = vmatmul.msk.f32.gmra.mxu1 %vm1180_vm2, %v5740_v32  ;;  %v2717_v30 = vadd.f32 %v14622_v58, %v1568_v31  ;;  %v14623_v25 = vld [vmem:[#allocation163_spill] sm:$0xff]  ;;  %v14624_v10 = vld [vmem:[#allocation174_spill] sm:$0xff] }
 0x39d   : > { %14618 = vst [vmem:[#allocation23_spill] sm:$0xff] %v11946_v20  ;;  %8390 = vmatmul.msk.f32.gmra.mxu2 %vm1180_vm2, %v4702_v57  ;;  %8464 = vmatmul.msk.f32.gmra.mxu0 %vm1180_vm2, %v5457_v36  ;;  %v4992_v32 = vmul.f32 %v11813_v23, %v14623_v25  ;;  %v5741_v11 = vmul.f32 %v11956_v5, %v14624_v10  ;;  %v14626_v57 = vld [vmem:[#allocation293_spill] sm:$0xff]  ;;  %v14628_v31 = vld [vmem:[#allocation134_spill] sm:$0xff]  ;;  %v14636_v25 = vld [vmem:[#allocation180_spill] sm:$0xff] }
 0x39e   : > { %v2062_v44 = vadd.f32 %v14626_v57, %v14625_v19  ;;  %v4703_v40 = vmul.f32 %v11407_v29, %v14628_v31  ;;  %v14629_v58 = vld [vmem:[#allocation58_spill] sm:$0xff]  ;;  %v14631_v10 = vld [vmem:[#allocation161_spill] sm:$0xff]  ;;  %v14633_v29 = vld [vmem:[#allocation292_spill] sm:$0xff] }
 0x39f   : > { %v3719_v1 = vpop.f32.mrf.mxu3  ;;  %v14632_v19 = vld [vmem:[#allocation102_spill] sm:$0xff]  ;;  %v14634_v57 = vld [vmem:[#allocation275_spill] sm:$0xff] }
 0x3a0   : > { %v3408_v33 = vpop.f32.mrf.mxu2  ;;  %v3755_v27 = vadd.f32 %v3719_v1, %v3006_v16  ;;  %v5458_v16 = vmul.f32 %v11819_v62, %v14629_v58  ;;  %v11984_v62 = vpop.permute.xlu2 %5370 }
 0x3a1   : > { %v3466_v20 = vadd.f32 %v3408_v33, %v2717_v30  ;;  %v11972_v30 = vpop.permute.xlu0 %4626  ;;  %v4471_v1 = vpop.f32.mrf.mxu1 }
 0x3a2   : > { %v11964_v36 = vpop.f32.mrf.mxu0  ;;  %v11966_v35 = vadd.f32 %v4468_v42, %v3755_v27  ;;  %v1571_v42 = vadd.f32 %v14632_v19, %v14631_v10  ;;  %v3007_v27 = vadd.f32 %v14633_v29, %v2062_v44  ;;  %v5742_v10 = vmul.f32 %v11984_v62, %v14636_v25  ;;  %v14639_v29 = vld [vmem:[#allocation60_spill] sm:$0xff] }
 0x3a3   : > { %v11975_v33 = vadd.f32 %v11763_v26, %v3466_v20  ;;  %v14642_v25 = vld [vmem:[#allocation108_spill] sm:$0xff] }
 0x3a4   : > { %14627 = vst [vmem:[#allocation258_spill] sm:$0xff] %v11966_v35  ;;  %8436 = vmatmul.msk.f32.gmra.mxu3 %vm1180_vm2, %v4992_v32  ;;  %8504 = vmatmul.msk.f32.gmra.mxu1 %vm1180_vm2, %v5741_v11  ;;  %v2718_v58 = vadd.f32 %v14634_v57, %v1571_v42  ;;  %v14635_v32 = vld [vmem:[#allocation169_spill] sm:$0xff]  ;;  %v5459_v42 = vmul.f32 %v11846_v51, %v14639_v29  ;;  %v12011_v51 = vpop.permute.xlu1 %5375 }
 0x3a5   : > { %14630 = vst [vmem:[#allocation55_spill] sm:$0xff] %v11975_v33  ;;  %8391 = vmatmul.msk.f32.gmra.mxu2 %vm1180_vm2, %v4703_v40  ;;  %8465 = vmatmul.msk.f32.gmra.mxu0 %vm1180_vm2, %v5458_v16  ;;  %v4993_v11 = vmul.f32 %v11896_v34, %v14635_v32  ;;  %v14638_v16 = vld [vmem:[#allocation138_spill] sm:$0xff] }
 0x3a6   : > { %v4704_v44 = vmul.f32 %v11436_v13, %v14638_v16  ;;  %v14643_v13 = vld [vmem:[#allocation277_spill] sm:$0xff] }
 0x3a7   : > { %v3722_v35 = vpop.f32.mrf.mxu3 }
 0x3a8   : > { %v3411_v26 = vpop.f32.mrf.mxu2  ;;  %v3756_v20 = vadd.f32 %v3722_v35, %v3007_v27  ;;  %v14641_v27 = vld [vmem:[#allocation166_spill] sm:$0xff] }
 0x3a9   : > { %v3467_v33 = vadd.f32 %v3411_v26, %v2718_v58  ;;  %v5876_v57 = vpop.f32.mrf.mxu1  ;;  %v1574_v58 = vadd.f32 %v14642_v25, %v14641_v27  ;;  %v12006_v26 = vpop.permute.xlu0 %4631 }
 0x3aa   : > { %v11991_v19 = vpop.f32.mrf.mxu0  ;;  %v11993_v40 = vadd.f32 %v4471_v1, %v3756_v20 }
 0x3ab   : > { %v12000_v35 = vadd.f32 %v11798_v4, %v3467_v33  ;;  %v2719_v1 = vadd.f32 %v14643_v13, %v1574_v58  ;;  %v14644_v33 = vld [vmem:[#allocation170_spill] sm:$0xff]  ;;  %v14649_v13 = vld [vmem:[#allocation21_spill] sm:$0xff] }
 0x3ac   : > { %14637 = vst [vmem:[#allocation8_spill] sm:$0xff] %v11993_v40  ;;  %8437 = vmatmul.msk.f32.gmra.mxu3 %vm1180_vm2, %v4993_v11  ;;  %8505 = vmatmul.msk.f32.gmra.mxu1 %vm1180_vm2, %v5742_v10  ;;  %v14646_v40 = vld [vmem:[#allocation187_spill] sm:$0xff]  ;;  %v5460_v32 = vmul.f32 %v11873_v55, %v14649_v13 }
 0x3ad   : > { %14640 = vst [vmem:[#allocation100_spill] sm:$0xff] %v12000_v35  ;;  %8392 = vmatmul.msk.f32.gmra.mxu2 %vm1180_vm2, %v4704_v44  ;;  %8466 = vmatmul.msk.f32.gmra.mxu0 %vm1180_vm2, %v5459_v42  ;;  %v14645_v35 = vld [vmem:[#allocation175_spill] sm:$0xff]  ;;  %v5743_v27 = vmul.f32 %v12011_v51, %v14646_v40  ;;  %v14652_v40 = vld [vmem:[#allocation114_spill] sm:$0xff] }
 0x3ae   : > { %v4994_v10 = vmul.f32 %v11972_v30, %v14645_v35  ;;  %v14648_v42 = vld [vmem:[#allocation143_spill] sm:$0xff] }
 0x3af   : > { %v5127_v20 = vpop.f32.mrf.mxu3  ;;  %v4705_v58 = vmul.f32 %v11465_v0, %v14648_v42  ;;  %v14653_v0 = vld [vmem:[#allocation204_spill] sm:$0xff] }
 0x3b0   : > { %v3414_v4 = vpop.f32.mrf.mxu2  ;;  %v5223_v29 = vadd.f32 %v5127_v20, %v14644_v33  ;;  %v12033_v33 = vpop.permute.xlu2 %4636 }
 0x3b1   : > { %v3468_v11 = vadd.f32 %v3414_v4, %v2719_v1  ;;  %v5879_v2 = vpop.f32.mrf.mxu1  ;;  %v14651_v1 = vld [vmem:[#allocation172_spill] sm:$0xff]  ;;  %v12038_v55 = vpop.permute.xlu0 %5380 }
 0x3b2   : > { %v12018_v25 = vpop.f32.mrf.mxu0  ;;  %v12020_v44 = vadd.f32 %v5876_v57, %v5223_v29  ;;  %v1577_v4 = vadd.f32 %v14652_v40, %v14651_v1 }
 0x3b3   : > { %v12027_v20 = vadd.f32 %v11827_v37, %v3468_v11  ;;  %v14654_v11 = vld [vmem:[#allocation176_spill] sm:$0xff] }
 0x3b4   : > { %14647 = vst [vmem:[#allocation257_spill] sm:$0xff] %v12020_v44  ;;  %8438 = vmatmul.msk.f32.gmra.mxu3 %vm1180_vm2, %v4994_v10  ;;  %8506 = vmatmul.msk.f32.gmra.mxu1 %vm1180_vm2, %v5743_v27  ;;  %v2720_v57 = vadd.f32 %v14653_v0, %v1577_v4  ;;  %v14655_v44 = vld [vmem:[#allocation181_spill] sm:$0xff] }
 0x3b5   : > { %14650 = vst [vmem:[#allocation42_spill] sm:$0xff] %v12027_v20  ;;  %8393 = vmatmul.msk.f32.gmra.mxu2 %vm1180_vm2, %v4705_v58  ;;  %8467 = vmatmul.msk.f32.gmra.mxu0 %vm1180_vm2, %v5460_v32  ;;  %v4995_v27 = vmul.f32 %v12006_v26, %v14655_v44  ;;  %v14656_v20 = vld [vmem:[#allocation193_spill] sm:$0xff]  ;;  %v14658_v32 = vld [vmem:[#allocation148_spill] sm:$0xff] }
 0x3b6   : > { %v5744_v1 = vmul.f32 %v12038_v55, %v14656_v20  ;;  %v4706_v4 = vmul.f32 %v11450_v15, %v14658_v32  ;;  %v14659_v0 = vld [vmem:[#allocation25_spill] sm:$0xff]  ;;  %v14662_v20 = vld [vmem:[#allocation119_spill] sm:$0xff]  ;;  %v14669_v32 = vld [vmem:[#allocation30_spill] sm:$0xff] }
 0x3b7   : > { %v5130_v29 = vpop.f32.mrf.mxu3  ;;  %v5461_v35 = vmul.f32 %v11902_v28, %v14659_v0 }
 0x3b8   : > { %v3417_v37 = vpop.f32.mrf.mxu2  ;;  %v5224_v13 = vadd.f32 %v5130_v29, %v14654_v11  ;;  %v12060_v11 = vpop.permute.xlu1 %4641 }
 0x3b9   : > { %v3469_v10 = vadd.f32 %v3417_v37, %v2720_v57  ;;  %v5882_v42 = vpop.f32.mrf.mxu1  ;;  %v14661_v57 = vld [vmem:[#allocation178_spill] sm:$0xff]  ;;  %v12064_v15 = vpop.permute.xlu2 %5385 }
 0x3ba   : > { %v12045_v40 = vpop.f32.mrf.mxu0  ;;  %v12047_v58 = vadd.f32 %v5879_v2, %v5224_v13  ;;  %v1580_v37 = vadd.f32 %v14662_v20, %v14661_v57  ;;  %v14663_v2 = vld [vmem:[#allocation211_spill] sm:$0xff] }
 0x3bb   : > { %v12054_v29 = vadd.f32 %v11854_v8, %v3469_v10  ;;  %v14664_v10 = vld [vmem:[#allocation182_spill] sm:$0xff] }
 0x3bc   : > { %14657 = vst [vmem:[#allocation106_spill] sm:$0xff] %v12047_v58  ;;  %8439 = vmatmul.msk.f32.gmra.mxu3 %vm1180_vm2, %v4995_v27  ;;  %8507 = vmatmul.msk.f32.gmra.mxu1 %vm1180_vm2, %v5744_v1  ;;  %v2721_v28 = vadd.f32 %v14663_v2, %v1580_v37  ;;  %v14665_v58 = vld [vmem:[#allocation188_spill] sm:$0xff]  ;;  %v5462_v37 = vmul.f32 %v11928_v39, %v14669_v32 }
 0x3bd   : > { %14660 = vst [vmem:[#allocation286_spill] sm:$0xff] %v12054_v29  ;;  %8394 = vmatmul.msk.f32.gmra.mxu2 %vm1180_vm2, %v4706_v4  ;;  %8468 = vmatmul.msk.f32.gmra.mxu0 %vm1180_vm2, %v5461_v35  ;;  %v4996_v1 = vmul.f32 %v12033_v33, %v14665_v58  ;;  %v14666_v29 = vld [vmem:[#allocation199_spill] sm:$0xff]  ;;  %v14668_v35 = vld [vmem:[#allocation153_spill] sm:$0xff] }
 0x3be   : > { %v5745_v57 = vmul.f32 %v12064_v15, %v14666_v29  ;;  %v4707_v44 = vmul.f32 %v11479_v9, %v14668_v35  ;;  %v14672_v29 = vld [vmem:[#allocation123_spill] sm:$0xff] }
 0x3bf   : > { %v5133_v13 = vpop.f32.mrf.mxu3  ;;  %v14673_v9 = vld [vmem:[#allocation283_spill] sm:$0xff] }
 0x3c0   : > { %v3420_v8 = vpop.f32.mrf.mxu2  ;;  %v5225_v0 = vadd.f32 %v5133_v13, %v14664_v10  ;;  %v12087_v10 = vpop.permute.xlu0 %4646 }
 0x3c1   : > { %v3470_v27 = vadd.f32 %v3420_v8, %v2721_v28  ;;  %v5885_v2 = vpop.f32.mrf.mxu1  ;;  %v14671_v28 = vld [vmem:[#allocation184_spill] sm:$0xff]  ;;  %v12092_v39 = vpop.permute.xlu1 %5390 }
 0x3c2   : > { %v12072_v20 = vpop.f32.mrf.mxu0  ;;  %v12074_v4 = vadd.f32 %v5882_v42, %v5225_v0  ;;  %v1583_v8 = vadd.f32 %v14672_v29, %v14671_v28  ;;  %v14674_v0 = vld [vmem:[#allocation189_spill] sm:$0xff] }
 0x3c3   : > { %v12081_v13 = vadd.f32 %v11881_v54, %v3470_v27 }
 0x3c4   : > { %14667 = vst [vmem:[#allocation262_spill] sm:$0xff] %v12074_v4  ;;  %8440 = vmatmul.msk.f32.gmra.mxu3 %vm1180_vm2, %v4996_v1  ;;  %8508 = vmatmul.msk.f32.gmra.mxu1 %vm1180_vm2, %v5745_v57  ;;  %v2722_v42 = vadd.f32 %v14673_v9, %v1583_v8  ;;  %v14675_v4 = vld [vmem:[#allocation194_spill] sm:$0xff]  ;;  %v5463_v9 = vmul.f32 %v11956_v5, %v14422_v38 }
 0x3c5   : > { %14670 = vst [vmem:[#allocation57_spill] sm:$0xff] %v12081_v13  ;;  %8395 = vmatmul.msk.f32.gmra.mxu2 %vm1180_vm2, %v4707_v44  ;;  %8469 = vmatmul.msk.f32.gmra.mxu0 %vm1180_vm2, %v5462_v37  ;;  %v4997_v57 = vmul.f32 %v12060_v11, %v14675_v4  ;;  %v14676_v13 = vld [vmem:[#allocation206_spill] sm:$0xff]  ;;  %v14678_v37 = vld [vmem:[#allocation160_spill] sm:$0xff] }
 0x3c6   : > { %v5746_v28 = vmul.f32 %v12092_v39, %v14676_v13  ;;  %v4708_v8 = vmul.f32 %v11508_v3, %v14678_v37  ;;  %v14681_v13 = vld [vmem:[#allocation128_spill] sm:$0xff]  ;;  %v14682_v3 = vld [vmem:[#allocation287_spill] sm:$0xff] }
 0x3c7   : > { %v5136_v32 = vpop.f32.mrf.mxu3 }
 0x3c8   : > { %v3423_v54 = vpop.f32.mrf.mxu2  ;;  %v5226_v27 = vadd.f32 %v5136_v32, %v14674_v0  ;;  %v12114_v0 = vpop.permute.xlu2 %4651 }
 0x3c9   : > { %v3471_v1 = vadd.f32 %v3423_v54, %v2722_v42  ;;  %v5888_v58 = vpop.f32.mrf.mxu1  ;;  %v14680_v42 = vld [vmem:[#allocation191_spill] sm:$0xff]  ;;  %v12119_v38 = vpop.permute.xlu0 %5395 }
 0x3ca   : > { %v12099_v29 = vpop.f32.mrf.mxu0  ;;  %v12101_v44 = vadd.f32 %v5885_v2, %v5226_v27  ;;  %v1586_v54 = vadd.f32 %v14681_v13, %v14680_v42  ;;  %v14683_v27 = vld [vmem:[#allocation234_spill] sm:$0xff] }
 0x3cb   : > { %v12108_v32 = vadd.f32 %v11910_v53, %v3471_v1 }
 0x3cc   : > { %14677 = vst [vmem:[#allocation20_spill] sm:$0xff] %v12101_v44  ;;  %8441 = vmatmul.msk.f32.gmra.mxu3 %vm1180_vm2, %v4997_v57  ;;  %8509 = vmatmul.msk.f32.gmra.mxu1 %vm1180_vm2, %v5746_v28  ;;  %v2723_v2 = vadd.f32 %v14682_v3, %v1586_v54  ;;  %v14684_v44 = vld [vmem:[#allocation200_spill] sm:$0xff]  ;;  %v5464_v3 = vmul.f32 %v11984_v62, %v14430_v18  ;;  %v14691_v18 = vld [vmem:[#allocation291_spill] sm:$0xff] }
 0x3cd   : > { %14679 = vst [vmem:[#allocation105_spill] sm:$0xff] %v12108_v32  ;;  %8396 = vmatmul.msk.f32.gmra.mxu2 %vm1180_vm2, %v4708_v8  ;;  %8470 = vmatmul.msk.f32.gmra.mxu0 %vm1180_vm2, %v5463_v9  ;;  %v4998_v28 = vmul.f32 %v12087_v10, %v14684_v44  ;;  %v14685_v32 = vld [vmem:[#allocation213_spill] sm:$0xff] }
 0x3ce   : > { %v5747_v42 = vmul.f32 %v12119_v38, %v14685_v32  ;;  %v14687_v9 = vld [vmem:[#allocation165_spill] sm:$0xff] }
 0x3cf   : > { %v5139_v5 = vpop.f32.mrf.mxu3  ;;  %v4709_v54 = vmul.f32 %v11490_v63, %v14687_v9  ;;  %v14690_v32 = vld [vmem:[#allocation133_spill] sm:$0xff] }
 0x3d0   : > { %v3426_v53 = vpop.f32.mrf.mxu2  ;;  %v5227_v1 = vadd.f32 %v5139_v5, %v14683_v27  ;;  %v12141_v27 = vpop.permute.xlu1 %4656 }
 0x3d1   : > { %v3472_v57 = vadd.f32 %v3426_v53, %v2723_v2  ;;  %v5891_v4 = vpop.f32.mrf.mxu1  ;;  %v14689_v2 = vld [vmem:[#allocation197_spill] sm:$0xff]  ;;  %v12145_v63 = vpop.permute.xlu2 %5400 }
 0x3d2   : > { %v12126_v13 = vpop.f32.mrf.mxu0  ;;  %v12128_v8 = vadd.f32 %v5888_v58, %v5227_v1  ;;  %v1589_v53 = vadd.f32 %v14690_v32, %v14689_v2  ;;  %v14692_v1 = vld [vmem:[#allocation192_spill] sm:$0xff] }
 0x3d3   : > { %v12135_v5 = vadd.f32 %v11937_v21, %v3472_v57 }
 0x3d4   : > { %14686 = vst [vmem:[#allocation261_spill] sm:$0xff] %v12128_v8  ;;  %8442 = vmatmul.msk.f32.gmra.mxu3 %vm1180_vm2, %v4998_v28  ;;  %8510 = vmatmul.msk.f32.gmra.mxu1 %vm1180_vm2, %v5747_v42  ;;  %v2724_v62 = vadd.f32 %v14691_v18, %v1589_v53  ;;  %v14693_v8 = vld [vmem:[#allocation207_spill] sm:$0xff]  ;;  %v5465_v53 = vmul.f32 %v12011_v51, %v14438_v14  ;;  %v14700_v14 = vld [vmem:[#allocation164_spill] sm:$0xff] }
 0x3d5   : > { %14688 = vst [vmem:[#allocation41_spill] sm:$0xff] %v12135_v5  ;;  %8397 = vmatmul.msk.f32.gmra.mxu2 %vm1180_vm2, %v4709_v54  ;;  %8471 = vmatmul.msk.f32.gmra.mxu0 %vm1180_vm2, %v5464_v3  ;;  %v4999_v42 = vmul.f32 %v12114_v0, %v14693_v8  ;;  %v14694_v5 = vld [vmem:[#allocation219_spill] sm:$0xff] }
 0x3d6   : > { %v5748_v2 = vmul.f32 %v12145_v63, %v14694_v5  ;;  %v14696_v3 = vld [vmem:[#allocation171_spill] sm:$0xff]  ;;  %v14699_v5 = vld [vmem:[#allocation137_spill] sm:$0xff] }
 0x3d7   : > { %v5142_v58 = vpop.f32.mrf.mxu3  ;;  %v4710_v44 = vmul.f32 %v11519_v56, %v14696_v3 }
 0x3d8   : > { %v3429_v21 = vpop.f32.mrf.mxu2  ;;  %v5228_v57 = vadd.f32 %v5142_v58, %v14692_v1  ;;  %v12168_v1 = vpop.permute.xlu0 %4661 }
 0x3d9   : > { %v3473_v28 = vadd.f32 %v3429_v21, %v2724_v62  ;;  %v5894_v18 = vpop.f32.mrf.mxu1  ;;  %v14698_v62 = vld [vmem:[#allocation203_spill] sm:$0xff]  ;;  %v12172_v56 = vpop.permute.xlu1 %5405 }
 0x3da   : > { %v12153_v32 = vpop.f32.mrf.mxu0  ;;  %v12155_v54 = vadd.f32 %v5891_v4, %v5228_v57  ;;  %v1592_v21 = vadd.f32 %v14699_v5, %v14698_v62  ;;  %v14701_v57 = vld [vmem:[#allocation201_spill] sm:$0xff] }
 0x3db   : > { %v12162_v58 = vadd.f32 %v11964_v36, %v3473_v28 }
 0x3dc   : > { %14695 = vst [vmem:[#allocation112_spill] sm:$0xff] %v12155_v54  ;;  %8443 = vmatmul.msk.f32.gmra.mxu3 %vm1180_vm2, %v4999_v42  ;;  %8511 = vmatmul.msk.f32.gmra.mxu1 %vm1180_vm2, %v5748_v2  ;;  %v2725_v51 = vadd.f32 %v14700_v14, %v1592_v21  ;;  %v14702_v54 = vld [vmem:[#allocation214_spill] sm:$0xff]  ;;  %v5466_v21 = vmul.f32 %v12038_v55, %v14447_v59 }
 0x3dd   : > { %14697 = vst [vmem:[#allocation290_spill] sm:$0xff] %v12162_v58  ;;  %8398 = vmatmul.msk.f32.gmra.mxu2 %vm1180_vm2, %v4710_v44  ;;  %8472 = vmatmul.msk.f32.gmra.mxu0 %vm1180_vm2, %v5465_v53  ;;  %v5000_v2 = vmul.f32 %v12141_v27, %v14702_v54  ;;  %v14703_v58 = vld [vmem:[#allocation225_spill] sm:$0xff]  ;;  %v14709_v59 = vld [vmem:[#allocation54_spill] sm:$0xff] }
 0x3de   : > { %v5749_v62 = vmul.f32 %v12172_v56, %v14703_v58  ;;  %v14705_v53 = vld [vmem:[#allocation177_spill] sm:$0xff]  ;;  %v14708_v58 = vld [vmem:[#allocation142_spill] sm:$0xff] }
 0x3df   : > { %v5145_v4 = vpop.f32.mrf.mxu3  ;;  %v4711_v8 = vmul.f32 %v11548_v47, %v14705_v53 }
 0x3e0   : > { %v3432_v36 = vpop.f32.mrf.mxu2  ;;  %v5229_v28 = vadd.f32 %v5145_v4, %v14701_v57  ;;  %v12195_v57 = vpop.permute.xlu2 %4666 }
 0x3e1   : > { %v3474_v42 = vadd.f32 %v3432_v36, %v2725_v51  ;;  %v5897_v14 = vpop.f32.mrf.mxu1  ;;  %v14707_v51 = vld [vmem:[#allocation210_spill] sm:$0xff]  ;;  %v12199_v47 = vpop.permute.xlu0 %5410 }
 0x3e2   : > { %v12180_v5 = vpop.f32.mrf.mxu0  ;;  %v12182_v44 = vadd.f32 %v5894_v18, %v5229_v28  ;;  %v1595_v36 = vadd.f32 %v14708_v58, %v14707_v51  ;;  %v14710_v28 = vld [vmem:[#allocation237_spill] sm:$0xff] }
 0x3e3   : > { %v12189_v4 = vadd.f32 %v11991_v19, %v3474_v42 }
 0x3e4   : > { %14704 = vst [vmem:[#allocation265_spill] sm:$0xff] %v12182_v44  ;;  %8444 = vmatmul.msk.f32.gmra.mxu3 %vm1180_vm2, %v5000_v2  ;;  %8512 = vmatmul.msk.f32.gmra.mxu1 %vm1180_vm2, %v5749_v62  ;;  %v2726_v55 = vadd.f32 %v14709_v59, %v1595_v36  ;;  %v14711_v44 = vld [vmem:[#allocation220_spill] sm:$0xff]  ;;  %v5467_v36 = vmul.f32 %v12064_v15, %v14455_v6  ;;  %v14718_v6 = vld [vmem:[#allocation167_spill] sm:$0xff] }
 0x3e5   : > { %14706 = vst [vmem:[#allocation59_spill] sm:$0xff] %v12189_v4  ;;  %8399 = vmatmul.msk.f32.gmra.mxu2 %vm1180_vm2, %v4711_v8  ;;  %8473 = vmatmul.msk.f32.gmra.mxu0 %vm1180_vm2, %v5466_v21  ;;  %v5001_v62 = vmul.f32 %v12168_v1, %v14711_v44  ;;  %v14712_v4 = vld [vmem:[#allocation232_spill] sm:$0xff]  ;;  %v14714_v21 = vld [vmem:[#allocation183_spill] sm:$0xff] }
 0x3e6   : > { %v5750_v51 = vmul.f32 %v12199_v47, %v14712_v4  ;;  %v4712_v54 = vmul.f32 %v11631_v49, %v14714_v21  ;;  %v14717_v4 = vld [vmem:[#allocation147_spill] sm:$0xff] }
 0x3e7   : > { %v5148_v18 = vpop.f32.mrf.mxu3 }
 0x3e8   : > { %v3435_v19 = vpop.f32.mrf.mxu2  ;;  %v5230_v42 = vadd.f32 %v5148_v18, %v14710_v28  ;;  %v12222_v28 = vpop.permute.xlu1 %4671 }
 0x3e9   : > { %v3475_v2 = vadd.f32 %v3435_v19, %v2726_v55  ;;  %v5900_v59 = vpop.f32.mrf.mxu1  ;;  %v14716_v55 = vld [vmem:[#allocation217_spill] sm:$0xff]  ;;  %v12226_v49 = vpop.permute.xlu2 %5415 }
 0x3ea   : > { %v12207_v58 = vpop.f32.mrf.mxu0  ;;  %v12209_v8 = vadd.f32 %v5897_v14, %v5230_v42  ;;  %v1598_v19 = vadd.f32 %v14717_v4, %v14716_v55  ;;  %v14719_v42 = vld [vmem:[#allocation205_spill] sm:$0xff] }
 0x3eb   : > { %v12216_v18 = vadd.f32 %v12018_v25, %v3475_v2 }
 0x3ec   : > { %14713 = vst [vmem:[#allocation145_spill] sm:$0xff] %v12209_v8  ;;  %8445 = vmatmul.msk.f32.gmra.mxu3 %vm1180_vm2, %v5001_v62  ;;  %8513 = vmatmul.msk.f32.gmra.mxu1 %vm1180_vm2, %v5750_v51  ;;  %v2727_v15 = vadd.f32 %v14718_v6, %v1598_v19  ;;  %v14720_v8 = vld [vmem:[#allocation226_spill] sm:$0xff]  ;;  %v5468_v19 = vmul.f32 %v12092_v39, %v14464_v22  ;;  %v14727_v22 = vld [vmem:[#allocation231_spill] sm:$0xff] }
 0x3ed   : > { %14715 = vst [vmem:[#allocation111_spill] sm:$0xff] %v12216_v18  ;;  %8400 = vmatmul.msk.f32.gmra.mxu2 %vm1180_vm2, %v4712_v54  ;;  %8474 = vmatmul.msk.f32.gmra.mxu0 %vm1180_vm2, %v5467_v36  ;;  %v5002_v51 = vmul.f32 %v12195_v57, %v14720_v8  ;;  %v14721_v18 = vld [vmem:[#allocation238_spill] sm:$0xff] }
 0x3ee   : > { %v5751_v55 = vmul.f32 %v12226_v49, %v14721_v18  ;;  %v14723_v36 = vld [vmem:[#allocation190_spill] sm:$0xff]  ;;  %v14726_v18 = vld [vmem:[#allocation152_spill] sm:$0xff] }
 0x3ef   : > { %v5151_v14 = vpop.f32.mrf.mxu3  ;;  %v4713_v44 = vmul.f32 %v11714_v43, %v14723_v36 }
 0x3f0   : > { %v3438_v25 = vpop.f32.mrf.mxu2  ;;  %v5231_v2 = vadd.f32 %v5151_v14, %v14719_v42  ;;  %v12249_v42 = vpop.permute.xlu0 %4676 }
 0x3f1   : > { %v3476_v62 = vadd.f32 %v3438_v25, %v2727_v15  ;;  %v5903_v6 = vpop.f32.mrf.mxu1  ;;  %v14725_v15 = vld [vmem:[#allocation223_spill] sm:$0xff]  ;;  %v12253_v43 = vpop.permute.xlu1 %5420 }
 0x3f2   : > { %v12234_v4 = vpop.f32.mrf.mxu0  ;;  %v12236_v54 = vadd.f32 %v5900_v59, %v5231_v2  ;;  %v1601_v25 = vadd.f32 %v14726_v18, %v14725_v15  ;;  %v14728_v2 = vld [vmem:[#allocation215_spill] sm:$0xff] }
 0x3f3   : > { %v12243_v14 = vadd.f32 %v12045_v40, %v3476_v62 }
 0x3f4   : > { %14722 = vst [vmem:[#allocation71_spill] sm:$0xff] %v12236_v54  ;;  %8446 = vmatmul.msk.f32.gmra.mxu3 %vm1180_vm2, %v5002_v51  ;;  %8514 = vmatmul.msk.f32.gmra.mxu1 %vm1180_vm2, %v5751_v55  ;;  %v2728_v39 = vadd.f32 %v14727_v22, %v1601_v25  ;;  %v14729_v54 = vld [vmem:[#allocation233_spill] sm:$0xff]  ;;  %v5469_v25 = vmul.f32 %v12119_v38, %v14475_v61  ;;  %v14736_v61 = vld [vmem:[#allocation227_spill] sm:$0xff] }
 0x3f5   : > { %14724 = vst [vmem:[#allocation27_spill] sm:$0xff] %v12243_v14  ;;  %8401 = vmatmul.msk.f32.gmra.mxu2 %vm1180_vm2, %v4713_v44  ;;  %8475 = vmatmul.msk.f32.gmra.mxu0 %vm1180_vm2, %v5468_v19  ;;  %v5003_v55 = vmul.f32 %v12222_v28, %v14729_v54  ;;  %v14730_v14 = vld [vmem:[#allocation245_spill] sm:$0xff]  ;;  %v14732_v19 = vld [vmem:[#allocation196_spill] sm:$0xff] }
 0x3f6   : > { %v5752_v15 = vmul.f32 %v12253_v43, %v14730_v14  ;;  %v4714_v8 = vmul.f32 %v11813_v23, %v14732_v19  ;;  %v14735_v14 = vld [vmem:[#allocation159_spill] sm:$0xff] }
 0x3f7   : > { %v5154_v59 = vpop.f32.mrf.mxu3 }
 0x3f8   : > { %v3441_v40 = vpop.f32.mrf.mxu2  ;;  %v5232_v62 = vadd.f32 %v5154_v59, %v14728_v2  ;;  %v12276_v2 = vpop.permute.xlu2 %4681 }
 0x3f9   : > { %v3477_v51 = vadd.f32 %v3441_v40, %v2728_v39  ;;  %v5906_v22 = vpop.f32.mrf.mxu1  ;;  %v14734_v39 = vld [vmem:[#allocation230_spill] sm:$0xff]  ;;  %v12280_v23 = vpop.permute.xlu0 %5425 }
 0x3fa   : > { %v12261_v18 = vpop.f32.mrf.mxu0  ;;  %v12263_v44 = vadd.f32 %v5903_v6, %v5232_v62  ;;  %v1604_v40 = vadd.f32 %v14735_v14, %v14734_v39  ;;  %v14737_v62 = vld [vmem:[#allocation221_spill] sm:$0xff] }
 0x3fb   : > { %v12270_v59 = vadd.f32 %v12072_v20, %v3477_v51 }
 0x3fc   : > { %14731 = vst [vmem:[#allocation116_spill] sm:$0xff] %v12263_v44  ;;  %8447 = vmatmul.msk.f32.gmra.mxu3 %vm1180_vm2, %v5003_v55  ;;  %8515 = vmatmul.msk.f32.gmra.mxu1 %vm1180_vm2, %v5752_v15  ;;  %v2729_v38 = vadd.f32 %v14736_v61, %v1604_v40  ;;  %v14738_v44 = vld [vmem:[#allocation239_spill] sm:$0xff]  ;;  %v5470_v40 = vmul.f32 %v12145_v63, %v14486_v60  ;;  %v14744_v63 = vld [vmem:[#allocation218_spill] sm:$0xff] }
 0x3fd   : > { %14733 = vst [vmem:[#allocation294_spill] sm:$0xff] %v12270_v59  ;;  %8402 = vmatmul.msk.f32.gmra.mxu2 %vm1180_vm2, %v4714_v8  ;;  %8476 = vmatmul.msk.f32.gmra.mxu0 %vm1180_vm2, %v5469_v25  ;;  %v5004_v15 = vmul.f32 %v12249_v42, %v14738_v44  ;;  %v14739_v59 = vld [vmem:[#allocation77_spill] sm:$0xff]  ;;  %v14741_v25 = vld [vmem:[#allocation202_spill] sm:$0xff] }
 0x3fe   : > { %v5753_v39 = vmul.f32 %v12280_v23, %v14739_v59  ;;  %v4715_v54 = vmul.f32 %v11896_v34, %v14741_v25 }
 0x3ff   : > { %v5157_v6 = vpop.f32.mrf.mxu3 }
 0x400   : > { %v3444_v20 = vpop.f32.mrf.mxu2  ;;  %v5233_v51 = vadd.f32 %v5157_v6, %v14737_v62 }
 0x401   : > { %v3478_v55 = vadd.f32 %v3444_v20, %v2729_v38  ;;  %v5909_v61 = vpop.f32.mrf.mxu1  ;;  %v12301_v38 = vpop.permute.xlu1 %4686  ;;  %v14743_v20 = vld [vmem:[#allocation61_spill] sm:$0xff] }
 0x402   : > { %v12288_v14 = vpop.f32.mrf.mxu0  ;;  %v12290_v8 = vadd.f32 %v5906_v22, %v5233_v51  ;;  %v12305_v22 = vpop.permute.xlu2 %5430 }
 0x403   : > { %v12297_v6 = vadd.f32 %v12099_v29, %v3478_v55  ;;  %v14745_v29 = vld [vmem:[#allocation246_spill] sm:$0xff]  ;;  %v14746_v55 = vld [vmem:[#allocation83_spill] sm:$0xff] }
 0x404   : > { %14740 = vst [vmem:[#allocation267_spill] sm:$0xff] %v12290_v8  ;;  %8448 = vmatmul.msk.f32.gmra.mxu3 %vm1180_vm2, %v5004_v15  ;;  %8516 = vmatmul.msk.f32.gmra.mxu1 %vm1180_vm2, %v5753_v39  ;;  %v5005_v51 = vmul.f32 %v12276_v2, %v14745_v29  ;;  %v5754_v15 = vmul.f32 %v12305_v22, %v14746_v55 }
 0x405   : > { %14742 = vst [vmem:[#allocation62_spill] sm:$0xff] %v12297_v6  ;;  %8403 = vmatmul.msk.f32.gmra.mxu2 %vm1180_vm2, %v4715_v54  ;;  %8477 = vmatmul.msk.f32.gmra.mxu0 %vm1180_vm2, %v5470_v40  ;;  %v14748_v54 = vld [vmem:[#allocation209_spill] sm:$0xff]  ;;  %v5471_v6 = vmul.f32 %v12172_v56, %v14497_v7  ;;  %v14751_v56 = vld [vmem:[#allocation228_spill] sm:$0xff] }
 0x406   : > { %v4716_v40 = vmul.f32 %v11972_v30, %v14748_v54 }
 0x407   : > { %v5160_v34 = vpop.f32.mrf.mxu3 }
 0x408   : > { %v4849_v59 = vpop.f32.mrf.mxu2  ;;  %v5234_v60 = vadd.f32 %v5160_v34, %v14743_v20 }
 0x409   : > { %v4945_v62 = vadd.f32 %v4849_v59, %v14744_v63  ;;  %v5912_v44 = vpop.f32.mrf.mxu1  ;;  %v12326_v59 = vpop.permute.xlu0 %4691 }
 0x40a   : > { %v12313_v39 = vpop.f32.mrf.mxu0  ;;  %v12315_v8 = vadd.f32 %v5909_v61, %v5234_v60  ;;  %v12330_v61 = vpop.permute.xlu1 %5435  ;;  %v14750_v60 = vld [vmem:[#allocation224_spill] sm:$0xff] }
 0x40b   : > { %v12322_v34 = vadd.f32 %v12126_v13, %v4945_v62  ;;  %v14752_v13 = vld [vmem:[#allocation250_spill] sm:$0xff] }
 0x40c   : > { %14747 = vst [vmem:[#allocation10_spill] sm:$0xff] %v12315_v8  ;;  %8449 = vmatmul.msk.f32.gmra.mxu3 %vm1180_vm2, %v5005_v51  ;;  %8517 = vmatmul.msk.f32.gmra.mxu1 %vm1180_vm2, %v5754_v15  ;;  %v5006_v62 = vmul.f32 %v12301_v38, %v14752_v13  ;;  %v5755_v51 = vmul.f32 %v12330_v61, %v14445_v50 }
 0x40d   : > { %14749 = vst [vmem:[#allocation118_spill] sm:$0xff] %v12322_v34  ;;  %8404 = vmatmul.msk.f32.gmra.mxu2 %vm1180_vm2, %v4716_v40  ;;  %8478 = vmatmul.msk.f32.gmra.mxu0 %vm1180_vm2, %v5471_v6  ;;  %v14754_v40 = vld [vmem:[#allocation216_spill] sm:$0xff]  ;;  %v5472_v8 = vmul.f32 %v12199_v47, %v14507_v48  ;;  %v14757_v48 = vld [vmem:[#allocation235_spill] sm:$0xff] }
 0x40e   : > { %v4717_v6 = vmul.f32 %v12006_v26, %v14754_v40  ;;  %v14756_v26 = vld [vmem:[#allocation104_spill] sm:$0xff] }
 0x40f   : > { %v5163_v30 = vpop.f32.mrf.mxu3 }
 0x410   : > { %v4852_v20 = vpop.f32.mrf.mxu2  ;;  %v5235_v7 = vadd.f32 %v5163_v30, %v14750_v60 }
 0x411   : > { %v4946_v63 = vadd.f32 %v4852_v20, %v14751_v56  ;;  %v5915_v34 = vpop.f32.mrf.mxu1  ;;  %v12353_v50 = vpop.permute.xlu0 %5440 }
 0x412   : > { %v12338_v55 = vpop.f32.mrf.mxu0  ;;  %v12340_v15 = vadd.f32 %v5912_v44, %v5235_v7  ;;  %v12356_v7 = vpop.permute.xlu2 %4696 }
 0x413   : > { %v12347_v30 = vadd.f32 %v12153_v32, %v4946_v63  ;;  %v14758_v32 = vld [vmem:[#allocation84_spill] sm:$0xff]  ;;  %v14759_v63 = vld [vmem:[#allocation91_spill] sm:$0xff] }
 0x414   : > { %14753 = vst [vmem:[#allocation75_spill] sm:$0xff] %v12340_v15  ;;  %8450 = vmatmul.msk.f32.gmra.mxu3 %vm1180_vm2, %v5006_v62  ;;  %8518 = vmatmul.msk.f32.gmra.mxu1 %vm1180_vm2, %v5755_v51  ;;  %v5007_v56 = vmul.f32 %v12326_v59, %v14758_v32  ;;  %v5756_v62 = vmul.f32 %v12353_v50, %v14759_v63  ;;  %v14764_v63 = vld [vmem:[#allocation69_spill] sm:$0xff] }
 0x415   : > { %14755 = vst [vmem:[#allocation47_spill] sm:$0xff] %v12347_v30  ;;  %8405 = vmatmul.msk.f32.gmra.mxu2 %vm1180_vm2, %v4717_v6  ;;  %8479 = vmatmul.msk.f32.gmra.mxu0 %vm1180_vm2, %v5472_v8  ;;  %v14761_v8 = vld [vmem:[#allocation222_spill] sm:$0xff]  ;;  %v5475_v32 = vmul.f32 %v12280_v23, %v14544_v24  ;;  %v14777_v23 = vld [vmem:[#allocation35_spill] sm:$0xff] }
 0x416   : > { %v4718_v15 = vmul.f32 %v12033_v33, %v14761_v8  ;;  %v14763_v33 = vld [vmem:[#allocation64_spill] sm:$0xff] }
 0x417   : > { %v5166_v44 = vpop.f32.mrf.mxu3 }
 0x418   : > { %v4855_v20 = vpop.f32.mrf.mxu2  ;;  %v5236_v60 = vadd.f32 %v5166_v44, %v14756_v26  ;;  %v5473_v44 = vmul.f32 %v12226_v49, %v14518_v52  ;;  %v14765_v49 = vld [vmem:[#allocation88_spill] sm:$0xff] }
 0x419   : > { %v4947_v47 = vadd.f32 %v4855_v20, %v14757_v48  ;;  %v5918_v26 = vpop.f32.mrf.mxu1  ;;  %v12376_v20 = vpop.permute.xlu1 %5445 }
 0x41a   : > { %v12363_v51 = vpop.f32.mrf.mxu0  ;;  %v12365_v6 = vadd.f32 %v5915_v34, %v5236_v60 }
 0x41b   : > { %v12372_v30 = vadd.f32 %v12180_v5, %v4947_v47  ;;  %v5008_v5 = vmul.f32 %v12356_v7, %v14765_v49  ;;  %v14766_v47 = vld [vmem:[#allocation95_spill] sm:$0xff] }
 0x41c   : > { %14760 = vst [vmem:[#allocation121_spill] sm:$0xff] %v12365_v6  ;;  %8451 = vmatmul.msk.f32.gmra.mxu3 %vm1180_vm2, %v5007_v56  ;;  %8519 = vmatmul.msk.f32.gmra.mxu1 %vm1180_vm2, %v5756_v62  ;;  %v5757_v56 = vmul.f32 %v12376_v20, %v14766_v47  ;;  %v14770_v47 = vld [vmem:[#allocation241_spill] sm:$0xff] }
 0x41d   : > { %14762 = vst [vmem:[#allocation268_spill] sm:$0xff] %v12372_v30  ;;  %8406 = vmatmul.msk.f32.gmra.mxu2 %vm1180_vm2, %v4718_v15  ;;  %8480 = vmatmul.msk.f32.gmra.mxu0 %vm1180_vm2, %v5473_v44  ;;  %v14768_v30 = vld [vmem:[#allocation229_spill] sm:$0xff]  ;;  %v12392_v44 = vpop.permute.xlu2 %6039 }
 0x41e   : > { %v4719_v15 = vmul.f32 %v12060_v11, %v14768_v30 }
 0x41f   : > { %v5169_v34 = vpop.f32.mrf.mxu3 }
 0x420   : > { %v4858_v60 = vpop.f32.mrf.mxu2  ;;  %v5237_v48 = vadd.f32 %v5169_v34, %v14763_v33  ;;  %v5474_v34 = vmul.f32 %v12253_v43, %v14531_v41  ;;  %v14771_v43 = vld [vmem:[#allocation34_spill] sm:$0xff] }
 0x421   : > { %v4948_v52 = vadd.f32 %v4858_v60, %v14764_v63  ;;  %v5921_v60 = vpop.f32.mrf.mxu1  ;;  %v12401_v63 = vpop.permute.xlu0 %6044 }
 0x422   : > { %v12386_v6 = vpop.f32.mrf.mxu0  ;;  %v12388_v62 = vadd.f32 %v5918_v26, %v5237_v48  ;;  %v12405_v11 = vpop.permute.xlu1 %6788 }
 0x423   : > { %v12397_v33 = vadd.f32 %v12207_v58, %v4948_v52  ;;  %v8785_v58 = vld [vmem:[%s9480_s12 + $0x10] sm:$0xff] }
 0x424   : > { %14767 = vst [vmem:[#allocation65_spill] sm:$0xff] %v12388_v62  ;;  %8452 = vmatmul.msk.f32.gmra.mxu3 %vm1180_vm2, %v5008_v5  ;;  %8520 = vmatmul.msk.f32.gmra.mxu1 %vm1180_vm2, %v5757_v56  ;;  %v6475_v52 = vmul.f32 %v8785_v58, %v12392_v44  ;;  %v14772_v5 = vld [vmem:[#allocation98_spill] sm:$0xff] }
 0x425   : > { %14769 = vst [vmem:[#allocation18_spill] sm:$0xff] %v12397_v33  ;;  %8407 = vmatmul.msk.f32.gmra.mxu2 %vm1180_vm2, %v4719_v15  ;;  %8481 = vmatmul.msk.f32.gmra.mxu0 %vm1180_vm2, %v5474_v34  ;;  %v7224_v56 = vmul.f32 %v12405_v11, %v14772_v5  ;;  %v14774_v34 = vld [vmem:[#allocation236_spill] sm:$0xff] }
 0x426   : > { %v4720_v49 = vmul.f32 %v12087_v10, %v14774_v34 }
 0x427   : > { %v5172_v26 = vpop.f32.mrf.mxu3 }
 0x428   : > { %v4861_v48 = vpop.f32.mrf.mxu2  ;;  %v5238_v41 = vadd.f32 %v5172_v26, %v14770_v47  ;;  %v12426_v47 = vpop.permute.xlu2 %6049 }
 0x429   : > { %v4949_v62 = vadd.f32 %v4861_v48, %v14771_v43  ;;  %v5924_v26 = vpop.f32.mrf.mxu1  ;;  %v14776_v43 = vld [vmem:[#allocation110_spill] sm:$0xff] }
 0x42a   : > { %v12413_v33 = vpop.f32.mrf.mxu0  ;;  %v12415_v15 = vadd.f32 %v5921_v60, %v5238_v41  ;;  %v12430_v60 = vpop.permute.xlu0 %6793 }
 0x42b   : > { %v12422_v48 = vadd.f32 %v12234_v4, %v4949_v62  ;;  %v8786_v4 = vld [vmem:[%s9480_s12 + $0x18] sm:$0xff] }
 0x42c   : > { %14773 = vst [vmem:[#allocation155_spill] sm:$0xff] %v12415_v15  ;;  %8557 = vmatmul.msk.f32.vlgmr.msra.gmra.mxu3 %vm1180_vm2, %v6475_v52  ;;  %8625 = vmatmul.msk.f32.vlgmr.msra.gmra.mxu1 %vm1180_vm2, %v7224_v56  ;;  %v6476_v62 = vmul.f32 %v8786_v4, %v12401_v63  ;;  %v14778_v52 = vld [vmem:[#allocation101_spill] sm:$0xff] }
 0x42d   : > { %14775 = vst [vmem:[#allocation125_spill] sm:$0xff] %v12422_v48  ;;  %8408 = vmatmul.msk.f32.gmra.mxu2 %vm1180_vm2, %v4720_v49  ;;  %8482 = vmatmul.msk.f32.gmra.mxu0 %vm1180_vm2, %v5475_v32  ;;  %v7225_v5 = vmul.f32 %v12430_v60, %v14778_v52  ;;  %v14780_v32 = vld [vmem:[#allocation242_spill] sm:$0xff]  ;;  %v5476_v48 = vmul.f32 %v12305_v22, %v14556_v45  ;;  %v14783_v22 = vld [vmem:[#allocation72_spill] sm:$0xff] }
 0x42e   : > { %v4721_v15 = vmul.f32 %v12114_v0, %v14780_v32 }
 0x42f   : > { %v5175_v10 = vpop.f32.mrf.mxu3 }
 0x430   : > { %v4864_v41 = vpop.f32.mrf.mxu2  ;;  %v5239_v24 = vadd.f32 %v5175_v10, %v14776_v43  ;;  %v12451_v43 = vpop.permute.xlu1 %6054 }
 0x431   : > { %v4950_v58 = vadd.f32 %v4864_v41, %v14777_v23  ;;  %v5927_v10 = vpop.f32.mrf.mxu1  ;;  %v14782_v23 = vld [vmem:[#allocation63_spill] sm:$0xff] }
 0x432   : > { %v12438_v56 = vpop.f32.mrf.mxu0  ;;  %v12440_v49 = vadd.f32 %v5924_v26, %v5239_v24  ;;  %v12455_v26 = vpop.permute.xlu2 %6798 }
 0x433   : > { %v12447_v41 = vadd.f32 %v12261_v18, %v4950_v58  ;;  %v8787_v18 = vld [vmem:[%s9480_s12 + $0x20] sm:$0xff] }
 0x434   : > { %14779 = vst [vmem:[#allocation74_spill] sm:$0xff] %v12440_v49  ;;  %8558 = vmatmul.msk.f32.gmra.mxu3 %vm1180_vm2, %v6476_v62  ;;  %8626 = vmatmul.msk.f32.gmra.mxu1 %vm1180_vm2, %v7225_v5  ;;  %v6477_v58 = vmul.f32 %v8787_v18, %v12426_v47  ;;  %v14784_v62 = vld [vmem:[#allocation107_spill] sm:$0xff] }
 0x435   : > { %14781 = vst [vmem:[#allocation46_spill] sm:$0xff] %v12447_v41  ;;  %8409 = vmatmul.msk.f32.gmra.mxu2 %vm1180_vm2, %v4721_v15  ;;  %8483 = vmatmul.msk.f32.gmra.mxu0 %vm1180_vm2, %v5476_v48  ;;  %v7226_v52 = vmul.f32 %v12455_v26, %v14784_v62  ;;  %v14786_v48 = vld [vmem:[#allocation248_spill] sm:$0xff]  ;;  %v5477_v41 = vmul.f32 %v12330_v61, %v14568_v46  ;;  %v14789_v61 = vld [vmem:[#allocation33_spill] sm:$0xff] }
 0x436   : > { %v4722_v49 = vmul.f32 %v12141_v27, %v14786_v48 }
 0x437   : > { %v5178_v0 = vpop.f32.mrf.mxu3 }
 0x438   : > { %v4867_v24 = vpop.f32.mrf.mxu2  ;;  %v5240_v45 = vadd.f32 %v5178_v0, %v14782_v23  ;;  %v12476_v23 = vpop.permute.xlu0 %6059 }
 0x439   : > { %v4951_v4 = vadd.f32 %v4867_v24, %v14783_v22  ;;  %v5930_v0 = vpop.f32.mrf.mxu1  ;;  %v14788_v22 = vld [vmem:[#allocation247_spill] sm:$0xff] }
 0x43a   : > { %v12463_v5 = vpop.f32.mrf.mxu0  ;;  %v12465_v15 = vadd.f32 %v5927_v10, %v5240_v45  ;;  %v12480_v10 = vpop.permute.xlu1 %6803 }
 0x43b   : > { %v12472_v24 = vadd.f32 %v12288_v14, %v4951_v4  ;;  %v8788_v14 = vld [vmem:[%s9480_s12 + $0x28] sm:$0xff] }
 0x43c   : > { %14785 = vst [vmem:[#allocation126_spill] sm:$0xff] %v12465_v15  ;;  %8559 = vmatmul.msk.f32.gmra.mxu3 %vm1180_vm2, %v6477_v58  ;;  %8627 = vmatmul.msk.f32.gmra.mxu1 %vm1180_vm2, %v7226_v52  ;;  %v6478_v4 = vmul.f32 %v8788_v14, %v12451_v43  ;;  %v14790_v58 = vld [vmem:[#allocation113_spill] sm:$0xff] }
 0x43d   : > { %14787 = vst [vmem:[#allocation270_spill] sm:$0xff] %v12472_v24  ;;  %8410 = vmatmul.msk.f32.gmra.mxu2 %vm1180_vm2, %v4722_v49  ;;  %8484 = vmatmul.msk.f32.gmra.mxu0 %vm1180_vm2, %v5477_v41  ;;  %v7227_v62 = vmul.f32 %v12480_v10, %v14790_v58  ;;  %v14792_v41 = vld [vmem:[#allocation251_spill] sm:$0xff] }
 0x43e   : > { %v4723_v15 = vmul.f32 %v12168_v1, %v14792_v41  ;;  %v14793_v24 = vld [vmem:[#allocation11_spill] sm:$0xff] }
 0x43f   : > { %v5181_v27 = vpop.f32.mrf.mxu3  ;;  %v5478_v13 = vmul.f32 %v12353_v50, %v14793_v24  ;;  %v14796_v24 = vld [vmem:[#allocation39_spill] sm:$0xff] }
 0x440   : > { %v4870_v45 = vpop.f32.mrf.mxu2  ;;  %v5241_v46 = vadd.f32 %v5181_v27, %v14788_v22  ;;  %v12501_v22 = vpop.permute.xlu2 %6064 }
 0x441   : > { %v4952_v18 = vadd.f32 %v4870_v45, %v14789_v61  ;;  %v5933_v27 = vpop.f32.mrf.mxu1  ;;  %v14795_v61 = vld [vmem:[#allocation13_spill] sm:$0xff] }
 0x442   : > { %v12488_v52 = vpop.f32.mrf.mxu0  ;;  %v12490_v49 = vadd.f32 %v5930_v0, %v5241_v46  ;;  %v12505_v0 = vpop.permute.xlu0 %6808 }
 0x443   : > { %v12497_v45 = vadd.f32 %v12313_v39, %v4952_v18  ;;  %v8789_v39 = vld [vmem:[%s9480_s12 + $0x30] sm:$0xff] }
 0x444   : > { %14791 = vst [vmem:[#allocation70_spill] sm:$0xff] %v12490_v49  ;;  %8560 = vmatmul.msk.f32.gmra.mxu3 %vm1180_vm2, %v6478_v4  ;;  %8628 = vmatmul.msk.f32.gmra.mxu1 %vm1180_vm2, %v7227_v62  ;;  %v6479_v18 = vmul.f32 %v8789_v39, %v12476_v23  ;;  %v14797_v4 = vld [vmem:[#allocation117_spill] sm:$0xff] }
 0x445   : > { %14794 = vst [vmem:[#allocation68_spill] sm:$0xff] %v12497_v45  ;;  %8411 = vmatmul.msk.f32.gmra.mxu2 %vm1180_vm2, %v4723_v15  ;;  %8485 = vmatmul.msk.f32.gmra.mxu0 %vm1180_vm2, %v5478_v13  ;;  %v7228_v58 = vmul.f32 %v12505_v0, %v14797_v4  ;;  %v14799_v13 = vld [vmem:[#allocation253_spill] sm:$0xff]  ;;  %v14800_v45 = vld [vmem:[#allocation14_spill] sm:$0xff] }
 0x446   : > { %v4724_v49 = vmul.f32 %v12195_v57, %v14799_v13  ;;  %v5479_v41 = vmul.f32 %v12376_v20, %v14800_v45  ;;  %v14803_v45 = vld [vmem:[#allocation79_spill] sm:$0xff] }
 0x447   : > { %v5184_v1 = vpop.f32.mrf.mxu3 }
 0x448   : > { %v4873_v46 = vpop.f32.mrf.mxu2  ;;  %v5242_v50 = vadd.f32 %v5184_v1, %v14795_v61  ;;  %v12526_v61 = vpop.permute.xlu1 %6069 }
 0x449   : > { %v4953_v14 = vadd.f32 %v4873_v46, %v14796_v24  ;;  %v5936_v1 = vpop.f32.mrf.mxu1  ;;  %v14802_v24 = vld [vmem:[#allocation244_spill] sm:$0xff] }
 0x44a   : > { %v12513_v62 = vpop.f32.mrf.mxu0  ;;  %v12515_v15 = vadd.f32 %v5933_v27, %v5242_v50  ;;  %v12530_v27 = vpop.permute.xlu2 %6813 }
 0x44b   : > { %v12522_v46 = vadd.f32 %v12338_v55, %v4953_v14  ;;  %v8790_v55 = vld [vmem:[%s9480_s12 + $0x38] sm:$0xff] }
 0x44c   : > { %14798 = vst [vmem:[#allocation22_spill] sm:$0xff] %v12515_v15  ;;  %8561 = vmatmul.msk.f32.gmra.mxu3 %vm1180_vm2, %v6479_v18  ;;  %8629 = vmatmul.msk.f32.gmra.mxu1 %vm1180_vm2, %v7228_v58  ;;  %v6480_v14 = vmul.f32 %v8790_v55, %v12501_v22  ;;  %v14804_v18 = vld [vmem:[#allocation122_spill] sm:$0xff] }
 0x44d   : > { %14801 = vst [vmem:[#allocation24_spill] sm:$0xff] %v12522_v46  ;;  %8412 = vmatmul.msk.f32.gmra.mxu2 %vm1180_vm2, %v4724_v49  ;;  %8486 = vmatmul.msk.f32.gmra.mxu0 %vm1180_vm2, %v5479_v41  ;;  %v7229_v4 = vmul.f32 %v12530_v27, %v14804_v18  ;;  %v14806_v41 = vld [vmem:[#allocation255_spill] sm:$0xff]  ;;  %v6946_v46 = vmul.f32 %v12405_v11, %v14604_v12 }
 0x44e   : > { %v4725_v15 = vmul.f32 %v12222_v28, %v14806_v41  ;;  %v14809_v11 = vld [vmem:[#allocation19_spill] sm:$0xff] }
 0x44f   : > { %v5187_v57 = vpop.f32.mrf.mxu3 }
 0x450   : > { %v4876_v50 = vpop.f32.mrf.mxu2  ;;  %v5243_v20 = vadd.f32 %v5187_v57, %v14802_v24  ;;  %v12551_v24 = vpop.permute.xlu0 %6074 }
 0x451   : > { %v4954_v39 = vadd.f32 %v4876_v50, %v14803_v45  ;;  %v5939_v57 = vpop.f32.mrf.mxu1  ;;  %v14808_v45 = vld [vmem:[#allocation44_spill] sm:$0xff] }
 0x452   : > { %v12538_v58 = vpop.f32.mrf.mxu0  ;;  %v12540_v49 = vadd.f32 %v5936_v1, %v5243_v20  ;;  %v12555_v1 = vpop.permute.xlu1 %6818 }
 0x453   : > { %v12547_v50 = vadd.f32 %v12363_v51, %v4954_v39  ;;  %v8791_v51 = vld [vmem:[%s9480_s12 + $0x40] sm:$0xff] }
 0x454   : > { %14805 = vst [vmem:[#allocation130_spill] sm:$0xff] %v12540_v49  ;;  %8562 = vmatmul.msk.f32.gmra.mxu3 %vm1180_vm2, %v6480_v14  ;;  %8630 = vmatmul.msk.f32.gmra.mxu1 %vm1180_vm2, %v7229_v4  ;;  %v6481_v39 = vmul.f32 %v8791_v51, %v12526_v61  ;;  %v14810_v14 = vld [vmem:[#allocation127_spill] sm:$0xff] }
 0x455   : > { %14807 = vst [vmem:[#allocation76_spill] sm:$0xff] %v12547_v50  ;;  %8413 = vmatmul.msk.f32.gmra.mxu2 %vm1180_vm2, %v4725_v15  ;;  %8591 = vmatmul.msk.f32.vlgmr.msra.gmra.mxu0 %vm1180_vm2, %v6946_v46  ;;  %v7230_v18 = vmul.f32 %v12555_v1, %v14810_v14  ;;  %v14812_v46 = vld [vmem:[#allocation259_spill] sm:$0xff]  ;;  %v6947_v50 = vmul.f32 %v12430_v60, %v14616_v17  ;;  %v14815_v60 = vld [vmem:[#allocation5_spill] sm:$0xff] }
 0x456   : > { %v4726_v49 = vmul.f32 %v12249_v42, %v14812_v46 }
 0x457   : > { %v5190_v28 = vpop.f32.mrf.mxu3 }
 0x458   : > { %v4879_v20 = vpop.f32.mrf.mxu2  ;;  %v5244_v12 = vadd.f32 %v5190_v28, %v14808_v45  ;;  %v12576_v45 = vpop.permute.xlu2 %6079 }
 0x459   : > { %v4955_v55 = vadd.f32 %v4879_v20, %v14809_v11  ;;  %v5942_v28 = vpop.f32.mrf.mxu1  ;;  %v14814_v11 = vld [vmem:[#allocation85_spill] sm:$0xff] }
 0x45a   : > { %v12563_v4 = vpop.f32.mrf.mxu0  ;;  %v12565_v15 = vadd.f32 %v5939_v57, %v5244_v12  ;;  %v12580_v57 = vpop.permute.xlu0 %6823 }
 0x45b   : > { %v12572_v20 = vadd.f32 %v12386_v6, %v4955_v55  ;;  %v8792_v6 = vld [vmem:[%s9480_s12 + $0x48] sm:$0xff] }
 0x45c   : > { %14811 = vst [vmem:[#allocation254_spill] sm:$0xff] %v12565_v15  ;;  %8563 = vmatmul.msk.f32.gmra.mxu3 %vm1180_vm2, %v6481_v39  ;;  %8631 = vmatmul.msk.f32.gmra.mxu1 %vm1180_vm2, %v7230_v18  ;;  %v6482_v55 = vmul.f32 %v8792_v6, %v12551_v24  ;;  %v14816_v39 = vld [vmem:[#allocation132_spill] sm:$0xff] }
 0x45d   : > { %14813 = vst [vmem:[#allocation131_spill] sm:$0xff] %v12572_v20  ;;  %8414 = vmatmul.msk.f32.gmra.mxu2 %vm1180_vm2, %v4726_v49  ;;  %8592 = vmatmul.msk.f32.gmra.mxu0 %vm1180_vm2, %v6947_v50  ;;  %v7231_v14 = vmul.f32 %v12580_v57, %v14816_v39  ;;  %v14818_v50 = vld [vmem:[#allocation263_spill] sm:$0xff]  ;;  %v6948_v20 = vmul.f32 %v12455_v26, %v14628_v31  ;;  %v14821_v26 = vld [vmem:[#allocation38_spill] sm:$0xff] }
 0x45e   : > { %v4727_v15 = vmul.f32 %v12276_v2, %v14818_v50 }
 0x45f   : > { %v5193_v42 = vpop.f32.mrf.mxu3 }
 0x460   : > { %v4882_v12 = vpop.f32.mrf.mxu2  ;;  %v5245_v17 = vadd.f32 %v5193_v42, %v14814_v11  ;;  %v12601_v11 = vpop.permute.xlu1 %6084 }
 0x461   : > { %v4956_v51 = vadd.f32 %v4882_v12, %v14815_v60  ;;  %v5945_v42 = vpop.f32.mrf.mxu1  ;;  %v14820_v60 = vld [vmem:[#allocation249_spill] sm:$0xff] }
 0x462   : > { %v12588_v18 = vpop.f32.mrf.mxu0  ;;  %v12590_v49 = vadd.f32 %v5942_v28, %v5245_v17  ;;  %v12605_v28 = vpop.permute.xlu2 %6828 }
 0x463   : > { %v12597_v12 = vadd.f32 %v12413_v33, %v4956_v51  ;;  %v8793_v33 = vld [vmem:[%s9480_s12 + $0x50] sm:$0xff] }
 0x464   : > { %14817 = vst [vmem:[#allocation173_spill] sm:$0xff] %v12590_v49  ;;  %8564 = vmatmul.msk.f32.gmra.mxu3 %vm1180_vm2, %v6482_v55  ;;  %8632 = vmatmul.msk.f32.gmra.mxu1 %vm1180_vm2, %v7231_v14  ;;  %v6483_v51 = vmul.f32 %v8793_v33, %v12576_v45  ;;  %v14822_v55 = vld [vmem:[#allocation136_spill] sm:$0xff] }
 0x465   : > { %14819 = vst [vmem:[#allocation272_spill] sm:$0xff] %v12597_v12  ;;  %8415 = vmatmul.msk.f32.gmra.mxu2 %vm1180_vm2, %v4727_v15  ;;  %8593 = vmatmul.msk.f32.gmra.mxu0 %vm1180_vm2, %v6948_v20  ;;  %v7232_v39 = vmul.f32 %v12605_v28, %v14822_v55  ;;  %v14824_v20 = vld [vmem:[#allocation6_spill] sm:$0xff]  ;;  %v6949_v12 = vmul.f32 %v12480_v10, %v14638_v16  ;;  %v14827_v10 = vld [vmem:[#allocation252_spill] sm:$0xff] }
 0x466   : > { %v4728_v49 = vmul.f32 %v12301_v38, %v14824_v20 }
 0x467   : > { %v5196_v2 = vpop.f32.mrf.mxu3 }
 0x468   : > { %v4885_v17 = vpop.f32.mrf.mxu2  ;;  %v5246_v31 = vadd.f32 %v5196_v2, %v14820_v60  ;;  %v12626_v60 = vpop.permute.xlu0 %6089 }
 0x469   : > { %v4957_v6 = vadd.f32 %v4885_v17, %v14821_v26  ;;  %v5948_v2 = vpop.f32.mrf.mxu1  ;;  %v14826_v26 = vld [vmem:[#allocation87_spill] sm:$0xff] }
 0x46a   : > { %v12613_v14 = vpop.f32.mrf.mxu0  ;;  %v12615_v15 = vadd.f32 %v5945_v42, %v5246_v31  ;;  %v12630_v42 = vpop.permute.xlu1 %6833 }
 0x46b   : > { %v12622_v17 = vadd.f32 %v12438_v56, %v4957_v6  ;;  %v8794_v56 = vld [vmem:[%s9480_s12 + $0x58] sm:$0xff] }
 0x46c   : > { %14823 = vst [vmem:[#allocation73_spill] sm:$0xff] %v12615_v15  ;;  %8565 = vmatmul.msk.f32.gmra.mxu3 %vm1180_vm2, %v6483_v51  ;;  %8633 = vmatmul.msk.f32.gmra.mxu1 %vm1180_vm2, %v7232_v39  ;;  %v6484_v6 = vmul.f32 %v8794_v56, %v12601_v11  ;;  %v14828_v51 = vld [vmem:[#allocation140_spill] sm:$0xff] }
 0x46d   : > { %14825 = vst [vmem:[#allocation26_spill] sm:$0xff] %v12622_v17  ;;  %8416 = vmatmul.msk.f32.gmra.mxu2 %vm1180_vm2, %v4728_v49  ;;  %8594 = vmatmul.msk.f32.gmra.mxu0 %vm1180_vm2, %v6949_v12  ;;  %v7233_v55 = vmul.f32 %v12630_v42, %v14828_v51  ;;  %v14830_v12 = vld [vmem:[#allocation103_spill] sm:$0xff] }
 0x46e   : > { %v4729_v15 = vmul.f32 %v12326_v59, %v14830_v12  ;;  %v14831_v17 = vld [vmem:[#allocation143_spill] sm:$0xff] }
 0x46f   : > { %v5199_v38 = vpop.f32.mrf.mxu3  ;;  %v6950_v20 = vmul.f32 %v12505_v0, %v14831_v17  ;;  %v14834_v17 = vld [vmem:[#allocation17_spill] sm:$0xff] }
 0x470   : > { %v4888_v31 = vpop.f32.mrf.mxu2  ;;  %v5247_v16 = vadd.f32 %v5199_v38, %v14826_v26  ;;  %v12651_v26 = vpop.permute.xlu2 %6094 }
 0x471   : > { %v4958_v33 = vadd.f32 %v4888_v31, %v14827_v10  ;;  %v5951_v38 = vpop.f32.mrf.mxu1  ;;  %v14833_v10 = vld [vmem:[#allocation48_spill] sm:$0xff] }
 0x472   : > { %v12638_v39 = vpop.f32.mrf.mxu0  ;;  %v12640_v49 = vadd.f32 %v5948_v2, %v5247_v16  ;;  %v12655_v2 = vpop.permute.xlu0 %6838 }
 0x473   : > { %v12647_v31 = vadd.f32 %v12463_v5, %v4958_v33  ;;  %v8795_v5 = vld [vmem:[%s9480_s12 + $0x60] sm:$0xff] }
 0x474   : > { %14829 = vst [vmem:[#allocation12_spill] sm:$0xff] %v12640_v49  ;;  %8566 = vmatmul.msk.f32.gmra.mxu3 %vm1180_vm2, %v6484_v6  ;;  %8634 = vmatmul.msk.f32.gmra.mxu1 %vm1180_vm2, %v7233_v55  ;;  %v6485_v33 = vmul.f32 %v8795_v5, %v12626_v60  ;;  %v14835_v6 = vld [vmem:[#allocation146_spill] sm:$0xff] }
 0x475   : > { %14832 = vst [vmem:[#allocation32_spill] sm:$0xff] %v12647_v31  ;;  %8417 = vmatmul.msk.f32.gmra.mxu2 %vm1180_vm2, %v4729_v15  ;;  %8595 = vmatmul.msk.f32.gmra.mxu0 %vm1180_vm2, %v6950_v20  ;;  %v7234_v51 = vmul.f32 %v12655_v2, %v14835_v6  ;;  %v14837_v20 = vld [vmem:[#allocation109_spill] sm:$0xff]  ;;  %v14838_v31 = vld [vmem:[#allocation148_spill] sm:$0xff] }
 0x476   : > { %v4730_v49 = vmul.f32 %v12356_v7, %v14837_v20  ;;  %v6951_v12 = vmul.f32 %v12530_v27, %v14838_v31  ;;  %v14840_v27 = vld [vmem:[#allocation90_spill] sm:$0xff] }
 0x477   : > { %v5202_v59 = vpop.f32.mrf.mxu3 }
 0x478   : > { %v4891_v16 = vpop.f32.mrf.mxu2  ;;  %v5248_v0 = vadd.f32 %v5202_v59, %v14833_v10  ;;  %v12676_v10 = vpop.permute.xlu1 %6099 }
 0x479   : > { %v4959_v56 = vadd.f32 %v4891_v16, %v14834_v17  ;;  %v5954_v59 = vpop.f32.mrf.mxu1  ;;  %v14841_v17 = vld [vmem:[#allocation67_spill] sm:$0xff] }
 0x47a   : > { %v12663_v55 = vpop.f32.mrf.mxu0  ;;  %v12665_v15 = vadd.f32 %v5951_v38, %v5248_v0  ;;  %v12680_v38 = vpop.permute.xlu2 %6843 }
 0x47b   : > { %v12672_v16 = vadd.f32 %v12488_v52, %v4959_v56  ;;  %v8796_v56 = vld [vmem:[%s9480_s12 + $0x68] sm:$0xff] }
 0x47c   : > { %14836 = vst [vmem:[#allocation81_spill] sm:$0xff] %v12665_v15  ;;  %8567 = vmatmul.msk.f32.gmra.mxu3 %vm1180_vm2, %v6485_v33  ;;  %8635 = vmatmul.msk.f32.gmra.mxu1 %vm1180_vm2, %v7234_v51  ;;  %v6486_v5 = vmul.f32 %v8796_v56, %v12651_v26  ;;  %v14842_v33 = vld [vmem:[#allocation151_spill] sm:$0xff] }
 0x47d   : > { %14839 = vst [vmem:[#allocation256_spill] sm:$0xff] %v12672_v16  ;;  %8418 = vmatmul.msk.f32.gmra.mxu2 %vm1180_vm2, %v4730_v49  ;;  %8596 = vmatmul.msk.f32.gmra.mxu0 %vm1180_vm2, %v6951_v12  ;;  %v7235_v6 = vmul.f32 %v12680_v38, %v14842_v33  ;;  %v8797_v49 = vld [vmem:[%s8974_s19 + $0x10] sm:$0xff]  ;;  %v6952_v16 = vmul.f32 %v12555_v1, %v14668_v35  ;;  %v14844_v35 = vld [vmem:[#allocation37_spill] sm:$0xff] }
 0x47e   : > { %v6197_v12 = vmul.f32 %v8797_v49, %v12392_v44 }
 0x47f   : > { %v5205_v7 = vpop.f32.mrf.mxu3 }
 0x480   : > { %v4894_v0 = vpop.f32.mrf.mxu2  ;;  %v5249_v31 = vadd.f32 %v5205_v7, %v14840_v27  ;;  %v12701_v27 = vpop.permute.xlu0 %6104 }
 0x481   : > { %v4960_v52 = vadd.f32 %v4894_v0, %v14841_v17  ;;  %v5957_v7 = vpop.f32.mrf.mxu1  ;;  %v14845_v17 = vld [vmem:[#allocation52_spill] sm:$0xff] }
 0x482   : > { %v12688_v51 = vpop.f32.mrf.mxu0  ;;  %v12690_v15 = vadd.f32 %v5954_v59, %v5249_v31  ;;  %v12705_v59 = vpop.permute.xlu1 %6848 }
 0x483   : > { %v12697_v0 = vadd.f32 %v12513_v62, %v4960_v52  ;;  %v8798_v52 = vld [vmem:[%s9480_s12 + $0x70] sm:$0xff] }
 0x484   : > { %14843 = vst [vmem:[#allocation135_spill] sm:$0xff] %v12690_v15  ;;  %8568 = vmatmul.msk.f32.gmra.mxu3 %vm1180_vm2, %v6486_v5  ;;  %8636 = vmatmul.msk.f32.gmra.mxu1 %vm1180_vm2, %v7235_v6  ;;  %v6487_v56 = vmul.f32 %v8798_v52, %v12676_v10  ;;  %v14846_v5 = vld [vmem:[#allocation158_spill] sm:$0xff]  ;;  %v6953_v15 = vmul.f32 %v12580_v57, %v14678_v37  ;;  %v14848_v37 = vld [vmem:[#allocation16_spill] sm:$0xff] }
 0x485   : > { %8523 = vmatmul.msk.f32.vlgmr.msra.gmra.mxu2 %vm1180_vm2, %v6197_v12  ;;  %8597 = vmatmul.msk.f32.gmra.mxu0 %vm1180_vm2, %v6952_v16  ;;  %v7236_v33 = vmul.f32 %v12705_v59, %v14846_v5  ;;  %v8799_v16 = vld [vmem:[%s8974_s19 + $0x18] sm:$0xff] }
 0x486   : > { %v6198_v12 = vmul.f32 %v8799_v16, %v12401_v63 }
 0x487   : > { %v5208_v44 = vpop.f32.mrf.mxu3 }
 0x488   : > { %v4897_v31 = vpop.f32.mrf.mxu2  ;;  %v5250_v1 = vadd.f32 %v5208_v44, %v14844_v35  ;;  %v12726_v35 = vpop.permute.xlu2 %6109 }
 0x489   : > { %v4961_v62 = vadd.f32 %v4897_v31, %v14845_v17  ;;  %v5960_v44 = vpop.f32.mrf.mxu1  ;;  %v14849_v17 = vld [vmem:[#allocation94_spill] sm:$0xff] }
 0x48a   : > { %v12713_v6 = vpop.f32.mrf.mxu0  ;;  %v12715_v49 = vadd.f32 %v5957_v7, %v5250_v1  ;;  %v12730_v7 = vpop.permute.xlu0 %6853 }
 0x48b   : > { %v12722_v31 = vadd.f32 %v12538_v58, %v4961_v62  ;;  %v8800_v62 = vld [vmem:[%s9480_s12 + $0x78] sm:$0xff] }
 0x48c   : > { %14847 = vst [vmem:[#allocation179_spill] sm:$0xff] %v12715_v49  ;;  %8569 = vmatmul.msk.f32.gmra.mxu3 %vm1180_vm2, %v6487_v56  ;;  %8637 = vmatmul.msk.f32.gmra.mxu1 %vm1180_vm2, %v7236_v33  ;;  %v6488_v52 = vmul.f32 %v8800_v62, %v12701_v27  ;;  %v14850_v56 = vld [vmem:[#allocation163_spill] sm:$0xff]  ;;  %v6954_v49 = vmul.f32 %v12605_v28, %v14687_v9  ;;  %v14852_v9 = vld [vmem:[#allocation66_spill] sm:$0xff] }
 0x48d   : > { %8524 = vmatmul.msk.f32.gmra.mxu2 %vm1180_vm2, %v6198_v12  ;;  %8598 = vmatmul.msk.f32.gmra.mxu0 %vm1180_vm2, %v6953_v15  ;;  %v7237_v5 = vmul.f32 %v12730_v7, %v14850_v56  ;;  %v8801_v15 = vld [vmem:[%s8974_s19 + $0x20] sm:$0xff] }
 0x48e   : > { %v6199_v12 = vmul.f32 %v8801_v15, %v12426_v47  ;;  %v14854_v56 = vld [vmem:[#allocation169_spill] sm:$0xff] }
 0x48f   : > { %v5211_v63 = vpop.f32.mrf.mxu3 }
 0x490   : > { %v4900_v1 = vpop.f32.mrf.mxu2  ;;  %v5251_v57 = vadd.f32 %v5211_v63, %v14848_v37 }
 0x491   : > { %v4962_v58 = vadd.f32 %v4900_v1, %v14849_v17  ;;  %v12749_v1 = vpop.permute.xlu1 %6114  ;;  %v5963_v37 = vpop.f32.mrf.mxu1 }
 0x492   : > { %v12738_v33 = vpop.f32.mrf.mxu0  ;;  %v12740_v16 = vadd.f32 %v5960_v44, %v5251_v57  ;;  %v12755_v44 = vpop.permute.xlu2 %6858 }
 0x493   : > { %v12747_v63 = vadd.f32 %v12563_v4, %v4962_v58  ;;  %v14853_v4 = vld [vmem:[#allocation23_spill] sm:$0xff]  ;;  %v8802_v58 = vld [vmem:[%s9480_s12 + $0x80] sm:$0xff] }
 0x494   : > { %14851 = vst [vmem:[#allocation274_spill] sm:$0xff] %v12740_v16  ;;  %8570 = vmatmul.msk.f32.gmra.mxu3 %vm1180_vm2, %v6488_v52  ;;  %8638 = vmatmul.msk.f32.gmra.mxu1 %vm1180_vm2, %v7237_v5  ;;  %v6489_v62 = vmul.f32 %v8802_v58, %v12726_v35  ;;  %v7238_v52 = vmul.f32 %v12755_v44, %v14854_v56 }
 0x495   : > { %8525 = vmatmul.msk.f32.gmra.mxu2 %vm1180_vm2, %v6199_v12  ;;  %8599 = vmatmul.msk.f32.gmra.mxu0 %vm1180_vm2, %v6954_v49  ;;  %v8803_v49 = vld [vmem:[%s8974_s19 + $0x28] sm:$0xff]  ;;  %v6955_v16 = vmul.f32 %v12630_v42, %v14696_v3 }
 0x496   : > { %v6200_v12 = vmul.f32 %v8803_v49, %v12451_v43  ;;  %v14856_v3 = vld [vmem:[#allocation258_spill] sm:$0xff] }
 0x497   : > { %v5214_v47 = vpop.f32.mrf.mxu3 }
 0x498   : > { %v4903_v57 = vpop.f32.mrf.mxu2  ;;  %v5252_v28 = vadd.f32 %v5214_v47, %v14852_v9 }
 0x499   : > { %v4963_v17 = vadd.f32 %v4903_v57, %v14853_v4  ;;  %v12776_v57 = vpop.permute.xlu0 %6119  ;;  %v5966_v43 = vpop.f32.mrf.mxu1 }
 0x49a   : > { %v12763_v5 = vpop.f32.mrf.mxu0  ;;  %v12765_v15 = vadd.f32 %v5963_v37, %v5252_v28  ;;  %v12780_v37 = vpop.permute.xlu1 %6863 }
 0x49b   : > { %v12772_v47 = vadd.f32 %v12588_v18, %v4963_v17  ;;  %v14857_v18 = vld [vmem:[#allocation55_spill] sm:$0xff]  ;;  %v8804_v17 = vld [vmem:[%s9480_s12 + $0x88] sm:$0xff] }
 0x49c   : > { %14855 = vst [vmem:[#allocation78_spill] sm:$0xff] %v12765_v15  ;;  %8571 = vmatmul.msk.f32.gmra.mxu3 %vm1180_vm2, %v6489_v62  ;;  %8639 = vmatmul.msk.f32.gmra.mxu1 %vm1180_vm2, %v7238_v52  ;;  %v6490_v58 = vmul.f32 %v8804_v17, %v12749_v1  ;;  %v14858_v62 = vld [vmem:[#allocation175_spill] sm:$0xff]  ;;  %v6956_v15 = vmul.f32 %v12655_v2, %v14705_v53 }
 0x49d   : > { %8526 = vmatmul.msk.f32.gmra.mxu2 %vm1180_vm2, %v6200_v12  ;;  %8600 = vmatmul.msk.f32.gmra.mxu0 %vm1180_vm2, %v6955_v16  ;;  %v7239_v56 = vmul.f32 %v12780_v37, %v14858_v62  ;;  %v8805_v16 = vld [vmem:[%s8974_s19 + $0x30] sm:$0xff] }
 0x49e   : > { %v6201_v12 = vmul.f32 %v8805_v16, %v12476_v23 }
 0x49f   : > { %v5217_v9 = vpop.f32.mrf.mxu3 }
 0x4a0   : > { %v4906_v28 = vpop.f32.mrf.mxu2  ;;  %v5253_v42 = vadd.f32 %v5217_v9, %v14856_v3 }
 0x4a1   : > { %v4964_v4 = vadd.f32 %v4906_v28, %v14857_v18  ;;  %v12801_v28 = vpop.permute.xlu2 %6124  ;;  %v5969_v2 = vpop.f32.mrf.mxu1 }
 0x4a2   : > { %v12788_v52 = vpop.f32.mrf.mxu0  ;;  %v12790_v49 = vadd.f32 %v5966_v43, %v5253_v42  ;;  %v12805_v43 = vpop.permute.xlu0 %6868  ;;  %v14861_v42 = vld [vmem:[#allocation8_spill] sm:$0xff] }
 0x4a3   : > { %v12797_v9 = vadd.f32 %v12613_v14, %v4964_v4  ;;  %v14862_v14 = vld [vmem:[#allocation100_spill] sm:$0xff]  ;;  %v8806_v4 = vld [vmem:[%s9480_s12 + $0x90] sm:$0xff] }
 0x4a4   : > { %14859 = vst [vmem:[#allocation31_spill] sm:$0xff] %v12790_v49  ;;  %8572 = vmatmul.msk.f32.gmra.mxu3 %vm1180_vm2, %v6490_v58  ;;  %8640 = vmatmul.msk.f32.gmra.mxu1 %vm1180_vm2, %v7239_v56  ;;  %v6491_v17 = vmul.f32 %v8806_v4, %v12776_v57  ;;  %v14863_v58 = vld [vmem:[#allocation181_spill] sm:$0xff]  ;;  %v8808_v4 = vld [vmem:[%s9480_s12 + $0x98] sm:$0xff]  ;;  %v8819_v49 = vld [vmem:[%s8974_s19 + $0x68] sm:$0xff] }
 0x4a5   : > { %14860 = vst [vmem:[#allocation29_spill] sm:$0xff] %v12797_v9  ;;  %8527 = vmatmul.msk.f32.gmra.mxu2 %vm1180_vm2, %v6201_v12  ;;  %8601 = vmatmul.msk.f32.gmra.mxu0 %vm1180_vm2, %v6956_v15  ;;  %v7240_v62 = vmul.f32 %v12805_v43, %v14863_v58  ;;  %v8807_v15 = vld [vmem:[%s8974_s19 + $0x38] sm:$0xff] }
 0x4a6   : > { %v6202_v12 = vmul.f32 %v8807_v15, %v12501_v22  ;;  %v14866_v22 = vld [vmem:[#allocation42_spill] sm:$0xff] }
 0x4a7   : > { %v5220_v23 = vpop.f32.mrf.mxu3 }
 0x4a8   : > { %v4909_v3 = vpop.f32.mrf.mxu2  ;;  %v5254_v53 = vadd.f32 %v5220_v23, %v14861_v42  ;;  %v6957_v23 = vmul.f32 %v12680_v38, %v14714_v21  ;;  %v12826_v42 = vpop.permute.xlu1 %6129  ;;  %v6492_v21 = vmul.f32 %v8808_v4, %v12801_v28  ;;  %v8810_v4 = vld [vmem:[%s9480_s12 + $0xa0] sm:$0xff] }
 0x4a9   : > { %v4965_v18 = vadd.f32 %v4909_v3, %v14862_v14 }
 0x4aa   : > { %v12813_v56 = vpop.f32.mrf.mxu0  ;;  %v12815_v16 = vadd.f32 %v5969_v2, %v5254_v53  ;;  %v12830_v53 = vpop.permute.xlu2 %6873 }
 0x4ab   : > { %v12822_v3 = vadd.f32 %v12638_v39, %v4965_v18  ;;  %v14867_v39 = vld [vmem:[#allocation188_spill] sm:$0xff] }
 0x4ac   : > { %14864 = vst [vmem:[#allocation141_spill] sm:$0xff] %v12815_v16  ;;  %8573 = vmatmul.msk.f32.gmra.mxu3 %vm1180_vm2, %v6491_v17  ;;  %8641 = vmatmul.msk.f32.gmra.mxu1 %vm1180_vm2, %v7240_v62  ;;  %v7241_v38 = vmul.f32 %v12830_v53, %v14867_v39  ;;  %v8809_v17 = vld [vmem:[%s8974_s19 + $0x40] sm:$0xff]  ;;  %v6958_v62 = vmul.f32 %v12705_v59, %v14723_v36 }
 0x4ad   : > { %14865 = vst [vmem:[#allocation80_spill] sm:$0xff] %v12822_v3  ;;  %8528 = vmatmul.msk.f32.gmra.mxu2 %vm1180_vm2, %v6202_v12  ;;  %8602 = vmatmul.msk.f32.gmra.mxu0 %vm1180_vm2, %v6957_v23  ;;  %v6203_v58 = vmul.f32 %v8809_v17, %v12526_v61  ;;  %v12848_v12 = vpop.permute.xlu0 %6134  ;;  %v14869_v61 = vld [vmem:[#allocation286_spill] sm:$0xff]  ;;  %v6493_v36 = vmul.f32 %v8810_v4, %v12826_v42 }
 0x4ae   : > { %v8812_v4 = vld [vmem:[%s9480_s12 + $0xa8] sm:$0xff] }
 0x4af   : > { %v14902_v3 = vld [vmem:[#allocation106_spill] sm:$0xff] }
 0x4b0   : > { %v4912_v2 = vpop.f32.mrf.mxu2  ;;  %v12852_v23 = vpop.permute.xlu1 %6878 }
 0x4b1   : > { %v4966_v14 = vadd.f32 %v4912_v2, %v14866_v22 }
 0x4b2   : > { %v12837_v18 = vpop.f32.mrf.mxu0 }
 0x4b3   : > { %v12844_v15 = vadd.f32 %v12663_v55, %v4966_v14  ;;  %v14870_v55 = vld [vmem:[#allocation194_spill] sm:$0xff] }
 0x4b4   : > { %8574 = vmatmul.msk.f32.gmra.mxu3 %vm1180_vm2, %v6492_v21  ;;  %8642 = vmatmul.msk.f32.gmra.mxu1 %vm1180_vm2, %v7241_v38  ;;  %v7242_v59 = vmul.f32 %v12852_v23, %v14870_v55  ;;  %v8811_v21 = vld [vmem:[%s8974_s19 + $0x48] sm:$0xff]  ;;  %v6959_v38 = vmul.f32 %v12730_v7, %v14732_v19  ;;  %v6494_v19 = vmul.f32 %v8812_v4, %v12848_v12  ;;  %v8814_v4 = vld [vmem:[%s9480_s12 + $0xb0] sm:$0xff] }
 0x4b5   : > { %14868 = vst [vmem:[#allocation260_spill] sm:$0xff] %v12844_v15  ;;  %8529 = vmatmul.msk.f32.gmra.mxu2 %vm1180_vm2, %v6203_v58  ;;  %8603 = vmatmul.msk.f32.gmra.mxu0 %vm1180_vm2, %v6958_v62  ;;  %v6204_v39 = vmul.f32 %v8811_v21, %v12551_v24  ;;  %v12870_v58 = vpop.permute.xlu2 %6139  ;;  %v12874_v62 = vpop.permute.xlu0 %6883  ;;  %v14872_v24 = vld [vmem:[#allocation57_spill] sm:$0xff] }
 0x4b6   : > { %v12887_v21 = vpop.f32.mrf.mxu3 }
 0x4b8   : > { %v4915_v2 = vpop.f32.mrf.mxu2 }
 0x4b9   : > { %v4967_v22 = vadd.f32 %v4915_v2, %v14869_v61 }
 0x4ba   : > { %v12859_v14 = vpop.f32.mrf.mxu0 }
 0x4bb   : > { %v12866_v17 = vadd.f32 %v12688_v51, %v4967_v22  ;;  %v14873_v51 = vld [vmem:[#allocation200_spill] sm:$0xff] }
 0x4bc   : > { %8575 = vmatmul.msk.f32.gmra.mxu3 %vm1180_vm2, %v6493_v36  ;;  %8643 = vmatmul.msk.f32.gmra.mxu1 %vm1180_vm2, %v7242_v59  ;;  %v7243_v7 = vmul.f32 %v12874_v62, %v14873_v51  ;;  %v8813_v36 = vld [vmem:[%s8974_s19 + $0x50] sm:$0xff]  ;;  %v6960_v59 = vmul.f32 %v12755_v44, %v14741_v25  ;;  %v12900_v25 = vpop.f32.mrf.mxu1  ;;  %v14875_v44 = vld [vmem:[#allocation105_spill] sm:$0xff] }
 0x4bd   : > { %14871 = vst [vmem:[#allocation51_spill] sm:$0xff] %v12866_v17  ;;  %8530 = vmatmul.msk.f32.gmra.mxu2 %vm1180_vm2, %v6204_v39  ;;  %8604 = vmatmul.msk.f32.gmra.mxu0 %vm1180_vm2, %v6959_v38  ;;  %v6205_v55 = vmul.f32 %v8813_v36, %v12576_v45  ;;  %v12894_v38 = vpop.permute.xlu1 %6144  ;;  %v12898_v45 = vpop.permute.xlu2 %6888 }
 0x4c0   : > { %v4918_v2 = vpop.f32.mrf.mxu2 }
 0x4c1   : > { %v4968_v61 = vadd.f32 %v4918_v2, %v14872_v24 }
 0x4c2   : > { %v12881_v22 = vpop.f32.mrf.mxu0 }
 0x4c3   : > { %v12890_v39 = vadd.f32 %v12713_v6, %v4968_v61  ;;  %v6495_v6 = vmul.f32 %v8814_v4, %v12870_v58  ;;  %v14876_v61 = vld [vmem:[#allocation207_spill] sm:$0xff] }
 0x4c4   : > { %8576 = vmatmul.msk.f32.gmra.mxu3 %vm1180_vm2, %v6494_v19  ;;  %8644 = vmatmul.msk.f32.gmra.mxu1 %vm1180_vm2, %v7243_v7  ;;  %v7244_v19 = vmul.f32 %v12898_v45, %v14876_v61  ;;  %v8815_v7 = vld [vmem:[%s8974_s19 + $0x58] sm:$0xff]  ;;  %v14878_v61 = vld [vmem:[#allocation41_spill] sm:$0xff] }
 0x4c5   : > { %14874 = vst [vmem:[#allocation185_spill] sm:$0xff] %v12890_v39  ;;  %8531 = vmatmul.msk.f32.gmra.mxu2 %vm1180_vm2, %v6205_v55  ;;  %8605 = vmatmul.msk.f32.gmra.mxu0 %vm1180_vm2, %v6960_v59  ;;  %v6206_v36 = vmul.f32 %v8815_v7, %v12601_v11  ;;  %v6961_v55 = vmul.f32 %v12780_v37, %v14748_v54  ;;  %v12924_v11 = vpop.permute.xlu1 %6893  ;;  %v8816_v37 = vld [vmem:[%s9480_s12 + $0xb8] sm:$0xff]  ;;  %v8817_v7 = vld [vmem:[%s8974_s19 + $0x60] sm:$0xff] }
 0x4c6   : > { %v6207_v16 = vmul.f32 %v8817_v7, %v12626_v60  ;;  %v8818_v7 = vld [vmem:[%s9480_s12 + $0xc0] sm:$0xff] }
 0x4c8   : > { %v4921_v2 = vpop.f32.mrf.mxu2 }
 0x4c9   : > { %v4969_v24 = vadd.f32 %v4921_v2, %v14875_v44  ;;  %v12918_v2 = vpop.permute.xlu0 %6149  ;;  %v12920_v44 = vpop.f32.mrf.mxu3 }
 0x4ca   : > { %v12907_v51 = vpop.f32.mrf.mxu0  ;;  %v6722_v9 = vadd.f32 %v12920_v44, %v14902_v3 }
 0x4cb   : > { %v12914_v59 = vadd.f32 %v12738_v33, %v4969_v24  ;;  %v6496_v33 = vmul.f32 %v8816_v37, %v12894_v38  ;;  %v14879_v24 = vld [vmem:[#allocation214_spill] sm:$0xff] }
 0x4cc   : > { %8577 = vmatmul.msk.f32.gmra.mxu3 %vm1180_vm2, %v6495_v6  ;;  %8645 = vmatmul.msk.f32.gmra.mxu1 %vm1180_vm2, %v7244_v19  ;;  %v7245_v6 = vmul.f32 %v12924_v11, %v14879_v24 }
 0x4cd   : > { %14877 = vst [vmem:[#allocation276_spill] sm:$0xff] %v12914_v59  ;;  %8532 = vmatmul.msk.f32.gmra.mxu2 %vm1180_vm2, %v6206_v36  ;;  %8606 = vmatmul.msk.f32.gmra.mxu0 %vm1180_vm2, %v6961_v55  ;;  %v6962_v36 = vmul.f32 %v12805_v43, %v14754_v40  ;;  %v12937_v55 = vpop.f32.mrf.mxu1  ;;  %v14881_v43 = vld [vmem:[#allocation290_spill] sm:$0xff] }
 0x4d0   : > { %v4924_v4 = vpop.f32.mrf.mxu2 }
 0x4d1   : > { %v4970_v54 = vadd.f32 %v4924_v4, %v14878_v61  ;;  %v12944_v61 = vpop.permute.xlu2 %6154  ;;  %v12948_v60 = vpop.permute.xlu0 %6898 }
 0x4d2   : > { %v12931_v19 = vpop.f32.mrf.mxu0  ;;  %v12950_v37 = vpop.f32.mrf.mxu3 }
 0x4d3   : > { %v12940_v4 = vadd.f32 %v12763_v5, %v4970_v54  ;;  %v6497_v5 = vmul.f32 %v8818_v7, %v12918_v2  ;;  %v14882_v54 = vld [vmem:[#allocation220_spill] sm:$0xff] }
 0x4d4   : > { %8578 = vmatmul.msk.f32.gmra.mxu3 %vm1180_vm2, %v6496_v33  ;;  %8646 = vmatmul.msk.f32.gmra.mxu1 %vm1180_vm2, %v7245_v6  ;;  %v7246_v33 = vmul.f32 %v12948_v60, %v14882_v54 }
 0x4d5   : > { %14880 = vst [vmem:[#allocation7_spill] sm:$0xff] %v12940_v4  ;;  %8533 = vmatmul.msk.f32.gmra.mxu2 %vm1180_vm2, %v6207_v16  ;;  %8607 = vmatmul.msk.f32.gmra.mxu0 %vm1180_vm2, %v6962_v36  ;;  %v6208_v16 = vmul.f32 %v8819_v49, %v12651_v26  ;;  %v6963_v36 = vmul.f32 %v12830_v53, %v14761_v8  ;;  %v14884_v53 = vld [vmem:[#allocation59_spill] sm:$0xff] }
 0x4d8   : > { %v4927_v40 = vpop.f32.mrf.mxu2 }
 0x4d9   : > { %v4971_v24 = vadd.f32 %v4927_v40, %v14881_v43  ;;  %v12968_v40 = vpop.permute.xlu1 %6159  ;;  %v12970_v43 = vpop.f32.mrf.mxu1 }
 0x4da   : > { %v12957_v6 = vpop.f32.mrf.mxu0  ;;  %v12974_v26 = vpop.permute.xlu2 %6903 }
 0x4db   : > { %v12964_v4 = vadd.f32 %v12788_v52, %v4971_v24  ;;  %v12976_v8 = vpop.f32.mrf.mxu3  ;;  %v8820_v24 = vld [vmem:[%s9480_s12 + $0xc8] sm:$0xff] }
 0x4dc   : > { %8579 = vmatmul.msk.f32.gmra.mxu3 %vm1180_vm2, %v6497_v5  ;;  %8647 = vmatmul.msk.f32.gmra.mxu1 %vm1180_vm2, %v7246_v33  ;;  %v6498_v7 = vmul.f32 %v8820_v24, %v12944_v61  ;;  %v14885_v5 = vld [vmem:[#allocation226_spill] sm:$0xff]  ;;  %v14887_v24 = vld [vmem:[#allocation111_spill] sm:$0xff] }
 0x4dd   : > { %14883 = vst [vmem:[#allocation36_spill] sm:$0xff] %v12964_v4  ;;  %8534 = vmatmul.msk.f32.gmra.mxu2 %vm1180_vm2, %v6208_v16  ;;  %8608 = vmatmul.msk.f32.gmra.mxu0 %vm1180_vm2, %v6963_v36  ;;  %v7247_v54 = vmul.f32 %v12974_v26, %v14885_v5  ;;  %v8821_v4 = vld [vmem:[%s8974_s19 + $0x70] sm:$0xff]  ;;  %v6964_v36 = vmul.f32 %v12852_v23, %v14768_v30 }
 0x4de   : > { %v6209_v16 = vmul.f32 %v8821_v4, %v12676_v10  ;;  %v8822_v23 = vld [vmem:[%s9480_s12 + $0xd0] sm:$0xff] }
 0x4e0   : > { %v4930_v49 = vpop.f32.mrf.mxu2 }
 0x4e1   : > { %v4972_v52 = vadd.f32 %v4930_v49, %v14884_v53  ;;  %v12994_v49 = vpop.permute.xlu0 %6164  ;;  %v12998_v53 = vpop.permute.xlu1 %6908 }
 0x4e2   : > { %v12983_v33 = vpop.f32.mrf.mxu0  ;;  %v13000_v10 = vpop.f32.mrf.mxu1 }
 0x4e3   : > { %v12990_v59 = vadd.f32 %v12813_v56, %v4972_v52  ;;  %v6499_v56 = vmul.f32 %v8822_v23, %v12968_v40  ;;  %v14888_v52 = vld [vmem:[#allocation233_spill] sm:$0xff] }
 0x4e4   : > { %8580 = vmatmul.msk.f32.gmra.mxu3 %vm1180_vm2, %v6498_v7  ;;  %8648 = vmatmul.msk.f32.gmra.mxu1 %vm1180_vm2, %v7247_v54  ;;  %v7248_v7 = vmul.f32 %v12998_v53, %v14888_v52  ;;  %v8823_v54 = vld [vmem:[%s8974_s19 + $0x78] sm:$0xff] }
 0x4e5   : > { %14886 = vst [vmem:[#allocation28_spill] sm:$0xff] %v12990_v59  ;;  %8535 = vmatmul.msk.f32.gmra.mxu2 %vm1180_vm2, %v6209_v16  ;;  %8609 = vmatmul.msk.f32.gmra.mxu0 %vm1180_vm2, %v6964_v36  ;;  %v6210_v16 = vmul.f32 %v8823_v54, %v12701_v27  ;;  %v6965_v36 = vmul.f32 %v12874_v62, %v14774_v34  ;;  %v13013_v59 = vpop.f32.mrf.mxu3  ;;  %v14890_v34 = vld [vmem:[#allocation27_spill] sm:$0xff]  ;;  %v8824_v54 = vld [vmem:[%s9480_s12 + $0xd8] sm:$0xff] }
 0x4e8   : > { %v4933_v4 = vpop.f32.mrf.mxu2 }
 0x4e9   : > { %v4973_v30 = vadd.f32 %v4933_v4, %v14887_v24  ;;  %v13020_v24 = vpop.permute.xlu2 %6169  ;;  %v13024_v27 = vpop.permute.xlu0 %6913 }
 0x4ea   : > { %v13007_v5 = vpop.f32.mrf.mxu0  ;;  %v13026_v52 = vpop.f32.mrf.mxu1 }
 0x4eb   : > { %v13016_v4 = vadd.f32 %v12837_v18, %v4973_v30  ;;  %v6500_v18 = vmul.f32 %v8824_v54, %v12994_v49  ;;  %v14891_v30 = vld [vmem:[#allocation239_spill] sm:$0xff] }
 0x4ec   : > { %8581 = vmatmul.msk.f32.gmra.mxu3 %vm1180_vm2, %v6499_v56  ;;  %8649 = vmatmul.msk.f32.gmra.mxu1 %vm1180_vm2, %v7248_v7  ;;  %v7249_v56 = vmul.f32 %v13024_v27, %v14891_v30  ;;  %v8825_v7 = vld [vmem:[%s8974_s19 + $0x80] sm:$0xff]  ;;  %v8827_v30 = vld [vmem:[%s8974_s19 + $0x88] sm:$0xff] }
 0x4ed   : > { %14889 = vst [vmem:[#allocation150_spill] sm:$0xff] %v13016_v4  ;;  %8536 = vmatmul.msk.f32.gmra.mxu2 %vm1180_vm2, %v6210_v16  ;;  %8610 = vmatmul.msk.f32.gmra.mxu0 %vm1180_vm2, %v6965_v36  ;;  %v6211_v4 = vmul.f32 %v8825_v7, %v12726_v35  ;;  %v6966_v16 = vmul.f32 %v12898_v45, %v14780_v32  ;;  %v14893_v45 = vld [vmem:[#allocation294_spill] sm:$0xff] }
 0x4f0   : > { %v4936_v23 = vpop.f32.mrf.mxu2 }
 0x4f1   : > { %v4974_v62 = vadd.f32 %v4936_v23, %v14890_v34  ;;  %v13044_v23 = vpop.permute.xlu1 %6174  ;;  %v13046_v34 = vpop.f32.mrf.mxu3 }
 0x4f2   : > { %v13040_v39 = vpop.f32.mrf.mxu0  ;;  %v13050_v35 = vpop.permute.xlu2 %6918 }
 0x4f3   : > { %v13038_v36 = vadd.f32 %v12859_v14, %v4974_v62  ;;  %v8826_v62 = vld [vmem:[%s9480_s12 + $0xe0] sm:$0xff]  ;;  %v13061_v7 = vpop.f32.mrf.mxu1 }
 0x4f4   : > { %8582 = vmatmul.msk.f32.gmra.mxu3 %vm1180_vm2, %v6500_v18  ;;  %8650 = vmatmul.msk.f32.gmra.mxu1 %vm1180_vm2, %v7249_v56  ;;  %v6501_v54 = vmul.f32 %v8826_v62, %v13020_v24  ;;  %v7250_v18 = vmul.f32 %v13050_v35, %v14745_v29  ;;  %v6212_v56 = vmul.f32 %v8827_v30, %v12749_v1  ;;  %v8829_v30 = vld [vmem:[%s8974_s19 + $0x90] sm:$0xff] }
 0x4f5   : > { %14892 = vst [vmem:[#allocation82_spill] sm:$0xff] %v13038_v36  ;;  %8537 = vmatmul.msk.f32.gmra.mxu2 %vm1180_vm2, %v6211_v4  ;;  %8611 = vmatmul.msk.f32.gmra.mxu0 %vm1180_vm2, %v6966_v16  ;;  %v6967_v4 = vmul.f32 %v12924_v11, %v14786_v48 }
 0x4f8   : > { %v4939_v32 = vpop.f32.mrf.mxu2 }
 0x4f9   : > { %v4975_v14 = vadd.f32 %v4939_v32, %v14893_v45  ;;  %v13068_v32 = vpop.permute.xlu0 %6179  ;;  %v13074_v1 = vpop.permute.xlu1 %6923  ;;  %v14895_v45 = vld [vmem:[#allocation62_spill] sm:$0xff] }
 0x4fa   : > { %v13072_v29 = vpop.f32.mrf.mxu0  ;;  %v13076_v48 = vpop.f32.mrf.mxu3 }
 0x4fb   : > { %v13064_v16 = vadd.f32 %v12881_v22, %v4975_v14  ;;  %v8828_v14 = vld [vmem:[%s9480_s12 + $0xe8] sm:$0xff] }
 0x4fc   : > { %8583 = vmatmul.msk.f32.gmra.mxu3 %vm1180_vm2, %v6501_v54  ;;  %8651 = vmatmul.msk.f32.gmra.mxu1 %vm1180_vm2, %v7250_v18  ;;  %v6502_v62 = vmul.f32 %v8828_v14, %v13044_v23  ;;  %v14896_v54 = vld [vmem:[#allocation250_spill] sm:$0xff] }
 0x4fd   : > { %14894 = vst [vmem:[#allocation264_spill] sm:$0xff] %v13064_v16  ;;  %8538 = vmatmul.msk.f32.gmra.mxu2 %vm1180_vm2, %v6212_v56  ;;  %8612 = vmatmul.msk.f32.gmra.mxu0 %vm1180_vm2, %v6967_v4  ;;  %v7251_v18 = vmul.f32 %v13074_v1, %v14896_v54  ;;  %v6213_v56 = vmul.f32 %v8829_v30, %v12776_v57  ;;  %v14897_v4 = vld [vmem:[#allocation251_spill] sm:$0xff]  ;;  %v14900_v54 = vld [vmem:[#allocation118_spill] sm:$0xff] }
 0x4fe   : > { %v6968_v16 = vmul.f32 %v12948_v60, %v14897_v4  ;;  %v14899_v60 = vld [vmem:[#allocation257_spill] sm:$0xff]  ;;  %v8830_v30 = vld [vmem:[%s9480_s12 + $0xf0] sm:$0xff] }
 0x4ff   : > { %v6503_v4 = vmul.f32 %v8830_v30, %v13068_v32 }
 0x500   : > { %v4942_v11 = vpop.f32.mrf.mxu2 }
 0x501   : > { %v4976_v22 = vadd.f32 %v4942_v11, %v14895_v45  ;;  %v13092_v11 = vpop.permute.xlu2 %6184  ;;  %v13094_v45 = vpop.f32.mrf.mxu1 }
 0x502   : > { %v13098_v57 = vpop.permute.xlu0 %6928 }
 0x503   : > { %v13088_v36 = vadd.f32 %v12907_v51, %v4976_v22  ;;  %v6721_v51 = vadd.f32 %v12887_v21, %v14899_v60  ;;  %v13102_v22 = vpop.f32.mrf.mxu0  ;;  %v6969_v21 = vmul.f32 %v12974_v26, %v14799_v13 }
 0x504   : > { %8584 = vmatmul.msk.f32.gmra.mxu3 %vm1180_vm2, %v6502_v62  ;;  %8652 = vmatmul.msk.f32.gmra.mxu1 %vm1180_vm2, %v7251_v18  ;;  %v13104_v62 = vpop.f32.mrf.mxu3 }
 0x505   : > { %14898 = vst [vmem:[#allocation50_spill] sm:$0xff] %v13088_v36  ;;  %8539 = vmatmul.msk.f32.gmra.mxu2 %vm1180_vm2, %v6213_v56  ;;  %8613 = vmatmul.msk.f32.gmra.mxu0 %vm1180_vm2, %v6968_v16  ;;  %v14901_v56 = vld [vmem:[#allocation84_spill] sm:$0xff]  ;;  %v7470_v60 = vadd.f32 %v12900_v25, %v6721_v51  ;;  %v14903_v51 = vld [vmem:[#allocation47_spill] sm:$0xff] }
 0x506   : > { %v7252_v16 = vmul.f32 %v13098_v57, %v14901_v56  ;;  %v8831_v36 = vld [vmem:[%s8974_s19 + $0x98] sm:$0xff] }
 0x507   : > { %v6214_v17 = vmul.f32 %v8831_v36, %v12801_v28  ;;  %v13127_v28 = vpop.permute.xlu1 %6189 }
 0x508   : > { %v6347_v14 = vpop.f32.mrf.mxu2 }
 0x509   : > { %v6443_v18 = vadd.f32 %v6347_v14, %v14900_v54  ;;  %v13137_v25 = vpop.permute.xlu2 %6933  ;;  %v13139_v44 = vpop.f32.mrf.mxu1  ;;  %v8832_v54 = vld [vmem:[%s9480_s12 + $0xf8] sm:$0xff] }
 0x50b   : > { %v7192_v15 = vadd.f32 %v12931_v19, %v6443_v18  ;;  %v7471_v19 = vadd.f32 %v12937_v55, %v6722_v9  ;;  %v14904_v18 = vld [vmem:[#allocation88_spill] sm:$0xff]  ;;  %v13151_v56 = vpop.f32.mrf.mxu0  ;;  %v6970_v9 = vmul.f32 %v12998_v53, %v14806_v41 }
 0x50c   : > { %8585 = vmatmul.msk.f32.gmra.mxu3 %vm1180_vm2, %v6503_v4  ;;  %8653 = vmatmul.msk.f32.gmra.mxu1 %vm1180_vm2, %v7252_v16  ;;  %v7253_v30 = vmul.f32 %v13137_v25, %v14904_v18  ;;  %v7735_v4 = vmul.f32 %v7470_v60, %v7470_v60  ;;  %v8833_v16 = vld [vmem:[%s8974_s19 + $0xa0] sm:$0xff]  ;;  %v13157_v55 = vpop.f32.mrf.mxu3 }
 0x50d   : > { %v7502_v13 = vadd.f32 %v7470_v60, %v7192_v15  ;;  %v7567_v3 = vsub.f32 %v7192_v15, %v7470_v60  ;;  %8540 = vmatmul.msk.f32.gmra.mxu2 %vm1180_vm2, %v6214_v17  ;;  %8614 = vmatmul.msk.f32.gmra.mxu0 %vm1180_vm2, %v6969_v21  ;;  %v7703_v26 = vmul.f32 %v7192_v15, %v7192_v15  ;;  %v7631_v60 = vsel %vm7534_vm4, %v7192_v15, 0.0 }
 0x50e   : > { %v6504_v17 = vmul.f32 %v8832_v54, %v13092_v11  ;;  %v6215_v21 = vmul.f32 %v8833_v16, %v12826_v42 }
 0x50f   : > { %7535 = vst.msk [vmem:[%s13123_s24] sm:$0xff] %vm7534_vm4, %v7502_v13  ;;  %v7767_v54 = vadd.f32 %v7735_v4, %v7703_v26  ;;  %v14906_v4 = vld [vmem:[#allocation268_spill] sm:$0xff] }
 0x510   : > { %7599 = vst.msk [vmem:[%s13133_s28] sm:$0xff] %vm7534_vm4, %v7567_v3  ;;  %v6350_v36 = vpop.f32.mrf.mxu2  ;;  %v7736_v3 = vmul.f32 %v7471_v19, %v7471_v19 }
 0x511   : > { %v6444_v14 = vadd.f32 %v6350_v36, %v14903_v51  ;;  %v14905_v36 = vld [vmem:[#allocation262_spill] sm:$0xff] }
 0x512   : > { %v6723_v51 = vadd.f32 %v12950_v37, %v14905_v36 }
 0x513   : > { %v7193_v13 = vadd.f32 %v12957_v6, %v6444_v14  ;;  %v13168_v6 = vpop.permute.xlu1 %6938  ;;  %v13175_v14 = vpop.f32.mrf.mxu1 }
 0x514   : > { %8586 = vmatmul.msk.f32.gmra.mxu3 %vm1180_vm2, %v6504_v17  ;;  %8654 = vmatmul.msk.f32.gmra.mxu1 %vm1180_vm2, %v7253_v30  ;;  %v7472_v26 = vadd.f32 %v12970_v43, %v6723_v51  ;;  %v7799_v17 = vsel %vm7534_vm4, %v7767_v54, 0.0  ;;  %v6971_v51 = vmul.f32 %v13024_v27, %v14812_v46  ;;  %v13200_v27 = vpop.permute.xlu2 %6943 }
 0x515   : > { %v7503_v42 = vadd.f32 %v7471_v19, %v7193_v13  ;;  %v7568_v18 = vsub.f32 %v7193_v13, %v7471_v19  ;;  %v7632_v41 = vsel %vm7534_vm4, %v7193_v13, 0.0  ;;  %v7704_v53 = vmul.f32 %v7193_v13, %v7193_v13  ;;  %8541 = vmatmul.msk.f32.gmra.mxu2 %vm1180_vm2, %v6215_v21  ;;  %8615 = vmatmul.msk.f32.gmra.mxu0 %vm1180_vm2, %v6970_v9  ;;  %v8834_v21 = vld [vmem:[%s9480_s12] sm:$0xff]  ;;  %v14907_v13 = vld [vmem:[#allocation92_spill] sm:$0xff] }
 0x516   : > { %v7633_v37 = vadd.f32 %v7632_v41, %v7631_v60  ;;  %v6505_v9 = vmul.f32 %v8834_v21, %v13127_v28  ;;  %v7254_v36 = vmul.f32 %v13168_v6, %v14907_v13  ;;  %v8835_v60 = vld [vmem:[%s8974_s19 + $0xa8] sm:$0xff]  ;;  %v7737_v54 = vmul.f32 %v7472_v26, %v7472_v26  ;;  %v14910_v13 = vld [vmem:[#allocation96_spill] sm:$0xff] }
 0x517   : > { %7536 = vst.msk [vmem:[%s13123_s24 + $0x8] sm:$0xff] %vm7534_vm4, %v7503_v42  ;;  %v7768_v15 = vadd.f32 %v7736_v3, %v7704_v53  ;;  %v6216_v43 = vmul.f32 %v8835_v60, %v12848_v12  ;;  %v13191_v53 = vpop.f32.mrf.mxu0  ;;  %v14909_v21 = vld [vmem:[#allocation18_spill] sm:$0xff] }
 0x518   : > { %7600 = vst.msk [vmem:[%s13133_s28 + $0x8] sm:$0xff] %vm7534_vm4, %v7568_v18  ;;  %v6353_v19 = vpop.f32.mrf.mxu2  ;;  %v14908_v18 = vld [vmem:[#allocation20_spill] sm:$0xff] }
 0x519   : > { %v7800_v30 = vsel %vm7534_vm4, %v7768_v15, 0.0  ;;  %v6445_v16 = vadd.f32 %v6353_v19, %v14906_v4  ;;  %v6724_v41 = vadd.f32 %v12976_v8, %v14908_v18  ;;  %v13195_v15 = vpop.f32.mrf.mxu3 }
 0x51a   : > { %v7801_v3 = vadd.f32 %v7800_v30, %v7799_v17  ;;  %v13202_v17 = vpop.permute.xlu0 %6194 }
 0x51b   : > { %v7194_v42 = vadd.f32 %v12983_v33, %v6445_v16  ;;  %v7473_v4 = vadd.f32 %v13000_v10, %v6724_v41  ;;  %v6972_v10 = vmul.f32 %v13050_v35, %v14818_v50 }
 0x51c   : > { %8587 = vmatmul.msk.f32.gmra.mxu3 %vm1180_vm2, %v6505_v9  ;;  %8655 = vmatmul.msk.f32.gmra.mxu1 %vm1180_vm2, %v7254_v36  ;;  %v7255_v36 = vmul.f32 %v13200_v27, %v14910_v13  ;;  %v8838_v13 = vld [vmem:[%s8974_s19 + $0xb8] sm:$0xff] }
 0x51d   : > { %v7504_v12 = vadd.f32 %v7472_v26, %v7194_v42  ;;  %v7569_v19 = vsub.f32 %v7194_v42, %v7472_v26  ;;  %v7634_v46 = vsel %vm7534_vm4, %v7194_v42, 0.0  ;;  %v7705_v33 = vmul.f32 %v7194_v42, %v7194_v42  ;;  %8542 = vmatmul.msk.f32.gmra.mxu2 %vm1180_vm2, %v6216_v43  ;;  %8616 = vmatmul.msk.f32.gmra.mxu0 %vm1180_vm2, %v6971_v51  ;;  %v8837_v51 = vld [vmem:[%s8974_s19 + $0xb0] sm:$0xff] }
 0x51e   : > { %v7635_v8 = vadd.f32 %v7634_v46, %v7633_v37  ;;  %v8836_v37 = vld [vmem:[%s9480_s12 + $0x8] sm:$0xff]  ;;  %v6217_v42 = vmul.f32 %v8837_v51, %v12870_v58  ;;  %v7738_v41 = vmul.f32 %v7473_v4, %v7473_v4  ;;  %s368_s12 = scalar_lea.vmem %s13620_s7, %s14968_s9 }
 0x51f   : > { %7537 = vst.msk [vmem:[%s13123_s24 + $0x10] sm:$0xff] %vm7534_vm4, %v7504_v12  ;;  %v7769_v30 = vadd.f32 %v7737_v54, %v7705_v33  ;;  %v6506_v60 = vmul.f32 %v8836_v37, %v13202_v17  ;;  %v13219_v54 = vpop.f32.mrf.mxu1  ;;  %v14911_v12 = vld [vmem:[#allocation261_spill] sm:$0xff] }
 0x520   : > { %7601 = vst.msk [vmem:[%s13133_s28 + $0x10] sm:$0xff] %vm7534_vm4, %v7569_v19  ;;  %v6356_v26 = vpop.f32.mrf.mxu2  ;;  %v6725_v19 = vadd.f32 %v13013_v59, %v14911_v12 }
 0x521   : > { %v7802_v16 = vsel %vm7534_vm4, %v7769_v30, 0.0  ;;  %v6446_v9 = vadd.f32 %v6356_v26, %v14909_v21  ;;  %v13231_v33 = vpop.f32.mrf.mxu3 }
 0x522   : > { %v7803_v43 = vadd.f32 %v7802_v16, %v7801_v3  ;;  %v7474_v30 = vadd.f32 %v13026_v52, %v6725_v19  ;;  %v14912_v16 = vld [vmem:[#allocation125_spill] sm:$0xff]  ;;  %v14914_v52 = vld [vmem:[#allocation112_spill] sm:$0xff] }
 0x523   : > { %v7195_v18 = vadd.f32 %v13007_v5, %v6446_v9  ;;  %v13229_v5 = vpop.f32.mrf.mxu0 }
 0x524   : > { %8588 = vmatmul.msk.f32.gmra.mxu3 %vm1180_vm2, %v6506_v60  ;;  %8656 = vmatmul.msk.f32.gmra.mxu1 %vm1180_vm2, %v7255_v36  ;;  %v6218_v36 = vmul.f32 %v8838_v13, %v12894_v38  ;;  %v7739_v51 = vmul.f32 %v7474_v30, %v7474_v30 }
 0x525   : > { %v7505_v3 = vadd.f32 %v7473_v4, %v7195_v18  ;;  %v7570_v46 = vsub.f32 %v7195_v18, %v7473_v4  ;;  %v7636_v58 = vsel %vm7534_vm4, %v7195_v18, 0.0  ;;  %v7706_v50 = vmul.f32 %v7195_v18, %v7195_v18  ;;  %8543 = vmatmul.msk.f32.gmra.mxu2 %vm1180_vm2, %v6217_v42  ;;  %8617 = vmatmul.msk.f32.gmra.mxu0 %vm1180_vm2, %v6972_v10 }
 0x526   : > { %v7637_v35 = vadd.f32 %v7636_v58, %v7635_v8  ;;  %v14913_v8 = vld [vmem:[#allocation6_spill] sm:$0xff]  ;;  %v6726_v42 = vadd.f32 %v13046_v34, %v14914_v52 }
 0x527   : > { %7538 = vst.msk [vmem:[%s13123_s24 + $0x18] sm:$0xff] %vm7534_vm4, %v7505_v3  ;;  %v7770_v59 = vadd.f32 %v7738_v41, %v7706_v50  ;;  %v6973_v37 = vmul.f32 %v13074_v1, %v14913_v8  ;;  %v13247_v10 = vpop.f32.mrf.mxu1  ;;  %v14915_v58 = vld [vmem:[#allocation46_spill] sm:$0xff] }
 0x528   : > { %7602 = vst.msk [vmem:[%s13133_s28 + $0x18] sm:$0xff] %vm7534_vm4, %v7570_v46  ;;  %v6359_v4 = vpop.f32.mrf.mxu2  ;;  %v7475_v1 = vadd.f32 %v13061_v7, %v6726_v42  ;;  %v14918_v52 = vld [vmem:[#allocation270_spill] sm:$0xff] }
 0x529   : > { %v7804_v26 = vsel %vm7534_vm4, %v7770_v59, 0.0  ;;  %v6447_v21 = vadd.f32 %v6359_v4, %v14912_v16  ;;  %v13259_v3 = vpop.f32.mrf.mxu3  ;;  %v14916_v4 = vld [vmem:[#allocation103_spill] sm:$0xff] }
 0x52a   : > { %v7805_v9 = vadd.f32 %v7804_v26, %v7803_v43  ;;  %v6974_v7 = vmul.f32 %v13098_v57, %v14916_v4  ;;  %v7740_v16 = vmul.f32 %v7475_v1, %v7475_v1  ;;  %v14920_v4 = vld [vmem:[#allocation68_spill] sm:$0xff] }
 0x52b   : > { %v7196_v60 = vadd.f32 %v13040_v39, %v6447_v21  ;;  %v13255_v19 = vpop.f32.mrf.mxu0  ;;  %v14917_v21 = vld [vmem:[#allocation265_spill] sm:$0xff] }
 0x52c   : > { %v6727_v13 = vadd.f32 %v13076_v48, %v14917_v21 }
 0x52d   : > { %v7506_v18 = vadd.f32 %v7474_v30, %v7196_v60  ;;  %v7571_v41 = vsub.f32 %v7196_v60, %v7474_v30  ;;  %v7638_v43 = vsel %vm7534_vm4, %v7196_v60, 0.0  ;;  %v7707_v12 = vmul.f32 %v7196_v60, %v7196_v60  ;;  %8544 = vmatmul.msk.f32.gmra.mxu2 %vm1180_vm2, %v6218_v36  ;;  %8618 = vmatmul.msk.f32.gmra.mxu0 %vm1180_vm2, %v6973_v37  ;;  %v8839_v30 = vld [vmem:[%s8974_s19 + $0xc0] sm:$0xff] }
 0x52e   : > { %v7639_v38 = vadd.f32 %v7638_v43, %v7637_v35  ;;  %v6219_v35 = vmul.f32 %v8839_v30, %v12918_v2  ;;  %v7476_v57 = vadd.f32 %v13094_v45, %v6727_v13  ;;  %v8840_v43 = vld [vmem:[%s8974_s19 + $0xc8] sm:$0xff]  ;;  %v14921_v13 = vld [vmem:[#allocation115_spill] sm:$0xff] }
 0x52f   : > { %7539 = vst.msk [vmem:[%s13123_s24 + $0x20] sm:$0xff] %vm7534_vm4, %v7506_v18  ;;  %v7771_v39 = vadd.f32 %v7739_v51, %v7707_v12  ;;  %v6220_v12 = vmul.f32 %v8840_v43, %v12944_v61 }
 0x530   : > { %7603 = vst.msk [vmem:[%s13133_s28 + $0x20] sm:$0xff] %vm7534_vm4, %v7571_v41  ;;  %v6362_v34 = vpop.f32.mrf.mxu2 }
 0x531   : > { %v7806_v46 = vsel %vm7534_vm4, %v7771_v39, 0.0  ;;  %v6448_v50 = vadd.f32 %v6362_v34, %v14915_v58  ;;  %v13288_v39 = vpop.f32.mrf.mxu3  ;;  %v14919_v34 = vld [vmem:[#allocation145_spill] sm:$0xff] }
 0x532   : > { %v7807_v59 = vadd.f32 %v7806_v46, %v7805_v9  ;;  %v13273_v9 = vpop.f32.mrf.mxu1  ;;  %v6728_v46 = vadd.f32 %v13104_v62, %v14919_v34 }
 0x533   : > { %v7197_v26 = vadd.f32 %v13072_v29, %v6448_v50  ;;  %v13282_v18 = vpop.f32.mrf.mxu0 }
 0x535   : > { %v7507_v36 = vadd.f32 %v7475_v1, %v7197_v26  ;;  %v7572_v8 = vsub.f32 %v7197_v26, %v7475_v1  ;;  %v7640_v37 = vsel %vm7534_vm4, %v7197_v26, 0.0  ;;  %v7708_v60 = vmul.f32 %v7197_v26, %v7197_v26  ;;  %8545 = vmatmul.msk.f32.gmra.mxu2 %vm1180_vm2, %v6219_v35  ;;  %8619 = vmatmul.msk.f32.gmra.mxu0 %vm1180_vm2, %v6974_v7 }
 0x536   : > { %v7641_v2 = vadd.f32 %v7640_v37, %v7639_v38  ;;  %v6975_v38 = vmul.f32 %v13137_v25, %v14837_v20  ;;  %v7741_v1 = vmul.f32 %v7476_v57, %v7476_v57  ;;  %v14922_v37 = vld [vmem:[#allocation71_spill] sm:$0xff] }
 0x537   : > { %7540 = vst.msk [vmem:[%s13123_s24 + $0x28] sm:$0xff] %vm7534_vm4, %v7507_v36  ;;  %v7772_v29 = vadd.f32 %v7740_v16, %v7708_v60  ;;  %v8841_v16 = vld [vmem:[%s8974_s19 + $0xd0] sm:$0xff]  ;;  %v6976_v36 = vmul.f32 %v13168_v6, %v14921_v13  ;;  %v6729_v60 = vadd.f32 %v13157_v55, %v14922_v37 }
 0x538   : > { %7604 = vst.msk [vmem:[%s13133_s28 + $0x28] sm:$0xff] %vm7534_vm4, %v7572_v8  ;;  %v6365_v48 = vpop.f32.mrf.mxu2  ;;  %v6221_v21 = vmul.f32 %v8841_v16, %v12968_v40 }
 0x539   : > { %v7808_v51 = vsel %vm7534_vm4, %v7772_v29, 0.0  ;;  %v6449_v42 = vadd.f32 %v6365_v48, %v14918_v52  ;;  %v13314_v29 = vpop.f32.mrf.mxu3  ;;  %v7478_v55 = vadd.f32 %v13175_v14, %v6729_v60 }
 0x53a   : > { %v7809_v41 = vadd.f32 %v7808_v51, %v7807_v59  ;;  %v13301_v62 = vpop.f32.mrf.mxu1 }
 0x53b   : > { %v7198_v45 = vadd.f32 %v13102_v22, %v6449_v42  ;;  %v7477_v22 = vadd.f32 %v13139_v44, %v6728_v46 }
 0x53d   : > { %v7508_v58 = vadd.f32 %v7476_v57, %v7198_v45  ;;  %v7573_v50 = vsub.f32 %v7198_v45, %v7476_v57  ;;  %v7642_v59 = vsel %vm7534_vm4, %v7198_v45, 0.0  ;;  %v7709_v30 = vmul.f32 %v7198_v45, %v7198_v45  ;;  %8546 = vmatmul.msk.f32.gmra.mxu2 %vm1180_vm2, %v6220_v12  ;;  %8620 = vmatmul.msk.f32.gmra.mxu0 %vm1180_vm2, %v6975_v38  ;;  %v8842_v38 = vld [vmem:[%s8974_s19 + $0xd8] sm:$0xff] }
 0x53e   : > { %v7643_v61 = vadd.f32 %v7642_v59, %v7641_v2  ;;  %v7742_v8 = vmul.f32 %v7477_v22, %v7477_v22  ;;  %v13312_v2 = vpop.f32.mrf.mxu0  ;;  %v6222_v45 = vmul.f32 %v8842_v38, %v12994_v49 }
 0x53f   : > { %7541 = vst.msk [vmem:[%s13123_s24 + $0x30] sm:$0xff] %vm7534_vm4, %v7508_v58  ;;  %v7773_v20 = vadd.f32 %v7741_v1, %v7709_v30  ;;  %v14924_v1 = vld [vmem:[#allocation120_spill] sm:$0xff]  ;;  %v7743_v58 = vmul.f32 %v7478_v55, %v7478_v55 }
 0x540   : > { %7605 = vst.msk [vmem:[%s13133_s28 + $0x30] sm:$0xff] %vm7534_vm4, %v7573_v50  ;;  %v6368_v25 = vpop.f32.mrf.mxu2  ;;  %v6977_v34 = vmul.f32 %v13200_v27, %v14924_v1  ;;  %v14925_v50 = vld [vmem:[#allocation116_spill] sm:$0xff] }
 0x541   : > { %v7810_v35 = vsel %vm7534_vm4, %v7773_v20, 0.0  ;;  %v6450_v7 = vadd.f32 %v6368_v25, %v14920_v4  ;;  %v6730_v59 = vadd.f32 %v13195_v15, %v14925_v50  ;;  %v13340_v25 = vpop.f32.mrf.mxu3 }
 0x542   : > { %v7811_v26 = vadd.f32 %v7810_v35, %v7809_v41  ;;  %v14923_v41 = vld [vmem:[#allocation24_spill] sm:$0xff]  ;;  %v13330_v46 = vpop.f32.mrf.mxu1 }
 0x543   : > { %v7199_v44 = vadd.f32 %v13151_v56, %v6450_v7  ;;  %v7479_v15 = vadd.f32 %v13219_v54, %v6730_v59  ;;  %v14926_v7 = vld [vmem:[#allocation76_spill] sm:$0xff] }
 0x545   : > { %v7509_v57 = vadd.f32 %v7477_v22, %v7199_v44  ;;  %v7574_v48 = vsub.f32 %v7199_v44, %v7477_v22  ;;  %v7644_v51 = vsel %vm7534_vm4, %v7199_v44, 0.0  ;;  %v7710_v40 = vmul.f32 %v7199_v44, %v7199_v44  ;;  %8547 = vmatmul.msk.f32.gmra.mxu2 %vm1180_vm2, %v6221_v21  ;;  %8621 = vmatmul.msk.f32.gmra.mxu0 %vm1180_vm2, %v6976_v36  ;;  %v8843_v21 = vld [vmem:[%s8974_s19 + $0xe0] sm:$0xff] }
 0x546   : > { %v7645_v6 = vadd.f32 %v7644_v51, %v7643_v61  ;;  %v13338_v49 = vpop.f32.mrf.mxu0  ;;  %v6223_v13 = vmul.f32 %v8843_v21, %v13020_v24  ;;  %v7744_v44 = vmul.f32 %v7479_v15, %v7479_v15 }
 0x547   : > { %7542 = vst.msk [vmem:[%s13123_s24 + $0x38] sm:$0xff] %vm7534_vm4, %v7509_v57  ;;  %v7774_v56 = vadd.f32 %v7742_v8, %v7710_v40  ;;  %v14927_v8 = vld [vmem:[#allocation267_spill] sm:$0xff] }
 0x548   : > { %7606 = vst.msk [vmem:[%s13133_s28 + $0x38] sm:$0xff] %vm7534_vm4, %v7574_v48  ;;  %v6371_v52 = vpop.f32.mrf.mxu2  ;;  %v6731_v37 = vadd.f32 %v13231_v33, %v14927_v8 }
 0x549   : > { %v7812_v42 = vsel %vm7534_vm4, %v7774_v56, 0.0  ;;  %v6451_v43 = vadd.f32 %v6371_v52, %v14923_v41  ;;  %v13365_v56 = vpop.f32.mrf.mxu3  ;;  %v14928_v52 = vld [vmem:[#allocation131_spill] sm:$0xff] }
 0x54a   : > { %v7813_v12 = vadd.f32 %v7812_v42, %v7811_v26  ;;  %v13354_v54 = vpop.f32.mrf.mxu1 }
 0x54b   : > { %v7200_v14 = vadd.f32 %v13191_v53, %v6451_v43  ;;  %v8844_v43 = vld [vmem:[%s8974_s19 + $0xe8] sm:$0xff] }
 0x54d   : > { %v7510_v30 = vadd.f32 %v7478_v55, %v7200_v14  ;;  %v7575_v61 = vsub.f32 %v7200_v14, %v7478_v55  ;;  %v7646_v20 = vsel %vm7534_vm4, %v7200_v14, 0.0  ;;  %v7711_v22 = vmul.f32 %v7200_v14, %v7200_v14  ;;  %8548 = vmatmul.msk.f32.gmra.mxu2 %vm1180_vm2, %v6222_v45  ;;  %8622 = vmatmul.msk.f32.gmra.mxu0 %vm1180_vm2, %v6977_v34  ;;  %v14929_v45 = vld [vmem:[#allocation10_spill] sm:$0xff] }
 0x54e   : > { %v7647_v27 = vadd.f32 %v7646_v20, %v7645_v6  ;;  %v13361_v6 = vpop.f32.mrf.mxu0  ;;  %v6732_v1 = vadd.f32 %v13259_v3, %v14929_v45  ;;  %v14930_v20 = vld [vmem:[#allocation272_spill] sm:$0xff] }
 0x54f   : > { %7543 = vst.msk [vmem:[%s13123_s24 + $0x40] sm:$0xff] %vm7534_vm4, %v7510_v30  ;;  %v7775_v53 = vadd.f32 %v7743_v58, %v7711_v22 }
 0x550   : > { %7607 = vst.msk [vmem:[%s13133_s28 + $0x40] sm:$0xff] %vm7534_vm4, %v7575_v61  ;;  %v6374_v35 = vpop.f32.mrf.mxu2 }
 0x551   : > { %v7814_v4 = vsel %vm7534_vm4, %v7775_v53, 0.0  ;;  %v6452_v26 = vadd.f32 %v6374_v35, %v14926_v7 }
 0x552   : > { %v7815_v16 = vadd.f32 %v7814_v4, %v7813_v12  ;;  %v6224_v12 = vmul.f32 %v8844_v43, %v13044_v23  ;;  %v13376_v30 = vpop.f32.mrf.mxu1  ;;  %v13389_v4 = vpop.f32.mrf.mxu3 }
 0x553   : > { %v7201_v36 = vadd.f32 %v13229_v5, %v6452_v26  ;;  %v7480_v5 = vadd.f32 %v13247_v10, %v6731_v37  ;;  %v14931_v26 = vld [vmem:[#allocation75_spill] sm:$0xff] }
 0x555   : > { %v7511_v60 = vadd.f32 %v7479_v15, %v7201_v36  ;;  %v7576_v57 = vsub.f32 %v7201_v36, %v7479_v15  ;;  %v7648_v48 = vsel %vm7534_vm4, %v7201_v36, 0.0  ;;  %v7712_v51 = vmul.f32 %v7201_v36, %v7201_v36  ;;  %8549 = vmatmul.msk.f32.gmra.mxu2 %vm1180_vm2, %v6223_v13  ;;  %v8845_v15 = vld [vmem:[%s8974_s19 + $0xf0] sm:$0xff] }
 0x556   : > { %v7649_v40 = vadd.f32 %v7648_v48, %v7647_v27  ;;  %v7745_v10 = vmul.f32 %v7480_v5, %v7480_v5  ;;  %v13385_v27 = vpop.f32.mrf.mxu0  ;;  %v6225_v35 = vmul.f32 %v8845_v15, %v13068_v32 }
 0x557   : > { %7544 = vst.msk [vmem:[%s13123_s24 + $0x48] sm:$0xff] %vm7534_vm4, %v7511_v60  ;;  %v7776_v24 = vadd.f32 %v7744_v44, %v7712_v51 }
 0x558   : > { %7608 = vst.msk [vmem:[%s13133_s28 + $0x48] sm:$0xff] %vm7534_vm4, %v7576_v57  ;;  %v6377_v33 = vpop.f32.mrf.mxu2  ;;  %v14932_v57 = vld [vmem:[#allocation26_spill] sm:$0xff] }
 0x559   : > { %v7816_v55 = vsel %vm7534_vm4, %v7776_v24, 0.0  ;;  %v6453_v42 = vadd.f32 %v6377_v33, %v14928_v52 }
 0x55a   : > { %v7817_v41 = vadd.f32 %v7816_v55, %v7815_v16  ;;  %v6733_v16 = vadd.f32 %v13288_v39, %v14931_v26  ;;  %v13401_v60 = vpop.f32.mrf.mxu1  ;;  %v14933_v55 = vld [vmem:[#allocation121_spill] sm:$0xff]  ;;  %v14936_v26 = vld [vmem:[#allocation256_spill] sm:$0xff] }
 0x55b   : > { %v7202_v38 = vadd.f32 %v13255_v19, %v6453_v42  ;;  %v7481_v19 = vadd.f32 %v13273_v9, %v6732_v1  ;;  %v13412_v42 = vpop.f32.mrf.mxu3  ;;  %v14934_v1 = vld [vmem:[#allocation32_spill] sm:$0xff] }
 0x55c   : > { %v7482_v37 = vadd.f32 %v13301_v62, %v6733_v16  ;;  %v6734_v62 = vadd.f32 %v13314_v29, %v14933_v55 }
 0x55d   : > { %v7512_v34 = vadd.f32 %v7480_v5, %v7202_v38  ;;  %v7577_v14 = vsub.f32 %v7202_v38, %v7480_v5  ;;  %v7650_v58 = vsel %vm7534_vm4, %v7202_v38, 0.0  ;;  %v7713_v50 = vmul.f32 %v7202_v38, %v7202_v38  ;;  %8550 = vmatmul.msk.f32.gmra.mxu2 %vm1180_vm2, %v6224_v12 }
 0x55e   : > { %v7651_v59 = vadd.f32 %v7650_v58, %v7649_v40  ;;  %v7746_v9 = vmul.f32 %v7481_v19, %v7481_v19  ;;  %v8846_v40 = vld [vmem:[%s8974_s19 + $0xf8] sm:$0xff]  ;;  %v7747_v33 = vmul.f32 %v7482_v37, %v7482_v37  ;;  %v13410_v52 = vpop.f32.mrf.mxu0  ;;  %v8847_v58 = vld [vmem:[%s8974_s19] sm:$0xff] }
 0x55f   : > { %7545 = vst.msk [vmem:[%s13123_s24 + $0x50] sm:$0xff] %vm7534_vm4, %v7512_v34  ;;  %v7777_v23 = vadd.f32 %v7745_v10, %v7713_v50  ;;  %v6226_v24 = vmul.f32 %v8846_v40, %v13092_v11  ;;  %v6227_v50 = vmul.f32 %v8847_v58, %v13127_v28 }
 0x560   : > { %7609 = vst.msk [vmem:[%s13133_s28 + $0x50] sm:$0xff] %vm7534_vm4, %v7577_v14  ;;  %v6380_v61 = vpop.f32.mrf.mxu2 }
 0x561   : > { %v7818_v3 = vsel %vm7534_vm4, %v7777_v23, 0.0  ;;  %v6454_v22 = vadd.f32 %v6380_v61, %v14930_v20  ;;  %v14935_v61 = vld [vmem:[#allocation65_spill] sm:$0xff] }
 0x562   : > { %v7819_v53 = vadd.f32 %v7818_v3, %v7817_v41 }
 0x563   : > { %v7203_v7 = vadd.f32 %v13282_v18, %v6454_v22 }
 0x565   : > { %v7513_v21 = vadd.f32 %v7481_v19, %v7203_v7  ;;  %v7578_v13 = vsub.f32 %v7203_v7, %v7481_v19  ;;  %v7652_v36 = vsel %vm7534_vm4, %v7203_v7, 0.0  ;;  %v7714_v44 = vmul.f32 %v7203_v7, %v7203_v7  ;;  %8551 = vmatmul.msk.f32.gmra.mxu2 %vm1180_vm2, %v6225_v35  ;;  %v13434_v35 = vpop.f32.mrf.mxu3 }
 0x566   : > { %v7653_v8 = vadd.f32 %v7652_v36, %v7651_v59  ;;  %v13425_v59 = vpop.f32.mrf.mxu1  ;;  %v13432_v15 = vpop.f32.mrf.mxu0 }
 0x567   : > { %7546 = vst.msk [vmem:[%s13123_s24 + $0x58] sm:$0xff] %vm7534_vm4, %v7513_v21  ;;  %v7778_v32 = vadd.f32 %v7746_v9, %v7714_v44 }
 0x568   : > { %7610 = vst.msk [vmem:[%s13133_s28 + $0x58] sm:$0xff] %vm7534_vm4, %v7578_v13  ;;  %v6383_v18 = vpop.f32.mrf.mxu2  ;;  %v8848_v13 = vld [vmem:[%s8974_s19 + $0x8] sm:$0xff] }
 0x569   : > { %v7820_v39 = vsel %vm7534_vm4, %v7778_v32, 0.0  ;;  %v6455_v48 = vadd.f32 %v6383_v18, %v14932_v57  ;;  %v6228_v36 = vmul.f32 %v8848_v13, %v13202_v17  ;;  %v14937_v32 = vld [vmem:[#allocation155_spill] sm:$0xff] }
 0x56a   : > { %v7821_v51 = vadd.f32 %v7820_v39, %v7819_v53 }
 0x56b   : > { %v7204_v5 = vadd.f32 %v13312_v2, %v6455_v48  ;;  %v7483_v2 = vadd.f32 %v13330_v46, %v6734_v62  ;;  %v6735_v46 = vadd.f32 %v13340_v25, %v14935_v61 }
 0x56d   : > { %v7514_v41 = vadd.f32 %v7482_v37, %v7204_v5  ;;  %v7579_v43 = vsub.f32 %v7204_v5, %v7482_v37  ;;  %v7654_v12 = vsel %vm7534_vm4, %v7204_v5, 0.0  ;;  %v7715_v38 = vmul.f32 %v7204_v5, %v7204_v5  ;;  %8552 = vmatmul.msk.f32.gmra.mxu2 %vm1180_vm2, %v6226_v24  ;;  %v6682_v24 = vpop.f32.mrf.mxu3 }
 0x56e   : > { %v7655_v10 = vadd.f32 %v7654_v12, %v7653_v8  ;;  %v7748_v19 = vmul.f32 %v7483_v2, %v7483_v2  ;;  %v7484_v7 = vadd.f32 %v13354_v54, %v6735_v46  ;;  %v6736_v37 = vadd.f32 %v13365_v56, %v14937_v32  ;;  %v13448_v54 = vpop.f32.mrf.mxu1 }
 0x56f   : > { %7547 = vst.msk [vmem:[%s13123_s24 + $0x60] sm:$0xff] %vm7534_vm4, %v7514_v41  ;;  %v7779_v11 = vadd.f32 %v7747_v33, %v7715_v38 }
 0x570   : > { %7611 = vst.msk [vmem:[%s13133_s28 + $0x60] sm:$0xff] %vm7534_vm4, %v7579_v43  ;;  %v6386_v29 = vpop.f32.mrf.mxu2  ;;  %v7749_v8 = vmul.f32 %v7484_v7, %v7484_v7  ;;  %v7485_v17 = vadd.f32 %v13376_v30, %v6736_v37  ;;  %v14938_v43 = vld [vmem:[#allocation74_spill] sm:$0xff] }
 0x571   : > { %v7822_v45 = vsel %vm7534_vm4, %v7779_v11, 0.0  ;;  %v6456_v34 = vadd.f32 %v6386_v29, %v14934_v1  ;;  %v6737_v12 = vadd.f32 %v13389_v4, %v14938_v43 }
 0x572   : > { %v7823_v14 = vadd.f32 %v7822_v45, %v7821_v51  ;;  %v7750_v41 = vmul.f32 %v7485_v17, %v7485_v17 }
 0x573   : > { %v7205_v23 = vadd.f32 %v13338_v49, %v6456_v34  ;;  %v7486_v1 = vadd.f32 %v13401_v60, %v6737_v12 }
 0x575   : > { %v7515_v3 = vadd.f32 %v7483_v2, %v7205_v23  ;;  %v7580_v20 = vsub.f32 %v7205_v23, %v7483_v2  ;;  %v7656_v22 = vsel %vm7534_vm4, %v7205_v23, 0.0  ;;  %v7716_v53 = vmul.f32 %v7205_v23, %v7205_v23  ;;  %8553 = vmatmul.msk.f32.gmra.mxu2 %vm1180_vm2, %v6227_v50  ;;  %v6685_v58 = vpop.f32.mrf.mxu3 }
 0x576   : > { %v7657_v28 = vadd.f32 %v7656_v22, %v7655_v10  ;;  %v7431_v29 = vpop.f32.mrf.mxu1  ;;  %v7751_v23 = vmul.f32 %v7486_v1, %v7486_v1 }
 0x577   : > { %7548 = vst.msk [vmem:[%s13123_s24 + $0x68] sm:$0xff] %vm7534_vm4, %v7515_v3  ;;  %v7780_v49 = vadd.f32 %v7748_v19, %v7716_v53  ;;  %v14939_v19 = vld [vmem:[#allocation126_spill] sm:$0xff] }
 0x578   : > { %7612 = vst.msk [vmem:[%s13133_s28 + $0x68] sm:$0xff] %vm7534_vm4, %v7580_v20  ;;  %v6389_v25 = vpop.f32.mrf.mxu2  ;;  %v6738_v61 = vadd.f32 %v13412_v42, %v14939_v19 }
 0x579   : > { %v7824_v9 = vsel %vm7534_vm4, %v7780_v49, 0.0  ;;  %v6457_v16 = vadd.f32 %v6389_v25, %v14936_v26  ;;  %v14940_v26 = vld [vmem:[#allocation70_spill] sm:$0xff] }
 0x57a   : > { %v7825_v21 = vadd.f32 %v7824_v9, %v7823_v14 }
 0x57b   : > { %v7206_v44 = vadd.f32 %v13361_v6, %v6457_v16  ;;  %v7150_v6 = vpop.f32.mrf.mxu0  ;;  %v6739_v16 = vadd.f32 %v13434_v35, %v14940_v26 }
 0x57d   : > { %v7516_v18 = vadd.f32 %v7484_v7, %v7206_v44  ;;  %v7581_v39 = vsub.f32 %v7206_v44, %v7484_v7  ;;  %v7658_v57 = vsel %vm7534_vm4, %v7206_v44, 0.0  ;;  %v7717_v48 = vmul.f32 %v7206_v44, %v7206_v44  ;;  %8554 = vmatmul.msk.f32.gmra.mxu2 %vm1180_vm2, %v6228_v36  ;;  %v6688_v13 = vpop.f32.mrf.mxu3 }
 0x57e   : > { %v7659_v51 = vadd.f32 %v7658_v57, %v7657_v28 }
 0x57f   : > { %7549 = vst.msk [vmem:[%s13123_s24 + $0x70] sm:$0xff] %vm7534_vm4, %v7516_v18  ;;  %v7781_v40 = vadd.f32 %v7749_v8, %v7717_v48 }
 0x580   : > { %7613 = vst.msk [vmem:[%s13133_s28 + $0x70] sm:$0xff] %vm7534_vm4, %v7581_v39  ;;  %v6392_v56 = vpop.f32.mrf.mxu2 }
 0x581   : > { %v7826_v5 = vsel %vm7534_vm4, %v7781_v40, 0.0  ;;  %v6458_v33 = vadd.f32 %v6392_v56, %v12697_v0  ;;  %v14941_v40 = vld [vmem:[#allocation22_spill] sm:$0xff] }
 0x582   : > { %v7827_v55 = vadd.f32 %v7826_v5, %v7825_v21 }
 0x583   : > { %v7207_v62 = vadd.f32 %v13385_v27, %v6458_v33  ;;  %v7153_v34 = vpop.f32.mrf.mxu0 }
 0x585   : > { %v7517_v38 = vadd.f32 %v7485_v17, %v7207_v62  ;;  %v7582_v30 = vsub.f32 %v7207_v62, %v7485_v17  ;;  %v7660_v10 = vsel %vm7534_vm4, %v7207_v62, 0.0  ;;  %v7718_v11 = vmul.f32 %v7207_v62, %v7207_v62 }
 0x586   : > { %v7661_v2 = vadd.f32 %v7660_v10, %v7659_v51  ;;  %v6740_v17 = vadd.f32 %v6682_v24, %v14941_v40 }
 0x587   : > { %7550 = vst.msk [vmem:[%s13123_s24 + $0x78] sm:$0xff] %vm7534_vm4, %v7517_v38  ;;  %v7782_v45 = vadd.f32 %v7750_v41, %v7718_v11  ;;  %v6691_v41 = vpop.f32.mrf.mxu3  ;;  %v14942_v38 = vld [vmem:[#allocation29_spill] sm:$0xff] }
 0x588   : > { %7614 = vst.msk [vmem:[%s13133_s28 + $0x78] sm:$0xff] %vm7534_vm4, %v7582_v30  ;;  %v6395_v0 = vpop.f32.mrf.mxu2 }
 0x589   : > { %v7828_v27 = vsel %vm7534_vm4, %v7782_v45, 0.0  ;;  %v6459_v4 = vadd.f32 %v6395_v0, %v12722_v31  ;;  %v7487_v31 = vadd.f32 %v13425_v59, %v6738_v61 }
 0x58a   : > { %v7829_v14 = vadd.f32 %v7828_v27, %v7827_v55 }
 0x58b   : > { %v7208_v50 = vadd.f32 %v13410_v52, %v6459_v4  ;;  %v7434_v52 = vpop.f32.mrf.mxu1  ;;  %v7752_v9 = vmul.f32 %v7487_v31, %v7487_v31  ;;  %v7156_v21 = vpop.f32.mrf.mxu0 }
 0x58d   : > { %v7518_v46 = vadd.f32 %v7486_v1, %v7208_v50  ;;  %v7583_v60 = vsub.f32 %v7208_v50, %v7486_v1  ;;  %v7662_v3 = vsel %vm7534_vm4, %v7208_v50, 0.0  ;;  %v7719_v20 = vmul.f32 %v7208_v50, %v7208_v50 }
 0x58e   : > { %v7663_v22 = vadd.f32 %v7662_v3, %v7661_v2  ;;  %v14943_v2 = vld [vmem:[#allocation130_spill] sm:$0xff] }
 0x58f   : > { %7551 = vst.msk [vmem:[%s13123_s24 + $0x80] sm:$0xff] %vm7534_vm4, %v7518_v46  ;;  %v7783_v53 = vadd.f32 %v7751_v23, %v7719_v20  ;;  %v6741_v45 = vadd.f32 %v6685_v58, %v14943_v2  ;;  %v14944_v46 = vld [vmem:[#allocation80_spill] sm:$0xff] }
 0x590   : > { %7615 = vst.msk [vmem:[%s13133_s28 + $0x80] sm:$0xff] %vm7534_vm4, %v7583_v60  ;;  %v6398_v28 = vpop.f32.mrf.mxu2 }
 0x591   : > { %v7830_v49 = vsel %vm7534_vm4, %v7783_v53, 0.0  ;;  %v6460_v42 = vadd.f32 %v6398_v28, %v12747_v63  ;;  %v7488_v63 = vadd.f32 %v13448_v54, %v6739_v16  ;;  %v7490_v23 = vadd.f32 %v7434_v52, %v6741_v45  ;;  %v14945_v53 = vld [vmem:[#allocation254_spill] sm:$0xff] }
 0x592   : > { %v7831_v7 = vadd.f32 %v7830_v49, %v7829_v14 }
 0x593   : > { %v7209_v25 = vadd.f32 %v13432_v15, %v6460_v42  ;;  %v7437_v57 = vpop.f32.mrf.mxu1  ;;  %v7753_v51 = vmul.f32 %v7488_v63, %v7488_v63  ;;  %v7159_v55 = vpop.f32.mrf.mxu0 }
 0x595   : > { %v7519_v59 = vadd.f32 %v7487_v31, %v7209_v25  ;;  %v7584_v36 = vsub.f32 %v7209_v25, %v7487_v31  ;;  %v7664_v44 = vsel %vm7534_vm4, %v7209_v25, 0.0  ;;  %v7720_v8 = vmul.f32 %v7209_v25, %v7209_v25 }
 0x596   : > { %v7665_v32 = vadd.f32 %v7664_v44, %v7663_v22  ;;  %v7755_v22 = vmul.f32 %v7490_v23, %v7490_v23  ;;  %v6742_v31 = vadd.f32 %v6688_v13, %v14945_v53 }
 0x597   : > { %7552 = vst.msk [vmem:[%s13123_s24 + $0x88] sm:$0xff] %vm7534_vm4, %v7519_v59  ;;  %v7784_v37 = vadd.f32 %v7752_v9, %v7720_v8  ;;  %v14946_v59 = vld [vmem:[#allocation260_spill] sm:$0xff] }
 0x598   : > { %7616 = vst.msk [vmem:[%s13133_s28 + $0x88] sm:$0xff] %vm7534_vm4, %v7584_v36  ;;  %v6401_v15 = vpop.f32.mrf.mxu2  ;;  %v7491_v26 = vadd.f32 %v7437_v57, %v6742_v31 }
 0x599   : > { %v7832_v18 = vsel %vm7534_vm4, %v7784_v37, 0.0  ;;  %v6461_v35 = vadd.f32 %v6401_v15, %v12772_v47  ;;  %v7489_v47 = vadd.f32 %v7431_v29, %v6740_v17 }
 0x59a   : > { %v7833_v39 = vadd.f32 %v7832_v18, %v7831_v7  ;;  %v7756_v37 = vmul.f32 %v7491_v26, %v7491_v26 }
 0x59b   : > { %v7210_v48 = vadd.f32 %v7150_v6, %v6461_v35  ;;  %v7754_v11 = vmul.f32 %v7489_v47, %v7489_v47  ;;  %v7440_v1 = vpop.f32.mrf.mxu1  ;;  %v7162_v19 = vpop.f32.mrf.mxu0 }
 0x59d   : > { %v7520_v56 = vadd.f32 %v7488_v63, %v7210_v48  ;;  %v7585_v5 = vsub.f32 %v7210_v48, %v7488_v63  ;;  %v7666_v33 = vsel %vm7534_vm4, %v7210_v48, 0.0  ;;  %v7721_v54 = vmul.f32 %v7210_v48, %v7210_v48  ;;  %v14947_v63 = vld [vmem:[#allocation173_spill] sm:$0xff] }
 0x59e   : > { %v7667_v62 = vadd.f32 %v7666_v33, %v7665_v32  ;;  %v6743_v15 = vadd.f32 %v6691_v41, %v14947_v63  ;;  %v14948_v33 = vld [vmem:[#allocation51_spill] sm:$0xff] }
 0x59f   : > { %7553 = vst.msk [vmem:[%s13123_s24 + $0x90] sm:$0xff] %vm7534_vm4, %v7520_v56  ;;  %v7785_v43 = vadd.f32 %v7753_v51, %v7721_v54 }
 0x5a0   : > { %7617 = vst.msk [vmem:[%s13133_s28 + $0x90] sm:$0xff] %vm7534_vm4, %v7585_v5  ;;  %v6404_v12 = vpop.f32.mrf.mxu2  ;;  %v7492_v40 = vadd.f32 %v7440_v1, %v6743_v15 }
 0x5a1   : > { %v7834_v6 = vsel %vm7534_vm4, %v7785_v43, 0.0  ;;  %v6462_v24 = vadd.f32 %v6404_v12, %v14942_v38  ;;  %v14949_v43 = vld [vmem:[#allocation73_spill] sm:$0xff] }
 0x5a2   : > { %v7835_v30 = vadd.f32 %v7834_v6, %v7833_v39  ;;  %v7757_v41 = vmul.f32 %v7492_v40, %v7492_v40 }
 0x5a3   : > { %v7211_v10 = vadd.f32 %v7153_v34, %v6462_v24  ;;  %v6694_v34 = vpop.f32.mrf.mxu3  ;;  %v7443_v25 = vpop.f32.mrf.mxu1 }
 0x5a4   : > { %v7165_v36 = vpop.f32.mrf.mxu0 }
 0x5a5   : > { %v7521_v0 = vadd.f32 %v7489_v47, %v7211_v10  ;;  %v7586_v27 = vsub.f32 %v7211_v10, %v7489_v47  ;;  %v7668_v4 = vsel %vm7534_vm4, %v7211_v10, 0.0  ;;  %v7722_v14 = vmul.f32 %v7211_v10, %v7211_v10 }
 0x5a6   : > { %v7669_v29 = vadd.f32 %v7668_v4, %v7667_v62  ;;  %v6744_v47 = vadd.f32 %v6694_v34, %v14949_v43 }
 0x5a7   : > { %7554 = vst.msk [vmem:[%s13123_s24 + $0x98] sm:$0xff] %vm7534_vm4, %v7521_v0  ;;  %v7786_v50 = vadd.f32 %v7754_v11, %v7722_v14 }
 0x5a8   : > { %7618 = vst.msk [vmem:[%s13133_s28 + $0x98] sm:$0xff] %vm7534_vm4, %v7586_v27  ;;  %v6407_v61 = vpop.f32.mrf.mxu2  ;;  %v7493_v45 = vadd.f32 %v7443_v25, %v6744_v47  ;;  %v14950_v27 = vld [vmem:[#allocation185_spill] sm:$0xff] }
 0x5a9   : > { %v7836_v58 = vsel %vm7534_vm4, %v7786_v50, 0.0  ;;  %v6463_v60 = vadd.f32 %v6407_v61, %v14944_v46 }
 0x5aa   : > { %v7837_v3 = vadd.f32 %v7836_v58, %v7835_v30 }
 0x5ab   : > { %v7212_v20 = vadd.f32 %v7156_v21, %v6463_v60  ;;  %v6697_v8 = vpop.f32.mrf.mxu3  ;;  %v7446_v56 = vpop.f32.mrf.mxu1 }
 0x5ac   : > { %v7168_v12 = vpop.f32.mrf.mxu0 }
 0x5ad   : > { %v7522_v28 = vadd.f32 %v7490_v23, %v7212_v20  ;;  %v7587_v49 = vsub.f32 %v7212_v20, %v7490_v23  ;;  %v7670_v52 = vsel %vm7534_vm4, %v7212_v20, 0.0  ;;  %v7723_v42 = vmul.f32 %v7212_v20, %v7212_v20 }
 0x5ae   : > { %v7671_v7 = vadd.f32 %v7670_v52, %v7669_v29  ;;  %v7758_v23 = vmul.f32 %v7493_v45, %v7493_v45  ;;  %v14952_v52 = vld [vmem:[#allocation276_spill] sm:$0xff] }
 0x5af   : > { %7555 = vst.msk [vmem:[%s13123_s24 + $0xa0] sm:$0xff] %vm7534_vm4, %v7522_v28  ;;  %v7787_v9 = vadd.f32 %v7755_v22, %v7723_v42 }
 0x5b0   : > { %7619 = vst.msk [vmem:[%s13133_s28 + $0xa0] sm:$0xff] %vm7534_vm4, %v7587_v49  ;;  %v6410_v16 = vpop.f32.mrf.mxu2 }
 0x5b1   : > { %v7838_v21 = vsel %vm7534_vm4, %v7787_v9, 0.0  ;;  %v6464_v13 = vadd.f32 %v6410_v16, %v14946_v59 }
 0x5b2   : > { %v7839_v44 = vadd.f32 %v7838_v21, %v7837_v3 }
 0x5b3   : > { %v7213_v32 = vadd.f32 %v7159_v55, %v6464_v13  ;;  %v6700_v6 = vpop.f32.mrf.mxu3  ;;  %v7449_v29 = vpop.f32.mrf.mxu1 }
 0x5b4   : > { %v7171_v3 = vpop.f32.mrf.mxu0 }
 0x5b5   : > { %v7523_v18 = vadd.f32 %v7491_v26, %v7213_v32  ;;  %v7588_v35 = vsub.f32 %v7213_v32, %v7491_v26  ;;  %v7672_v39 = vsel %vm7534_vm4, %v7213_v32, 0.0  ;;  %v7724_v57 = vmul.f32 %v7213_v32, %v7213_v32  ;;  %v14953_v26 = vld [vmem:[#allocation81_spill] sm:$0xff] }
 0x5b6   : > { %v7673_v48 = vadd.f32 %v7672_v39, %v7671_v7  ;;  %v6746_v16 = vadd.f32 %v6700_v6, %v14953_v26  ;;  %v14954_v39 = vld [vmem:[#allocation7_spill] sm:$0xff] }
 0x5b7   : > { %7556 = vst.msk [vmem:[%s13123_s24 + $0xa8] sm:$0xff] %vm7534_vm4, %v7523_v18  ;;  %v7788_v51 = vadd.f32 %v7756_v37, %v7724_v57 }
 0x5b8   : > { %7620 = vst.msk [vmem:[%s13133_s28 + $0xa8] sm:$0xff] %vm7534_vm4, %v7588_v35  ;;  %v6413_v17 = vpop.f32.mrf.mxu2  ;;  %v7495_v37 = vadd.f32 %v7449_v29, %v6746_v16 }
 0x5b9   : > { %v7840_v5 = vsel %vm7534_vm4, %v7788_v51, 0.0  ;;  %v6465_v54 = vadd.f32 %v6413_v17, %v14948_v33  ;;  %v14955_v17 = vld [vmem:[#allocation135_spill] sm:$0xff] }
 0x5ba   : > { %v7841_v55 = vadd.f32 %v7840_v5, %v7839_v44 }
 0x5bb   : > { %v7214_v62 = vadd.f32 %v7162_v19, %v6465_v54  ;;  %v14951_v19 = vld [vmem:[#allocation12_spill] sm:$0xff]  ;;  %v6703_v22 = vpop.f32.mrf.mxu3  ;;  %v7452_v21 = vpop.f32.mrf.mxu1 }
 0x5bc   : > { %v6745_v61 = vadd.f32 %v6697_v8, %v14951_v19  ;;  %v7174_v63 = vpop.f32.mrf.mxu0 }
 0x5bd   : > { %v7524_v38 = vadd.f32 %v7492_v40, %v7214_v62  ;;  %v7589_v24 = vsub.f32 %v7214_v62, %v7492_v40  ;;  %v7674_v30 = vsel %vm7534_vm4, %v7214_v62, 0.0  ;;  %v7725_v10 = vmul.f32 %v7214_v62, %v7214_v62 }
 0x5be   : > { %v7675_v11 = vadd.f32 %v7674_v30, %v7673_v48  ;;  %v7494_v31 = vadd.f32 %v7446_v56, %v6745_v61  ;;  %v7760_v40 = vmul.f32 %v7495_v37, %v7495_v37  ;;  %v6747_v56 = vadd.f32 %v6703_v22, %v14955_v17 }
 0x5bf   : > { %7557 = vst.msk [vmem:[%s13123_s24 + $0xb0] sm:$0xff] %vm7534_vm4, %v7524_v38  ;;  %v7789_v2 = vadd.f32 %v7757_v41, %v7725_v10  ;;  %v14956_v38 = vld [vmem:[#allocation36_spill] sm:$0xff] }
 0x5c0   : > { %7621 = vst.msk [vmem:[%s13133_s28 + $0xb0] sm:$0xff] %vm7534_vm4, %v7589_v24  ;;  %v6416_v1 = vpop.f32.mrf.mxu2  ;;  %v7759_v9 = vmul.f32 %v7494_v31, %v7494_v31  ;;  %v7496_v47 = vadd.f32 %v7452_v21, %v6747_v56 }
 0x5c1   : > { %v7842_v0 = vsel %vm7534_vm4, %v7789_v2, 0.0  ;;  %v6466_v4 = vadd.f32 %v6416_v1, %v14950_v27  ;;  %v14957_v1 = vld [vmem:[#allocation179_spill] sm:$0xff] }
 0x5c2   : > { %v7843_v14 = vadd.f32 %v7842_v0, %v7841_v55 }
 0x5c3   : > { %v7215_v50 = vadd.f32 %v7165_v36, %v6466_v4  ;;  %v6706_v18 = vpop.f32.mrf.mxu3  ;;  %v7455_v41 = vpop.f32.mrf.mxu1 }
 0x5c4   : > { %v7177_v30 = vpop.f32.mrf.mxu0  ;;  %v6748_v0 = vadd.f32 %v6706_v18, %v14957_v1 }
 0x5c5   : > { %v7525_v34 = vadd.f32 %v7493_v45, %v7215_v50  ;;  %v7590_v58 = vsub.f32 %v7215_v50, %v7493_v45  ;;  %v7676_v46 = vsel %vm7534_vm4, %v7215_v50, 0.0  ;;  %v7726_v60 = vmul.f32 %v7215_v50, %v7215_v50 }
 0x5c6   : > { %v7677_v20 = vadd.f32 %v7676_v46, %v7675_v11  ;;  %v7761_v45 = vmul.f32 %v7496_v47, %v7496_v47  ;;  %v7497_v19 = vadd.f32 %v7455_v41, %v6748_v0  ;;  %v14958_v46 = vld [vmem:[#allocation28_spill] sm:$0xff] }
 0x5c7   : > { %7558 = vst.msk [vmem:[%s13123_s24 + $0xb8] sm:$0xff] %vm7534_vm4, %v7525_v34  ;;  %v7790_v53 = vadd.f32 %v7758_v23, %v7726_v60 }
 0x5c8   : > { %7622 = vst.msk [vmem:[%s13133_s28 + $0xb8] sm:$0xff] %vm7534_vm4, %v7590_v58  ;;  %v6419_v28 = vpop.f32.mrf.mxu2  ;;  %v7762_v22 = vmul.f32 %v7497_v19, %v7497_v19 }
 0x5c9   : > { %v7844_v49 = vsel %vm7534_vm4, %v7790_v53, 0.0  ;;  %v6467_v42 = vadd.f32 %v6419_v28, %v14952_v52  ;;  %v14959_v53 = vld [vmem:[#allocation274_spill] sm:$0xff] }
 0x5ca   : > { %v7845_v7 = vadd.f32 %v7844_v49, %v7843_v14 }
 0x5cb   : > { %v7216_v25 = vadd.f32 %v7168_v12, %v6467_v42  ;;  %v6709_v11 = vpop.f32.mrf.mxu3  ;;  %v7458_v34 = vpop.f32.mrf.mxu1 }
 0x5cc   : > { %v7180_v28 = vpop.f32.mrf.mxu0 }
 0x5cd   : > { %v7526_v59 = vadd.f32 %v7494_v31, %v7216_v25  ;;  %v7591_v13 = vsub.f32 %v7216_v25, %v7494_v31  ;;  %v7678_v36 = vsel %vm7534_vm4, %v7216_v25, 0.0  ;;  %v7727_v44 = vmul.f32 %v7216_v25, %v7216_v25 }
 0x5ce   : > { %v7679_v8 = vadd.f32 %v7678_v36, %v7677_v20  ;;  %v6749_v31 = vadd.f32 %v6709_v11, %v14959_v53 }
 0x5cf   : > { %7559 = vst.msk [vmem:[%s13123_s24 + $0xc0] sm:$0xff] %vm7534_vm4, %v7526_v59  ;;  %v7791_v32 = vadd.f32 %v7759_v9, %v7727_v44 }
 0x5d0   : > { %7623 = vst.msk [vmem:[%s13133_s28 + $0xc0] sm:$0xff] %vm7534_vm4, %v7591_v13  ;;  %v6422_v15 = vpop.f32.mrf.mxu2  ;;  %v7498_v16 = vadd.f32 %v7458_v34, %v6749_v31  ;;  %v14960_v13 = vld [vmem:[#allocation150_spill] sm:$0xff] }
 0x5d1   : > { %v7846_v35 = vsel %vm7534_vm4, %v7791_v32, 0.0  ;;  %v6468_v57 = vadd.f32 %v6422_v15, %v14954_v39 }
 0x5d2   : > { %v7847_v48 = vadd.f32 %v7846_v35, %v7845_v7 }
 0x5d3   : > { %v7217_v51 = vadd.f32 %v7171_v3, %v6468_v57  ;;  %v6712_v49 = vpop.f32.mrf.mxu3 }
 0x5d5   : > { %v7527_v5 = vadd.f32 %v7495_v37, %v7217_v51  ;;  %v7592_v33 = vsub.f32 %v7217_v51, %v7495_v37  ;;  %v7680_v54 = vsel %vm7534_vm4, %v7217_v51, 0.0  ;;  %v7728_v55 = vmul.f32 %v7217_v51, %v7217_v51 }
 0x5d6   : > { %v7681_v62 = vadd.f32 %v7680_v54, %v7679_v8  ;;  %v7461_v8 = vpop.f32.mrf.mxu1  ;;  %v7763_v37 = vmul.f32 %v7498_v16, %v7498_v16  ;;  %v14962_v54 = vld [vmem:[#allocation82_spill] sm:$0xff] }
 0x5d7   : > { %7560 = vst.msk [vmem:[%s13123_s24 + $0xc8] sm:$0xff] %vm7534_vm4, %v7527_v5  ;;  %v7792_v43 = vadd.f32 %v7760_v40, %v7728_v55 }
 0x5d8   : > { %7624 = vst.msk [vmem:[%s13133_s28 + $0xc8] sm:$0xff] %vm7534_vm4, %v7592_v33  ;;  %v6425_v12 = vpop.f32.mrf.mxu2 }
 0x5d9   : > { %v7848_v6 = vsel %vm7534_vm4, %v7792_v43, 0.0  ;;  %v6469_v24 = vadd.f32 %v6425_v12, %v14956_v38 }
 0x5da   : > { %v7849_v10 = vadd.f32 %v7848_v6, %v7847_v48  ;;  %v7183_v48 = vpop.f32.mrf.mxu0 }
 0x5db   : > { %v7218_v2 = vadd.f32 %v7174_v63, %v6469_v24  ;;  %v14961_v63 = vld [vmem:[#allocation78_spill] sm:$0xff]  ;;  %v6715_v40 = vpop.f32.mrf.mxu3 }
 0x5dc   : > { %v6750_v15 = vadd.f32 %v6712_v49, %v14961_v63 }
 0x5dd   : > { %v7528_v27 = vadd.f32 %v7496_v47, %v7218_v2  ;;  %v7593_v4 = vsub.f32 %v7218_v2, %v7496_v47  ;;  %v7682_v14 = vsel %vm7534_vm4, %v7218_v2, 0.0  ;;  %v7729_v29 = vmul.f32 %v7218_v2, %v7218_v2  ;;  %v14963_v47 = vld [vmem:[#allocation31_spill] sm:$0xff] }
 0x5de   : > { %v7683_v50 = vadd.f32 %v7682_v14, %v7681_v62  ;;  %v7499_v56 = vadd.f32 %v7461_v8, %v6750_v15  ;;  %v6751_v12 = vadd.f32 %v6715_v40, %v14963_v47  ;;  %v7464_v6 = vpop.f32.mrf.mxu1  ;;  %v14964_v14 = vld [vmem:[#allocation264_spill] sm:$0xff] }
 0x5df   : > { %7561 = vst.msk [vmem:[%s13123_s24 + $0xd0] sm:$0xff] %vm7534_vm4, %v7528_v27  ;;  %v7793_v23 = vadd.f32 %v7761_v45, %v7729_v29 }
 0x5e0   : > { %7625 = vst.msk [vmem:[%s13133_s28 + $0xd0] sm:$0xff] %vm7534_vm4, %v7593_v4  ;;  %v6428_v61 = vpop.f32.mrf.mxu2  ;;  %v7764_v43 = vmul.f32 %v7499_v56, %v7499_v56  ;;  %v7500_v45 = vadd.f32 %v7464_v6, %v6751_v12 }
 0x5e1   : > { %v7850_v58 = vsel %vm7534_vm4, %v7793_v23, 0.0  ;;  %v6470_v60 = vadd.f32 %v6428_v61, %v14958_v46  ;;  %v14965_v61 = vld [vmem:[#allocation141_spill] sm:$0xff] }
 0x5e2   : > { %v7851_v3 = vadd.f32 %v7850_v58, %v7849_v10  ;;  %v7186_v1 = vpop.f32.mrf.mxu0 }
 0x5e3   : > { %v7219_v20 = vadd.f32 %v7177_v30, %v6470_v60  ;;  %v6718_v27 = vpop.f32.mrf.mxu3 }
 0x5e4   : > { %v6752_v34 = vadd.f32 %v6718_v27, %v14965_v61 }
 0x5e5   : > { %v7529_v52 = vadd.f32 %v7497_v19, %v7219_v20  ;;  %v7594_v42 = vsub.f32 %v7219_v20, %v7497_v19  ;;  %v7684_v7 = vsel %vm7534_vm4, %v7219_v20, 0.0  ;;  %v7730_v25 = vmul.f32 %v7219_v20, %v7219_v20 }
 0x5e6   : > { %v7685_v9 = vadd.f32 %v7684_v7, %v7683_v50  ;;  %v7765_v19 = vmul.f32 %v7500_v45, %v7500_v45 }
 0x5e7   : > { %7562 = vst.msk [vmem:[%s13123_s24 + $0xd8] sm:$0xff] %vm7534_vm4, %v7529_v52  ;;  %v7794_v26 = vadd.f32 %v7762_v22, %v7730_v25  ;;  %v7467_v22 = vpop.f32.mrf.mxu1  ;;  %v14966_v52 = vld [vmem:[#allocation50_spill] sm:$0xff] }
 0x5e8   : > { %7626 = vst.msk [vmem:[%s13133_s28 + $0xd8] sm:$0xff] %vm7534_vm4, %v7594_v42  ;;  %v6431_v21 = vpop.f32.mrf.mxu2  ;;  %v7501_v31 = vadd.f32 %v7467_v22, %v6752_v34 }
 0x5e9   : > { %v7852_v59 = vsel %vm7534_vm4, %v7794_v26, 0.0  ;;  %v6471_v36 = vadd.f32 %v6431_v21, %v14960_v13 }
 0x5ea   : > { %v7853_v44 = vadd.f32 %v7852_v59, %v7851_v3  ;;  %v7189_v7 = vpop.f32.mrf.mxu0  ;;  %v7766_v26 = vmul.f32 %v7501_v31, %v7501_v31 }
 0x5eb   : > { %v7220_v32 = vadd.f32 %v7180_v28, %v6471_v36 }
 0x5ed   : > { %v7530_v18 = vadd.f32 %v7498_v16, %v7220_v32  ;;  %v7595_v35 = vsub.f32 %v7220_v32, %v7498_v16  ;;  %v7686_v39 = vsel %vm7534_vm4, %v7220_v32, 0.0  ;;  %v7731_v57 = vmul.f32 %v7220_v32, %v7220_v32 }
 0x5ee   : > { %v7687_v51 = vadd.f32 %v7686_v39, %v7685_v9 }
 0x5ef   : > { %7563 = vst.msk [vmem:[%s13123_s24 + $0xe0] sm:$0xff] %vm7534_vm4, %v7530_v18  ;;  %v7795_v17 = vadd.f32 %v7763_v37, %v7731_v57 }
 0x5f0   : > { %7627 = vst.msk [vmem:[%s13133_s28 + $0xe0] sm:$0xff] %vm7534_vm4, %v7595_v35  ;;  %v6434_v5 = vpop.f32.mrf.mxu2 }
 0x5f1   : > { %v7854_v33 = vsel %vm7534_vm4, %v7795_v17, 0.0  ;;  %v6472_v55 = vadd.f32 %v6434_v5, %v14962_v54 }
 0x5f2   : > { %v7855_v62 = vadd.f32 %v7854_v33, %v7853_v44 }
 0x5f3   : > { %v7221_v41 = vadd.f32 %v7183_v48, %v6472_v55 }
 0x5f5   : > { %v7531_v38 = vadd.f32 %v7499_v56, %v7221_v41  ;;  %v7596_v24 = vsub.f32 %v7221_v41, %v7499_v56  ;;  %v7688_v30 = vsel %vm7534_vm4, %v7221_v41, 0.0  ;;  %v7732_v10 = vmul.f32 %v7221_v41, %v7221_v41 }
 0x5f6   : > { %v7689_v11 = vadd.f32 %v7688_v30, %v7687_v51 }
 0x5f7   : > { %7564 = vst.msk [vmem:[%s13123_s24 + $0xe8] sm:$0xff] %vm7534_vm4, %v7531_v38  ;;  %v7796_v2 = vadd.f32 %v7764_v43, %v7732_v10 }
 0x5f8   : > { %7628 = vst.msk [vmem:[%s13133_s28 + $0xe8] sm:$0xff] %vm7534_vm4, %v7596_v24  ;;  %v6437_v0 = vpop.f32.mrf.mxu2 }
 0x5f9   : > { %v7856_v4 = vsel %vm7534_vm4, %v7796_v2, 0.0  ;;  %v6473_v29 = vadd.f32 %v6437_v0, %v14964_v14 }
 0x5fa   : > { %v7857_v50 = vadd.f32 %v7856_v4, %v7855_v62 }
 0x5fb   : > { %v7222_v23 = vadd.f32 %v7186_v1, %v6473_v29 }
 0x5fd   : > { %v7532_v58 = vadd.f32 %v7500_v45, %v7222_v23  ;;  %v7597_v46 = vsub.f32 %v7222_v23, %v7500_v45  ;;  %v7690_v60 = vsel %vm7534_vm4, %v7222_v23, 0.0  ;;  %v7733_v3 = vmul.f32 %v7222_v23, %v7222_v23 }
 0x5fe   : > { %v7691_v20 = vadd.f32 %v7690_v60, %v7689_v11 }
 0x5ff   : > { %7565 = vst.msk [vmem:[%s13123_s24 + $0xf0] sm:$0xff] %vm7534_vm4, %v7532_v58  ;;  %v7797_v53 = vadd.f32 %v7765_v19, %v7733_v3 }
 0x600   : > { %7629 = vst.msk [vmem:[%s13133_s28 + $0xf0] sm:$0xff] %vm7534_vm4, %v7597_v46  ;;  %v6440_v28 = vpop.f32.mrf.mxu2 }
 0x601   : > { %v7858_v49 = vsel %vm7534_vm4, %v7797_v53, 0.0  ;;  %v6474_v42 = vadd.f32 %v6440_v28, %v14966_v52 }
 0x602   : > { %v7859_v25 = vadd.f32 %v7858_v49, %v7857_v50 }
 0x603   : > { %v7223_v9 = vadd.f32 %v7189_v7, %v6474_v42 }
 0x605   : > { %v7533_v16 = vadd.f32 %v7501_v31, %v7223_v9  ;;  %v7598_v21 = vsub.f32 %v7223_v9, %v7501_v31  ;;  %v7692_v59 = vsel %vm7534_vm4, %v7223_v9, 0.0  ;;  %v7734_v13 = vmul.f32 %v7223_v9, %v7223_v9 }
 0x606   : > { %v7693_v36 = vadd.f32 %v7692_v59, %v7691_v20 }
 0x607   : > { %7566 = vst.msk [vmem:[%s13123_s24 + $0xf8] sm:$0xff] %vm7534_vm4, %v7533_v16  ;;  %v7798_v44 = vadd.f32 %v7766_v26, %v7734_v13 }
 0x608   : > { %7630 = vst.msk [vmem:[%s13133_s28 + $0xf8] sm:$0xff] %vm7534_vm4, %v7598_v21  ;;  %v7694_v8 = vrot.slane %v7693_v36, 4 }
 0x609   : > { %v7860_v32 = vsel %vm7534_vm4, %v7798_v44, 0.0 }
 0x60a   : > { %v7695_v37 = vadd.f32 %v7694_v8, %v7693_v36  ;;  %v7861_v63 = vadd.f32 %v7860_v32, %v7859_v25 }
 0x60c   : > { %v7696_v15 = vrot.slane %v7695_v37, 2  ;;  %v7862_v18 = vrot.slane %v7861_v63, 4 }
 0x60e   : > { %v7697_v35 = vadd.f32 %v7696_v15, %v7695_v37  ;;  %v7863_v39 = vadd.f32 %v7862_v18, %v7861_v63 }
 0x610   : > { %v7698_v57 = vrot.slane %v7697_v35, 1  ;;  %v7864_v48 = vrot.slane %v7863_v39, 2 }
 0x612   : > { %v7699_v51 = vadd.f32 %v7698_v57, %v7697_v35  ;;  %v7865_v40 = vadd.f32 %v7864_v48, %v7863_v39 }
 0x614   : > { %v7700_v17 = vmul.f32 2.0, %v7699_v51  ;;  %v7866_v56 = vrot.slane %v7865_v40, 1 }
 0x616   : > { %7702 = vst.msk [vmem:[%s368_s12] sm:$0x1] %vm7701_vm5, %v7700_v17  ;;  %v7867_v5 = vadd.f32 %v7866_v56, %v7865_v40 }
 0x618   : > { %v7868_v33 = vmul.f32 2.0, %v7867_v5 }
 0x61a   : > { %7869 = vst.msk [vmem:[%s371_s10] sm:$0x1] %vm7701_vm5, %v7868_v33 }
 0x61b PF: > { %s20_s27 = sadd.s32 1, %s8889_s27  }
 0x61c   : > { %p17_p7 = scmp.ge.s32.totalorder %s20_s27, 4  }
 0x61e   :  { %19 = sbr.rel (!%p17_p7) target bundleno = 1 (0x1), region = 138 }
 0x623   :  { %7931 = vsyncpa [#allocation3], 1 }
 0x624   :  { %7933 = vsyncpa [#allocation3 + $0x1], 1 }

</bundles_post_ra>
